<compile_context>
chip_gen: v7x
topology: tpu7x:2x2x1
jax: 0.10.0
libtpu: 0.0.40
codegen_flags: <defaults>
</compile_context>

<pallas_src>
import functools
import math

import jax
import jax.numpy as jnp
from jax.experimental import pallas as pl
from jax.experimental.pallas import tpu as pltpu


_VMEM_BUDGET_BYTES = 40 * 1024 * 1024     # double-buffered working-set budget
_VMEM_LIMIT_BYTES = 48 * 1024 * 1024      # scoped-VMEM limit (<= 64 MiB v7x)


def _round_up(v, m):
    return ((v + m - 1) // m) * m


def _choose_tm(M, tm_cap, K, Cout, in_itemsize, out_itemsize):
    """Pick the M-tile size: multiple of 8, VMEM-safe, >=8 blocks when M is big."""
    tm = min(tm_cap, _round_up(M, 8))
    # Prefer >=8 grid blocks (>=4 per TensorCore on v7x after the megacore
    # split) but never drop below 512 rows/tile (keeps ~85% HBM-roofline DMA).
    min_blocks = 8
    if pl.cdiv(M, tm) < min_blocks and M >= min_blocks * 512:
        tm = max(512, _round_up(pl.cdiv(M, min_blocks), 8))

    def footprint(t):
        return (2 * t * K * in_itemsize            # double-buffered x tiles
                + 2 * t * Cout * out_itemsize      # double-buffered out tiles
                + 2 * (K * Cout * 2 + Cout * 4))   # weight (bf16) + bias (f32)

    while tm > 8 and footprint(tm) > _VMEM_BUDGET_BYTES:
        tm = max(8, (tm // 2) // 8 * 8)
    return max(8, (tm // 8) * 8)


def _token_linear_kernel(x_ref, w_ref, b_ref, o_ref):
    # x_ref: (TM, K) native dtype; w_ref: (K, Cout) bf16; b_ref: (1, Cout) f32
    acc = jnp.dot(x_ref[...].astype(jnp.bfloat16), w_ref[...],
                  preferred_element_type=jnp.float32)
    o_ref[...] = (acc + b_ref[...]).astype(o_ref.dtype)


def prepare_token_learner_params(weight, bias):
    """One-time prep: PyTorch Conv1d weight (Cout, Cin, 1) -> (Cin, Cout) bf16,
    bias (Cout,) -> (1, Cout) f32.  Do this outside the per-call jit."""
    Cout, Cin, ksize = weight.shape
    assert ksize == 1, "TokenLearner conv is kernel_size=1"
    wf = jnp.asarray(weight).reshape(Cout, Cin).T.astype(jnp.bfloat16)
    b2 = jnp.asarray(bias).reshape(1, Cout).astype(jnp.float32)
    return wf, b2


@functools.partial(jax.jit, static_argnames=("tm_cap", "out_dtype"))
def token_learner_pallas(x, wf, b2, *, tm_cap=2048, out_dtype=None):
    """TokenLearner forward.

    x:  (B, N, Cin)   token-major activations (Cin = 1024 in the module)
    wf: (Cin, Cout)   bf16 weight from prepare_token_learner_params
    b2: (1, Cout)     f32 bias
    Returns (B, N, Cout) in `out_dtype` (defaults to x.dtype).
    """
    B, N, Cin = x.shape
    K, Cout = wf.shape
    assert K == Cin
    M = B * N

    out_dtype = x.dtype if out_dtype is None else out_dtype
    out_dtype = jnp.dtype(out_dtype)

    x2 = x.reshape(M, Cin)            # contiguous -> free reshape, no HBM pass
    tm = _choose_tm(M, tm_cap, K, Cout, x.dtype.itemsize, out_dtype.itemsize)
    grid = pl.cdiv(M, tm)             # partial final block OK (no M reduction)

    out = pl.pallas_call(
        _token_linear_kernel,
        out_shape=jax.ShapeDtypeStruct((M, Cout), out_dtype),
        grid_spec=pltpu.PrefetchScalarGridSpec(
            num_scalar_prefetch=0,
            grid=(grid,),
            in_specs=[
                pl.BlockSpec((tm, K), lambda i: (i, 0)),      # streamed x tile
                pl.BlockSpec((K, Cout), lambda i: (0, 0)),    # grid-invariant W
                pl.BlockSpec((1, Cout), lambda i: (0, 0)),    # grid-invariant b
            ],
            out_specs=pl.BlockSpec((tm, Cout), lambda i: (i, 0)),
        ),
        compiler_params=pltpu.CompilerParams(
            dimension_semantics=("parallel",),
            vmem_limit_bytes=_VMEM_LIMIT_BYTES,
        ),
    )(x2, wf, b2)
    return out.reshape(B, N, Cout)


# ----------------------------- references ----------------------------------

def _reference_token_learner_f32(x, weight, bias):
    # PyTorch semantics: permute -> Conv1d(Cin, Cout, 1) -> permute, in f32.
    w = weight.reshape(weight.shape[0], weight.shape[1])          # (Cout, Cin)
    return jnp.einsum("bnc,oc->bno", x, w) + bias[None, None, :]


def _reference_token_learner_bf16(x, wf, b2):
    # Same math as the kernel (bf16 inputs, f32 accumulation) in plain XLA.
    B, N, C = x.shape
    out = jnp.dot(x.reshape(B * N, C).astype(jnp.bfloat16), wf,
                  preferred_element_type=jnp.float32) + b2
    return out.reshape(B, N, -1).astype(x.dtype)


# ------------------------------- demo ---------------------------------------

if __name__ == "__main__":
    # Module hard-codes the 1024 -> 512 projection; keep those channel dims and
    # use a small token count: B=2, N=512 tokens -> M = 1024 rows.
    B, N, Cin, Cout = 2, 512, 1024, 512

    key = jax.random.PRNGKey(0)
    kx, kw, kb = jax.random.split(key, 3)

    x = jax.random.normal(kx, (B, N, Cin), dtype=jnp.float32)
    bound = 1.0 / math.sqrt(Cin)       # PyTorch Conv1d default init range
    weight = jax.random.uniform(kw, (Cout, Cin, 1), jnp.float32, -bound, bound)
    bias = jax.random.uniform(kb, (Cout,), jnp.float32, -bound, bound)

    wf, b2 = prepare_token_learner_params(weight, bias)

    # Default path (single tile here).
    out = jax.block_until_ready(token_learner_pallas(x, wf, b2))
    assert out.shape == (B, N, Cout), out.shape

    ref_bf16 = jax.block_until_ready(_reference_token_learner_bf16(x, wf, b2))
    ref_f32 = jax.block_until_ready(_reference_token_learner_f32(x, weight, bias))

    # Same-math (bf16 MXU) check.
    assert bool(jnp.allclose(out, ref_bf16, atol=1e-2, rtol=1e-2)), float(
        jnp.max(jnp.abs(out - ref_bf16)))
    # Full-precision PyTorch-semantics check (loose: bf16 inputs).
    assert bool(jnp.allclose(out, ref_f32, atol=6e-2, rtol=6e-2)), float(
        jnp.max(jnp.abs(out - ref_f32)))

    # Multi-tile grid with a partial final block (1024 rows, TM=384 -> 3 blocks).
    out_tiled = jax.block_until_ready(
        token_learner_pallas(x, wf, b2, tm_cap=384))
    assert bool(jnp.allclose(out_tiled, ref_bf16, atol=1e-2, rtol=1e-2)), float(
        jnp.max(jnp.abs(out_tiled - ref_bf16)))

    # bf16-output option for memory-bound v6e/v7x consumers.
    out_bf16 = jax.block_until_ready(
        token_learner_pallas(x, wf, b2, out_dtype=jnp.bfloat16))
    assert out_bf16.dtype == jnp.bfloat16
    assert bool(jnp.allclose(out_bf16.astype(jnp.float32), ref_f32,
                             atol=1e-1, rtol=1e-1)), float(
        jnp.max(jnp.abs(out_bf16.astype(jnp.float32) - ref_f32)))

    print("KERNEL_OK")
</pallas_src>

<mosaic_0001>
module attributes {stable_mosaic.version = 11 : i64} {
  func.func @_token_linear_kernel(%arg0: i32, %arg1: memref<1024x1024xf32, #tpu.memory_space<vmem>>, %arg2: memref<1024x512xbf16, #tpu.memory_space<vmem>>, %arg3: memref<1x512xf32, #tpu.memory_space<vmem>>, %arg4: memref<1024x512xf32, #tpu.memory_space<vmem>>) attributes {dimension_semantics = [#tpu.dimension_semantics<parallel>], iteration_bounds = array<i64: 1>, scalar_prefetch = 0 : i64, scratch_operands = 0 : i64, tpu.core_type = #tpu.core_type<tc>, window_params = [{transform_indices = @transform_0, window_bounds = array<i64: 1024, 1024>}, {pipeline_mode = #tpu.pipeline_mode<synchronous>, transform_indices = @transform_1, window_bounds = array<i64: 1024, 512>}, {pipeline_mode = #tpu.pipeline_mode<synchronous>, transform_indices = @transform_2, window_bounds = array<i64: 1, 512>}, {transform_indices = @transform_3, window_bounds = array<i64: 1024, 512>}]} {
    %c0 = arith.constant 0 : index
    %c0_0 = arith.constant 0 : index
    %0 = vector.load %arg1[%c0, %c0_0] : memref<1024x1024xf32, #tpu.memory_space<vmem>>, vector<1024x1024xf32>
    %1 = arith.truncf %0 : vector<1024x1024xf32> to vector<1024x1024xbf16>
    %c0_1 = arith.constant 0 : index
    %c0_2 = arith.constant 0 : index
    %2 = vector.load %arg2[%c0_1, %c0_2] : memref<1024x512xbf16, #tpu.memory_space<vmem>>, vector<1024x512xbf16>
    %cst = arith.constant dense<0.000000e+00> : vector<1024x512xf32>
    %3 = tpu.matmul %1, %2, %cst {dimension_numbers = #tpu.dot_dimension_numbers<[1], [0], [0], [1], [0, 0, 1, 1], [], []>} : vector<1024x1024xbf16>, vector<1024x512xbf16>, vector<1024x512xf32> -> vector<1024x512xf32>
    %c0_3 = arith.constant 0 : index
    %c0_4 = arith.constant 0 : index
    %4 = vector.load %arg3[%c0_3, %c0_4] : memref<1x512xf32, #tpu.memory_space<vmem>>, vector<1x512xf32>
    %5 = vector.broadcast %4 : vector<1x512xf32> to vector<1024x512xf32>
    %6 = arith.addf %3, %5 : vector<1024x512xf32>
    %c0_5 = arith.constant 0 : index
    %c0_6 = arith.constant 0 : index
    %7 = vector.load %arg4[%c0_5, %c0_6] : memref<1024x512xf32, #tpu.memory_space<vmem>>, vector<1024x512xf32>
    tpu.vector_store %arg4[%c0_5, %c0_6], %6 {strides = array<i32>} : memref<1024x512xf32, #tpu.memory_space<vmem>>, vector<1024x512xf32>,
    return
  }
  func.func @transform_0(%arg0: i32) -> (i32, i32) {
    %c0_i32 = arith.constant 0 : i32
    %c0_i32_0 = arith.constant 0 : i32
    return %arg0, %c0_i32 : i32, i32
  }
  func.func @transform_1(%arg0: i32) -> (i32, i32) {
    %c0_i32 = arith.constant 0 : i32
    %c0_i32_0 = arith.constant 0 : i32
    %c0_i32_1 = arith.constant 0 : i32
    return %c0_i32, %c0_i32_0 : i32, i32
  }
  func.func @transform_2(%arg0: i32) -> (i32, i32) {
    %c0_i32 = arith.constant 0 : i32
    %c0_i32_0 = arith.constant 0 : i32
    %c0_i32_1 = arith.constant 0 : i32
    return %c0_i32, %c0_i32_0 : i32, i32
  }
  func.func @transform_3(%arg0: i32) -> (i32, i32) {
    %c0_i32 = arith.constant 0 : i32
    %c0_i32_0 = arith.constant 0 : i32
    return %arg0, %c0_i32 : i32, i32
  }
}

</mosaic_0001>

<bundles_post_ra>
// kernel: token_learner_pallas.1
= control target key start
LH: loop header
LB: loop body
LE: loop exit
PB: predicated region body
PF: predicated region fallthrough
CT: control target
= control target key end

     0   :  { %8 = vsyncpa [#allocation3], 0  ;;  %s12452_s0 = inlined_call_operand.hbm [shape: f32[1024,1024], index: 0, kind: input, shape index: {}]   ;;  %s12453_s1 = inlined_call_operand.hbm [shape: bf16[1024,512], index: 1, kind: input, shape index: {}]   ;;  %s12454_s2 = inlined_call_operand.hbm [shape: f32[1,512], index: 2, kind: input, shape index: {}]   ;;  %s12455_s3 = inlined_call_operand.hbm [shape: f32[1024,512], index: 3, kind: output, shape index: {}]  }
   0x1   :  { %9 = vsyncpa [#allocation6], 0 }
   0x2   :  { %10 = vsyncpa [#allocation4], 0  ;;  %s11854_s12 = smov [#allocation5]   ;;  %s11760_s16 = scalar_lea.hbm %s12453_s1, 32768 }
   0x3   :  { %s28_s13 = sshll.u32 %s11854_s12, 4  ;;  %p11761_p0 = scmp.ne.s32.totalorder %s12453_s1, %s11760_s16  ;;  %s29_s13 = int_to_ptr.vmem [resolvable:$true] %s28_s13 }
   0x4   :  { %p11764_p1 = scmp.lt.u32.totalorder %s11760_s16, %s12453_s1 }
   0x6   :  { %p11766_p2 = pnand %p11764_p1, %p11761_p0 }
   0x8   :  { %11769 = shalt.err (!%p11766_p2)
}
   0x9   :  { %s11770_s21 = scalar_lea.vmem %s29_s13, 32768  ;;  %p11775_p4 = scmp.lt.s32.totalorder %s29_s13, %s29_s13 }
   0xa   :  { %p11771_p3 = scmp.ne.s32.totalorder %s29_s13, %s11770_s21  ;;  %p11776_p5 = scmp.lt.s32.totalorder %s11770_s21, %s11770_s21 }
   0xc   :  { %p11777_p6 = por %p11776_p5, %p11775_p4 }
   0xe   :  { %p11778_p7 = pnand %p11777_p6, %p11771_p3 }
  0x10   :  { %11781 = shalt.err (!%p11778_p7)
}
  0x11   :  { %s11855_s22 = smov 256   ;;  %s11856_s23 = smov 16  }
  0x12   :  { %34 = dma.hbm_to_vmem [thread:$0]  %s12453_s1, 32768, %s29_s13, [#allocation6], %s11855_s22, %s11855_s22, %s11856_s23  }
  0x13   :  { %s11857_s26 = smov [#allocation2]   ;;  %s11782_s30 = scalar_lea.hbm %s12452_s0, 131072 }
  0x14   :  { %s16_s27 = sshll.u32 %s11857_s26, 4  ;;  %p11783_p8 = scmp.ne.s32.totalorder %s12452_s0, %s11782_s30  ;;  %s17_s27 = int_to_ptr.vmem [resolvable:$true] %s16_s27 }
  0x15   :  { %p11786_p9 = scmp.lt.u32.totalorder %s11782_s30, %s12452_s0 }
  0x17   :  { %p11788_p10 = pnand %p11786_p9, %p11783_p8 }
  0x19   :  { %11791 = shalt.err (!%p11788_p10)
}
  0x1a   :  { %s11792_s8 = scalar_lea.vmem %s17_s27, 131072  ;;  %p11797_p12 = scmp.lt.s32.totalorder %s17_s27, %s17_s27 }
  0x1b   :  { %p11793_p11 = scmp.ne.s32.totalorder %s17_s27, %s11792_s8  ;;  %p11798_p13 = scmp.lt.s32.totalorder %s11792_s8, %s11792_s8 }
  0x1d   :  { %p11799_p0 = por %p11798_p13, %p11797_p12 }
  0x1f   :  { %p11800_p1 = pnand %p11799_p0, %p11793_p11 }
  0x21   :  { %11803 = shalt.err (!%p11800_p1)
}
  0x22   :  { %s11858_s1 = smov 1024   ;;  %s11859_s9 = smov 64  }
  0x23   :  { %22 = dma.hbm_to_vmem [thread:$0]  %s12452_s0, 131072, %s17_s27, [#allocation3], %s11858_s1, %s11858_s1, %s11859_s9  }
  0x24   :  { %s11860_s12 = smov [#allocation7]   ;;  %s11804_s16 = scalar_lea.hbm %s12454_s2, 64 }
  0x25   :  { %s41_s13 = sshll.u32 %s11860_s12, 4  ;;  %p11805_p2 = scmp.ne.s32.totalorder %s12454_s2, %s11804_s16  ;;  %s42_s13 = int_to_ptr.vmem [resolvable:$true] %s41_s13 }
  0x26   :  { %p11808_p3 = scmp.lt.u32.totalorder %s11804_s16, %s12454_s2 }
  0x28   :  { %p11810_p4 = pnand %p11808_p3, %p11805_p2 }
  0x2a   :  { %11813 = shalt.err (!%p11810_p4)
}
  0x2b   :  { %s11814_s21 = scalar_lea.vmem %s42_s13, 64  ;;  %p11819_p6 = scmp.lt.s32.totalorder %s42_s13, %s42_s13 }
  0x2c   :  { %p11815_p5 = scmp.ne.s32.totalorder %s42_s13, %s11814_s21  ;;  %p11820_p7 = scmp.lt.s32.totalorder %s11814_s21, %s11814_s21 }
  0x2e   :  { %p11821_p8 = por %p11820_p7, %p11819_p6 }
  0x30   :  { %p11822_p9 = pnand %p11821_p8, %p11815_p5 }
  0x32   :  { %11825 = shalt.err (!%p11822_p9)
}
  0x33   :  { %44 = dma.hbm_to_vmem [thread:$0]  %s12454_s2, 64, %s42_s13, [#allocation6]  }
  0x34   :  { %11848 = dma.done.wait [#allocation3], 131072  }
  0x35   :  { %11849 = vsyncadd [#allocation3], 4294836224 }
  0x36   :  { %11850 = dma.done.wait [#allocation6], 32832  }
  0x37   :  { %11851 = vsyncadd [#allocation6], 4294934464  ;;  %v11376_v0 = vld [vmem:[#allocation5 + $0x4] ss:$16 sps:$4 sm:$0xff]   ;;  %v11378_v1 = vld [vmem:[#allocation5 + $0xc] ss:$16 sps:$4 sm:$0xff]  }
  0x38   :  { %3148 = vmatprep.subr.bf16.mxu0 %v11376_v0  ;;  %v11380_v2 = vld [vmem:[#allocation5] ss:$16 sps:$4 sm:$0xff]   ;;  %v11381_v3 = vld [vmem:[#allocation5 + $0x8] ss:$16 sps:$4 sm:$0xff]   ;;  %5840 = vmatprep.subr.bf16.mxu1 %v11378_v1  ;;  %v11382_v4 = vld [vmem:[#allocation5 + $0x24] ss:$16 sps:$4 sm:$0xff]  }
  0x39   :  { %3149 = vmatpush1.bf16.msra.mxu0 %v11380_v2  ;;  %5841 = vmatpush1.bf16.msra.mxu1 %v11381_v3  ;;  %v11384_v5 = vld [vmem:[#allocation5 + $0x2c] ss:$16 sps:$4 sm:$0xff]   ;;  %v11386_v6 = vld [vmem:[#allocation5 + $0x20] ss:$16 sps:$4 sm:$0xff]   ;;  %v11387_v7 = vld [vmem:[#allocation5 + $0x28] ss:$16 sps:$4 sm:$0xff]  }
  0x3a   :  { %3150 = vmatprep.subr.bf16.mxu0 %v11382_v4  ;;  %5842 = vmatprep.subr.bf16.mxu1 %v11384_v5  ;;  %v11388_v8 = vld [vmem:[#allocation5 + $0x44] ss:$16 sps:$4 sm:$0xff]   ;;  %v11390_v9 = vld [vmem:[#allocation5 + $0x4c] ss:$16 sps:$4 sm:$0xff]   ;;  %v11392_v10 = vld [vmem:[#allocation5 + $0x40] ss:$16 sps:$4 sm:$0xff]  }
  0x3b   :  { %v11393_v11 = vld [vmem:[#allocation5 + $0x48] ss:$16 sps:$4 sm:$0xff]   ;;  %v11394_v12 = vld [vmem:[#allocation5 + $0x64] ss:$16 sps:$4 sm:$0xff]   ;;  %v11396_v13 = vld [vmem:[#allocation5 + $0x6c] ss:$16 sps:$4 sm:$0xff]  }
  0x3c   :  { %v11398_v14 = vld [vmem:[#allocation5 + $0x60] ss:$16 sps:$4 sm:$0xff]   ;;  %v11399_v15 = vld [vmem:[#allocation5 + $0x68] ss:$16 sps:$4 sm:$0xff]   ;;  %v11400_v16 = vld [vmem:[#allocation5 + $0x84] ss:$16 sps:$4 sm:$0xff]  }
  0x3d   :  { %3151 = vmatpush1.bf16.msra.mxu0 %v11386_v6  ;;  %5843 = vmatpush1.bf16.msra.mxu1 %v11387_v7  ;;  %v11402_v17 = vld [vmem:[#allocation5 + $0x8c] ss:$16 sps:$4 sm:$0xff]   ;;  %v11404_v18 = vld [vmem:[#allocation5 + $0x80] ss:$16 sps:$4 sm:$0xff]   ;;  %v11405_v19 = vld [vmem:[#allocation5 + $0x88] ss:$16 sps:$4 sm:$0xff]  }
  0x3e   :  { %3152 = vmatprep.subr.bf16.mxu0 %v11388_v8  ;;  %5844 = vmatprep.subr.bf16.mxu1 %v11390_v9  ;;  %v11406_v20 = vld [vmem:[#allocation5 + $0xa4] ss:$16 sps:$4 sm:$0xff]   ;;  %v11408_v21 = vld [vmem:[#allocation5 + $0xac] ss:$16 sps:$4 sm:$0xff]   ;;  %v11410_v22 = vld [vmem:[#allocation5 + $0xa0] ss:$16 sps:$4 sm:$0xff]  }
  0x3f   :  { %v11411_v23 = vld [vmem:[#allocation5 + $0xa8] ss:$16 sps:$4 sm:$0xff]   ;;  %v11412_v24 = vld [vmem:[#allocation5 + $0xc4] ss:$16 sps:$4 sm:$0xff]   ;;  %v11414_v25 = vld [vmem:[#allocation5 + $0xcc] ss:$16 sps:$4 sm:$0xff]  }
  0x40   :  { %v11416_v26 = vld [vmem:[#allocation5 + $0xc0] ss:$16 sps:$4 sm:$0xff]   ;;  %v11417_v27 = vld [vmem:[#allocation5 + $0xc8] ss:$16 sps:$4 sm:$0xff]   ;;  %v11418_v28 = vld [vmem:[#allocation5 + $0xe4] ss:$16 sps:$4 sm:$0xff]  }
  0x41   :  { %3153 = vmatpush1.bf16.msra.mxu0 %v11392_v10  ;;  %5845 = vmatpush1.bf16.msra.mxu1 %v11393_v11  ;;  %v11420_v29 = vld [vmem:[#allocation5 + $0xec] ss:$16 sps:$4 sm:$0xff]   ;;  %v11422_v30 = vld [vmem:[#allocation5 + $0xe0] ss:$16 sps:$4 sm:$0xff]   ;;  %v11423_v31 = vld [vmem:[#allocation5 + $0xe8] ss:$16 sps:$4 sm:$0xff]  }
  0x42   :  { %3154 = vmatprep.subr.bf16.mxu0 %v11394_v12  ;;  %5846 = vmatprep.subr.bf16.mxu1 %v11396_v13  ;;  %v11424_v32 = vld [vmem:[#allocation5 + $0x104] ss:$16 sps:$4 sm:$0xff]   ;;  %v11426_v33 = vld [vmem:[#allocation5 + $0x10c] ss:$16 sps:$4 sm:$0xff]   ;;  %v11428_v34 = vld [vmem:[#allocation5 + $0x100] ss:$16 sps:$4 sm:$0xff]  }
  0x43   :  { %v11429_v35 = vld [vmem:[#allocation5 + $0x108] ss:$16 sps:$4 sm:$0xff]   ;;  %v11430_v36 = vld [vmem:[#allocation5 + $0x124] ss:$16 sps:$4 sm:$0xff]   ;;  %v11432_v37 = vld [vmem:[#allocation5 + $0x12c] ss:$16 sps:$4 sm:$0xff]  }
  0x44   :  { %v11434_v38 = vld [vmem:[#allocation5 + $0x120] ss:$16 sps:$4 sm:$0xff]   ;;  %v11435_v39 = vld [vmem:[#allocation5 + $0x128] ss:$16 sps:$4 sm:$0xff]   ;;  %v11436_v40 = vld [vmem:[#allocation5 + $0x144] ss:$16 sps:$4 sm:$0xff]  }
  0x45   :  { %3155 = vmatpush1.bf16.msra.mxu0 %v11398_v14  ;;  %5847 = vmatpush1.bf16.msra.mxu1 %v11399_v15  ;;  %v11438_v41 = vld [vmem:[#allocation5 + $0x14c] ss:$16 sps:$4 sm:$0xff]   ;;  %v11440_v42 = vld [vmem:[#allocation5 + $0x140] ss:$16 sps:$4 sm:$0xff]   ;;  %v11441_v43 = vld [vmem:[#allocation5 + $0x148] ss:$16 sps:$4 sm:$0xff]  }
  0x46   :  { %3156 = vmatprep.subr.bf16.mxu0 %v11400_v16  ;;  %5848 = vmatprep.subr.bf16.mxu1 %v11402_v17  ;;  %v11442_v44 = vld [vmem:[#allocation5 + $0x164] ss:$16 sps:$4 sm:$0xff]   ;;  %v11444_v45 = vld [vmem:[#allocation5 + $0x16c] ss:$16 sps:$4 sm:$0xff]   ;;  %v11446_v47 = vld [vmem:[#allocation5 + $0x160] ss:$16 sps:$4 sm:$0xff]  }
  0x47   :  { %v55_v46 = vld [vmem:[#allocation2 + $0x8] sm:$0xff]  ;;  %v11448_v50 = vld [vmem:[#allocation5 + $0x184] ss:$16 sps:$4 sm:$0xff]   ;;  %v11452_v53 = vld [vmem:[#allocation5 + $0x180] ss:$16 sps:$4 sm:$0xff]   ;;  %s11861_s2 = smov [#allocation8]  }
  0x48   :  { %v11447_v48 = vld [vmem:[#allocation5 + $0x168] ss:$16 sps:$4 sm:$0xff]   ;;  %v11450_v52 = vld [vmem:[#allocation5 + $0x18c] ss:$16 sps:$4 sm:$0xff]   ;;  %v11454_v55 = vld [vmem:[#allocation5 + $0x1a4] ss:$16 sps:$4 sm:$0xff]  }
  0x49   :  { %3157 = vmatpush1.bf16.msra.mxu0 %v11404_v18  ;;  %5849 = vmatpush1.bf16.msra.mxu1 %v11405_v19  ;;  %v63_v49 = vld [vmem:[#allocation2 + $0x48] sm:$0xff]  ;;  %v11458_v57 = vld [vmem:[#allocation5 + $0x1a0] ss:$16 sps:$4 sm:$0xff]   ;;  %v11460_v59 = vld [vmem:[#allocation5 + $0x1c4] ss:$16 sps:$4 sm:$0xff]   ;;  %s9049_s23 = sshll.u32 %s11861_s2, 4  ;;  %s9050_s23 = int_to_ptr.vmem [resolvable:$true] %s9049_s23 }
  0x4a   :  { %3158 = vmatprep.subr.bf16.mxu0 %v11406_v20  ;;  %5850 = vmatprep.subr.bf16.mxu1 %v11408_v21  ;;  %v1079_v51 = vpack.c.bf16 %v63_v49, %v55_v46  ;;  %v11453_v54 = vld [vmem:[#allocation5 + $0x188] ss:$16 sps:$4 sm:$0xff]   ;;  %v11456_v56 = vld [vmem:[#allocation5 + $0x1ac] ss:$16 sps:$4 sm:$0xff]   ;;  %v11464_v61 = vld [vmem:[#allocation5 + $0x1c0] ss:$16 sps:$4 sm:$0xff]   ;;  %p11831_p11 = scmp.lt.s32.totalorder %s9050_s23, %s9050_s23 }
  0x4b   :  { %v11459_v58 = vld [vmem:[#allocation5 + $0x1a8] ss:$16 sps:$4 sm:$0xff]   ;;  %v11462_v60 = vld [vmem:[#allocation5 + $0x1cc] ss:$16 sps:$4 sm:$0xff]   ;;  %v11466_v63 = vld [vmem:[#allocation5 + $0x1e4] ss:$16 sps:$4 sm:$0xff]  }
  0x4c   :  { %3180 = vmatprep.mubr.bf16.mxu0 %v1079_v51  ;;  %5872 = vmatprep.mubr.bf16.mxu1 %v1079_v51  ;;  %v11465_v62 = vld [vmem:[#allocation5 + $0x1c8] ss:$16 sps:$4 sm:$0xff]   ;;  %v11468_v0 = vld [vmem:[#allocation5 + $0x1ec] ss:$16 sps:$4 sm:$0xff]   ;;  %v11470_v1 = vld [vmem:[#allocation5 + $0x1e0] ss:$16 sps:$4 sm:$0xff]  }
  0x4d   :  { %3159 = vmatpush1.bf16.msra.mxu0 %v11410_v22  ;;  %5851 = vmatpush1.bf16.msra.mxu1 %v11411_v23  ;;  %v11471_v2 = vld [vmem:[#allocation5 + $0x1e8] ss:$16 sps:$4 sm:$0xff]   ;;  %v54_v3 = vld [vmem:[#allocation2] sm:$0xff]  ;;  %v11477_v6 = vld [vmem:[#allocation5 + $0x20c] ss:$16 sps:$4 sm:$0xff]   ;;  %s11826_s24 = scalar_lea.vmem %s9050_s23, 65536 }
  0x4e   :  { %3160 = vmatprep.subr.bf16.mxu0 %v11412_v24  ;;  %5852 = vmatprep.subr.bf16.mxu1 %v11414_v25  ;;  %v62_v4 = vld [vmem:[#allocation2 + $0x40] sm:$0xff]  ;;  %v71_v7 = vld [vmem:[#allocation2 + $0x88] sm:$0xff]  ;;  %p11827_p10 = scmp.ne.s32.totalorder %s9050_s23, %s11826_s24  ;;  %p11832_p12 = scmp.lt.s32.totalorder %s11826_s24, %s11826_s24 }
  0x4f   :  { %v11474_v5 = vld [vmem:[#allocation5 + $0x204] ss:$16 sps:$4 sm:$0xff]   ;;  %v79_v8 = vld [vmem:[#allocation2 + $0xc8] sm:$0xff]  ;;  %v1078_v9 = vpack.c.bf16 %v62_v4, %v54_v3  ;;  %v11472_v10 = vld [vmem:[#allocation5 + $0x200] ss:$16 sps:$4 sm:$0xff]  }
  0x50   :  { %v11475_v11 = vld [vmem:[#allocation5 + $0x208] ss:$16 sps:$4 sm:$0xff]   ;;  %v1087_v12 = vpack.c.bf16 %v79_v8, %v71_v7  ;;  %v70_v13 = vld [vmem:[#allocation2 + $0x80] sm:$0xff]  ;;  %v11483_v16 = vld [vmem:[#allocation5 + $0x22c] ss:$16 sps:$4 sm:$0xff]   ;;  %p11833_p13 = por %p11832_p12, %p11831_p11 }
  0x51   :  { %3161 = vmatpush1.bf16.msra.mxu0 %v11416_v26  ;;  %5853 = vmatpush1.bf16.msra.mxu1 %v11417_v27  ;;  %v78_v14 = vld [vmem:[#allocation2 + $0xc0] sm:$0xff]  ;;  %v87_v17 = vld [vmem:[#allocation2 + $0x108] sm:$0xff] }
  0x52   :  { %3162 = vmatprep.subr.bf16.mxu0 %v11418_v28  ;;  %5854 = vmatprep.subr.bf16.mxu1 %v11420_v29  ;;  %v11480_v15 = vld [vmem:[#allocation5 + $0x224] ss:$16 sps:$4 sm:$0xff]   ;;  %v95_v18 = vld [vmem:[#allocation2 + $0x148] sm:$0xff]  ;;  %v11478_v19 = vld [vmem:[#allocation5 + $0x220] ss:$16 sps:$4 sm:$0xff]   ;;  %v1086_v23 = vpack.c.bf16 %v78_v14, %v70_v13  ;;  %p11834_p0 = pnand %p11833_p13, %p11827_p10 }
  0x53   :  { %v11481_v20 = vld [vmem:[#allocation5 + $0x228] ss:$16 sps:$4 sm:$0xff]   ;;  %v11486_v21 = vld [vmem:[#allocation5 + $0x244] ss:$16 sps:$4 sm:$0xff]   ;;  %v11489_v22 = vld [vmem:[#allocation5 + $0x24c] ss:$16 sps:$4 sm:$0xff]   ;;  %v1095_v24 = vpack.c.bf16 %v95_v18, %v87_v17 }
  0x54   :  { %v11484_v25 = vld [vmem:[#allocation5 + $0x240] ss:$16 sps:$4 sm:$0xff]   ;;  %v11487_v26 = vld [vmem:[#allocation5 + $0x248] ss:$16 sps:$4 sm:$0xff]   ;;  %v11492_v28 = vld [vmem:[#allocation5 + $0x264] ss:$16 sps:$4 sm:$0xff]  }
  0x55   :  { %3163 = vmatpush1.bf16.msra.mxu0 %v11422_v30  ;;  %5855 = vmatpush1.bf16.msra.mxu1 %v11423_v31  ;;  %v86_v27 = vld [vmem:[#allocation2 + $0x100] sm:$0xff]  ;;  %v11495_v29 = vld [vmem:[#allocation5 + $0x26c] ss:$16 sps:$4 sm:$0xff]  }
  0x56   :  { %3164 = vmatprep.subr.bf16.mxu0 %v11424_v32  ;;  %5856 = vmatprep.subr.bf16.mxu1 %v11426_v33  ;;  %v94_v30 = vld [vmem:[#allocation2 + $0x140] sm:$0xff]  ;;  %v103_v31 = vld [vmem:[#allocation2 + $0x188] sm:$0xff] }
  0x57   :  { %v111_v32 = vld [vmem:[#allocation2 + $0x1c8] sm:$0xff]  ;;  %v11490_v33 = vld [vmem:[#allocation5 + $0x260] ss:$16 sps:$4 sm:$0xff]   ;;  %v11510_v18 = vld [vmem:[#allocation5 + $0x2c4] ss:$16 sps:$4 sm:$0xff]  }
  0x58   :  { %v135_v49 = vld [vmem:[#allocation2 + $0x288] sm:$0xff]  ;;  %v11508_v17 = vld [vmem:[#allocation5 + $0x2c0] ss:$16 sps:$4 sm:$0xff]  }
  0x59   :  { %3165 = vmatpush1.bf16.msra.mxu0 %v11428_v34  ;;  %5857 = vmatpush1.bf16.msra.mxu1 %v11429_v35  ;;  %v11493_v34 = vld [vmem:[#allocation5 + $0x268] ss:$16 sps:$4 sm:$0xff]   ;;  %v11498_v35 = vld [vmem:[#allocation5 + $0x284] ss:$16 sps:$4 sm:$0xff]  }
  0x5a   :  { %3166 = vmatprep.subr.bf16.mxu0 %v11430_v36  ;;  %5858 = vmatprep.subr.bf16.mxu1 %v11432_v37  ;;  %v11501_v36 = vld [vmem:[#allocation5 + $0x28c] ss:$16 sps:$4 sm:$0xff]   ;;  %v1094_v37 = vpack.c.bf16 %v94_v30, %v86_v27  ;;  %v214_v27 = vld [vmem:[#allocation2 + $0x500] sm:$0xff] }
  0x5b   :  { %v183_v7 = vld [vmem:[#allocation2 + $0x408] sm:$0xff] }
  0x5c   :  { %v191_v8 = vld [vmem:[#allocation2 + $0x448] sm:$0xff] }
  0x5d   :  { %3167 = vmatpush1.bf16.msra.mxu0 %v11434_v38  ;;  %5859 = vmatpush1.bf16.msra.mxu1 %v11435_v39  ;;  %v1103_v38 = vpack.c.bf16 %v111_v32, %v103_v31  ;;  %v11496_v39 = vld [vmem:[#allocation5 + $0x280] ss:$16 sps:$4 sm:$0xff]   ;;  %v199_v13 = vld [vmem:[#allocation2 + $0x488] sm:$0xff] }
  0x5e   :  { %3168 = vmatprep.subr.bf16.mxu0 %v11436_v40  ;;  %5860 = vmatprep.subr.bf16.mxu1 %v11438_v41  ;;  %v11499_v40 = vld [vmem:[#allocation5 + $0x288] ss:$16 sps:$4 sm:$0xff]   ;;  %v102_v41 = vld [vmem:[#allocation2 + $0x180] sm:$0xff] }
  0x5f   :  { %v207_v14 = vld [vmem:[#allocation2 + $0x4c8] sm:$0xff] }
  0x60   :  { %v239_v30 = vld [vmem:[#allocation2 + $0x5c8] sm:$0xff] }
  0x61   :  { %3169 = vmatpush1.bf16.msra.mxu0 %v11440_v42  ;;  %5861 = vmatpush1.bf16.msra.mxu1 %v11441_v43  ;;  %v110_v42 = vld [vmem:[#allocation2 + $0x1c0] sm:$0xff]  ;;  %v119_v43 = vld [vmem:[#allocation2 + $0x208] sm:$0xff] }
  0x62   :  { %3170 = vmatprep.subr.bf16.mxu0 %v11442_v44  ;;  %5862 = vmatprep.subr.bf16.mxu1 %v11444_v45  ;;  %v127_v44 = vld [vmem:[#allocation2 + $0x248] sm:$0xff]  ;;  %v1102_v45 = vpack.c.bf16 %v110_v42, %v102_v41 }
  0x63   :  { %v1111_v46 = vpack.c.bf16 %v127_v44, %v119_v43  ;;  %v263_v41 = vld [vmem:[#allocation2 + $0x688] sm:$0xff] }
  0x64   :  { %v271_v42 = vld [vmem:[#allocation2 + $0x6c8] sm:$0xff] }
  0x65   :  { %3171 = vmatpush1.bf16.msra.mxu0 %v11446_v47  ;;  %5863 = vmatpush1.bf16.msra.mxu1 %v11447_v48  ;;  %v118_v47 = vld [vmem:[#allocation2 + $0x200] sm:$0xff]  ;;  %v1183_v44 = vpack.c.bf16 %v271_v42, %v263_v41  ;;  %v11531_v42 = vld [vmem:[#allocation5 + $0x32c] ss:$16 sps:$4 sm:$0xff]  }
  0x66   :  { %3172 = vmatprep.subr.bf16.mxu0 %v11448_v50  ;;  %5864 = vmatprep.subr.bf16.mxu1 %v11450_v52  ;;  %v126_v48 = vld [vmem:[#allocation2 + $0x240] sm:$0xff]  ;;  %v143_v50 = vld [vmem:[#allocation2 + $0x2c8] sm:$0xff] }
  0x67   :  { %v1110_v51 = vpack.c.bf16 %v126_v48, %v118_v47  ;;  %v1119_v52 = vpack.c.bf16 %v143_v50, %v135_v49  ;;  %v11517_v47 = vld [vmem:[#allocation5 + $0x2e8] ss:$16 sps:$4 sm:$0xff]   ;;  %v262_v48 = vld [vmem:[#allocation2 + $0x680] sm:$0xff]  ;;  %v11519_v50 = vld [vmem:[#allocation5 + $0x2ec] ss:$16 sps:$4 sm:$0xff]  }
  0x68   :  { %v270_v49 = vld [vmem:[#allocation2 + $0x6c0] sm:$0xff] }
  0x69   :  { %3173 = vmatpush1.bf16.msra.mxu0 %v11452_v53  ;;  %5865 = vmatpush1.bf16.msra.mxu1 %v11453_v54  ;;  %v11502_v53 = vld [vmem:[#allocation5 + $0x2a0] ss:$16 sps:$4 sm:$0xff]   ;;  %v11504_v54 = vld [vmem:[#allocation5 + $0x2a4] ss:$16 sps:$4 sm:$0xff]  }
  0x6a   :  { %3174 = vmatprep.subr.bf16.mxu0 %v11454_v55  ;;  %5866 = vmatprep.subr.bf16.mxu1 %v11456_v56  ;;  %v11505_v55 = vld [vmem:[#allocation5 + $0x2a8] ss:$16 sps:$4 sm:$0xff]   ;;  %v134_v56 = vld [vmem:[#allocation2 + $0x280] sm:$0xff] }
  0x6b   :  { %v398_v41 = vld [vmem:[#allocation2 + $0xac0] sm:$0xff] }
  0x6d   :  { %3175 = vmatpush1.bf16.msra.mxu0 %v11458_v57  ;;  %5867 = vmatpush1.bf16.msra.mxu1 %v11459_v58  ;;  %v142_v57 = vld [vmem:[#allocation2 + $0x2c0] sm:$0xff]  ;;  %v11507_v58 = vld [vmem:[#allocation5 + $0x2ac] ss:$16 sps:$4 sm:$0xff]  }
  0x6e   :  { %3176 = vmatprep.subr.bf16.mxu0 %v11460_v59  ;;  %5868 = vmatprep.subr.bf16.mxu1 %v11462_v60  ;;  %v151_v59 = vld [vmem:[#allocation2 + $0x308] sm:$0xff] }
  0x6f   :  { %v159_v60 = vld [vmem:[#allocation2 + $0x348] sm:$0xff] }
  0x71   :  { %3177 = vmatpush1.bf16.msra.mxu0 %v11464_v61  ;;  %5869 = vmatpush1.bf16.msra.mxu1 %v11465_v62  ;;  %v1118_v61 = vpack.c.bf16 %v142_v57, %v134_v56  ;;  %v1127_v62 = vpack.c.bf16 %v159_v60, %v151_v59  ;;  %v286_v56 = vld [vmem:[#allocation2 + $0x740] sm:$0xff]  ;;  %v295_v57 = vld [vmem:[#allocation2 + $0x788] sm:$0xff] }
  0x72   :  { %3178 = vmatprep.subr.bf16.mxu0 %v11466_v63  ;;  %5870 = vmatprep.subr.bf16.mxu1 %v11468_v0  ;;  %v150_v63 = vld [vmem:[#allocation2 + $0x300] sm:$0xff] }
  0x73   :  { %v158_v0 = vld [vmem:[#allocation2 + $0x340] sm:$0xff] }
  0x74   :  { %v1126_v3 = vpack.c.bf16 %v158_v0, %v150_v63  ;;  %v311_v63 = vld [vmem:[#allocation2 + $0x808] sm:$0xff] }
  0x75   :  { %3179 = vmatpush1.bf16.msra.mxu0 %v11470_v1  ;;  %5871 = vmatpush1.bf16.msra.mxu1 %v11471_v2  ;;  %v167_v1 = vld [vmem:[#allocation2 + $0x388] sm:$0xff] }
  0x76   :  { %3821 = vmatprep.subr.bf16.mxu0 %v11474_v5  ;;  %6513 = vmatprep.subr.bf16.mxu1 %v11477_v6  ;;  %v175_v2 = vld [vmem:[#allocation2 + $0x3c8] sm:$0xff]  ;;  %v166_v5 = vld [vmem:[#allocation2 + $0x380] sm:$0xff] }
  0x77   :  { %v1135_v4 = vpack.c.bf16 %v175_v2, %v167_v1  ;;  %v174_v6 = vld [vmem:[#allocation2 + $0x3c0] sm:$0xff]  ;;  %v319_v0 = vld [vmem:[#allocation2 + $0x848] sm:$0xff] }
  0x78   :  { %3181 = vmatmul.mubr.bf16.vlgmr.msra.gmra.mrb[0].mxu0 %v1078_v9  ;;  %5873 = vmatmul.mubr.bf16.vlgmr.msra.gmra.mrb[0].mxu1 %v1078_v9  ;;  %v1134_v9 = vpack.c.bf16 %v174_v6, %v166_v5  ;;  %v1207_v2 = vpack.c.bf16 %v319_v0, %v311_v63  ;;  %v327_v5 = vld [vmem:[#allocation2 + $0x888] sm:$0xff] }
  0x79   :  { %3822 = vmatpush1.bf16.msra.mxu0 %v11472_v10  ;;  %6514 = vmatpush1.bf16.msra.mxu1 %v11475_v11  ;;  %v1143_v10 = vpack.c.bf16 %v191_v8, %v183_v7  ;;  %v182_v11 = vld [vmem:[#allocation2 + $0x400] sm:$0xff]  ;;  %v335_v6 = vld [vmem:[#allocation2 + $0x8c8] sm:$0xff] }
  0x7a   :  { %3190 = vmatprep.mubr.bf16.mxu0 %v1087_v12  ;;  %5882 = vmatprep.mubr.bf16.mxu1 %v1087_v12  ;;  %v190_v12 = vld [vmem:[#allocation2 + $0x440] sm:$0xff]  ;;  %v1215_v8 = vpack.c.bf16 %v335_v6, %v327_v5  ;;  %v11537_v6 = vld [vmem:[#allocation5 + $0x34c] ss:$16 sps:$4 sm:$0xff]  }
  0x7b   :  { %3823 = vmatprep.subr.bf16.mxu0 %v11480_v15  ;;  %6515 = vmatprep.subr.bf16.mxu1 %v11483_v16  ;;  %v1142_v15 = vpack.c.bf16 %v190_v12, %v182_v11  ;;  %v1151_v16 = vpack.c.bf16 %v207_v14, %v199_v13  ;;  %v11523_v11 = vld [vmem:[#allocation5 + $0x308] ss:$16 sps:$4 sm:$0xff]   ;;  %v326_v12 = vld [vmem:[#allocation2 + $0x880] sm:$0xff]  ;;  %v11525_v14 = vld [vmem:[#allocation5 + $0x30c] ss:$16 sps:$4 sm:$0xff]  }
  0x7c   :  { %v334_v13 = vld [vmem:[#allocation2 + $0x8c0] sm:$0xff] }
  0x7d   :  { %3824 = vmatpush1.bf16.msra.mxu0 %v11478_v19  ;;  %6516 = vmatpush1.bf16.msra.mxu1 %v11481_v20  ;;  %v11511_v19 = vld [vmem:[#allocation5 + $0x2c8] ss:$16 sps:$4 sm:$0xff]   ;;  %v198_v20 = vld [vmem:[#allocation2 + $0x480] sm:$0xff] }
  0x7e   :  { %3825 = vmatprep.subr.bf16.mxu0 %v11486_v21  ;;  %6517 = vmatprep.subr.bf16.mxu1 %v11489_v22  ;;  %v206_v21 = vld [vmem:[#allocation2 + $0x4c0] sm:$0xff]  ;;  %v11513_v22 = vld [vmem:[#allocation5 + $0x2cc] ss:$16 sps:$4 sm:$0xff]  }
  0x7f   :  { %v462_v5 = vld [vmem:[#allocation2 + $0xcc0] sm:$0xff] }
  0x80   :  { %3191 = vmatmul.mubr.bf16.gmra.mrb[4].mxu0 %v1086_v23  ;;  %5883 = vmatmul.mubr.bf16.gmra.mrb[4].mxu1 %v1086_v23  ;;  %v215_v23 = vld [vmem:[#allocation2 + $0x508] sm:$0xff] }
  0x81   :  { %3200 = vmatprep.mubr.bf16.mxu0 %v1095_v24  ;;  %5892 = vmatprep.mubr.bf16.mxu1 %v1095_v24  ;;  %v223_v24 = vld [vmem:[#allocation2 + $0x548] sm:$0xff] }
  0x82   :  { %3826 = vmatpush1.bf16.msra.mxu0 %v11484_v25  ;;  %6518 = vmatpush1.bf16.msra.mxu1 %v11487_v26  ;;  %v1150_v25 = vpack.c.bf16 %v206_v21, %v198_v20  ;;  %v1159_v26 = vpack.c.bf16 %v223_v24, %v215_v23  ;;  %v350_v20 = vld [vmem:[#allocation2 + $0x940] sm:$0xff]  ;;  %v359_v21 = vld [vmem:[#allocation2 + $0x988] sm:$0xff] }
  0x83   :  { %3827 = vmatprep.subr.bf16.mxu0 %v11492_v28  ;;  %6519 = vmatprep.subr.bf16.mxu1 %v11495_v29  ;;  %v222_v28 = vld [vmem:[#allocation2 + $0x540] sm:$0xff]  ;;  %v231_v29 = vld [vmem:[#allocation2 + $0x588] sm:$0xff] }
  0x84   :  { %v1158_v31 = vpack.c.bf16 %v222_v28, %v214_v27  ;;  %v1167_v32 = vpack.c.bf16 %v239_v30, %v231_v29  ;;  %v375_v27 = vld [vmem:[#allocation2 + $0xa08] sm:$0xff] }
  0x85   :  { %v383_v28 = vld [vmem:[#allocation2 + $0xa48] sm:$0xff] }
  0x86   :  { %3828 = vmatpush1.bf16.msra.mxu0 %v11490_v33  ;;  %6520 = vmatpush1.bf16.msra.mxu1 %v11493_v34  ;;  %v230_v33 = vld [vmem:[#allocation2 + $0x580] sm:$0xff]  ;;  %v1239_v30 = vpack.c.bf16 %v383_v28, %v375_v27 }
  0x87   :  { %3829 = vmatprep.subr.bf16.mxu0 %v11498_v35  ;;  %6521 = vmatprep.subr.bf16.mxu1 %v11501_v36  ;;  %v238_v34 = vld [vmem:[#allocation2 + $0x5c0] sm:$0xff]  ;;  %v247_v35 = vld [vmem:[#allocation2 + $0x608] sm:$0xff] }
  0x88   :  { %3201 = vmatmul.mubr.bf16.gmra.mrb[8].mxu0 %v1094_v37  ;;  %5893 = vmatmul.mubr.bf16.gmra.mrb[8].mxu1 %v1094_v37  ;;  %v255_v36 = vld [vmem:[#allocation2 + $0x648] sm:$0xff]  ;;  %v1166_v37 = vpack.c.bf16 %v238_v34, %v230_v33 }
  0x89   :  { %3210 = vmatprep.mubr.bf16.mxu0 %v1103_v38  ;;  %5902 = vmatprep.mubr.bf16.mxu1 %v1103_v38  ;;  %v1175_v38 = vpack.c.bf16 %v255_v36, %v247_v35  ;;  %v391_v33 = vld [vmem:[#allocation2 + $0xa88] sm:$0xff] }
  0x8a   :  { %3830 = vmatpush1.bf16.msra.mxu0 %v11496_v39  ;;  %6522 = vmatpush1.bf16.msra.mxu1 %v11499_v40  ;;  %v246_v39 = vld [vmem:[#allocation2 + $0x600] sm:$0xff]  ;;  %v399_v34 = vld [vmem:[#allocation2 + $0xac8] sm:$0xff] }
  0x8b   :  { %3831 = vmatprep.subr.bf16.mxu0 %v11504_v54  ;;  %6523 = vmatprep.subr.bf16.mxu1 %v11507_v58  ;;  %v254_v40 = vld [vmem:[#allocation2 + $0x640] sm:$0xff]  ;;  %v303_v58 = vld [vmem:[#allocation2 + $0x7c8] sm:$0xff]  ;;  %v1247_v36 = vpack.c.bf16 %v399_v34, %v391_v33 }
  0x8c   :  { %v1174_v43 = vpack.c.bf16 %v254_v40, %v246_v39  ;;  %v1199_v60 = vpack.c.bf16 %v303_v58, %v295_v57  ;;  %v11529_v39 = vld [vmem:[#allocation5 + $0x328] ss:$16 sps:$4 sm:$0xff]   ;;  %v390_v40 = vld [vmem:[#allocation2 + $0xa80] sm:$0xff]  ;;  %v11543_v34 = vld [vmem:[#allocation5 + $0x36c] ss:$16 sps:$4 sm:$0xff]  }
  0x8d   :  { %v526_v33 = vld [vmem:[#allocation2 + $0xec0] sm:$0xff] }
  0x8e   :  { %3832 = vmatpush1.bf16.msra.mxu0 %v11502_v53  ;;  %6524 = vmatpush1.bf16.msra.mxu1 %v11505_v55  ;;  %v1182_v53 = vpack.c.bf16 %v270_v49, %v262_v48  ;;  %v278_v55 = vld [vmem:[#allocation2 + $0x700] sm:$0xff]  ;;  %v423_v49 = vld [vmem:[#allocation2 + $0xb88] sm:$0xff] }
  0x8f   :  { %3833 = vmatprep.subr.bf16.mxu0 %v11510_v18  ;;  %6525 = vmatprep.subr.bf16.mxu1 %v11513_v22  ;;  %v1190_v59 = vpack.c.bf16 %v286_v56, %v278_v55  ;;  %v367_v22 = vld [vmem:[#allocation2 + $0x9c8] sm:$0xff]  ;;  %v414_v48 = vld [vmem:[#allocation2 + $0xb40] sm:$0xff] }
  0x90   :  { %3211 = vmatmul.mubr.bf16.gmra.mrb[12].mxu0 %v1102_v45  ;;  %5903 = vmatmul.mubr.bf16.gmra.mrb[12].mxu1 %v1102_v45  ;;  %v11514_v45 = vld [vmem:[#allocation5 + $0x2e0] ss:$16 sps:$4 sm:$0xff]   ;;  %v1231_v24 = vpack.c.bf16 %v367_v22, %v359_v21  ;;  %v439_v55 = vld [vmem:[#allocation2 + $0xc08] sm:$0xff] }
  0x91   :  { %3220 = vmatprep.mubr.bf16.mxu0 %v1111_v46  ;;  %5912 = vmatprep.mubr.bf16.mxu1 %v1111_v46  ;;  %v11516_v46 = vld [vmem:[#allocation5 + $0x2e4] ss:$16 sps:$4 sm:$0xff]   ;;  %v447_v56 = vld [vmem:[#allocation2 + $0xc48] sm:$0xff] }
  0x92   :  { %3834 = vmatpush1.bf16.msra.mxu0 %v11508_v17  ;;  %6526 = vmatpush1.bf16.msra.mxu1 %v11511_v19  ;;  %v1214_v17 = vpack.c.bf16 %v334_v13, %v326_v12  ;;  %v342_v19 = vld [vmem:[#allocation2 + $0x900] sm:$0xff]  ;;  %v1271_v58 = vpack.c.bf16 %v447_v56, %v439_v55  ;;  %v487_v13 = vld [vmem:[#allocation2 + $0xd88] sm:$0xff] }
  0x93   :  { %3835 = vmatprep.subr.bf16.mxu0 %v11516_v46  ;;  %6527 = vmatprep.subr.bf16.mxu1 %v11519_v50  ;;  %v1222_v23 = vpack.c.bf16 %v350_v20, %v342_v19  ;;  %v431_v50 = vld [vmem:[#allocation2 + $0xbc8] sm:$0xff]  ;;  %v478_v12 = vld [vmem:[#allocation2 + $0xd40] sm:$0xff] }
  0x94   :  { %v503_v19 = vld [vmem:[#allocation2 + $0xe08] sm:$0xff] }
  0x95   :  { %v511_v20 = vld [vmem:[#allocation2 + $0xe48] sm:$0xff] }
  0x96   :  { %3836 = vmatpush1.bf16.msra.mxu0 %v11514_v45  ;;  %6528 = vmatpush1.bf16.msra.mxu1 %v11517_v47  ;;  %v1246_v45 = vpack.c.bf16 %v398_v41, %v390_v40  ;;  %v406_v47 = vld [vmem:[#allocation2 + $0xb00] sm:$0xff]  ;;  %v1303_v22 = vpack.c.bf16 %v511_v20, %v503_v19  ;;  %v551_v41 = vld [vmem:[#allocation2 + $0xf88] sm:$0xff] }
  0x97   :  { %6529 = vmatprep.subr.bf16.mxu1 %v11525_v14  ;;  %v495_v14 = vld [vmem:[#allocation2 + $0xdc8] sm:$0xff]  ;;  %v542_v40 = vld [vmem:[#allocation2 + $0xf40] sm:$0xff] }
  0x98   :  { %3221 = vmatmul.mubr.bf16.gmra.mrb[16].mxu0 %v1110_v51  ;;  %5913 = vmatmul.mubr.bf16.gmra.mrb[16].mxu1 %v1110_v51  ;;  %v279_v51 = vld [vmem:[#allocation2 + $0x708] sm:$0xff] }
  0x99   :  { %3230 = vmatprep.mubr.bf16.mxu0 %v1119_v52  ;;  %5922 = vmatprep.mubr.bf16.mxu1 %v1119_v52  ;;  %v287_v52 = vld [vmem:[#allocation2 + $0x748] sm:$0xff] }
  0x9a   :  { %v1191_v54 = vpack.c.bf16 %v287_v52, %v279_v51  ;;  %6530 = vmatpush1.bf16.msra.mxu1 %v11523_v11  ;;  %v1254_v51 = vpack.c.bf16 %v414_v48, %v406_v47  ;;  %v1263_v52 = vpack.c.bf16 %v431_v50, %v423_v49  ;;  %v470_v11 = vld [vmem:[#allocation2 + $0xd00] sm:$0xff]  ;;  %v567_v47 = vld [vmem:[#allocation2 + $0x1008] sm:$0xff] }
  0x9b   :  { %6531 = vmatprep.subr.bf16.mxu1 %v11531_v42  ;;  %v559_v42 = vld [vmem:[#allocation2 + $0xfc8] sm:$0xff] }
  0x9c   :  { %v575_v48 = vld [vmem:[#allocation2 + $0x1048] sm:$0xff] }
  0x9d   :  { %v1335_v50 = vpack.c.bf16 %v575_v48, %v567_v47 }
  0x9e   :  { %6532 = vmatpush1.bf16.msra.mxu1 %v11529_v39  ;;  %v534_v39 = vld [vmem:[#allocation2 + $0xf00] sm:$0xff] }
  0x9f   :  { %6533 = vmatprep.subr.bf16.mxu1 %v11537_v6  ;;  %v623_v6 = vld [vmem:[#allocation2 + $0x11c8] sm:$0xff] }
  0xa0   :  { %3231 = vmatmul.mubr.bf16.gmra.mrb[20].mxu0 %v1118_v61  ;;  %5923 = vmatmul.mubr.bf16.gmra.mrb[20].mxu1 %v1118_v61  ;;  %v294_v61 = vld [vmem:[#allocation2 + $0x780] sm:$0xff] }
  0xa1   :  { %3240 = vmatprep.mubr.bf16.mxu0 %v1127_v62  ;;  %5932 = vmatprep.mubr.bf16.mxu1 %v1127_v62  ;;  %v302_v62 = vld [vmem:[#allocation2 + $0x7c0] sm:$0xff] }
  0xa2   :  { %v1198_v1 = vpack.c.bf16 %v302_v62, %v294_v61  ;;  %v455_v61 = vld [vmem:[#allocation2 + $0xc88] sm:$0xff] }
  0xa3   :  { %v463_v62 = vld [vmem:[#allocation2 + $0xcc8] sm:$0xff] }
  0xa4   :  { %v1279_v0 = vpack.c.bf16 %v463_v62, %v455_v61  ;;  %v590_v61 = vld [vmem:[#allocation2 + $0x10c0] sm:$0xff]  ;;  %v11549_v62 = vld [vmem:[#allocation5 + $0x38c] ss:$16 sps:$4 sm:$0xff]  }
  0xa8   :  { %3241 = vmatmul.mubr.bf16.gmra.mrb[24].mxu0 %v1126_v3  ;;  %5933 = vmatmul.mubr.bf16.gmra.mrb[24].mxu1 %v1126_v3  ;;  %v310_v3 = vld [vmem:[#allocation2 + $0x800] sm:$0xff] }
  0xa9   :  { %3250 = vmatprep.mubr.bf16.mxu0 %v1135_v4  ;;  %5942 = vmatprep.mubr.bf16.mxu1 %v1135_v4  ;;  %v318_v4 = vld [vmem:[#allocation2 + $0x840] sm:$0xff] }
  0xaa   :  { %v1206_v7 = vpack.c.bf16 %v318_v4, %v310_v3  ;;  %v11535_v3 = vld [vmem:[#allocation5 + $0x348] ss:$16 sps:$4 sm:$0xff]   ;;  %v454_v4 = vld [vmem:[#allocation2 + $0xc80] sm:$0xff] }
  0xab   :  { %6534 = vmatpush1.bf16.msra.mxu1 %v11535_v3  ;;  %v598_v3 = vld [vmem:[#allocation2 + $0x1100] sm:$0xff] }
  0xac   :  { %6535 = vmatprep.subr.bf16.mxu1 %v11543_v34  ;;  %v687_v34 = vld [vmem:[#allocation2 + $0x13c8] sm:$0xff] }
  0xb0   :  { %3251 = vmatmul.mubr.bf16.gmra.mrb[28].mxu0 %v1134_v9  ;;  %5943 = vmatmul.mubr.bf16.gmra.mrb[28].mxu1 %v1134_v9  ;;  %v11520_v9 = vld [vmem:[#allocation5 + $0x300] ss:$16 sps:$4 sm:$0xff]  }
  0xb1   :  { %3260 = vmatprep.mubr.bf16.mxu0 %v1143_v10  ;;  %5952 = vmatprep.mubr.bf16.mxu1 %v1143_v10  ;;  %v11522_v10 = vld [vmem:[#allocation5 + $0x304] ss:$16 sps:$4 sm:$0xff]  }
  0xb2   :  { %3837 = vmatprep.subr.bf16.mxu0 %v11522_v10 }
  0xb3   :  { %3838 = vmatpush1.bf16.msra.mxu0 %v11520_v9  ;;  %v1278_v9 = vpack.c.bf16 %v462_v5, %v454_v4  ;;  %v606_v4 = vld [vmem:[#allocation2 + $0x1140] sm:$0xff]  ;;  %v615_v5 = vld [vmem:[#allocation2 + $0x1188] sm:$0xff] }
  0xb8   :  { %3261 = vmatmul.mubr.bf16.gmra.mrb[32].mxu0 %v1142_v15  ;;  %5953 = vmatmul.mubr.bf16.gmra.mrb[32].mxu1 %v1142_v15  ;;  %v343_v15 = vld [vmem:[#allocation2 + $0x908] sm:$0xff] }
  0xb9   :  { %3270 = vmatprep.mubr.bf16.mxu0 %v1151_v16  ;;  %5962 = vmatprep.mubr.bf16.mxu1 %v1151_v16  ;;  %v351_v16 = vld [vmem:[#allocation2 + $0x948] sm:$0xff] }
  0xba   :  { %v1223_v18 = vpack.c.bf16 %v351_v16, %v343_v15  ;;  %v1286_v15 = vpack.c.bf16 %v478_v12, %v470_v11  ;;  %v1295_v16 = vpack.c.bf16 %v495_v14, %v487_v13  ;;  %v631_v11 = vld [vmem:[#allocation2 + $0x1208] sm:$0xff] }
  0xbb   :  { %v639_v12 = vld [vmem:[#allocation2 + $0x1248] sm:$0xff] }
  0xbc   :  { %v1367_v14 = vpack.c.bf16 %v639_v12, %v631_v11 }
  0xc0   :  { %3271 = vmatmul.mubr.bf16.gmra.mrb[36].mxu0 %v1150_v25  ;;  %5963 = vmatmul.mubr.bf16.gmra.mrb[36].mxu1 %v1150_v25  ;;  %v358_v25 = vld [vmem:[#allocation2 + $0x980] sm:$0xff] }
  0xc1   :  { %3280 = vmatprep.mubr.bf16.mxu0 %v1159_v26  ;;  %5972 = vmatprep.mubr.bf16.mxu1 %v1159_v26  ;;  %v366_v26 = vld [vmem:[#allocation2 + $0x9c0] sm:$0xff] }
  0xc2   :  { %v1230_v29 = vpack.c.bf16 %v366_v26, %v358_v25  ;;  %v519_v25 = vld [vmem:[#allocation2 + $0xe88] sm:$0xff] }
  0xc3   :  { %v527_v26 = vld [vmem:[#allocation2 + $0xec8] sm:$0xff] }
  0xc4   :  { %v1311_v28 = vpack.c.bf16 %v527_v26, %v519_v25  ;;  %v654_v25 = vld [vmem:[#allocation2 + $0x12c0] sm:$0xff]  ;;  %v11555_v26 = vld [vmem:[#allocation5 + $0x3ac] ss:$16 sps:$4 sm:$0xff]  }
  0xc8   :  { %3281 = vmatmul.mubr.bf16.gmra.mrb[40].mxu0 %v1158_v31  ;;  %5973 = vmatmul.mubr.bf16.gmra.mrb[40].mxu1 %v1158_v31  ;;  %v374_v31 = vld [vmem:[#allocation2 + $0xa00] sm:$0xff] }
  0xc9   :  { %3290 = vmatprep.mubr.bf16.mxu0 %v1167_v32  ;;  %5982 = vmatprep.mubr.bf16.mxu1 %v1167_v32  ;;  %v382_v32 = vld [vmem:[#allocation2 + $0xa40] sm:$0xff] }
  0xca   :  { %v1238_v35 = vpack.c.bf16 %v382_v32, %v374_v31  ;;  %v11541_v31 = vld [vmem:[#allocation5 + $0x368] ss:$16 sps:$4 sm:$0xff]   ;;  %v518_v32 = vld [vmem:[#allocation2 + $0xe80] sm:$0xff] }
  0xcb   :  { %6536 = vmatpush1.bf16.msra.mxu1 %v11541_v31  ;;  %v662_v31 = vld [vmem:[#allocation2 + $0x1300] sm:$0xff] }
  0xcc   :  { %6537 = vmatprep.subr.bf16.mxu1 %v11549_v62  ;;  %v751_v62 = vld [vmem:[#allocation2 + $0x15c8] sm:$0xff] }
  0xd0   :  { %3291 = vmatmul.mubr.bf16.gmra.mrb[44].mxu0 %v1166_v37  ;;  %5983 = vmatmul.mubr.bf16.gmra.mrb[44].mxu1 %v1166_v37  ;;  %v11526_v37 = vld [vmem:[#allocation5 + $0x320] ss:$16 sps:$4 sm:$0xff]  }
  0xd1   :  { %3300 = vmatprep.mubr.bf16.mxu0 %v1175_v38  ;;  %5992 = vmatprep.mubr.bf16.mxu1 %v1175_v38  ;;  %v11528_v38 = vld [vmem:[#allocation5 + $0x324] ss:$16 sps:$4 sm:$0xff]  }
  0xd2   :  { %3839 = vmatprep.subr.bf16.mxu0 %v11528_v38 }
  0xd3   :  { %3840 = vmatpush1.bf16.msra.mxu0 %v11526_v37  ;;  %v1310_v37 = vpack.c.bf16 %v526_v33, %v518_v32  ;;  %v670_v32 = vld [vmem:[#allocation2 + $0x1340] sm:$0xff]  ;;  %v679_v33 = vld [vmem:[#allocation2 + $0x1388] sm:$0xff] }
  0xd8   :  { %3301 = vmatmul.mubr.bf16.gmra.mrb[48].mxu0 %v1174_v43  ;;  %5993 = vmatmul.mubr.bf16.gmra.mrb[48].mxu1 %v1174_v43  ;;  %v407_v43 = vld [vmem:[#allocation2 + $0xb08] sm:$0xff] }
  0xd9   :  { %3310 = vmatprep.mubr.bf16.mxu0 %v1183_v44  ;;  %6002 = vmatprep.mubr.bf16.mxu1 %v1183_v44  ;;  %v415_v44 = vld [vmem:[#allocation2 + $0xb48] sm:$0xff] }
  0xda   :  { %v1255_v46 = vpack.c.bf16 %v415_v44, %v407_v43  ;;  %v1318_v43 = vpack.c.bf16 %v542_v40, %v534_v39  ;;  %v1327_v44 = vpack.c.bf16 %v559_v42, %v551_v41  ;;  %v695_v39 = vld [vmem:[#allocation2 + $0x1408] sm:$0xff] }
  0xdb   :  { %v703_v40 = vld [vmem:[#allocation2 + $0x1448] sm:$0xff] }
  0xdc   :  { %v1399_v42 = vpack.c.bf16 %v703_v40, %v695_v39 }
  0xe0   :  { %3311 = vmatmul.mubr.bf16.gmra.mrb[52].mxu0 %v1182_v53  ;;  %6003 = vmatmul.mubr.bf16.gmra.mrb[52].mxu1 %v1182_v53  ;;  %v422_v53 = vld [vmem:[#allocation2 + $0xb80] sm:$0xff] }
  0xe1   :  { %3320 = vmatprep.mubr.bf16.mxu0 %v1191_v54  ;;  %6012 = vmatprep.mubr.bf16.mxu1 %v1191_v54  ;;  %v430_v54 = vld [vmem:[#allocation2 + $0xbc0] sm:$0xff] }
  0xe2   :  { %v1262_v57 = vpack.c.bf16 %v430_v54, %v422_v53  ;;  %v583_v53 = vld [vmem:[#allocation2 + $0x1088] sm:$0xff] }
  0xe3   :  { %v591_v54 = vld [vmem:[#allocation2 + $0x10c8] sm:$0xff] }
  0xe4   :  { %v1343_v56 = vpack.c.bf16 %v591_v54, %v583_v53  ;;  %v718_v53 = vld [vmem:[#allocation2 + $0x14c0] sm:$0xff]  ;;  %v11561_v54 = vld [vmem:[#allocation5 + $0x3cc] ss:$16 sps:$4 sm:$0xff]  }
  0xe8   :  { %3321 = vmatmul.mubr.bf16.gmra.mrb[56].mxu0 %v1190_v59  ;;  %6013 = vmatmul.mubr.bf16.gmra.mrb[56].mxu1 %v1190_v59  ;;  %v438_v59 = vld [vmem:[#allocation2 + $0xc00] sm:$0xff] }
  0xe9   :  { %3330 = vmatprep.mubr.bf16.mxu0 %v1199_v60  ;;  %6022 = vmatprep.mubr.bf16.mxu1 %v1199_v60  ;;  %v446_v60 = vld [vmem:[#allocation2 + $0xc40] sm:$0xff] }
  0xea   :  { %v1270_v63 = vpack.c.bf16 %v446_v60, %v438_v59  ;;  %v11547_v59 = vld [vmem:[#allocation5 + $0x388] ss:$16 sps:$4 sm:$0xff]   ;;  %v582_v60 = vld [vmem:[#allocation2 + $0x1080] sm:$0xff] }
  0xeb   :  { %6538 = vmatpush1.bf16.msra.mxu1 %v11547_v59  ;;  %v726_v59 = vld [vmem:[#allocation2 + $0x1500] sm:$0xff] }
  0xec   :  { %6539 = vmatprep.subr.bf16.mxu1 %v11555_v26  ;;  %v815_v26 = vld [vmem:[#allocation2 + $0x17c8] sm:$0xff] }
  0xf0   :  { %3331 = vmatmul.mubr.bf16.gmra.mrb[60].mxu0 %v1198_v1  ;;  %6023 = vmatmul.mubr.bf16.gmra.mrb[60].mxu1 %v1198_v1  ;;  %v11532_v1 = vld [vmem:[#allocation5 + $0x340] ss:$16 sps:$4 sm:$0xff]  }
  0xf1   :  { %3340 = vmatprep.mubr.bf16.mxu0 %v1207_v2  ;;  %6032 = vmatprep.mubr.bf16.mxu1 %v1207_v2  ;;  %v11534_v2 = vld [vmem:[#allocation5 + $0x344] ss:$16 sps:$4 sm:$0xff]  }
  0xf2   :  { %3841 = vmatprep.subr.bf16.mxu0 %v11534_v2 }
  0xf3   :  { %3842 = vmatpush1.bf16.msra.mxu0 %v11532_v1  ;;  %v1342_v1 = vpack.c.bf16 %v590_v61, %v582_v60  ;;  %v734_v60 = vld [vmem:[#allocation2 + $0x1540] sm:$0xff]  ;;  %v743_v61 = vld [vmem:[#allocation2 + $0x1588] sm:$0xff] }
  0xf8   :  { %3341 = vmatmul.mubr.bf16.gmra.mrb[64].mxu0 %v1206_v7  ;;  %6033 = vmatmul.mubr.bf16.gmra.mrb[64].mxu1 %v1206_v7  ;;  %v471_v7 = vld [vmem:[#allocation2 + $0xd08] sm:$0xff] }
  0xf9   :  { %3350 = vmatprep.mubr.bf16.mxu0 %v1215_v8  ;;  %6042 = vmatprep.mubr.bf16.mxu1 %v1215_v8  ;;  %v479_v8 = vld [vmem:[#allocation2 + $0xd48] sm:$0xff] }
  0xfa   :  { %v1287_v10 = vpack.c.bf16 %v479_v8, %v471_v7  ;;  %v1350_v7 = vpack.c.bf16 %v606_v4, %v598_v3  ;;  %v1359_v8 = vpack.c.bf16 %v623_v6, %v615_v5  ;;  %v759_v3 = vld [vmem:[#allocation2 + $0x1608] sm:$0xff] }
  0xfb   :  { %v767_v4 = vld [vmem:[#allocation2 + $0x1648] sm:$0xff] }
  0xfc   :  { %v1431_v6 = vpack.c.bf16 %v767_v4, %v759_v3  ;;  %v902_v3 = vld [vmem:[#allocation2 + $0x1a80] sm:$0xff] }
  0xfd   :  { %v910_v4 = vld [vmem:[#allocation2 + $0x1ac0] sm:$0xff] }
 0x100   :  { %3351 = vmatmul.mubr.bf16.gmra.mrb[68].mxu0 %v1214_v17  ;;  %6043 = vmatmul.mubr.bf16.gmra.mrb[68].mxu1 %v1214_v17  ;;  %v486_v17 = vld [vmem:[#allocation2 + $0xd80] sm:$0xff] }
 0x101   :  { %3360 = vmatprep.mubr.bf16.mxu0 %v1223_v18  ;;  %6052 = vmatprep.mubr.bf16.mxu1 %v1223_v18  ;;  %v494_v18 = vld [vmem:[#allocation2 + $0xdc0] sm:$0xff] }
 0x102   :  { %v1294_v21 = vpack.c.bf16 %v494_v18, %v486_v17  ;;  %v647_v17 = vld [vmem:[#allocation2 + $0x1288] sm:$0xff] }
 0x103   :  { %v655_v18 = vld [vmem:[#allocation2 + $0x12c8] sm:$0xff] }
 0x104   :  { %v1375_v20 = vpack.c.bf16 %v655_v18, %v647_v17  ;;  %v782_v17 = vld [vmem:[#allocation2 + $0x16c0] sm:$0xff]  ;;  %v11567_v18 = vld [vmem:[#allocation5 + $0x3ec] ss:$16 sps:$4 sm:$0xff]  }
 0x108   :  { %3361 = vmatmul.mubr.bf16.gmra.mrb[72].mxu0 %v1222_v23  ;;  %6053 = vmatmul.mubr.bf16.gmra.mrb[72].mxu1 %v1222_v23  ;;  %v502_v23 = vld [vmem:[#allocation2 + $0xe00] sm:$0xff] }
 0x109   :  { %3370 = vmatprep.mubr.bf16.mxu0 %v1231_v24  ;;  %6062 = vmatprep.mubr.bf16.mxu1 %v1231_v24  ;;  %v510_v24 = vld [vmem:[#allocation2 + $0xe40] sm:$0xff] }
 0x10a   :  { %v1302_v27 = vpack.c.bf16 %v510_v24, %v502_v23  ;;  %v11553_v23 = vld [vmem:[#allocation5 + $0x3a8] ss:$16 sps:$4 sm:$0xff]   ;;  %v646_v24 = vld [vmem:[#allocation2 + $0x1280] sm:$0xff] }
 0x10b   :  { %6540 = vmatpush1.bf16.msra.mxu1 %v11553_v23  ;;  %v790_v23 = vld [vmem:[#allocation2 + $0x1700] sm:$0xff] }
 0x10c   :  { %6541 = vmatprep.subr.bf16.mxu1 %v11561_v54 }
 0x110   :  { %3371 = vmatmul.mubr.bf16.gmra.mrb[76].mxu0 %v1230_v29  ;;  %6063 = vmatmul.mubr.bf16.gmra.mrb[76].mxu1 %v1230_v29  ;;  %v11538_v29 = vld [vmem:[#allocation5 + $0x360] ss:$16 sps:$4 sm:$0xff]  }
 0x111   :  { %3380 = vmatprep.mubr.bf16.mxu0 %v1239_v30  ;;  %6072 = vmatprep.mubr.bf16.mxu1 %v1239_v30  ;;  %v11540_v30 = vld [vmem:[#allocation5 + $0x364] ss:$16 sps:$4 sm:$0xff]  }
 0x112   :  { %3843 = vmatprep.subr.bf16.mxu0 %v11540_v30 }
 0x113   :  { %3844 = vmatpush1.bf16.msra.mxu0 %v11538_v29  ;;  %v1374_v29 = vpack.c.bf16 %v654_v25, %v646_v24  ;;  %v798_v24 = vld [vmem:[#allocation2 + $0x1740] sm:$0xff]  ;;  %v807_v25 = vld [vmem:[#allocation2 + $0x1788] sm:$0xff] }
 0x118   :  { %3381 = vmatmul.mubr.bf16.gmra.mrb[80].mxu0 %v1238_v35  ;;  %6073 = vmatmul.mubr.bf16.gmra.mrb[80].mxu1 %v1238_v35  ;;  %v535_v35 = vld [vmem:[#allocation2 + $0xf08] sm:$0xff] }
 0x119   :  { %3390 = vmatprep.mubr.bf16.mxu0 %v1247_v36  ;;  %6082 = vmatprep.mubr.bf16.mxu1 %v1247_v36  ;;  %v543_v36 = vld [vmem:[#allocation2 + $0xf48] sm:$0xff] }
 0x11a   :  { %v1319_v38 = vpack.c.bf16 %v543_v36, %v535_v35  ;;  %v1382_v35 = vpack.c.bf16 %v670_v32, %v662_v31  ;;  %v1391_v36 = vpack.c.bf16 %v687_v34, %v679_v33  ;;  %v823_v31 = vld [vmem:[#allocation2 + $0x1808] sm:$0xff] }
 0x11b   :  { %v831_v32 = vld [vmem:[#allocation2 + $0x1848] sm:$0xff] }
 0x11c   :  { %v1463_v34 = vpack.c.bf16 %v831_v32, %v823_v31 }
 0x120   :  { %3391 = vmatmul.mubr.bf16.gmra.mrb[84].mxu0 %v1246_v45  ;;  %6083 = vmatmul.mubr.bf16.gmra.mrb[84].mxu1 %v1246_v45  ;;  %v550_v45 = vld [vmem:[#allocation2 + $0xf80] sm:$0xff] }
 0x121   :  { %3400 = vmatprep.mubr.bf16.mxu0 %v1255_v46  ;;  %6092 = vmatprep.mubr.bf16.mxu1 %v1255_v46  ;;  %v558_v46 = vld [vmem:[#allocation2 + $0xfc0] sm:$0xff] }
 0x122   :  { %v1326_v49 = vpack.c.bf16 %v558_v46, %v550_v45  ;;  %v711_v45 = vld [vmem:[#allocation2 + $0x1488] sm:$0xff] }
 0x123   :  { %v719_v46 = vld [vmem:[#allocation2 + $0x14c8] sm:$0xff] }
 0x124   :  { %v1407_v48 = vpack.c.bf16 %v719_v46, %v711_v45  ;;  %v855_v45 = vld [vmem:[#allocation2 + $0x1908] sm:$0xff] }
 0x125   :  { %v863_v46 = vld [vmem:[#allocation2 + $0x1948] sm:$0xff] }
 0x128   :  { %3401 = vmatmul.mubr.bf16.gmra.mrb[88].mxu0 %v1254_v51  ;;  %6093 = vmatmul.mubr.bf16.gmra.mrb[88].mxu1 %v1254_v51  ;;  %v566_v51 = vld [vmem:[#allocation2 + $0x1000] sm:$0xff] }
 0x129   :  { %3410 = vmatprep.mubr.bf16.mxu0 %v1263_v52  ;;  %6102 = vmatprep.mubr.bf16.mxu1 %v1263_v52  ;;  %v574_v52 = vld [vmem:[#allocation2 + $0x1040] sm:$0xff] }
 0x12a   :  { %v1334_v55 = vpack.c.bf16 %v574_v52, %v566_v51  ;;  %v11559_v51 = vld [vmem:[#allocation5 + $0x3c8] ss:$16 sps:$4 sm:$0xff]   ;;  %v710_v52 = vld [vmem:[#allocation2 + $0x1480] sm:$0xff] }
 0x12b   :  { %6542 = vmatpush1.bf16.msra.mxu1 %v11559_v51  ;;  %v871_v51 = vld [vmem:[#allocation2 + $0x1988] sm:$0xff] }
 0x12c   :  { %6543 = vmatprep.subr.bf16.mxu1 %v11567_v18  ;;  %v959_v18 = vld [vmem:[#allocation2 + $0x1c48] sm:$0xff] }
 0x130   :  { %3411 = vmatmul.mubr.bf16.gmra.mrb[92].mxu0 %v1262_v57  ;;  %6103 = vmatmul.mubr.bf16.gmra.mrb[92].mxu1 %v1262_v57  ;;  %v11544_v57 = vld [vmem:[#allocation5 + $0x380] ss:$16 sps:$4 sm:$0xff]  }
 0x131   :  { %3420 = vmatprep.mubr.bf16.mxu0 %v1271_v58  ;;  %6112 = vmatprep.mubr.bf16.mxu1 %v1271_v58  ;;  %v11546_v58 = vld [vmem:[#allocation5 + $0x384] ss:$16 sps:$4 sm:$0xff]  }
 0x132   :  { %3845 = vmatprep.subr.bf16.mxu0 %v11546_v58 }
 0x133   :  { %3846 = vmatpush1.bf16.msra.mxu0 %v11544_v57  ;;  %v1406_v57 = vpack.c.bf16 %v718_v53, %v710_v52  ;;  %v879_v52 = vld [vmem:[#allocation2 + $0x19c8] sm:$0xff] }
 0x134   :  { %v1487_v54 = vpack.c.bf16 %v879_v52, %v871_v51  ;;  %v1030_v51 = vld [vmem:[#allocation2 + $0x1e80] sm:$0xff] }
 0x135   :  { %v1038_v52 = vld [vmem:[#allocation2 + $0x1ec0] sm:$0xff] }
 0x138   :  { %3421 = vmatmul.mubr.bf16.gmra.mrb[96].mxu0 %v1270_v63  ;;  %6113 = vmatmul.mubr.bf16.gmra.mrb[96].mxu1 %v1270_v63  ;;  %v599_v63 = vld [vmem:[#allocation2 + $0x1108] sm:$0xff] }
 0x139   :  { %3430 = vmatprep.mubr.bf16.mxu0 %v1279_v0  ;;  %6122 = vmatprep.mubr.bf16.mxu1 %v1279_v0  ;;  %v607_v0 = vld [vmem:[#allocation2 + $0x1148] sm:$0xff] }
 0x13a   :  { %v1351_v2 = vpack.c.bf16 %v607_v0, %v599_v63  ;;  %v1414_v63 = vpack.c.bf16 %v734_v60, %v726_v59  ;;  %v1423_v0 = vpack.c.bf16 %v751_v62, %v743_v61  ;;  %v886_v61 = vld [vmem:[#allocation2 + $0x1a00] sm:$0xff] }
 0x13b   :  { %v894_v62 = vld [vmem:[#allocation2 + $0x1a40] sm:$0xff] }
 0x140   :  { %3431 = vmatmul.mubr.bf16.gmra.mrb[100].mxu0 %v1278_v9  ;;  %6123 = vmatmul.mubr.bf16.gmra.mrb[100].mxu1 %v1278_v9  ;;  %v614_v9 = vld [vmem:[#allocation2 + $0x1180] sm:$0xff] }
 0x141   :  { %3440 = vmatprep.mubr.bf16.mxu0 %v1287_v10  ;;  %6132 = vmatprep.mubr.bf16.mxu1 %v1287_v10  ;;  %v622_v10 = vld [vmem:[#allocation2 + $0x11c0] sm:$0xff] }
 0x142   :  { %v1358_v13 = vpack.c.bf16 %v622_v10, %v614_v9  ;;  %v775_v9 = vld [vmem:[#allocation2 + $0x1688] sm:$0xff] }
 0x143   :  { %v783_v10 = vld [vmem:[#allocation2 + $0x16c8] sm:$0xff] }
 0x144   :  { %v1439_v12 = vpack.c.bf16 %v783_v10, %v775_v9  ;;  %v918_v9 = vld [vmem:[#allocation2 + $0x1b00] sm:$0xff] }
 0x145   :  { %v926_v10 = vld [vmem:[#allocation2 + $0x1b40] sm:$0xff] }
 0x148   :  { %3441 = vmatmul.mubr.bf16.gmra.mrb[104].mxu0 %v1286_v15  ;;  %6133 = vmatmul.mubr.bf16.gmra.mrb[104].mxu1 %v1286_v15  ;;  %v630_v15 = vld [vmem:[#allocation2 + $0x1200] sm:$0xff] }
 0x149   :  { %3450 = vmatprep.mubr.bf16.mxu0 %v1295_v16  ;;  %6142 = vmatprep.mubr.bf16.mxu1 %v1295_v16  ;;  %v638_v16 = vld [vmem:[#allocation2 + $0x1240] sm:$0xff] }
 0x14a   :  { %v1366_v19 = vpack.c.bf16 %v638_v16, %v630_v15  ;;  %v11565_v15 = vld [vmem:[#allocation5 + $0x3e8] ss:$16 sps:$4 sm:$0xff]   ;;  %v774_v16 = vld [vmem:[#allocation2 + $0x1680] sm:$0xff] }
 0x14b   :  { %6544 = vmatpush1.bf16.msra.mxu1 %v11565_v15  ;;  %v934_v15 = vld [vmem:[#allocation2 + $0x1b80] sm:$0xff] }
 0x150   :  { %3451 = vmatmul.mubr.bf16.gmra.mrb[108].mxu0 %v1294_v21  ;;  %6143 = vmatmul.mubr.bf16.gmra.mrb[108].mxu1 %v1294_v21  ;;  %v11550_v21 = vld [vmem:[#allocation5 + $0x3a0] ss:$16 sps:$4 sm:$0xff]  }
 0x151   :  { %3460 = vmatprep.mubr.bf16.mxu0 %v1303_v22  ;;  %6152 = vmatprep.mubr.bf16.mxu1 %v1303_v22  ;;  %v11552_v22 = vld [vmem:[#allocation5 + $0x3a4] ss:$16 sps:$4 sm:$0xff]  }
 0x152   :  { %3847 = vmatprep.subr.bf16.mxu0 %v11552_v22 }
 0x153   :  { %3848 = vmatpush1.bf16.msra.mxu0 %v11550_v21  ;;  %v1438_v21 = vpack.c.bf16 %v782_v17, %v774_v16  ;;  %v942_v16 = vld [vmem:[#allocation2 + $0x1bc0] sm:$0xff]  ;;  %v951_v17 = vld [vmem:[#allocation2 + $0x1c08] sm:$0xff] }
 0x158   :  { %3461 = vmatmul.mubr.bf16.gmra.mrb[112].mxu0 %v1302_v27  ;;  %6153 = vmatmul.mubr.bf16.gmra.mrb[112].mxu1 %v1302_v27  ;;  %v663_v27 = vld [vmem:[#allocation2 + $0x1308] sm:$0xff] }
 0x159   :  { %3470 = vmatprep.mubr.bf16.mxu0 %v1311_v28  ;;  %6162 = vmatprep.mubr.bf16.mxu1 %v1311_v28  ;;  %v671_v28 = vld [vmem:[#allocation2 + $0x1348] sm:$0xff] }
 0x15a   :  { %v1383_v30 = vpack.c.bf16 %v671_v28, %v663_v27  ;;  %v1446_v27 = vpack.c.bf16 %v798_v24, %v790_v23  ;;  %v1455_v28 = vpack.c.bf16 %v815_v26, %v807_v25  ;;  %v967_v23 = vld [vmem:[#allocation2 + $0x1c88] sm:$0xff] }
 0x15b   :  { %v975_v24 = vld [vmem:[#allocation2 + $0x1cc8] sm:$0xff] }
 0x15c   :  { %v1535_v26 = vpack.c.bf16 %v975_v24, %v967_v23 }
 0x160   :  { %3471 = vmatmul.mubr.bf16.gmra.mrb[116].mxu0 %v1310_v37  ;;  %6163 = vmatmul.mubr.bf16.gmra.mrb[116].mxu1 %v1310_v37  ;;  %v678_v37 = vld [vmem:[#allocation2 + $0x1380] sm:$0xff] }
 0x161   :  { %3480 = vmatprep.mubr.bf16.mxu0 %v1319_v38  ;;  %6172 = vmatprep.mubr.bf16.mxu1 %v1319_v38  ;;  %v686_v38 = vld [vmem:[#allocation2 + $0x13c0] sm:$0xff] }
 0x162   :  { %v1390_v41 = vpack.c.bf16 %v686_v38, %v678_v37  ;;  %v839_v37 = vld [vmem:[#allocation2 + $0x1888] sm:$0xff] }
 0x163   :  { %v847_v38 = vld [vmem:[#allocation2 + $0x18c8] sm:$0xff] }
 0x164   :  { %v1471_v40 = vpack.c.bf16 %v847_v38, %v839_v37 }
 0x168   :  { %3481 = vmatmul.mubr.bf16.gmra.mrb[120].mxu0 %v1318_v43  ;;  %6173 = vmatmul.mubr.bf16.gmra.mrb[120].mxu1 %v1318_v43  ;;  %v694_v43 = vld [vmem:[#allocation2 + $0x1400] sm:$0xff] }
 0x169   :  { %3490 = vmatprep.mubr.bf16.mxu0 %v1327_v44  ;;  %6182 = vmatprep.mubr.bf16.mxu1 %v1327_v44  ;;  %v702_v44 = vld [vmem:[#allocation2 + $0x1440] sm:$0xff] }
 0x16a   :  { %v1398_v47 = vpack.c.bf16 %v702_v44, %v694_v43  ;;  %v846_v43 = vld [vmem:[#allocation2 + $0x18c0] sm:$0xff]  ;;  %v11573_v44 = vld [vmem:[#allocation5 + $0x40c] ss:$16 sps:$4 sm:$0xff]  }
 0x16b   :  { %7186 = vmatprep.subr.bf16.mxu1 %v11573_v44 }
 0x170   :  { %3491 = vmatmul.mubr.bf16.gmra.mrb[124].mxu0 %v1326_v49  ;;  %6183 = vmatmul.mubr.bf16.gmra.mrb[124].mxu1 %v1326_v49  ;;  %v11556_v49 = vld [vmem:[#allocation5 + $0x3c0] ss:$16 sps:$4 sm:$0xff]  }
 0x171   :  { %3500 = vmatprep.mubr.bf16.mxu0 %v1335_v50  ;;  %6192 = vmatprep.mubr.bf16.mxu1 %v1335_v50  ;;  %v11558_v50 = vld [vmem:[#allocation5 + $0x3c4] ss:$16 sps:$4 sm:$0xff]  }
 0x172   :  { %3849 = vmatprep.subr.bf16.mxu0 %v11558_v50  ;;  %v862_v50 = vld [vmem:[#allocation2 + $0x1940] sm:$0xff] }
 0x173   :  { %3850 = vmatpush1.bf16.msra.mxu0 %v11556_v49  ;;  %v854_v49 = vld [vmem:[#allocation2 + $0x1900] sm:$0xff] }
 0x174   :  { %v1478_v53 = vpack.c.bf16 %v862_v50, %v854_v49 }
 0x178   :  { %3501 = vmatmul.mubr.bf16.gmra.mrb[128].mxu0 %v1334_v55  ;;  %6193 = vmatmul.mubr.bf16.gmra.mrb[128].mxu1 %v1334_v55  ;;  %v727_v55 = vld [vmem:[#allocation2 + $0x1508] sm:$0xff] }
 0x179   :  { %3510 = vmatprep.mubr.bf16.mxu0 %v1343_v56  ;;  %6202 = vmatprep.mubr.bf16.mxu1 %v1343_v56  ;;  %v735_v56 = vld [vmem:[#allocation2 + $0x1548] sm:$0xff] }
 0x17a   :  { %v1415_v58 = vpack.c.bf16 %v735_v56, %v727_v55  ;;  %v870_v55 = vld [vmem:[#allocation2 + $0x1980] sm:$0xff] }
 0x17b   :  { %v878_v56 = vld [vmem:[#allocation2 + $0x19c0] sm:$0xff] }
 0x17c   :  { %v1486_v59 = vpack.c.bf16 %v878_v56, %v870_v55  ;;  %v1566_v55 = vpack.c.bf16 %v1038_v52, %v1030_v51 }
 0x180   :  { %3511 = vmatmul.mubr.bf16.gmra.mrb[132].mxu0 %v1342_v1  ;;  %6203 = vmatmul.mubr.bf16.gmra.mrb[132].mxu1 %v1342_v1  ;;  %v742_v1 = vld [vmem:[#allocation2 + $0x1580] sm:$0xff] }
 0x181   :  { %3520 = vmatprep.mubr.bf16.mxu0 %v1351_v2  ;;  %6212 = vmatprep.mubr.bf16.mxu1 %v1351_v2  ;;  %v750_v2 = vld [vmem:[#allocation2 + $0x15c0] sm:$0xff] }
 0x182   :  { %v1422_v5 = vpack.c.bf16 %v750_v2, %v742_v1  ;;  %v1494_v1 = vpack.c.bf16 %v894_v62, %v886_v61 }
 0x188   :  { %3521 = vmatmul.mubr.bf16.gmra.mrb[136].mxu0 %v1350_v7  ;;  %6213 = vmatmul.mubr.bf16.gmra.mrb[136].mxu1 %v1350_v7  ;;  %v758_v7 = vld [vmem:[#allocation2 + $0x1600] sm:$0xff] }
 0x189   :  { %3530 = vmatprep.mubr.bf16.mxu0 %v1359_v8  ;;  %6222 = vmatprep.mubr.bf16.mxu1 %v1359_v8  ;;  %v766_v8 = vld [vmem:[#allocation2 + $0x1640] sm:$0xff] }
 0x18a   :  { %v1430_v11 = vpack.c.bf16 %v766_v8, %v758_v7  ;;  %v1502_v7 = vpack.c.bf16 %v910_v4, %v902_v3 }
 0x190   :  { %3531 = vmatmul.mubr.bf16.gmra.mrb[140].mxu0 %v1358_v13  ;;  %6223 = vmatmul.mubr.bf16.gmra.mrb[140].mxu1 %v1358_v13  ;;  %v11562_v13 = vld [vmem:[#allocation5 + $0x3e0] ss:$16 sps:$4 sm:$0xff]  }
 0x191   :  { %3540 = vmatprep.mubr.bf16.mxu0 %v1367_v14  ;;  %6232 = vmatprep.mubr.bf16.mxu1 %v1367_v14  ;;  %v11564_v14 = vld [vmem:[#allocation5 + $0x3e4] ss:$16 sps:$4 sm:$0xff]  }
 0x192   :  { %3851 = vmatprep.subr.bf16.mxu0 %v11564_v14 }
 0x193   :  { %3852 = vmatpush1.bf16.msra.mxu0 %v11562_v13  ;;  %v1510_v13 = vpack.c.bf16 %v926_v10, %v918_v9  ;;  %v11568_v10 = vld [vmem:[#allocation5 + $0x400] ss:$16 sps:$4 sm:$0xff]  }
 0x198   :  { %3541 = vmatmul.mubr.bf16.gmra.mrb[144].mxu0 %v1366_v19  ;;  %6233 = vmatmul.mubr.bf16.gmra.mrb[144].mxu1 %v1366_v19  ;;  %v791_v19 = vld [vmem:[#allocation2 + $0x1708] sm:$0xff] }
 0x199   :  { %3550 = vmatprep.mubr.bf16.mxu0 %v1375_v20  ;;  %6242 = vmatprep.mubr.bf16.mxu1 %v1375_v20  ;;  %v799_v20 = vld [vmem:[#allocation2 + $0x1748] sm:$0xff] }
 0x19a   :  { %v1447_v22 = vpack.c.bf16 %v799_v20, %v791_v19  ;;  %v1518_v19 = vpack.c.bf16 %v942_v16, %v934_v15  ;;  %v1527_v20 = vpack.c.bf16 %v959_v18, %v951_v17  ;;  %v72_v15 = vld [vmem:[#allocation2 + $0x90] sm:$0xff]  ;;  %v89_v17 = vld [vmem:[#allocation2 + $0x118] sm:$0xff] }
 0x19b   :  { %v80_v16 = vld [vmem:[#allocation2 + $0xd0] sm:$0xff] }
 0x19c   :  { %v11574_v18 = vld [vmem:[#allocation5 + $0x420] ss:$16 sps:$4 sm:$0xff]   ;;  %v1088_v23 = vpack.c.bf16 %v80_v16, %v72_v15 }
 0x1a0   :  { %3551 = vmatmul.mubr.bf16.gmra.mrb[148].mxu0 %v1374_v29  ;;  %6243 = vmatmul.mubr.bf16.gmra.mrb[148].mxu1 %v1374_v29  ;;  %v806_v29 = vld [vmem:[#allocation2 + $0x1780] sm:$0xff] }
 0x1a1   :  { %3560 = vmatprep.mubr.bf16.mxu0 %v1383_v30  ;;  %6252 = vmatprep.mubr.bf16.mxu1 %v1383_v30  ;;  %v814_v30 = vld [vmem:[#allocation2 + $0x17c0] sm:$0xff] }
 0x1a2   :  { %v1454_v33 = vpack.c.bf16 %v814_v30, %v806_v29  ;;  %v983_v29 = vld [vmem:[#allocation2 + $0x1d08] sm:$0xff] }
 0x1a3   :  { %v991_v30 = vld [vmem:[#allocation2 + $0x1d48] sm:$0xff] }
 0x1a4   :  { %v1543_v32 = vpack.c.bf16 %v991_v30, %v983_v29  ;;  %v88_v29 = vld [vmem:[#allocation2 + $0x110] sm:$0xff] }
 0x1a5   :  { %v96_v30 = vld [vmem:[#allocation2 + $0x150] sm:$0xff] }
 0x1a8   :  { %3561 = vmatmul.mubr.bf16.gmra.mrb[152].mxu0 %v1382_v35  ;;  %6253 = vmatmul.mubr.bf16.gmra.mrb[152].mxu1 %v1382_v35  ;;  %v822_v35 = vld [vmem:[#allocation2 + $0x1800] sm:$0xff] }
 0x1a9   :  { %3570 = vmatprep.mubr.bf16.mxu0 %v1391_v36  ;;  %6262 = vmatprep.mubr.bf16.mxu1 %v1391_v36  ;;  %v830_v36 = vld [vmem:[#allocation2 + $0x1840] sm:$0xff] }
 0x1aa   :  { %v1462_v39 = vpack.c.bf16 %v830_v36, %v822_v35  ;;  %v999_v35 = vld [vmem:[#allocation2 + $0x1d88] sm:$0xff] }
 0x1ab   :  { %v1007_v36 = vld [vmem:[#allocation2 + $0x1dc8] sm:$0xff] }
 0x1ac   :  { %v1551_v38 = vpack.c.bf16 %v1007_v36, %v999_v35  ;;  %v11594_v35 = vld [vmem:[#allocation5 + $0x484] ss:$16 sps:$4 sm:$0xff]   ;;  %v11597_v36 = vld [vmem:[#allocation5 + $0x48c] ss:$16 sps:$4 sm:$0xff]  }
 0x1b0   :  { %3571 = vmatmul.mubr.bf16.gmra.mrb[156].mxu0 %v1390_v41  ;;  %6263 = vmatmul.mubr.bf16.gmra.mrb[156].mxu1 %v1390_v41  ;;  %v11570_v41 = vld [vmem:[#allocation5 + $0x404] ss:$16 sps:$4 sm:$0xff]  }
 0x1b1   :  { %3580 = vmatprep.mubr.bf16.mxu0 %v1399_v42  ;;  %6272 = vmatprep.mubr.bf16.mxu1 %v1399_v42  ;;  %v838_v42 = vld [vmem:[#allocation2 + $0x1880] sm:$0xff] }
 0x1b2   :  { %4494 = vmatprep.subr.bf16.mxu0 %v11570_v41  ;;  %v1015_v41 = vld [vmem:[#allocation2 + $0x1e08] sm:$0xff] }
 0x1b8   :  { %3581 = vmatmul.mubr.bf16.gmra.mrb[160].mxu0 %v1398_v47  ;;  %6273 = vmatmul.mubr.bf16.gmra.mrb[160].mxu1 %v1398_v47  ;;  %v1470_v47 = vpack.c.bf16 %v846_v43, %v838_v42  ;;  %v1023_v42 = vld [vmem:[#allocation2 + $0x1e48] sm:$0xff] }
 0x1b9   :  { %3590 = vmatprep.mubr.bf16.mxu0 %v1407_v48  ;;  %6282 = vmatprep.mubr.bf16.mxu1 %v1407_v48  ;;  %v1479_v48 = vpack.c.bf16 %v863_v46, %v855_v45  ;;  %v1559_v44 = vpack.c.bf16 %v1023_v42, %v1015_v41  ;;  %v1014_v45 = vld [vmem:[#allocation2 + $0x1e00] sm:$0xff]  ;;  %v104_v41 = vld [vmem:[#allocation2 + $0x190] sm:$0xff] }
 0x1ba   :  { %v1022_v46 = vld [vmem:[#allocation2 + $0x1e40] sm:$0xff]  ;;  %v112_v42 = vld [vmem:[#allocation2 + $0x1d0] sm:$0xff] }
 0x1bb   :  { %v1558_v49 = vpack.c.bf16 %v1022_v46, %v1014_v45  ;;  %v1104_v45 = vpack.c.bf16 %v112_v42, %v104_v41  ;;  %v265_v41 = vld [vmem:[#allocation2 + $0x698] sm:$0xff] }
 0x1bc   :  { %v273_v42 = vld [vmem:[#allocation2 + $0x6d8] sm:$0xff] }
 0x1c0   :  { %3591 = vmatmul.mubr.bf16.gmra.mrb[164].mxu0 %v1406_v57  ;;  %6283 = vmatmul.mubr.bf16.gmra.mrb[164].mxu1 %v1406_v57  ;;  %v887_v57 = vld [vmem:[#allocation2 + $0x1a08] sm:$0xff] }
 0x1c1   :  { %3600 = vmatprep.mubr.bf16.mxu0 %v1415_v58  ;;  %6292 = vmatprep.mubr.bf16.mxu1 %v1415_v58  ;;  %v895_v58 = vld [vmem:[#allocation2 + $0x1a48] sm:$0xff] }
 0x1c2   :  { %v1495_v60 = vpack.c.bf16 %v895_v58, %v887_v57  ;;  %v1046_v57 = vld [vmem:[#allocation2 + $0x1f00] sm:$0xff] }
 0x1c3   :  { %v1054_v58 = vld [vmem:[#allocation2 + $0x1f40] sm:$0xff] }
 0x1c4   :  { %v1574_v61 = vpack.c.bf16 %v1054_v58, %v1046_v57  ;;  %v144_v57 = vld [vmem:[#allocation2 + $0x2d0] sm:$0xff]  ;;  %v11603_v58 = vld [vmem:[#allocation5 + $0x4ac] ss:$16 sps:$4 sm:$0xff]  }
 0x1c8   :  { %3601 = vmatmul.mubr.bf16.gmra.mrb[168].mxu0 %v1414_v63  ;;  %6293 = vmatmul.mubr.bf16.gmra.mrb[168].mxu1 %v1414_v63  ;;  %v903_v63 = vld [vmem:[#allocation2 + $0x1a88] sm:$0xff] }
 0x1c9   :  { %3610 = vmatprep.mubr.bf16.mxu0 %v1423_v0  ;;  %6302 = vmatprep.mubr.bf16.mxu1 %v1423_v0  ;;  %v911_v0 = vld [vmem:[#allocation2 + $0x1ac8] sm:$0xff] }
 0x1ca   :  { %v1503_v2 = vpack.c.bf16 %v911_v0, %v903_v63  ;;  %v1062_v63 = vld [vmem:[#allocation2 + $0x1f80] sm:$0xff] }
 0x1cb   :  { %v1070_v0 = vld [vmem:[#allocation2 + $0x1fc0] sm:$0xff] }
 0x1cc   :  { %v1582_v3 = vpack.c.bf16 %v1070_v0, %v1062_v63  ;;  %v152_v63 = vld [vmem:[#allocation2 + $0x310] sm:$0xff] }
 0x1cd   :  { %v160_v0 = vld [vmem:[#allocation2 + $0x350] sm:$0xff] }
 0x1d0   :  { %3611 = vmatmul.mubr.bf16.gmra.mrb[172].mxu0 %v1422_v5  ;;  %6303 = vmatmul.mubr.bf16.gmra.mrb[172].mxu1 %v1422_v5  ;;  %v919_v5 = vld [vmem:[#allocation2 + $0x1b08] sm:$0xff] }
 0x1d1   :  { %3620 = vmatprep.mubr.bf16.mxu0 %v1431_v6  ;;  %6312 = vmatprep.mubr.bf16.mxu1 %v1431_v6  ;;  %v927_v6 = vld [vmem:[#allocation2 + $0x1b48] sm:$0xff] }
 0x1d2   :  { %v1511_v8 = vpack.c.bf16 %v927_v6, %v919_v5  ;;  %v56_v5 = vld [vmem:[#allocation2 + $0x10] sm:$0xff] }
 0x1d3   :  { %v64_v6 = vld [vmem:[#allocation2 + $0x50] sm:$0xff] }
 0x1d4   :  { %v1080_v9 = vpack.c.bf16 %v64_v6, %v56_v5  ;;  %v168_v5 = vld [vmem:[#allocation2 + $0x390] sm:$0xff] }
 0x1d5   :  { %v176_v6 = vld [vmem:[#allocation2 + $0x3d0] sm:$0xff] }
 0x1d8   :  { %3621 = vmatmul.mubr.bf16.gmra.mrb[176].mxu0 %v1430_v11  ;;  %6313 = vmatmul.mubr.bf16.gmra.mrb[176].mxu1 %v1430_v11  ;;  %v935_v11 = vld [vmem:[#allocation2 + $0x1b88] sm:$0xff] }
 0x1d9   :  { %3630 = vmatprep.mubr.bf16.mxu0 %v1439_v12  ;;  %6322 = vmatprep.mubr.bf16.mxu1 %v1439_v12  ;;  %v943_v12 = vld [vmem:[#allocation2 + $0x1bc8] sm:$0xff] }
 0x1da   :  { %v1519_v14 = vpack.c.bf16 %v943_v12, %v935_v11  ;;  %v11571_v11 = vld [vmem:[#allocation5 + $0x408] ss:$16 sps:$4 sm:$0xff]  }
 0x1e0   :  { %3631 = vmatmul.mubr.bf16.gmra.mrb[180].mxu0 %v1438_v21  ;;  %6323 = vmatmul.mubr.bf16.gmra.mrb[180].mxu1 %v1438_v21  ;;  %v950_v21 = vld [vmem:[#allocation2 + $0x1c00] sm:$0xff] }
 0x1e1   :  { %3640 = vmatprep.mubr.bf16.mxu0 %v1447_v22  ;;  %6332 = vmatprep.mubr.bf16.mxu1 %v1447_v22  ;;  %v958_v22 = vld [vmem:[#allocation2 + $0x1c40] sm:$0xff] }
 0x1e2   :  { %v1526_v25 = vpack.c.bf16 %v958_v22, %v950_v21  ;;  %v11582_v21 = vld [vmem:[#allocation5 + $0x444] ss:$16 sps:$4 sm:$0xff]   ;;  %v11585_v22 = vld [vmem:[#allocation5 + $0x44c] ss:$16 sps:$4 sm:$0xff]  }
 0x1e8   :  { %3641 = vmatmul.mubr.bf16.gmra.mrb[184].mxu0 %v1446_v27  ;;  %6333 = vmatmul.mubr.bf16.gmra.mrb[184].mxu1 %v1446_v27  ;;  %v966_v27 = vld [vmem:[#allocation2 + $0x1c80] sm:$0xff] }
 0x1e9   :  { %3650 = vmatprep.mubr.bf16.mxu0 %v1455_v28  ;;  %6342 = vmatprep.mubr.bf16.mxu1 %v1455_v28  ;;  %v974_v28 = vld [vmem:[#allocation2 + $0x1cc0] sm:$0xff] }
 0x1ea   :  { %v1534_v31 = vpack.c.bf16 %v974_v28, %v966_v27  ;;  %v11588_v27 = vld [vmem:[#allocation5 + $0x464] ss:$16 sps:$4 sm:$0xff]   ;;  %v11591_v28 = vld [vmem:[#allocation5 + $0x46c] ss:$16 sps:$4 sm:$0xff]  }
 0x1f0   :  { %3651 = vmatmul.mubr.bf16.gmra.mrb[188].mxu0 %v1454_v33  ;;  %6343 = vmatmul.mubr.bf16.gmra.mrb[188].mxu1 %v1454_v33  ;;  %v982_v33 = vld [vmem:[#allocation2 + $0x1d00] sm:$0xff] }
 0x1f1   :  { %3660 = vmatprep.mubr.bf16.mxu0 %v1463_v34  ;;  %6352 = vmatprep.mubr.bf16.mxu1 %v1463_v34  ;;  %v990_v34 = vld [vmem:[#allocation2 + $0x1d40] sm:$0xff] }
 0x1f2   :  { %v1542_v37 = vpack.c.bf16 %v990_v34, %v982_v33  ;;  %v11586_v33 = vld [vmem:[#allocation5 + $0x460] ss:$16 sps:$4 sm:$0xff]   ;;  %v11589_v34 = vld [vmem:[#allocation5 + $0x468] ss:$16 sps:$4 sm:$0xff]  }
 0x1f8   :  { %3661 = vmatmul.mubr.bf16.gmra.mrb[192].mxu0 %v1462_v39  ;;  %6353 = vmatmul.mubr.bf16.gmra.mrb[192].mxu1 %v1462_v39  ;;  %v998_v39 = vld [vmem:[#allocation2 + $0x1d80] sm:$0xff] }
 0x1f9   :  { %3670 = vmatprep.mubr.bf16.mxu0 %v1471_v40  ;;  %6362 = vmatprep.mubr.bf16.mxu1 %v1471_v40  ;;  %v1006_v40 = vld [vmem:[#allocation2 + $0x1dc0] sm:$0xff] }
 0x1fa   :  { %v1550_v43 = vpack.c.bf16 %v1006_v40, %v998_v39  ;;  %v11592_v39 = vld [vmem:[#allocation5 + $0x480] ss:$16 sps:$4 sm:$0xff]   ;;  %v11595_v40 = vld [vmem:[#allocation5 + $0x488] ss:$16 sps:$4 sm:$0xff]  }
 0x200   :  { %3671 = vmatmul.mubr.bf16.gmra.mrb[196].mxu0 %v1470_v47  ;;  %6363 = vmatmul.mubr.bf16.gmra.mrb[196].mxu1 %v1470_v47  ;;  %v1031_v47 = vld [vmem:[#allocation2 + $0x1e88] sm:$0xff] }
 0x201   :  { %3680 = vmatprep.mubr.bf16.mxu0 %v1479_v48  ;;  %6372 = vmatprep.mubr.bf16.mxu1 %v1479_v48  ;;  %v1039_v48 = vld [vmem:[#allocation2 + $0x1ec8] sm:$0xff] }
 0x202   :  { %v1567_v50 = vpack.c.bf16 %v1039_v48, %v1031_v47  ;;  %v120_v47 = vld [vmem:[#allocation2 + $0x210] sm:$0xff] }
 0x203   :  { %v128_v48 = vld [vmem:[#allocation2 + $0x250] sm:$0xff] }
 0x204   :  { %v1112_v51 = vpack.c.bf16 %v128_v48, %v120_v47  ;;  %v11613_v47 = vld [vmem:[#allocation5 + $0x4e8] ss:$16 sps:$4 sm:$0xff]   ;;  %v264_v48 = vld [vmem:[#allocation2 + $0x690] sm:$0xff] }
 0x208   :  { %3681 = vmatmul.mubr.bf16.gmra.mrb[200].mxu0 %v1478_v53  ;;  %6373 = vmatmul.mubr.bf16.gmra.mrb[200].mxu1 %v1478_v53  ;;  %v1047_v53 = vld [vmem:[#allocation2 + $0x1f08] sm:$0xff] }
 0x209   :  { %3690 = vmatprep.mubr.bf16.mxu0 %v1487_v54  ;;  %6382 = vmatprep.mubr.bf16.mxu1 %v1487_v54  ;;  %v1055_v54 = vld [vmem:[#allocation2 + $0x1f48] sm:$0xff] }
 0x20a   :  { %v1575_v56 = vpack.c.bf16 %v1055_v54, %v1047_v53  ;;  %v11598_v53 = vld [vmem:[#allocation5 + $0x4a0] ss:$16 sps:$4 sm:$0xff]   ;;  %v11600_v54 = vld [vmem:[#allocation5 + $0x4a4] ss:$16 sps:$4 sm:$0xff]  }
 0x210   :  { %3691 = vmatmul.mubr.bf16.gmra.mrb[204].mxu0 %v1486_v59  ;;  %6383 = vmatmul.mubr.bf16.gmra.mrb[204].mxu1 %v1486_v59  ;;  %v1063_v59 = vld [vmem:[#allocation2 + $0x1f88] sm:$0xff] }
 0x211   :  { %3700 = vmatprep.mubr.bf16.mxu0 %v1495_v60  ;;  %6392 = vmatprep.mubr.bf16.mxu1 %v1495_v60  ;;  %v1071_v60 = vld [vmem:[#allocation2 + $0x1fc8] sm:$0xff] }
 0x212   :  { %v1583_v62 = vpack.c.bf16 %v1071_v60, %v1063_v59  ;;  %v153_v59 = vld [vmem:[#allocation2 + $0x318] sm:$0xff] }
 0x213   :  { %v161_v60 = vld [vmem:[#allocation2 + $0x358] sm:$0xff] }
 0x218   :  { %3701 = vmatmul.mubr.bf16.gmra.mrb[208].mxu0 %v1494_v1  ;;  %6393 = vmatmul.mubr.bf16.gmra.mrb[208].mxu1 %v1494_v1  ;;  %v57_v1 = vld [vmem:[#allocation2 + $0x18] sm:$0xff] }
 0x219   :  { %3710 = vmatprep.mubr.bf16.mxu0 %v1503_v2  ;;  %6402 = vmatprep.mubr.bf16.mxu1 %v1503_v2  ;;  %v65_v2 = vld [vmem:[#allocation2 + $0x58] sm:$0xff] }
 0x21a   :  { %v1081_v4 = vpack.c.bf16 %v65_v2, %v57_v1  ;;  %v169_v1 = vld [vmem:[#allocation2 + $0x398] sm:$0xff] }
 0x21b   :  { %v177_v2 = vld [vmem:[#allocation2 + $0x3d8] sm:$0xff] }
 0x220   :  { %3711 = vmatmul.mubr.bf16.gmra.mrb[212].mxu0 %v1502_v7  ;;  %6403 = vmatmul.mubr.bf16.gmra.mrb[212].mxu1 %v1502_v7  ;;  %v73_v7 = vld [vmem:[#allocation2 + $0x98] sm:$0xff] }
 0x221   :  { %3720 = vmatprep.mubr.bf16.mxu0 %v1511_v8  ;;  %6412 = vmatprep.mubr.bf16.mxu1 %v1511_v8  ;;  %v81_v8 = vld [vmem:[#allocation2 + $0xd8] sm:$0xff] }
 0x222   :  { %v1089_v12 = vpack.c.bf16 %v81_v8, %v73_v7  ;;  %v185_v7 = vld [vmem:[#allocation2 + $0x418] sm:$0xff] }
 0x223   :  { %v193_v8 = vld [vmem:[#allocation2 + $0x458] sm:$0xff] }
 0x228   :  { %3721 = vmatmul.mubr.bf16.gmra.mrb[216].mxu0 %v1510_v13  ;;  %6413 = vmatmul.mubr.bf16.gmra.mrb[216].mxu1 %v1510_v13  ;;  %v11576_v13 = vld [vmem:[#allocation5 + $0x424] ss:$16 sps:$4 sm:$0xff]  }
 0x229   :  { %3730 = vmatprep.mubr.bf16.mxu0 %v1519_v14  ;;  %6422 = vmatprep.mubr.bf16.mxu1 %v1519_v14  ;;  %v11579_v14 = vld [vmem:[#allocation5 + $0x42c] ss:$16 sps:$4 sm:$0xff]  }
 0x230   :  { %3731 = vmatmul.mubr.bf16.gmra.mrb[220].mxu0 %v1518_v19  ;;  %6423 = vmatmul.mubr.bf16.gmra.mrb[220].mxu1 %v1518_v19  ;;  %v11577_v19 = vld [vmem:[#allocation5 + $0x428] ss:$16 sps:$4 sm:$0xff]  }
 0x231   :  { %3740 = vmatprep.mubr.bf16.mxu0 %v1527_v20  ;;  %6432 = vmatprep.mubr.bf16.mxu1 %v1527_v20  ;;  %v97_v20 = vld [vmem:[#allocation2 + $0x158] sm:$0xff] }
 0x232   :  { %v1097_v24 = vpack.c.bf16 %v97_v20, %v89_v17  ;;  %v11604_v17 = vld [vmem:[#allocation5 + $0x4c0] ss:$16 sps:$4 sm:$0xff]  }
 0x233   :  { %v200_v20 = vld [vmem:[#allocation2 + $0x490] sm:$0xff] }
 0x238   :  { %3741 = vmatmul.mubr.bf16.gmra.mrb[224].mxu0 %v1526_v25  ;;  %6433 = vmatmul.mubr.bf16.gmra.mrb[224].mxu1 %v1526_v25  ;;  %v11580_v25 = vld [vmem:[#allocation5 + $0x440] ss:$16 sps:$4 sm:$0xff]  }
 0x239   :  { %3750 = vmatprep.mubr.bf16.mxu0 %v1535_v26  ;;  %6442 = vmatprep.mubr.bf16.mxu1 %v1535_v26  ;;  %v11583_v26 = vld [vmem:[#allocation5 + $0x448] ss:$16 sps:$4 sm:$0xff]  }
 0x240   :  { %3751 = vmatmul.mubr.bf16.gmra.mrb[228].mxu0 %v1534_v31  ;;  %6443 = vmatmul.mubr.bf16.gmra.mrb[228].mxu1 %v1534_v31  ;;  %v105_v31 = vld [vmem:[#allocation2 + $0x198] sm:$0xff] }
 0x241   :  { %3760 = vmatprep.mubr.bf16.mxu0 %v1543_v32  ;;  %6452 = vmatprep.mubr.bf16.mxu1 %v1543_v32  ;;  %v113_v32 = vld [vmem:[#allocation2 + $0x1d8] sm:$0xff] }
 0x248   :  { %3761 = vmatmul.mubr.bf16.gmra.mrb[232].mxu0 %v1542_v37  ;;  %6453 = vmatmul.mubr.bf16.gmra.mrb[232].mxu1 %v1542_v37  ;;  %v1096_v37 = vpack.c.bf16 %v96_v30, %v88_v29  ;;  %v233_v29 = vld [vmem:[#allocation2 + $0x598] sm:$0xff] }
 0x249   :  { %3770 = vmatprep.mubr.bf16.mxu0 %v1551_v38  ;;  %6462 = vmatprep.mubr.bf16.mxu1 %v1551_v38  ;;  %v1105_v38 = vpack.c.bf16 %v113_v32, %v105_v31  ;;  %v241_v30 = vld [vmem:[#allocation2 + $0x5d8] sm:$0xff] }
 0x24a   :  { %v1169_v32 = vpack.c.bf16 %v241_v30, %v233_v29 }
 0x250   :  { %3771 = vmatmul.mubr.bf16.gmra.mrb[236].mxu0 %v1550_v43  ;;  %6463 = vmatmul.mubr.bf16.gmra.mrb[236].mxu1 %v1550_v43  ;;  %v121_v43 = vld [vmem:[#allocation2 + $0x218] sm:$0xff] }
 0x251   :  { %3780 = vmatprep.mubr.bf16.mxu0 %v1559_v44  ;;  %6472 = vmatprep.mubr.bf16.mxu1 %v1559_v44  ;;  %v129_v44 = vld [vmem:[#allocation2 + $0x258] sm:$0xff] }
 0x252   :  { %v1113_v46 = vpack.c.bf16 %v129_v44, %v121_v43  ;;  %v1185_v44 = vpack.c.bf16 %v273_v42, %v265_v41  ;;  %v400_v41 = vld [vmem:[#allocation2 + $0xad0] sm:$0xff]  ;;  %v11627_v42 = vld [vmem:[#allocation5 + $0x52c] ss:$16 sps:$4 sm:$0xff]  }
 0x258   :  { %3781 = vmatmul.mubr.bf16.gmra.mrb[240].mxu0 %v1558_v49  ;;  %6473 = vmatmul.mubr.bf16.gmra.mrb[240].mxu1 %v1558_v49  ;;  %v137_v49 = vld [vmem:[#allocation2 + $0x298] sm:$0xff] }
 0x259   :  { %3790 = vmatprep.mubr.bf16.mxu0 %v1567_v50  ;;  %6482 = vmatprep.mubr.bf16.mxu1 %v1567_v50  ;;  %v145_v50 = vld [vmem:[#allocation2 + $0x2d8] sm:$0xff] }
 0x25a   :  { %v1121_v52 = vpack.c.bf16 %v145_v50, %v137_v49  ;;  %v272_v49 = vld [vmem:[#allocation2 + $0x6d0] sm:$0xff]  ;;  %v11615_v50 = vld [vmem:[#allocation5 + $0x4ec] ss:$16 sps:$4 sm:$0xff]  }
 0x260   :  { %3791 = vmatmul.mubr.bf16.gmra.mrb[244].mxu0 %v1566_v55  ;;  %6483 = vmatmul.mubr.bf16.gmra.mrb[244].mxu1 %v1566_v55  ;;  %v11601_v55 = vld [vmem:[#allocation5 + $0x4a8] ss:$16 sps:$4 sm:$0xff]  }
 0x261   :  { %3800 = vmatprep.mubr.bf16.mxu0 %v1575_v56  ;;  %6492 = vmatprep.mubr.bf16.mxu1 %v1575_v56  ;;  %v136_v56 = vld [vmem:[#allocation2 + $0x290] sm:$0xff] }
 0x268   :  { %3801 = vmatmul.mubr.bf16.gmra.mrb[248].mxu0 %v1574_v61  ;;  %6493 = vmatmul.mubr.bf16.gmra.mrb[248].mxu1 %v1574_v61  ;;  %v1120_v61 = vpack.c.bf16 %v144_v57, %v136_v56  ;;  %v288_v56 = vld [vmem:[#allocation2 + $0x750] sm:$0xff]  ;;  %v297_v57 = vld [vmem:[#allocation2 + $0x798] sm:$0xff] }
 0x269   :  { %3810 = vmatprep.mubr.bf16.mxu0 %v1583_v62  ;;  %6502 = vmatprep.mubr.bf16.mxu1 %v1583_v62  ;;  %v1129_v62 = vpack.c.bf16 %v161_v60, %v153_v59 }
 0x270   :  { %3811 = vmatmul.mubr.bf16.gmra.mrb[252].mxu0 %v1582_v3  ;;  %6503 = vmatmul.mubr.bf16.gmra.mrb[252].mxu1 %v1582_v3  ;;  %v1128_v3 = vpack.c.bf16 %v160_v0, %v152_v63  ;;  %v313_v63 = vld [vmem:[#allocation2 + $0x818] sm:$0xff] }
 0x271   :  { %3853 = vmatprep.mubr.bf16.mxu0 %v1081_v4  ;;  %6545 = vmatprep.mubr.bf16.mxu1 %v1081_v4  ;;  %v1137_v4 = vpack.c.bf16 %v177_v2, %v169_v1  ;;  %v321_v0 = vld [vmem:[#allocation2 + $0x858] sm:$0xff] }
 0x272   :  { %v1209_v2 = vpack.c.bf16 %v321_v0, %v313_v63 }
 0x278   :  { %3854 = vmatmul.mubr.bf16.vlgmr.msra.gmra.mrb[0].mxu0 %v1080_v9  ;;  %6546 = vmatmul.mubr.bf16.vlgmr.msra.gmra.mrb[0].mxu1 %v1080_v9  ;;  %v1136_v9 = vpack.c.bf16 %v176_v6, %v168_v5  ;;  %v329_v5 = vld [vmem:[#allocation2 + $0x898] sm:$0xff] }
 0x279   :  { %4495 = vmatpush1.bf16.msra.mxu0 %v11568_v10  ;;  %7187 = vmatpush1.bf16.msra.mxu1 %v11571_v11  ;;  %v1145_v10 = vpack.c.bf16 %v193_v8, %v185_v7  ;;  %v184_v11 = vld [vmem:[#allocation2 + $0x410] sm:$0xff]  ;;  %v337_v6 = vld [vmem:[#allocation2 + $0x8d8] sm:$0xff] }
 0x27a   :  { %3863 = vmatprep.mubr.bf16.mxu0 %v1089_v12  ;;  %6555 = vmatprep.mubr.bf16.mxu1 %v1089_v12  ;;  %v192_v12 = vld [vmem:[#allocation2 + $0x450] sm:$0xff]  ;;  %v1217_v8 = vpack.c.bf16 %v337_v6, %v329_v5  ;;  %v11633_v6 = vld [vmem:[#allocation5 + $0x54c] ss:$16 sps:$4 sm:$0xff]  }
 0x27b   :  { %4496 = vmatprep.subr.bf16.mxu0 %v11576_v13  ;;  %7188 = vmatprep.subr.bf16.mxu1 %v11579_v14  ;;  %v201_v13 = vld [vmem:[#allocation2 + $0x498] sm:$0xff]  ;;  %v1144_v15 = vpack.c.bf16 %v192_v12, %v184_v11  ;;  %v328_v12 = vld [vmem:[#allocation2 + $0x890] sm:$0xff] }
 0x27c   :  { %v209_v14 = vld [vmem:[#allocation2 + $0x4d8] sm:$0xff]  ;;  %v464_v5 = vld [vmem:[#allocation2 + $0xcd0] sm:$0xff] }
 0x27d   :  { %4497 = vmatpush1.bf16.msra.mxu0 %v11574_v18  ;;  %7189 = vmatpush1.bf16.msra.mxu1 %v11577_v19  ;;  %v1153_v16 = vpack.c.bf16 %v209_v14, %v201_v13  ;;  %v11606_v18 = vld [vmem:[#allocation5 + $0x4c4] ss:$16 sps:$4 sm:$0xff]   ;;  %v11607_v19 = vld [vmem:[#allocation5 + $0x4c8] ss:$16 sps:$4 sm:$0xff]   ;;  %v11621_v14 = vld [vmem:[#allocation5 + $0x50c] ss:$16 sps:$4 sm:$0xff]  }
 0x27e   :  { %4498 = vmatprep.subr.bf16.mxu0 %v11582_v21  ;;  %7190 = vmatprep.subr.bf16.mxu1 %v11585_v22  ;;  %v208_v21 = vld [vmem:[#allocation2 + $0x4d0] sm:$0xff]  ;;  %v11609_v22 = vld [vmem:[#allocation5 + $0x4cc] ss:$16 sps:$4 sm:$0xff]   ;;  %v11619_v11 = vld [vmem:[#allocation5 + $0x508] ss:$16 sps:$4 sm:$0xff]  }
 0x27f   :  { %v336_v13 = vld [vmem:[#allocation2 + $0x8d0] sm:$0xff] }
 0x280   :  { %3864 = vmatmul.mubr.bf16.gmra.mrb[4].mxu0 %v1088_v23  ;;  %6556 = vmatmul.mubr.bf16.gmra.mrb[4].mxu1 %v1088_v23  ;;  %v217_v23 = vld [vmem:[#allocation2 + $0x518] sm:$0xff] }
 0x281   :  { %3873 = vmatprep.mubr.bf16.mxu0 %v1097_v24  ;;  %6565 = vmatprep.mubr.bf16.mxu1 %v1097_v24  ;;  %v225_v24 = vld [vmem:[#allocation2 + $0x558] sm:$0xff] }
 0x282   :  { %4499 = vmatpush1.bf16.msra.mxu0 %v11580_v25  ;;  %7191 = vmatpush1.bf16.msra.mxu1 %v11583_v26  ;;  %v1152_v25 = vpack.c.bf16 %v208_v21, %v200_v20  ;;  %v1161_v26 = vpack.c.bf16 %v225_v24, %v217_v23  ;;  %v352_v20 = vld [vmem:[#allocation2 + $0x950] sm:$0xff]  ;;  %v361_v21 = vld [vmem:[#allocation2 + $0x998] sm:$0xff] }
 0x283   :  { %4500 = vmatprep.subr.bf16.mxu0 %v11588_v27  ;;  %7192 = vmatprep.subr.bf16.mxu1 %v11591_v28  ;;  %v216_v27 = vld [vmem:[#allocation2 + $0x510] sm:$0xff] }
 0x284   :  { %v224_v28 = vld [vmem:[#allocation2 + $0x550] sm:$0xff] }
 0x285   :  { %v1160_v31 = vpack.c.bf16 %v224_v28, %v216_v27  ;;  %v377_v27 = vld [vmem:[#allocation2 + $0xa18] sm:$0xff] }
 0x286   :  { %4501 = vmatpush1.bf16.msra.mxu0 %v11586_v33  ;;  %7193 = vmatpush1.bf16.msra.mxu1 %v11589_v34  ;;  %v232_v33 = vld [vmem:[#allocation2 + $0x590] sm:$0xff]  ;;  %v385_v28 = vld [vmem:[#allocation2 + $0xa58] sm:$0xff] }
 0x287   :  { %4502 = vmatprep.subr.bf16.mxu0 %v11594_v35  ;;  %7194 = vmatprep.subr.bf16.mxu1 %v11597_v36  ;;  %v240_v34 = vld [vmem:[#allocation2 + $0x5d0] sm:$0xff]  ;;  %v249_v35 = vld [vmem:[#allocation2 + $0x618] sm:$0xff]  ;;  %v1241_v30 = vpack.c.bf16 %v385_v28, %v377_v27 }
 0x288   :  { %3874 = vmatmul.mubr.bf16.gmra.mrb[8].mxu0 %v1096_v37  ;;  %6566 = vmatmul.mubr.bf16.gmra.mrb[8].mxu1 %v1096_v37  ;;  %v257_v36 = vld [vmem:[#allocation2 + $0x658] sm:$0xff]  ;;  %v1168_v37 = vpack.c.bf16 %v240_v34, %v232_v33 }
 0x289   :  { %3883 = vmatprep.mubr.bf16.mxu0 %v1105_v38  ;;  %6575 = vmatprep.mubr.bf16.mxu1 %v1105_v38  ;;  %v1177_v38 = vpack.c.bf16 %v257_v36, %v249_v35  ;;  %v393_v33 = vld [vmem:[#allocation2 + $0xa98] sm:$0xff] }
 0x28a   :  { %4503 = vmatpush1.bf16.msra.mxu0 %v11592_v39  ;;  %7195 = vmatpush1.bf16.msra.mxu1 %v11595_v40  ;;  %v248_v39 = vld [vmem:[#allocation2 + $0x610] sm:$0xff]  ;;  %v401_v34 = vld [vmem:[#allocation2 + $0xad8] sm:$0xff] }
 0x28b   :  { %4504 = vmatprep.subr.bf16.mxu0 %v11600_v54  ;;  %7196 = vmatprep.subr.bf16.mxu1 %v11603_v58  ;;  %v256_v40 = vld [vmem:[#allocation2 + $0x650] sm:$0xff]  ;;  %v305_v58 = vld [vmem:[#allocation2 + $0x7d8] sm:$0xff]  ;;  %v1249_v36 = vpack.c.bf16 %v401_v34, %v393_v33 }
 0x28c   :  { %v1176_v43 = vpack.c.bf16 %v256_v40, %v248_v39  ;;  %v1201_v60 = vpack.c.bf16 %v305_v58, %v297_v57  ;;  %v11625_v39 = vld [vmem:[#allocation5 + $0x528] ss:$16 sps:$4 sm:$0xff]   ;;  %v392_v40 = vld [vmem:[#allocation2 + $0xa90] sm:$0xff]  ;;  %v11639_v34 = vld [vmem:[#allocation5 + $0x56c] ss:$16 sps:$4 sm:$0xff]  }
 0x28d   :  { %v528_v33 = vld [vmem:[#allocation2 + $0xed0] sm:$0xff] }
 0x28e   :  { %4505 = vmatpush1.bf16.msra.mxu0 %v11598_v53  ;;  %7197 = vmatpush1.bf16.msra.mxu1 %v11601_v55  ;;  %v1184_v53 = vpack.c.bf16 %v272_v49, %v264_v48  ;;  %v280_v55 = vld [vmem:[#allocation2 + $0x710] sm:$0xff]  ;;  %v425_v49 = vld [vmem:[#allocation2 + $0xb98] sm:$0xff] }
 0x28f   :  { %4506 = vmatprep.subr.bf16.mxu0 %v11606_v18  ;;  %7198 = vmatprep.subr.bf16.mxu1 %v11609_v22  ;;  %v1192_v59 = vpack.c.bf16 %v288_v56, %v280_v55  ;;  %v369_v22 = vld [vmem:[#allocation2 + $0x9d8] sm:$0xff]  ;;  %v416_v48 = vld [vmem:[#allocation2 + $0xb50] sm:$0xff] }
 0x290   :  { %3884 = vmatmul.mubr.bf16.gmra.mrb[12].mxu0 %v1104_v45  ;;  %6576 = vmatmul.mubr.bf16.gmra.mrb[12].mxu1 %v1104_v45  ;;  %v11610_v45 = vld [vmem:[#allocation5 + $0x4e0] ss:$16 sps:$4 sm:$0xff]   ;;  %v1233_v24 = vpack.c.bf16 %v369_v22, %v361_v21  ;;  %v441_v55 = vld [vmem:[#allocation2 + $0xc18] sm:$0xff] }
 0x291   :  { %3893 = vmatprep.mubr.bf16.mxu0 %v1113_v46  ;;  %6585 = vmatprep.mubr.bf16.mxu1 %v1113_v46  ;;  %v11612_v46 = vld [vmem:[#allocation5 + $0x4e4] ss:$16 sps:$4 sm:$0xff]   ;;  %v449_v56 = vld [vmem:[#allocation2 + $0xc58] sm:$0xff] }
 0x292   :  { %4507 = vmatpush1.bf16.msra.mxu0 %v11604_v17  ;;  %7199 = vmatpush1.bf16.msra.mxu1 %v11607_v19  ;;  %v1216_v17 = vpack.c.bf16 %v336_v13, %v328_v12  ;;  %v344_v19 = vld [vmem:[#allocation2 + $0x910] sm:$0xff]  ;;  %v1273_v58 = vpack.c.bf16 %v449_v56, %v441_v55  ;;  %v489_v13 = vld [vmem:[#allocation2 + $0xd98] sm:$0xff] }
 0x293   :  { %4508 = vmatprep.subr.bf16.mxu0 %v11612_v46  ;;  %7200 = vmatprep.subr.bf16.mxu1 %v11615_v50  ;;  %v1224_v23 = vpack.c.bf16 %v352_v20, %v344_v19  ;;  %v433_v50 = vld [vmem:[#allocation2 + $0xbd8] sm:$0xff]  ;;  %v480_v12 = vld [vmem:[#allocation2 + $0xd50] sm:$0xff] }
 0x294   :  { %v505_v19 = vld [vmem:[#allocation2 + $0xe18] sm:$0xff] }
 0x295   :  { %v513_v20 = vld [vmem:[#allocation2 + $0xe58] sm:$0xff] }
 0x296   :  { %4509 = vmatpush1.bf16.msra.mxu0 %v11610_v45  ;;  %7201 = vmatpush1.bf16.msra.mxu1 %v11613_v47  ;;  %v1248_v45 = vpack.c.bf16 %v400_v41, %v392_v40  ;;  %v408_v47 = vld [vmem:[#allocation2 + $0xb10] sm:$0xff]  ;;  %v1305_v22 = vpack.c.bf16 %v513_v20, %v505_v19  ;;  %v553_v41 = vld [vmem:[#allocation2 + $0xf98] sm:$0xff] }
 0x297   :  { %7202 = vmatprep.subr.bf16.mxu1 %v11621_v14  ;;  %v497_v14 = vld [vmem:[#allocation2 + $0xdd8] sm:$0xff]  ;;  %v544_v40 = vld [vmem:[#allocation2 + $0xf50] sm:$0xff] }
 0x298   :  { %3894 = vmatmul.mubr.bf16.gmra.mrb[16].mxu0 %v1112_v51  ;;  %6586 = vmatmul.mubr.bf16.gmra.mrb[16].mxu1 %v1112_v51  ;;  %v281_v51 = vld [vmem:[#allocation2 + $0x718] sm:$0xff] }
 0x299   :  { %3903 = vmatprep.mubr.bf16.mxu0 %v1121_v52  ;;  %6595 = vmatprep.mubr.bf16.mxu1 %v1121_v52  ;;  %v289_v52 = vld [vmem:[#allocation2 + $0x758] sm:$0xff] }
 0x29a   :  { %v1193_v54 = vpack.c.bf16 %v289_v52, %v281_v51  ;;  %7203 = vmatpush1.bf16.msra.mxu1 %v11619_v11  ;;  %v1256_v51 = vpack.c.bf16 %v416_v48, %v408_v47  ;;  %v1265_v52 = vpack.c.bf16 %v433_v50, %v425_v49  ;;  %v472_v11 = vld [vmem:[#allocation2 + $0xd10] sm:$0xff]  ;;  %v569_v47 = vld [vmem:[#allocation2 + $0x1018] sm:$0xff] }
 0x29b   :  { %7204 = vmatprep.subr.bf16.mxu1 %v11627_v42  ;;  %v561_v42 = vld [vmem:[#allocation2 + $0xfd8] sm:$0xff] }
 0x29c   :  { %v577_v48 = vld [vmem:[#allocation2 + $0x1058] sm:$0xff] }
 0x29d   :  { %v1337_v50 = vpack.c.bf16 %v577_v48, %v569_v47 }
 0x29e   :  { %7205 = vmatpush1.bf16.msra.mxu1 %v11625_v39  ;;  %v536_v39 = vld [vmem:[#allocation2 + $0xf10] sm:$0xff] }
 0x29f   :  { %7206 = vmatprep.subr.bf16.mxu1 %v11633_v6  ;;  %v625_v6 = vld [vmem:[#allocation2 + $0x11d8] sm:$0xff] }
 0x2a0   :  { %3904 = vmatmul.mubr.bf16.gmra.mrb[20].mxu0 %v1120_v61  ;;  %6596 = vmatmul.mubr.bf16.gmra.mrb[20].mxu1 %v1120_v61  ;;  %v296_v61 = vld [vmem:[#allocation2 + $0x790] sm:$0xff] }
 0x2a1   :  { %3913 = vmatprep.mubr.bf16.mxu0 %v1129_v62  ;;  %6605 = vmatprep.mubr.bf16.mxu1 %v1129_v62  ;;  %v304_v62 = vld [vmem:[#allocation2 + $0x7d0] sm:$0xff] }
 0x2a2   :  { %v1200_v1 = vpack.c.bf16 %v304_v62, %v296_v61  ;;  %v457_v61 = vld [vmem:[#allocation2 + $0xc98] sm:$0xff] }
 0x2a3   :  { %v465_v62 = vld [vmem:[#allocation2 + $0xcd8] sm:$0xff] }
 0x2a4   :  { %v1281_v0 = vpack.c.bf16 %v465_v62, %v457_v61  ;;  %v592_v61 = vld [vmem:[#allocation2 + $0x10d0] sm:$0xff]  ;;  %v11645_v62 = vld [vmem:[#allocation5 + $0x58c] ss:$16 sps:$4 sm:$0xff]  }
 0x2a8   :  { %3914 = vmatmul.mubr.bf16.gmra.mrb[24].mxu0 %v1128_v3  ;;  %6606 = vmatmul.mubr.bf16.gmra.mrb[24].mxu1 %v1128_v3  ;;  %v312_v3 = vld [vmem:[#allocation2 + $0x810] sm:$0xff] }
 0x2a9   :  { %3923 = vmatprep.mubr.bf16.mxu0 %v1137_v4  ;;  %6615 = vmatprep.mubr.bf16.mxu1 %v1137_v4  ;;  %v320_v4 = vld [vmem:[#allocation2 + $0x850] sm:$0xff] }
 0x2aa   :  { %v1208_v7 = vpack.c.bf16 %v320_v4, %v312_v3  ;;  %v11631_v3 = vld [vmem:[#allocation5 + $0x548] ss:$16 sps:$4 sm:$0xff]   ;;  %v456_v4 = vld [vmem:[#allocation2 + $0xc90] sm:$0xff] }
 0x2ab   :  { %7207 = vmatpush1.bf16.msra.mxu1 %v11631_v3  ;;  %v600_v3 = vld [vmem:[#allocation2 + $0x1110] sm:$0xff] }
 0x2ac   :  { %7208 = vmatprep.subr.bf16.mxu1 %v11639_v34  ;;  %v689_v34 = vld [vmem:[#allocation2 + $0x13d8] sm:$0xff] }
 0x2b0   :  { %3924 = vmatmul.mubr.bf16.gmra.mrb[28].mxu0 %v1136_v9  ;;  %6616 = vmatmul.mubr.bf16.gmra.mrb[28].mxu1 %v1136_v9  ;;  %v11616_v9 = vld [vmem:[#allocation5 + $0x500] ss:$16 sps:$4 sm:$0xff]  }
 0x2b1   :  { %3933 = vmatprep.mubr.bf16.mxu0 %v1145_v10  ;;  %6625 = vmatprep.mubr.bf16.mxu1 %v1145_v10  ;;  %v11618_v10 = vld [vmem:[#allocation5 + $0x504] ss:$16 sps:$4 sm:$0xff]  }
 0x2b2   :  { %4510 = vmatprep.subr.bf16.mxu0 %v11618_v10 }
 0x2b3   :  { %4511 = vmatpush1.bf16.msra.mxu0 %v11616_v9  ;;  %v1280_v9 = vpack.c.bf16 %v464_v5, %v456_v4  ;;  %v608_v4 = vld [vmem:[#allocation2 + $0x1150] sm:$0xff]  ;;  %v617_v5 = vld [vmem:[#allocation2 + $0x1198] sm:$0xff] }
 0x2b8   :  { %3934 = vmatmul.mubr.bf16.gmra.mrb[32].mxu0 %v1144_v15  ;;  %6626 = vmatmul.mubr.bf16.gmra.mrb[32].mxu1 %v1144_v15  ;;  %v345_v15 = vld [vmem:[#allocation2 + $0x918] sm:$0xff] }
 0x2b9   :  { %3943 = vmatprep.mubr.bf16.mxu0 %v1153_v16  ;;  %6635 = vmatprep.mubr.bf16.mxu1 %v1153_v16  ;;  %v353_v16 = vld [vmem:[#allocation2 + $0x958] sm:$0xff] }
 0x2ba   :  { %v1225_v18 = vpack.c.bf16 %v353_v16, %v345_v15  ;;  %v1288_v15 = vpack.c.bf16 %v480_v12, %v472_v11  ;;  %v1297_v16 = vpack.c.bf16 %v497_v14, %v489_v13  ;;  %v633_v11 = vld [vmem:[#allocation2 + $0x1218] sm:$0xff] }
 0x2bb   :  { %v641_v12 = vld [vmem:[#allocation2 + $0x1258] sm:$0xff] }
 0x2bc   :  { %v1369_v14 = vpack.c.bf16 %v641_v12, %v633_v11 }
 0x2c0   :  { %3944 = vmatmul.mubr.bf16.gmra.mrb[36].mxu0 %v1152_v25  ;;  %6636 = vmatmul.mubr.bf16.gmra.mrb[36].mxu1 %v1152_v25  ;;  %v360_v25 = vld [vmem:[#allocation2 + $0x990] sm:$0xff] }
 0x2c1   :  { %3953 = vmatprep.mubr.bf16.mxu0 %v1161_v26  ;;  %6645 = vmatprep.mubr.bf16.mxu1 %v1161_v26  ;;  %v368_v26 = vld [vmem:[#allocation2 + $0x9d0] sm:$0xff] }
 0x2c2   :  { %v1232_v29 = vpack.c.bf16 %v368_v26, %v360_v25  ;;  %v521_v25 = vld [vmem:[#allocation2 + $0xe98] sm:$0xff] }
 0x2c3   :  { %v529_v26 = vld [vmem:[#allocation2 + $0xed8] sm:$0xff] }
 0x2c4   :  { %v1313_v28 = vpack.c.bf16 %v529_v26, %v521_v25  ;;  %v656_v25 = vld [vmem:[#allocation2 + $0x12d0] sm:$0xff]  ;;  %v11651_v26 = vld [vmem:[#allocation5 + $0x5ac] ss:$16 sps:$4 sm:$0xff]  }
 0x2c8   :  { %3954 = vmatmul.mubr.bf16.gmra.mrb[40].mxu0 %v1160_v31  ;;  %6646 = vmatmul.mubr.bf16.gmra.mrb[40].mxu1 %v1160_v31  ;;  %v376_v31 = vld [vmem:[#allocation2 + $0xa10] sm:$0xff] }
 0x2c9   :  { %3963 = vmatprep.mubr.bf16.mxu0 %v1169_v32  ;;  %6655 = vmatprep.mubr.bf16.mxu1 %v1169_v32  ;;  %v384_v32 = vld [vmem:[#allocation2 + $0xa50] sm:$0xff] }
 0x2ca   :  { %v1240_v35 = vpack.c.bf16 %v384_v32, %v376_v31  ;;  %v11637_v31 = vld [vmem:[#allocation5 + $0x568] ss:$16 sps:$4 sm:$0xff]   ;;  %v520_v32 = vld [vmem:[#allocation2 + $0xe90] sm:$0xff] }
 0x2cb   :  { %7209 = vmatpush1.bf16.msra.mxu1 %v11637_v31  ;;  %v664_v31 = vld [vmem:[#allocation2 + $0x1310] sm:$0xff] }
 0x2cc   :  { %7210 = vmatprep.subr.bf16.mxu1 %v11645_v62  ;;  %v753_v62 = vld [vmem:[#allocation2 + $0x15d8] sm:$0xff] }
 0x2d0   :  { %3964 = vmatmul.mubr.bf16.gmra.mrb[44].mxu0 %v1168_v37  ;;  %6656 = vmatmul.mubr.bf16.gmra.mrb[44].mxu1 %v1168_v37  ;;  %v11622_v37 = vld [vmem:[#allocation5 + $0x520] ss:$16 sps:$4 sm:$0xff]  }
 0x2d1   :  { %3973 = vmatprep.mubr.bf16.mxu0 %v1177_v38  ;;  %6665 = vmatprep.mubr.bf16.mxu1 %v1177_v38  ;;  %v11624_v38 = vld [vmem:[#allocation5 + $0x524] ss:$16 sps:$4 sm:$0xff]  }
 0x2d2   :  { %4512 = vmatprep.subr.bf16.mxu0 %v11624_v38 }
 0x2d3   :  { %4513 = vmatpush1.bf16.msra.mxu0 %v11622_v37  ;;  %v1312_v37 = vpack.c.bf16 %v528_v33, %v520_v32  ;;  %v672_v32 = vld [vmem:[#allocation2 + $0x1350] sm:$0xff]  ;;  %v681_v33 = vld [vmem:[#allocation2 + $0x1398] sm:$0xff] }
 0x2d8   :  { %3974 = vmatmul.mubr.bf16.gmra.mrb[48].mxu0 %v1176_v43  ;;  %6666 = vmatmul.mubr.bf16.gmra.mrb[48].mxu1 %v1176_v43  ;;  %v409_v43 = vld [vmem:[#allocation2 + $0xb18] sm:$0xff] }
 0x2d9   :  { %3983 = vmatprep.mubr.bf16.mxu0 %v1185_v44  ;;  %6675 = vmatprep.mubr.bf16.mxu1 %v1185_v44  ;;  %v417_v44 = vld [vmem:[#allocation2 + $0xb58] sm:$0xff] }
 0x2da   :  { %v1257_v46 = vpack.c.bf16 %v417_v44, %v409_v43  ;;  %v1320_v43 = vpack.c.bf16 %v544_v40, %v536_v39  ;;  %v1329_v44 = vpack.c.bf16 %v561_v42, %v553_v41  ;;  %v697_v39 = vld [vmem:[#allocation2 + $0x1418] sm:$0xff] }
 0x2db   :  { %v705_v40 = vld [vmem:[#allocation2 + $0x1458] sm:$0xff] }
 0x2dc   :  { %v1401_v42 = vpack.c.bf16 %v705_v40, %v697_v39 }
 0x2e0   :  { %3984 = vmatmul.mubr.bf16.gmra.mrb[52].mxu0 %v1184_v53  ;;  %6676 = vmatmul.mubr.bf16.gmra.mrb[52].mxu1 %v1184_v53  ;;  %v424_v53 = vld [vmem:[#allocation2 + $0xb90] sm:$0xff] }
 0x2e1   :  { %3993 = vmatprep.mubr.bf16.mxu0 %v1193_v54  ;;  %6685 = vmatprep.mubr.bf16.mxu1 %v1193_v54  ;;  %v432_v54 = vld [vmem:[#allocation2 + $0xbd0] sm:$0xff] }
 0x2e2   :  { %v1264_v57 = vpack.c.bf16 %v432_v54, %v424_v53  ;;  %v585_v53 = vld [vmem:[#allocation2 + $0x1098] sm:$0xff] }
 0x2e3   :  { %v593_v54 = vld [vmem:[#allocation2 + $0x10d8] sm:$0xff] }
 0x2e4   :  { %v1345_v56 = vpack.c.bf16 %v593_v54, %v585_v53  ;;  %v720_v53 = vld [vmem:[#allocation2 + $0x14d0] sm:$0xff]  ;;  %v11657_v54 = vld [vmem:[#allocation5 + $0x5cc] ss:$16 sps:$4 sm:$0xff]  }
 0x2e8   :  { %3994 = vmatmul.mubr.bf16.gmra.mrb[56].mxu0 %v1192_v59  ;;  %6686 = vmatmul.mubr.bf16.gmra.mrb[56].mxu1 %v1192_v59  ;;  %v440_v59 = vld [vmem:[#allocation2 + $0xc10] sm:$0xff] }
 0x2e9   :  { %4003 = vmatprep.mubr.bf16.mxu0 %v1201_v60  ;;  %6695 = vmatprep.mubr.bf16.mxu1 %v1201_v60  ;;  %v448_v60 = vld [vmem:[#allocation2 + $0xc50] sm:$0xff] }
 0x2ea   :  { %v1272_v63 = vpack.c.bf16 %v448_v60, %v440_v59  ;;  %v11643_v59 = vld [vmem:[#allocation5 + $0x588] ss:$16 sps:$4 sm:$0xff]   ;;  %v584_v60 = vld [vmem:[#allocation2 + $0x1090] sm:$0xff] }
 0x2eb   :  { %7211 = vmatpush1.bf16.msra.mxu1 %v11643_v59  ;;  %v728_v59 = vld [vmem:[#allocation2 + $0x1510] sm:$0xff] }
 0x2ec   :  { %7212 = vmatprep.subr.bf16.mxu1 %v11651_v26  ;;  %v817_v26 = vld [vmem:[#allocation2 + $0x17d8] sm:$0xff] }
 0x2f0   :  { %4004 = vmatmul.mubr.bf16.gmra.mrb[60].mxu0 %v1200_v1  ;;  %6696 = vmatmul.mubr.bf16.gmra.mrb[60].mxu1 %v1200_v1  ;;  %v11628_v1 = vld [vmem:[#allocation5 + $0x540] ss:$16 sps:$4 sm:$0xff]  }
 0x2f1   :  { %4013 = vmatprep.mubr.bf16.mxu0 %v1209_v2  ;;  %6705 = vmatprep.mubr.bf16.mxu1 %v1209_v2  ;;  %v11630_v2 = vld [vmem:[#allocation5 + $0x544] ss:$16 sps:$4 sm:$0xff]  }
 0x2f2   :  { %4514 = vmatprep.subr.bf16.mxu0 %v11630_v2 }
 0x2f3   :  { %4515 = vmatpush1.bf16.msra.mxu0 %v11628_v1  ;;  %v1344_v1 = vpack.c.bf16 %v592_v61, %v584_v60  ;;  %v736_v60 = vld [vmem:[#allocation2 + $0x1550] sm:$0xff]  ;;  %v745_v61 = vld [vmem:[#allocation2 + $0x1598] sm:$0xff] }
 0x2f8   :  { %4014 = vmatmul.mubr.bf16.gmra.mrb[64].mxu0 %v1208_v7  ;;  %6706 = vmatmul.mubr.bf16.gmra.mrb[64].mxu1 %v1208_v7  ;;  %v473_v7 = vld [vmem:[#allocation2 + $0xd18] sm:$0xff] }
 0x2f9   :  { %4023 = vmatprep.mubr.bf16.mxu0 %v1217_v8  ;;  %6715 = vmatprep.mubr.bf16.mxu1 %v1217_v8  ;;  %v481_v8 = vld [vmem:[#allocation2 + $0xd58] sm:$0xff] }
 0x2fa   :  { %v1289_v10 = vpack.c.bf16 %v481_v8, %v473_v7  ;;  %v1352_v7 = vpack.c.bf16 %v608_v4, %v600_v3  ;;  %v1361_v8 = vpack.c.bf16 %v625_v6, %v617_v5  ;;  %v761_v3 = vld [vmem:[#allocation2 + $0x1618] sm:$0xff] }
 0x2fb   :  { %v769_v4 = vld [vmem:[#allocation2 + $0x1658] sm:$0xff] }
 0x2fc   :  { %v1433_v6 = vpack.c.bf16 %v769_v4, %v761_v3  ;;  %v904_v3 = vld [vmem:[#allocation2 + $0x1a90] sm:$0xff] }
 0x2fd   :  { %v912_v4 = vld [vmem:[#allocation2 + $0x1ad0] sm:$0xff] }
 0x300   :  { %4024 = vmatmul.mubr.bf16.gmra.mrb[68].mxu0 %v1216_v17  ;;  %6716 = vmatmul.mubr.bf16.gmra.mrb[68].mxu1 %v1216_v17  ;;  %v488_v17 = vld [vmem:[#allocation2 + $0xd90] sm:$0xff] }
 0x301   :  { %4033 = vmatprep.mubr.bf16.mxu0 %v1225_v18  ;;  %6725 = vmatprep.mubr.bf16.mxu1 %v1225_v18  ;;  %v496_v18 = vld [vmem:[#allocation2 + $0xdd0] sm:$0xff] }
 0x302   :  { %v1296_v21 = vpack.c.bf16 %v496_v18, %v488_v17  ;;  %v649_v17 = vld [vmem:[#allocation2 + $0x1298] sm:$0xff] }
 0x303   :  { %v657_v18 = vld [vmem:[#allocation2 + $0x12d8] sm:$0xff] }
 0x304   :  { %v1377_v20 = vpack.c.bf16 %v657_v18, %v649_v17  ;;  %v784_v17 = vld [vmem:[#allocation2 + $0x16d0] sm:$0xff]  ;;  %v11663_v18 = vld [vmem:[#allocation5 + $0x5ec] ss:$16 sps:$4 sm:$0xff]  }
 0x308   :  { %4034 = vmatmul.mubr.bf16.gmra.mrb[72].mxu0 %v1224_v23  ;;  %6726 = vmatmul.mubr.bf16.gmra.mrb[72].mxu1 %v1224_v23  ;;  %v504_v23 = vld [vmem:[#allocation2 + $0xe10] sm:$0xff] }
 0x309   :  { %4043 = vmatprep.mubr.bf16.mxu0 %v1233_v24  ;;  %6735 = vmatprep.mubr.bf16.mxu1 %v1233_v24  ;;  %v512_v24 = vld [vmem:[#allocation2 + $0xe50] sm:$0xff] }
 0x30a   :  { %v1304_v27 = vpack.c.bf16 %v512_v24, %v504_v23  ;;  %v11649_v23 = vld [vmem:[#allocation5 + $0x5a8] ss:$16 sps:$4 sm:$0xff]   ;;  %v648_v24 = vld [vmem:[#allocation2 + $0x1290] sm:$0xff] }
 0x30b   :  { %7213 = vmatpush1.bf16.msra.mxu1 %v11649_v23  ;;  %v792_v23 = vld [vmem:[#allocation2 + $0x1710] sm:$0xff] }
 0x30c   :  { %7214 = vmatprep.subr.bf16.mxu1 %v11657_v54 }
 0x310   :  { %4044 = vmatmul.mubr.bf16.gmra.mrb[76].mxu0 %v1232_v29  ;;  %6736 = vmatmul.mubr.bf16.gmra.mrb[76].mxu1 %v1232_v29  ;;  %v11634_v29 = vld [vmem:[#allocation5 + $0x560] ss:$16 sps:$4 sm:$0xff]  }
 0x311   :  { %4053 = vmatprep.mubr.bf16.mxu0 %v1241_v30  ;;  %6745 = vmatprep.mubr.bf16.mxu1 %v1241_v30  ;;  %v11636_v30 = vld [vmem:[#allocation5 + $0x564] ss:$16 sps:$4 sm:$0xff]  }
 0x312   :  { %4516 = vmatprep.subr.bf16.mxu0 %v11636_v30 }
 0x313   :  { %4517 = vmatpush1.bf16.msra.mxu0 %v11634_v29  ;;  %v1376_v29 = vpack.c.bf16 %v656_v25, %v648_v24  ;;  %v800_v24 = vld [vmem:[#allocation2 + $0x1750] sm:$0xff]  ;;  %v809_v25 = vld [vmem:[#allocation2 + $0x1798] sm:$0xff] }
 0x318   :  { %4054 = vmatmul.mubr.bf16.gmra.mrb[80].mxu0 %v1240_v35  ;;  %6746 = vmatmul.mubr.bf16.gmra.mrb[80].mxu1 %v1240_v35  ;;  %v537_v35 = vld [vmem:[#allocation2 + $0xf18] sm:$0xff] }
 0x319   :  { %4063 = vmatprep.mubr.bf16.mxu0 %v1249_v36  ;;  %6755 = vmatprep.mubr.bf16.mxu1 %v1249_v36  ;;  %v545_v36 = vld [vmem:[#allocation2 + $0xf58] sm:$0xff] }
 0x31a   :  { %v1321_v38 = vpack.c.bf16 %v545_v36, %v537_v35  ;;  %v1384_v35 = vpack.c.bf16 %v672_v32, %v664_v31  ;;  %v1393_v36 = vpack.c.bf16 %v689_v34, %v681_v33  ;;  %v825_v31 = vld [vmem:[#allocation2 + $0x1818] sm:$0xff] }
 0x31b   :  { %v833_v32 = vld [vmem:[#allocation2 + $0x1858] sm:$0xff] }
 0x31c   :  { %v1465_v34 = vpack.c.bf16 %v833_v32, %v825_v31 }
 0x320   :  { %4064 = vmatmul.mubr.bf16.gmra.mrb[84].mxu0 %v1248_v45  ;;  %6756 = vmatmul.mubr.bf16.gmra.mrb[84].mxu1 %v1248_v45  ;;  %v552_v45 = vld [vmem:[#allocation2 + $0xf90] sm:$0xff] }
 0x321   :  { %4073 = vmatprep.mubr.bf16.mxu0 %v1257_v46  ;;  %6765 = vmatprep.mubr.bf16.mxu1 %v1257_v46  ;;  %v560_v46 = vld [vmem:[#allocation2 + $0xfd0] sm:$0xff] }
 0x322   :  { %v1328_v49 = vpack.c.bf16 %v560_v46, %v552_v45  ;;  %v713_v45 = vld [vmem:[#allocation2 + $0x1498] sm:$0xff] }
 0x323   :  { %v721_v46 = vld [vmem:[#allocation2 + $0x14d8] sm:$0xff] }
 0x324   :  { %v1409_v48 = vpack.c.bf16 %v721_v46, %v713_v45  ;;  %v857_v45 = vld [vmem:[#allocation2 + $0x1918] sm:$0xff] }
 0x325   :  { %v865_v46 = vld [vmem:[#allocation2 + $0x1958] sm:$0xff] }
 0x328   :  { %4074 = vmatmul.mubr.bf16.gmra.mrb[88].mxu0 %v1256_v51  ;;  %6766 = vmatmul.mubr.bf16.gmra.mrb[88].mxu1 %v1256_v51  ;;  %v568_v51 = vld [vmem:[#allocation2 + $0x1010] sm:$0xff] }
 0x329   :  { %4083 = vmatprep.mubr.bf16.mxu0 %v1265_v52  ;;  %6775 = vmatprep.mubr.bf16.mxu1 %v1265_v52  ;;  %v576_v52 = vld [vmem:[#allocation2 + $0x1050] sm:$0xff] }
 0x32a   :  { %v1336_v55 = vpack.c.bf16 %v576_v52, %v568_v51  ;;  %v11655_v51 = vld [vmem:[#allocation5 + $0x5c8] ss:$16 sps:$4 sm:$0xff]   ;;  %v712_v52 = vld [vmem:[#allocation2 + $0x1490] sm:$0xff] }
 0x32b   :  { %7215 = vmatpush1.bf16.msra.mxu1 %v11655_v51  ;;  %v873_v51 = vld [vmem:[#allocation2 + $0x1998] sm:$0xff] }
 0x32c   :  { %7216 = vmatprep.subr.bf16.mxu1 %v11663_v18  ;;  %v961_v18 = vld [vmem:[#allocation2 + $0x1c58] sm:$0xff] }
 0x330   :  { %4084 = vmatmul.mubr.bf16.gmra.mrb[92].mxu0 %v1264_v57  ;;  %6776 = vmatmul.mubr.bf16.gmra.mrb[92].mxu1 %v1264_v57  ;;  %v11640_v57 = vld [vmem:[#allocation5 + $0x580] ss:$16 sps:$4 sm:$0xff]  }
 0x331   :  { %4093 = vmatprep.mubr.bf16.mxu0 %v1273_v58  ;;  %6785 = vmatprep.mubr.bf16.mxu1 %v1273_v58  ;;  %v11642_v58 = vld [vmem:[#allocation5 + $0x584] ss:$16 sps:$4 sm:$0xff]  }
 0x332   :  { %4518 = vmatprep.subr.bf16.mxu0 %v11642_v58 }
 0x333   :  { %4519 = vmatpush1.bf16.msra.mxu0 %v11640_v57  ;;  %v1408_v57 = vpack.c.bf16 %v720_v53, %v712_v52  ;;  %v881_v52 = vld [vmem:[#allocation2 + $0x19d8] sm:$0xff] }
 0x334   :  { %v1489_v54 = vpack.c.bf16 %v881_v52, %v873_v51  ;;  %v1032_v51 = vld [vmem:[#allocation2 + $0x1e90] sm:$0xff] }
 0x335   :  { %v1040_v52 = vld [vmem:[#allocation2 + $0x1ed0] sm:$0xff] }
 0x338   :  { %4094 = vmatmul.mubr.bf16.gmra.mrb[96].mxu0 %v1272_v63  ;;  %6786 = vmatmul.mubr.bf16.gmra.mrb[96].mxu1 %v1272_v63  ;;  %v601_v63 = vld [vmem:[#allocation2 + $0x1118] sm:$0xff] }
 0x339   :  { %4103 = vmatprep.mubr.bf16.mxu0 %v1281_v0  ;;  %6795 = vmatprep.mubr.bf16.mxu1 %v1281_v0  ;;  %v609_v0 = vld [vmem:[#allocation2 + $0x1158] sm:$0xff] }
 0x33a   :  { %v1353_v2 = vpack.c.bf16 %v609_v0, %v601_v63  ;;  %v1416_v63 = vpack.c.bf16 %v736_v60, %v728_v59  ;;  %v1425_v0 = vpack.c.bf16 %v753_v62, %v745_v61  ;;  %v888_v61 = vld [vmem:[#allocation2 + $0x1a10] sm:$0xff] }
 0x33b   :  { %v896_v62 = vld [vmem:[#allocation2 + $0x1a50] sm:$0xff] }
 0x340   :  { %4104 = vmatmul.mubr.bf16.gmra.mrb[100].mxu0 %v1280_v9  ;;  %6796 = vmatmul.mubr.bf16.gmra.mrb[100].mxu1 %v1280_v9  ;;  %v616_v9 = vld [vmem:[#allocation2 + $0x1190] sm:$0xff] }
 0x341   :  { %4113 = vmatprep.mubr.bf16.mxu0 %v1289_v10  ;;  %6805 = vmatprep.mubr.bf16.mxu1 %v1289_v10  ;;  %v624_v10 = vld [vmem:[#allocation2 + $0x11d0] sm:$0xff] }
 0x342   :  { %v1360_v13 = vpack.c.bf16 %v624_v10, %v616_v9  ;;  %v777_v9 = vld [vmem:[#allocation2 + $0x1698] sm:$0xff] }
 0x343   :  { %v785_v10 = vld [vmem:[#allocation2 + $0x16d8] sm:$0xff] }
 0x344   :  { %v1441_v12 = vpack.c.bf16 %v785_v10, %v777_v9  ;;  %v920_v9 = vld [vmem:[#allocation2 + $0x1b10] sm:$0xff] }
 0x345   :  { %v928_v10 = vld [vmem:[#allocation2 + $0x1b50] sm:$0xff] }
 0x348   :  { %4114 = vmatmul.mubr.bf16.gmra.mrb[104].mxu0 %v1288_v15  ;;  %6806 = vmatmul.mubr.bf16.gmra.mrb[104].mxu1 %v1288_v15  ;;  %v632_v15 = vld [vmem:[#allocation2 + $0x1210] sm:$0xff] }
 0x349   :  { %4123 = vmatprep.mubr.bf16.mxu0 %v1297_v16  ;;  %6815 = vmatprep.mubr.bf16.mxu1 %v1297_v16  ;;  %v640_v16 = vld [vmem:[#allocation2 + $0x1250] sm:$0xff] }
 0x34a   :  { %v1368_v19 = vpack.c.bf16 %v640_v16, %v632_v15  ;;  %v11661_v15 = vld [vmem:[#allocation5 + $0x5e8] ss:$16 sps:$4 sm:$0xff]   ;;  %v776_v16 = vld [vmem:[#allocation2 + $0x1690] sm:$0xff] }
 0x34b   :  { %7217 = vmatpush1.bf16.msra.mxu1 %v11661_v15  ;;  %v936_v15 = vld [vmem:[#allocation2 + $0x1b90] sm:$0xff] }
 0x350   :  { %4124 = vmatmul.mubr.bf16.gmra.mrb[108].mxu0 %v1296_v21  ;;  %6816 = vmatmul.mubr.bf16.gmra.mrb[108].mxu1 %v1296_v21  ;;  %v11646_v21 = vld [vmem:[#allocation5 + $0x5a0] ss:$16 sps:$4 sm:$0xff]  }
 0x351   :  { %4133 = vmatprep.mubr.bf16.mxu0 %v1305_v22  ;;  %6825 = vmatprep.mubr.bf16.mxu1 %v1305_v22  ;;  %v11648_v22 = vld [vmem:[#allocation5 + $0x5a4] ss:$16 sps:$4 sm:$0xff]  }
 0x352   :  { %4520 = vmatprep.subr.bf16.mxu0 %v11648_v22 }
 0x353   :  { %4521 = vmatpush1.bf16.msra.mxu0 %v11646_v21  ;;  %v1440_v21 = vpack.c.bf16 %v784_v17, %v776_v16  ;;  %v944_v16 = vld [vmem:[#allocation2 + $0x1bd0] sm:$0xff]  ;;  %v953_v17 = vld [vmem:[#allocation2 + $0x1c18] sm:$0xff] }
 0x358   :  { %4134 = vmatmul.mubr.bf16.gmra.mrb[112].mxu0 %v1304_v27  ;;  %6826 = vmatmul.mubr.bf16.gmra.mrb[112].mxu1 %v1304_v27  ;;  %v665_v27 = vld [vmem:[#allocation2 + $0x1318] sm:$0xff] }
 0x359   :  { %4143 = vmatprep.mubr.bf16.mxu0 %v1313_v28  ;;  %6835 = vmatprep.mubr.bf16.mxu1 %v1313_v28  ;;  %v673_v28 = vld [vmem:[#allocation2 + $0x1358] sm:$0xff] }
 0x35a   :  { %v1385_v30 = vpack.c.bf16 %v673_v28, %v665_v27  ;;  %v1448_v27 = vpack.c.bf16 %v800_v24, %v792_v23  ;;  %v1457_v28 = vpack.c.bf16 %v817_v26, %v809_v25  ;;  %v969_v23 = vld [vmem:[#allocation2 + $0x1c98] sm:$0xff] }
 0x35b   :  { %v977_v24 = vld [vmem:[#allocation2 + $0x1cd8] sm:$0xff] }
 0x35c   :  { %v1537_v26 = vpack.c.bf16 %v977_v24, %v969_v23 }
 0x360   :  { %4144 = vmatmul.mubr.bf16.gmra.mrb[116].mxu0 %v1312_v37  ;;  %6836 = vmatmul.mubr.bf16.gmra.mrb[116].mxu1 %v1312_v37  ;;  %v680_v37 = vld [vmem:[#allocation2 + $0x1390] sm:$0xff] }
 0x361   :  { %4153 = vmatprep.mubr.bf16.mxu0 %v1321_v38  ;;  %6845 = vmatprep.mubr.bf16.mxu1 %v1321_v38  ;;  %v688_v38 = vld [vmem:[#allocation2 + $0x13d0] sm:$0xff] }
 0x362   :  { %v1392_v41 = vpack.c.bf16 %v688_v38, %v680_v37  ;;  %v841_v37 = vld [vmem:[#allocation2 + $0x1898] sm:$0xff] }
 0x363   :  { %v849_v38 = vld [vmem:[#allocation2 + $0x18d8] sm:$0xff] }
 0x364   :  { %v1473_v40 = vpack.c.bf16 %v849_v38, %v841_v37 }
 0x368   :  { %4154 = vmatmul.mubr.bf16.gmra.mrb[120].mxu0 %v1320_v43  ;;  %6846 = vmatmul.mubr.bf16.gmra.mrb[120].mxu1 %v1320_v43  ;;  %v696_v43 = vld [vmem:[#allocation2 + $0x1410] sm:$0xff] }
 0x369   :  { %4163 = vmatprep.mubr.bf16.mxu0 %v1329_v44  ;;  %6855 = vmatprep.mubr.bf16.mxu1 %v1329_v44  ;;  %v704_v44 = vld [vmem:[#allocation2 + $0x1450] sm:$0xff] }
 0x36a   :  { %v1400_v47 = vpack.c.bf16 %v704_v44, %v696_v43  ;;  %v848_v43 = vld [vmem:[#allocation2 + $0x18d0] sm:$0xff]  ;;  %v11669_v44 = vld [vmem:[#allocation5 + $0x60c] ss:$16 sps:$4 sm:$0xff]  }
 0x36b   :  { %7859 = vmatprep.subr.bf16.mxu1 %v11669_v44 }
 0x370   :  { %4164 = vmatmul.mubr.bf16.gmra.mrb[124].mxu0 %v1328_v49  ;;  %6856 = vmatmul.mubr.bf16.gmra.mrb[124].mxu1 %v1328_v49  ;;  %v11652_v49 = vld [vmem:[#allocation5 + $0x5c0] ss:$16 sps:$4 sm:$0xff]  }
 0x371   :  { %4173 = vmatprep.mubr.bf16.mxu0 %v1337_v50  ;;  %6865 = vmatprep.mubr.bf16.mxu1 %v1337_v50  ;;  %v11654_v50 = vld [vmem:[#allocation5 + $0x5c4] ss:$16 sps:$4 sm:$0xff]  }
 0x372   :  { %4522 = vmatprep.subr.bf16.mxu0 %v11654_v50  ;;  %v864_v50 = vld [vmem:[#allocation2 + $0x1950] sm:$0xff] }
 0x373   :  { %4523 = vmatpush1.bf16.msra.mxu0 %v11652_v49  ;;  %v856_v49 = vld [vmem:[#allocation2 + $0x1910] sm:$0xff] }
 0x374   :  { %v1480_v53 = vpack.c.bf16 %v864_v50, %v856_v49 }
 0x378   :  { %4174 = vmatmul.mubr.bf16.gmra.mrb[128].mxu0 %v1336_v55  ;;  %6866 = vmatmul.mubr.bf16.gmra.mrb[128].mxu1 %v1336_v55  ;;  %v729_v55 = vld [vmem:[#allocation2 + $0x1518] sm:$0xff] }
 0x379   :  { %4183 = vmatprep.mubr.bf16.mxu0 %v1345_v56  ;;  %6875 = vmatprep.mubr.bf16.mxu1 %v1345_v56  ;;  %v737_v56 = vld [vmem:[#allocation2 + $0x1558] sm:$0xff] }
 0x37a   :  { %v1417_v58 = vpack.c.bf16 %v737_v56, %v729_v55  ;;  %v872_v55 = vld [vmem:[#allocation2 + $0x1990] sm:$0xff] }
 0x37b   :  { %v880_v56 = vld [vmem:[#allocation2 + $0x19d0] sm:$0xff] }
 0x37c   :  { %v1488_v59 = vpack.c.bf16 %v880_v56, %v872_v55  ;;  %v1568_v55 = vpack.c.bf16 %v1040_v52, %v1032_v51 }
 0x380   :  { %4184 = vmatmul.mubr.bf16.gmra.mrb[132].mxu0 %v1344_v1  ;;  %6876 = vmatmul.mubr.bf16.gmra.mrb[132].mxu1 %v1344_v1  ;;  %v744_v1 = vld [vmem:[#allocation2 + $0x1590] sm:$0xff] }
 0x381   :  { %4193 = vmatprep.mubr.bf16.mxu0 %v1353_v2  ;;  %6885 = vmatprep.mubr.bf16.mxu1 %v1353_v2  ;;  %v752_v2 = vld [vmem:[#allocation2 + $0x15d0] sm:$0xff] }
 0x382   :  { %v1424_v5 = vpack.c.bf16 %v752_v2, %v744_v1  ;;  %v1496_v1 = vpack.c.bf16 %v896_v62, %v888_v61 }
 0x388   :  { %4194 = vmatmul.mubr.bf16.gmra.mrb[136].mxu0 %v1352_v7  ;;  %6886 = vmatmul.mubr.bf16.gmra.mrb[136].mxu1 %v1352_v7  ;;  %v760_v7 = vld [vmem:[#allocation2 + $0x1610] sm:$0xff] }
 0x389   :  { %4203 = vmatprep.mubr.bf16.mxu0 %v1361_v8  ;;  %6895 = vmatprep.mubr.bf16.mxu1 %v1361_v8  ;;  %v768_v8 = vld [vmem:[#allocation2 + $0x1650] sm:$0xff] }
 0x38a   :  { %v1432_v11 = vpack.c.bf16 %v768_v8, %v760_v7  ;;  %v1504_v7 = vpack.c.bf16 %v912_v4, %v904_v3 }
 0x390   :  { %4204 = vmatmul.mubr.bf16.gmra.mrb[140].mxu0 %v1360_v13  ;;  %6896 = vmatmul.mubr.bf16.gmra.mrb[140].mxu1 %v1360_v13  ;;  %v11658_v13 = vld [vmem:[#allocation5 + $0x5e0] ss:$16 sps:$4 sm:$0xff]  }
 0x391   :  { %4213 = vmatprep.mubr.bf16.mxu0 %v1369_v14  ;;  %6905 = vmatprep.mubr.bf16.mxu1 %v1369_v14  ;;  %v11660_v14 = vld [vmem:[#allocation5 + $0x5e4] ss:$16 sps:$4 sm:$0xff]  }
 0x392   :  { %4524 = vmatprep.subr.bf16.mxu0 %v11660_v14 }
 0x393   :  { %4525 = vmatpush1.bf16.msra.mxu0 %v11658_v13  ;;  %v1512_v13 = vpack.c.bf16 %v928_v10, %v920_v9  ;;  %v11664_v10 = vld [vmem:[#allocation5 + $0x600] ss:$16 sps:$4 sm:$0xff]  }
 0x398   :  { %4214 = vmatmul.mubr.bf16.gmra.mrb[144].mxu0 %v1368_v19  ;;  %6906 = vmatmul.mubr.bf16.gmra.mrb[144].mxu1 %v1368_v19  ;;  %v793_v19 = vld [vmem:[#allocation2 + $0x1718] sm:$0xff] }
 0x399   :  { %4223 = vmatprep.mubr.bf16.mxu0 %v1377_v20  ;;  %6915 = vmatprep.mubr.bf16.mxu1 %v1377_v20  ;;  %v801_v20 = vld [vmem:[#allocation2 + $0x1758] sm:$0xff] }
 0x39a   :  { %v1449_v22 = vpack.c.bf16 %v801_v20, %v793_v19  ;;  %v1520_v19 = vpack.c.bf16 %v944_v16, %v936_v15  ;;  %v1529_v20 = vpack.c.bf16 %v961_v18, %v953_v17  ;;  %v74_v15 = vld [vmem:[#allocation2 + $0xa0] sm:$0xff]  ;;  %v91_v17 = vld [vmem:[#allocation2 + $0x128] sm:$0xff] }
 0x39b   :  { %v82_v16 = vld [vmem:[#allocation2 + $0xe0] sm:$0xff] }
 0x39c   :  { %v11670_v18 = vld [vmem:[#allocation5 + $0x620] ss:$16 sps:$4 sm:$0xff]   ;;  %v1090_v23 = vpack.c.bf16 %v82_v16, %v74_v15 }
 0x3a0   :  { %4224 = vmatmul.mubr.bf16.gmra.mrb[148].mxu0 %v1376_v29  ;;  %6916 = vmatmul.mubr.bf16.gmra.mrb[148].mxu1 %v1376_v29  ;;  %v808_v29 = vld [vmem:[#allocation2 + $0x1790] sm:$0xff] }
 0x3a1   :  { %4233 = vmatprep.mubr.bf16.mxu0 %v1385_v30  ;;  %6925 = vmatprep.mubr.bf16.mxu1 %v1385_v30  ;;  %v816_v30 = vld [vmem:[#allocation2 + $0x17d0] sm:$0xff] }
 0x3a2   :  { %v1456_v33 = vpack.c.bf16 %v816_v30, %v808_v29  ;;  %v985_v29 = vld [vmem:[#allocation2 + $0x1d18] sm:$0xff] }
 0x3a3   :  { %v993_v30 = vld [vmem:[#allocation2 + $0x1d58] sm:$0xff] }
 0x3a4   :  { %v1545_v32 = vpack.c.bf16 %v993_v30, %v985_v29  ;;  %v90_v29 = vld [vmem:[#allocation2 + $0x120] sm:$0xff] }
 0x3a5   :  { %v98_v30 = vld [vmem:[#allocation2 + $0x160] sm:$0xff] }
 0x3a8   :  { %4234 = vmatmul.mubr.bf16.gmra.mrb[152].mxu0 %v1384_v35  ;;  %6926 = vmatmul.mubr.bf16.gmra.mrb[152].mxu1 %v1384_v35  ;;  %v824_v35 = vld [vmem:[#allocation2 + $0x1810] sm:$0xff] }
 0x3a9   :  { %4243 = vmatprep.mubr.bf16.mxu0 %v1393_v36  ;;  %6935 = vmatprep.mubr.bf16.mxu1 %v1393_v36  ;;  %v832_v36 = vld [vmem:[#allocation2 + $0x1850] sm:$0xff] }
 0x3aa   :  { %v1464_v39 = vpack.c.bf16 %v832_v36, %v824_v35  ;;  %v1001_v35 = vld [vmem:[#allocation2 + $0x1d98] sm:$0xff] }
 0x3ab   :  { %v1009_v36 = vld [vmem:[#allocation2 + $0x1dd8] sm:$0xff] }
 0x3ac   :  { %v1553_v38 = vpack.c.bf16 %v1009_v36, %v1001_v35  ;;  %v11690_v35 = vld [vmem:[#allocation5 + $0x684] ss:$16 sps:$4 sm:$0xff]   ;;  %v11693_v36 = vld [vmem:[#allocation5 + $0x68c] ss:$16 sps:$4 sm:$0xff]  }
 0x3b0   :  { %4244 = vmatmul.mubr.bf16.gmra.mrb[156].mxu0 %v1392_v41  ;;  %6936 = vmatmul.mubr.bf16.gmra.mrb[156].mxu1 %v1392_v41  ;;  %v11666_v41 = vld [vmem:[#allocation5 + $0x604] ss:$16 sps:$4 sm:$0xff]  }
 0x3b1   :  { %4253 = vmatprep.mubr.bf16.mxu0 %v1401_v42  ;;  %6945 = vmatprep.mubr.bf16.mxu1 %v1401_v42  ;;  %v840_v42 = vld [vmem:[#allocation2 + $0x1890] sm:$0xff] }
 0x3b2   :  { %5167 = vmatprep.subr.bf16.mxu0 %v11666_v41  ;;  %v1017_v41 = vld [vmem:[#allocation2 + $0x1e18] sm:$0xff] }
 0x3b8   :  { %4254 = vmatmul.mubr.bf16.gmra.mrb[160].mxu0 %v1400_v47  ;;  %6946 = vmatmul.mubr.bf16.gmra.mrb[160].mxu1 %v1400_v47  ;;  %v1472_v47 = vpack.c.bf16 %v848_v43, %v840_v42  ;;  %v1025_v42 = vld [vmem:[#allocation2 + $0x1e58] sm:$0xff] }
 0x3b9   :  { %4263 = vmatprep.mubr.bf16.mxu0 %v1409_v48  ;;  %6955 = vmatprep.mubr.bf16.mxu1 %v1409_v48  ;;  %v1481_v48 = vpack.c.bf16 %v865_v46, %v857_v45  ;;  %v1561_v44 = vpack.c.bf16 %v1025_v42, %v1017_v41  ;;  %v1016_v45 = vld [vmem:[#allocation2 + $0x1e10] sm:$0xff]  ;;  %v106_v41 = vld [vmem:[#allocation2 + $0x1a0] sm:$0xff] }
 0x3ba   :  { %v1024_v46 = vld [vmem:[#allocation2 + $0x1e50] sm:$0xff]  ;;  %v114_v42 = vld [vmem:[#allocation2 + $0x1e0] sm:$0xff] }
 0x3bb   :  { %v1560_v49 = vpack.c.bf16 %v1024_v46, %v1016_v45  ;;  %v1106_v45 = vpack.c.bf16 %v114_v42, %v106_v41  ;;  %v267_v41 = vld [vmem:[#allocation2 + $0x6a8] sm:$0xff] }
 0x3bc   :  { %v275_v42 = vld [vmem:[#allocation2 + $0x6e8] sm:$0xff] }
 0x3c0   :  { %4264 = vmatmul.mubr.bf16.gmra.mrb[164].mxu0 %v1408_v57  ;;  %6956 = vmatmul.mubr.bf16.gmra.mrb[164].mxu1 %v1408_v57  ;;  %v889_v57 = vld [vmem:[#allocation2 + $0x1a18] sm:$0xff] }
 0x3c1   :  { %4273 = vmatprep.mubr.bf16.mxu0 %v1417_v58  ;;  %6965 = vmatprep.mubr.bf16.mxu1 %v1417_v58  ;;  %v897_v58 = vld [vmem:[#allocation2 + $0x1a58] sm:$0xff] }
 0x3c2   :  { %v1497_v60 = vpack.c.bf16 %v897_v58, %v889_v57  ;;  %v1048_v57 = vld [vmem:[#allocation2 + $0x1f10] sm:$0xff] }
 0x3c3   :  { %v1056_v58 = vld [vmem:[#allocation2 + $0x1f50] sm:$0xff] }
 0x3c4   :  { %v1576_v61 = vpack.c.bf16 %v1056_v58, %v1048_v57  ;;  %v146_v57 = vld [vmem:[#allocation2 + $0x2e0] sm:$0xff]  ;;  %v11699_v58 = vld [vmem:[#allocation5 + $0x6ac] ss:$16 sps:$4 sm:$0xff]  }
 0x3c8   :  { %4274 = vmatmul.mubr.bf16.gmra.mrb[168].mxu0 %v1416_v63  ;;  %6966 = vmatmul.mubr.bf16.gmra.mrb[168].mxu1 %v1416_v63  ;;  %v905_v63 = vld [vmem:[#allocation2 + $0x1a98] sm:$0xff] }
 0x3c9   :  { %4283 = vmatprep.mubr.bf16.mxu0 %v1425_v0  ;;  %6975 = vmatprep.mubr.bf16.mxu1 %v1425_v0  ;;  %v913_v0 = vld [vmem:[#allocation2 + $0x1ad8] sm:$0xff] }
 0x3ca   :  { %v1505_v2 = vpack.c.bf16 %v913_v0, %v905_v63  ;;  %v1064_v63 = vld [vmem:[#allocation2 + $0x1f90] sm:$0xff] }
 0x3cb   :  { %v1072_v0 = vld [vmem:[#allocation2 + $0x1fd0] sm:$0xff] }
 0x3cc   :  { %v1584_v3 = vpack.c.bf16 %v1072_v0, %v1064_v63  ;;  %v154_v63 = vld [vmem:[#allocation2 + $0x320] sm:$0xff] }
 0x3cd   :  { %v162_v0 = vld [vmem:[#allocation2 + $0x360] sm:$0xff] }
 0x3d0   :  { %4284 = vmatmul.mubr.bf16.gmra.mrb[172].mxu0 %v1424_v5  ;;  %6976 = vmatmul.mubr.bf16.gmra.mrb[172].mxu1 %v1424_v5  ;;  %v921_v5 = vld [vmem:[#allocation2 + $0x1b18] sm:$0xff] }
 0x3d1   :  { %4293 = vmatprep.mubr.bf16.mxu0 %v1433_v6  ;;  %6985 = vmatprep.mubr.bf16.mxu1 %v1433_v6  ;;  %v929_v6 = vld [vmem:[#allocation2 + $0x1b58] sm:$0xff] }
 0x3d2   :  { %v1513_v8 = vpack.c.bf16 %v929_v6, %v921_v5  ;;  %v58_v5 = vld [vmem:[#allocation2 + $0x20] sm:$0xff] }
 0x3d3   :  { %v66_v6 = vld [vmem:[#allocation2 + $0x60] sm:$0xff] }
 0x3d4   :  { %v1082_v9 = vpack.c.bf16 %v66_v6, %v58_v5  ;;  %v170_v5 = vld [vmem:[#allocation2 + $0x3a0] sm:$0xff] }
 0x3d5   :  { %v178_v6 = vld [vmem:[#allocation2 + $0x3e0] sm:$0xff] }
 0x3d8   :  { %4294 = vmatmul.mubr.bf16.gmra.mrb[176].mxu0 %v1432_v11  ;;  %6986 = vmatmul.mubr.bf16.gmra.mrb[176].mxu1 %v1432_v11  ;;  %v937_v11 = vld [vmem:[#allocation2 + $0x1b98] sm:$0xff] }
 0x3d9   :  { %4303 = vmatprep.mubr.bf16.mxu0 %v1441_v12  ;;  %6995 = vmatprep.mubr.bf16.mxu1 %v1441_v12  ;;  %v945_v12 = vld [vmem:[#allocation2 + $0x1bd8] sm:$0xff] }
 0x3da   :  { %v1521_v14 = vpack.c.bf16 %v945_v12, %v937_v11  ;;  %v11667_v11 = vld [vmem:[#allocation5 + $0x608] ss:$16 sps:$4 sm:$0xff]  }
 0x3e0   :  { %4304 = vmatmul.mubr.bf16.gmra.mrb[180].mxu0 %v1440_v21  ;;  %6996 = vmatmul.mubr.bf16.gmra.mrb[180].mxu1 %v1440_v21  ;;  %v952_v21 = vld [vmem:[#allocation2 + $0x1c10] sm:$0xff] }
 0x3e1   :  { %4313 = vmatprep.mubr.bf16.mxu0 %v1449_v22  ;;  %7005 = vmatprep.mubr.bf16.mxu1 %v1449_v22  ;;  %v960_v22 = vld [vmem:[#allocation2 + $0x1c50] sm:$0xff] }
 0x3e2   :  { %v1528_v25 = vpack.c.bf16 %v960_v22, %v952_v21  ;;  %v11678_v21 = vld [vmem:[#allocation5 + $0x644] ss:$16 sps:$4 sm:$0xff]   ;;  %v11681_v22 = vld [vmem:[#allocation5 + $0x64c] ss:$16 sps:$4 sm:$0xff]  }
 0x3e8   :  { %4314 = vmatmul.mubr.bf16.gmra.mrb[184].mxu0 %v1448_v27  ;;  %7006 = vmatmul.mubr.bf16.gmra.mrb[184].mxu1 %v1448_v27  ;;  %v968_v27 = vld [vmem:[#allocation2 + $0x1c90] sm:$0xff] }
 0x3e9   :  { %4323 = vmatprep.mubr.bf16.mxu0 %v1457_v28  ;;  %7015 = vmatprep.mubr.bf16.mxu1 %v1457_v28  ;;  %v976_v28 = vld [vmem:[#allocation2 + $0x1cd0] sm:$0xff] }
 0x3ea   :  { %v1536_v31 = vpack.c.bf16 %v976_v28, %v968_v27  ;;  %v11684_v27 = vld [vmem:[#allocation5 + $0x664] ss:$16 sps:$4 sm:$0xff]   ;;  %v11687_v28 = vld [vmem:[#allocation5 + $0x66c] ss:$16 sps:$4 sm:$0xff]  }
 0x3f0   :  { %4324 = vmatmul.mubr.bf16.gmra.mrb[188].mxu0 %v1456_v33  ;;  %7016 = vmatmul.mubr.bf16.gmra.mrb[188].mxu1 %v1456_v33  ;;  %v984_v33 = vld [vmem:[#allocation2 + $0x1d10] sm:$0xff] }
 0x3f1   :  { %4333 = vmatprep.mubr.bf16.mxu0 %v1465_v34  ;;  %7025 = vmatprep.mubr.bf16.mxu1 %v1465_v34  ;;  %v992_v34 = vld [vmem:[#allocation2 + $0x1d50] sm:$0xff] }
 0x3f2   :  { %v1544_v37 = vpack.c.bf16 %v992_v34, %v984_v33  ;;  %v11682_v33 = vld [vmem:[#allocation5 + $0x660] ss:$16 sps:$4 sm:$0xff]   ;;  %v11685_v34 = vld [vmem:[#allocation5 + $0x668] ss:$16 sps:$4 sm:$0xff]  }
 0x3f8   :  { %4334 = vmatmul.mubr.bf16.gmra.mrb[192].mxu0 %v1464_v39  ;;  %7026 = vmatmul.mubr.bf16.gmra.mrb[192].mxu1 %v1464_v39  ;;  %v1000_v39 = vld [vmem:[#allocation2 + $0x1d90] sm:$0xff] }
 0x3f9   :  { %4343 = vmatprep.mubr.bf16.mxu0 %v1473_v40  ;;  %7035 = vmatprep.mubr.bf16.mxu1 %v1473_v40  ;;  %v1008_v40 = vld [vmem:[#allocation2 + $0x1dd0] sm:$0xff] }
 0x3fa   :  { %v1552_v43 = vpack.c.bf16 %v1008_v40, %v1000_v39  ;;  %v11688_v39 = vld [vmem:[#allocation5 + $0x680] ss:$16 sps:$4 sm:$0xff]   ;;  %v11691_v40 = vld [vmem:[#allocation5 + $0x688] ss:$16 sps:$4 sm:$0xff]  }
 0x400   :  { %4344 = vmatmul.mubr.bf16.gmra.mrb[196].mxu0 %v1472_v47  ;;  %7036 = vmatmul.mubr.bf16.gmra.mrb[196].mxu1 %v1472_v47  ;;  %v1033_v47 = vld [vmem:[#allocation2 + $0x1e98] sm:$0xff] }
 0x401   :  { %4353 = vmatprep.mubr.bf16.mxu0 %v1481_v48  ;;  %7045 = vmatprep.mubr.bf16.mxu1 %v1481_v48  ;;  %v1041_v48 = vld [vmem:[#allocation2 + $0x1ed8] sm:$0xff] }
 0x402   :  { %v1569_v50 = vpack.c.bf16 %v1041_v48, %v1033_v47  ;;  %v122_v47 = vld [vmem:[#allocation2 + $0x220] sm:$0xff] }
 0x403   :  { %v130_v48 = vld [vmem:[#allocation2 + $0x260] sm:$0xff] }
 0x404   :  { %v1114_v51 = vpack.c.bf16 %v130_v48, %v122_v47  ;;  %v11709_v47 = vld [vmem:[#allocation5 + $0x6e8] ss:$16 sps:$4 sm:$0xff]   ;;  %v266_v48 = vld [vmem:[#allocation2 + $0x6a0] sm:$0xff] }
 0x408   :  { %4354 = vmatmul.mubr.bf16.gmra.mrb[200].mxu0 %v1480_v53  ;;  %7046 = vmatmul.mubr.bf16.gmra.mrb[200].mxu1 %v1480_v53  ;;  %v1049_v53 = vld [vmem:[#allocation2 + $0x1f18] sm:$0xff] }
 0x409   :  { %4363 = vmatprep.mubr.bf16.mxu0 %v1489_v54  ;;  %7055 = vmatprep.mubr.bf16.mxu1 %v1489_v54  ;;  %v1057_v54 = vld [vmem:[#allocation2 + $0x1f58] sm:$0xff] }
 0x40a   :  { %v1577_v56 = vpack.c.bf16 %v1057_v54, %v1049_v53  ;;  %v11694_v53 = vld [vmem:[#allocation5 + $0x6a0] ss:$16 sps:$4 sm:$0xff]   ;;  %v11696_v54 = vld [vmem:[#allocation5 + $0x6a4] ss:$16 sps:$4 sm:$0xff]  }
 0x410   :  { %4364 = vmatmul.mubr.bf16.gmra.mrb[204].mxu0 %v1488_v59  ;;  %7056 = vmatmul.mubr.bf16.gmra.mrb[204].mxu1 %v1488_v59  ;;  %v1065_v59 = vld [vmem:[#allocation2 + $0x1f98] sm:$0xff] }
 0x411   :  { %4373 = vmatprep.mubr.bf16.mxu0 %v1497_v60  ;;  %7065 = vmatprep.mubr.bf16.mxu1 %v1497_v60  ;;  %v1073_v60 = vld [vmem:[#allocation2 + $0x1fd8] sm:$0xff] }
 0x412   :  { %v1585_v62 = vpack.c.bf16 %v1073_v60, %v1065_v59  ;;  %v155_v59 = vld [vmem:[#allocation2 + $0x328] sm:$0xff] }
 0x413   :  { %v163_v60 = vld [vmem:[#allocation2 + $0x368] sm:$0xff] }
 0x418   :  { %4374 = vmatmul.mubr.bf16.gmra.mrb[208].mxu0 %v1496_v1  ;;  %7066 = vmatmul.mubr.bf16.gmra.mrb[208].mxu1 %v1496_v1  ;;  %v59_v1 = vld [vmem:[#allocation2 + $0x28] sm:$0xff] }
 0x419   :  { %4383 = vmatprep.mubr.bf16.mxu0 %v1505_v2  ;;  %7075 = vmatprep.mubr.bf16.mxu1 %v1505_v2  ;;  %v67_v2 = vld [vmem:[#allocation2 + $0x68] sm:$0xff] }
 0x41a   :  { %v1083_v4 = vpack.c.bf16 %v67_v2, %v59_v1  ;;  %v171_v1 = vld [vmem:[#allocation2 + $0x3a8] sm:$0xff] }
 0x41b   :  { %v179_v2 = vld [vmem:[#allocation2 + $0x3e8] sm:$0xff] }
 0x420   :  { %4384 = vmatmul.mubr.bf16.gmra.mrb[212].mxu0 %v1504_v7  ;;  %7076 = vmatmul.mubr.bf16.gmra.mrb[212].mxu1 %v1504_v7  ;;  %v75_v7 = vld [vmem:[#allocation2 + $0xa8] sm:$0xff] }
 0x421   :  { %4393 = vmatprep.mubr.bf16.mxu0 %v1513_v8  ;;  %7085 = vmatprep.mubr.bf16.mxu1 %v1513_v8  ;;  %v83_v8 = vld [vmem:[#allocation2 + $0xe8] sm:$0xff] }
 0x422   :  { %v1091_v12 = vpack.c.bf16 %v83_v8, %v75_v7  ;;  %v187_v7 = vld [vmem:[#allocation2 + $0x428] sm:$0xff] }
 0x423   :  { %v195_v8 = vld [vmem:[#allocation2 + $0x468] sm:$0xff] }
 0x428   :  { %4394 = vmatmul.mubr.bf16.gmra.mrb[216].mxu0 %v1512_v13  ;;  %7086 = vmatmul.mubr.bf16.gmra.mrb[216].mxu1 %v1512_v13  ;;  %v11672_v13 = vld [vmem:[#allocation5 + $0x624] ss:$16 sps:$4 sm:$0xff]  }
 0x429   :  { %4403 = vmatprep.mubr.bf16.mxu0 %v1521_v14  ;;  %7095 = vmatprep.mubr.bf16.mxu1 %v1521_v14  ;;  %v11675_v14 = vld [vmem:[#allocation5 + $0x62c] ss:$16 sps:$4 sm:$0xff]  }
 0x430   :  { %4404 = vmatmul.mubr.bf16.gmra.mrb[220].mxu0 %v1520_v19  ;;  %7096 = vmatmul.mubr.bf16.gmra.mrb[220].mxu1 %v1520_v19  ;;  %v11673_v19 = vld [vmem:[#allocation5 + $0x628] ss:$16 sps:$4 sm:$0xff]  }
 0x431   :  { %4413 = vmatprep.mubr.bf16.mxu0 %v1529_v20  ;;  %7105 = vmatprep.mubr.bf16.mxu1 %v1529_v20  ;;  %v99_v20 = vld [vmem:[#allocation2 + $0x168] sm:$0xff] }
 0x432   :  { %v1099_v24 = vpack.c.bf16 %v99_v20, %v91_v17  ;;  %v11700_v17 = vld [vmem:[#allocation5 + $0x6c0] ss:$16 sps:$4 sm:$0xff]  }
 0x433   :  { %v202_v20 = vld [vmem:[#allocation2 + $0x4a0] sm:$0xff] }
 0x438   :  { %4414 = vmatmul.mubr.bf16.gmra.mrb[224].mxu0 %v1528_v25  ;;  %7106 = vmatmul.mubr.bf16.gmra.mrb[224].mxu1 %v1528_v25  ;;  %v11676_v25 = vld [vmem:[#allocation5 + $0x640] ss:$16 sps:$4 sm:$0xff]  }
 0x439   :  { %4423 = vmatprep.mubr.bf16.mxu0 %v1537_v26  ;;  %7115 = vmatprep.mubr.bf16.mxu1 %v1537_v26  ;;  %v11679_v26 = vld [vmem:[#allocation5 + $0x648] ss:$16 sps:$4 sm:$0xff]  }
 0x440   :  { %4424 = vmatmul.mubr.bf16.gmra.mrb[228].mxu0 %v1536_v31  ;;  %7116 = vmatmul.mubr.bf16.gmra.mrb[228].mxu1 %v1536_v31  ;;  %v107_v31 = vld [vmem:[#allocation2 + $0x1a8] sm:$0xff] }
 0x441   :  { %4433 = vmatprep.mubr.bf16.mxu0 %v1545_v32  ;;  %7125 = vmatprep.mubr.bf16.mxu1 %v1545_v32  ;;  %v115_v32 = vld [vmem:[#allocation2 + $0x1e8] sm:$0xff] }
 0x448   :  { %4434 = vmatmul.mubr.bf16.gmra.mrb[232].mxu0 %v1544_v37  ;;  %7126 = vmatmul.mubr.bf16.gmra.mrb[232].mxu1 %v1544_v37  ;;  %v1098_v37 = vpack.c.bf16 %v98_v30, %v90_v29  ;;  %v235_v29 = vld [vmem:[#allocation2 + $0x5a8] sm:$0xff] }
 0x449   :  { %4443 = vmatprep.mubr.bf16.mxu0 %v1553_v38  ;;  %7135 = vmatprep.mubr.bf16.mxu1 %v1553_v38  ;;  %v1107_v38 = vpack.c.bf16 %v115_v32, %v107_v31  ;;  %v243_v30 = vld [vmem:[#allocation2 + $0x5e8] sm:$0xff] }
 0x44a   :  { %v1171_v32 = vpack.c.bf16 %v243_v30, %v235_v29 }
 0x450   :  { %4444 = vmatmul.mubr.bf16.gmra.mrb[236].mxu0 %v1552_v43  ;;  %7136 = vmatmul.mubr.bf16.gmra.mrb[236].mxu1 %v1552_v43  ;;  %v123_v43 = vld [vmem:[#allocation2 + $0x228] sm:$0xff] }
 0x451   :  { %4453 = vmatprep.mubr.bf16.mxu0 %v1561_v44  ;;  %7145 = vmatprep.mubr.bf16.mxu1 %v1561_v44  ;;  %v131_v44 = vld [vmem:[#allocation2 + $0x268] sm:$0xff] }
 0x452   :  { %v1115_v46 = vpack.c.bf16 %v131_v44, %v123_v43  ;;  %v1187_v44 = vpack.c.bf16 %v275_v42, %v267_v41  ;;  %v402_v41 = vld [vmem:[#allocation2 + $0xae0] sm:$0xff]  ;;  %v11723_v42 = vld [vmem:[#allocation5 + $0x72c] ss:$16 sps:$4 sm:$0xff]  }
 0x458   :  { %4454 = vmatmul.mubr.bf16.gmra.mrb[240].mxu0 %v1560_v49  ;;  %7146 = vmatmul.mubr.bf16.gmra.mrb[240].mxu1 %v1560_v49  ;;  %v139_v49 = vld [vmem:[#allocation2 + $0x2a8] sm:$0xff] }
 0x459   :  { %4463 = vmatprep.mubr.bf16.mxu0 %v1569_v50  ;;  %7155 = vmatprep.mubr.bf16.mxu1 %v1569_v50  ;;  %v147_v50 = vld [vmem:[#allocation2 + $0x2e8] sm:$0xff] }
 0x45a   :  { %v1123_v52 = vpack.c.bf16 %v147_v50, %v139_v49  ;;  %v274_v49 = vld [vmem:[#allocation2 + $0x6e0] sm:$0xff]  ;;  %v11711_v50 = vld [vmem:[#allocation5 + $0x6ec] ss:$16 sps:$4 sm:$0xff]  }
 0x460   :  { %4464 = vmatmul.mubr.bf16.gmra.mrb[244].mxu0 %v1568_v55  ;;  %7156 = vmatmul.mubr.bf16.gmra.mrb[244].mxu1 %v1568_v55  ;;  %v11697_v55 = vld [vmem:[#allocation5 + $0x6a8] ss:$16 sps:$4 sm:$0xff]  }
 0x461   :  { %4473 = vmatprep.mubr.bf16.mxu0 %v1577_v56  ;;  %7165 = vmatprep.mubr.bf16.mxu1 %v1577_v56  ;;  %v138_v56 = vld [vmem:[#allocation2 + $0x2a0] sm:$0xff] }
 0x468   :  { %4474 = vmatmul.mubr.bf16.gmra.mrb[248].mxu0 %v1576_v61  ;;  %7166 = vmatmul.mubr.bf16.gmra.mrb[248].mxu1 %v1576_v61  ;;  %v1122_v61 = vpack.c.bf16 %v146_v57, %v138_v56  ;;  %v290_v56 = vld [vmem:[#allocation2 + $0x760] sm:$0xff]  ;;  %v299_v57 = vld [vmem:[#allocation2 + $0x7a8] sm:$0xff] }
 0x469   :  { %4483 = vmatprep.mubr.bf16.mxu0 %v1585_v62  ;;  %7175 = vmatprep.mubr.bf16.mxu1 %v1585_v62  ;;  %v1131_v62 = vpack.c.bf16 %v163_v60, %v155_v59 }
 0x470   :  { %4484 = vmatmul.mubr.bf16.gmra.mrb[252].mxu0 %v1584_v3  ;;  %7176 = vmatmul.mubr.bf16.gmra.mrb[252].mxu1 %v1584_v3  ;;  %v1130_v3 = vpack.c.bf16 %v162_v0, %v154_v63  ;;  %v315_v63 = vld [vmem:[#allocation2 + $0x828] sm:$0xff] }
 0x471   :  { %4526 = vmatprep.mubr.bf16.mxu0 %v1083_v4  ;;  %7218 = vmatprep.mubr.bf16.mxu1 %v1083_v4  ;;  %v1139_v4 = vpack.c.bf16 %v179_v2, %v171_v1  ;;  %v323_v0 = vld [vmem:[#allocation2 + $0x868] sm:$0xff] }
 0x472   :  { %v1211_v2 = vpack.c.bf16 %v323_v0, %v315_v63 }
 0x478   :  { %4527 = vmatmul.mubr.bf16.vlgmr.msra.gmra.mrb[0].mxu0 %v1082_v9  ;;  %7219 = vmatmul.mubr.bf16.vlgmr.msra.gmra.mrb[0].mxu1 %v1082_v9  ;;  %v1138_v9 = vpack.c.bf16 %v178_v6, %v170_v5  ;;  %v331_v5 = vld [vmem:[#allocation2 + $0x8a8] sm:$0xff] }
 0x479   :  { %5168 = vmatpush1.bf16.msra.mxu0 %v11664_v10  ;;  %7860 = vmatpush1.bf16.msra.mxu1 %v11667_v11  ;;  %v1147_v10 = vpack.c.bf16 %v195_v8, %v187_v7  ;;  %v186_v11 = vld [vmem:[#allocation2 + $0x420] sm:$0xff]  ;;  %v339_v6 = vld [vmem:[#allocation2 + $0x8e8] sm:$0xff] }
 0x47a   :  { %4536 = vmatprep.mubr.bf16.mxu0 %v1091_v12  ;;  %7228 = vmatprep.mubr.bf16.mxu1 %v1091_v12  ;;  %v194_v12 = vld [vmem:[#allocation2 + $0x460] sm:$0xff]  ;;  %v1219_v8 = vpack.c.bf16 %v339_v6, %v331_v5  ;;  %v11729_v6 = vld [vmem:[#allocation5 + $0x74c] ss:$16 sps:$4 sm:$0xff]  }
 0x47b   :  { %5169 = vmatprep.subr.bf16.mxu0 %v11672_v13  ;;  %7861 = vmatprep.subr.bf16.mxu1 %v11675_v14  ;;  %v203_v13 = vld [vmem:[#allocation2 + $0x4a8] sm:$0xff]  ;;  %v1146_v15 = vpack.c.bf16 %v194_v12, %v186_v11  ;;  %v330_v12 = vld [vmem:[#allocation2 + $0x8a0] sm:$0xff] }
 0x47c   :  { %v211_v14 = vld [vmem:[#allocation2 + $0x4e8] sm:$0xff]  ;;  %v466_v5 = vld [vmem:[#allocation2 + $0xce0] sm:$0xff] }
 0x47d   :  { %5170 = vmatpush1.bf16.msra.mxu0 %v11670_v18  ;;  %7862 = vmatpush1.bf16.msra.mxu1 %v11673_v19  ;;  %v1155_v16 = vpack.c.bf16 %v211_v14, %v203_v13  ;;  %v11702_v18 = vld [vmem:[#allocation5 + $0x6c4] ss:$16 sps:$4 sm:$0xff]   ;;  %v11703_v19 = vld [vmem:[#allocation5 + $0x6c8] ss:$16 sps:$4 sm:$0xff]   ;;  %v11717_v14 = vld [vmem:[#allocation5 + $0x70c] ss:$16 sps:$4 sm:$0xff]  }
 0x47e   :  { %5171 = vmatprep.subr.bf16.mxu0 %v11678_v21  ;;  %7863 = vmatprep.subr.bf16.mxu1 %v11681_v22  ;;  %v210_v21 = vld [vmem:[#allocation2 + $0x4e0] sm:$0xff]  ;;  %v11705_v22 = vld [vmem:[#allocation5 + $0x6cc] ss:$16 sps:$4 sm:$0xff]   ;;  %v11715_v11 = vld [vmem:[#allocation5 + $0x708] ss:$16 sps:$4 sm:$0xff]  }
 0x47f   :  { %v338_v13 = vld [vmem:[#allocation2 + $0x8e0] sm:$0xff] }
 0x480   :  { %4537 = vmatmul.mubr.bf16.gmra.mrb[4].mxu0 %v1090_v23  ;;  %7229 = vmatmul.mubr.bf16.gmra.mrb[4].mxu1 %v1090_v23  ;;  %v219_v23 = vld [vmem:[#allocation2 + $0x528] sm:$0xff] }
 0x481   :  { %4546 = vmatprep.mubr.bf16.mxu0 %v1099_v24  ;;  %7238 = vmatprep.mubr.bf16.mxu1 %v1099_v24  ;;  %v227_v24 = vld [vmem:[#allocation2 + $0x568] sm:$0xff] }
 0x482   :  { %5172 = vmatpush1.bf16.msra.mxu0 %v11676_v25  ;;  %7864 = vmatpush1.bf16.msra.mxu1 %v11679_v26  ;;  %v1154_v25 = vpack.c.bf16 %v210_v21, %v202_v20  ;;  %v1163_v26 = vpack.c.bf16 %v227_v24, %v219_v23  ;;  %v354_v20 = vld [vmem:[#allocation2 + $0x960] sm:$0xff]  ;;  %v363_v21 = vld [vmem:[#allocation2 + $0x9a8] sm:$0xff] }
 0x483   :  { %5173 = vmatprep.subr.bf16.mxu0 %v11684_v27  ;;  %7865 = vmatprep.subr.bf16.mxu1 %v11687_v28  ;;  %v218_v27 = vld [vmem:[#allocation2 + $0x520] sm:$0xff] }
 0x484   :  { %v226_v28 = vld [vmem:[#allocation2 + $0x560] sm:$0xff] }
 0x485   :  { %v1162_v31 = vpack.c.bf16 %v226_v28, %v218_v27  ;;  %v379_v27 = vld [vmem:[#allocation2 + $0xa28] sm:$0xff] }
 0x486   :  { %5174 = vmatpush1.bf16.msra.mxu0 %v11682_v33  ;;  %7866 = vmatpush1.bf16.msra.mxu1 %v11685_v34  ;;  %v234_v33 = vld [vmem:[#allocation2 + $0x5a0] sm:$0xff]  ;;  %v387_v28 = vld [vmem:[#allocation2 + $0xa68] sm:$0xff] }
 0x487   :  { %5175 = vmatprep.subr.bf16.mxu0 %v11690_v35  ;;  %7867 = vmatprep.subr.bf16.mxu1 %v11693_v36  ;;  %v242_v34 = vld [vmem:[#allocation2 + $0x5e0] sm:$0xff]  ;;  %v251_v35 = vld [vmem:[#allocation2 + $0x628] sm:$0xff]  ;;  %v1243_v30 = vpack.c.bf16 %v387_v28, %v379_v27 }
 0x488   :  { %4547 = vmatmul.mubr.bf16.gmra.mrb[8].mxu0 %v1098_v37  ;;  %7239 = vmatmul.mubr.bf16.gmra.mrb[8].mxu1 %v1098_v37  ;;  %v259_v36 = vld [vmem:[#allocation2 + $0x668] sm:$0xff]  ;;  %v1170_v37 = vpack.c.bf16 %v242_v34, %v234_v33 }
 0x489   :  { %4556 = vmatprep.mubr.bf16.mxu0 %v1107_v38  ;;  %7248 = vmatprep.mubr.bf16.mxu1 %v1107_v38  ;;  %v1179_v38 = vpack.c.bf16 %v259_v36, %v251_v35  ;;  %v395_v33 = vld [vmem:[#allocation2 + $0xaa8] sm:$0xff] }
 0x48a   :  { %5176 = vmatpush1.bf16.msra.mxu0 %v11688_v39  ;;  %7868 = vmatpush1.bf16.msra.mxu1 %v11691_v40  ;;  %v250_v39 = vld [vmem:[#allocation2 + $0x620] sm:$0xff]  ;;  %v403_v34 = vld [vmem:[#allocation2 + $0xae8] sm:$0xff] }
 0x48b   :  { %5177 = vmatprep.subr.bf16.mxu0 %v11696_v54  ;;  %7869 = vmatprep.subr.bf16.mxu1 %v11699_v58  ;;  %v258_v40 = vld [vmem:[#allocation2 + $0x660] sm:$0xff]  ;;  %v307_v58 = vld [vmem:[#allocation2 + $0x7e8] sm:$0xff]  ;;  %v1251_v36 = vpack.c.bf16 %v403_v34, %v395_v33 }
 0x48c   :  { %v1178_v43 = vpack.c.bf16 %v258_v40, %v250_v39  ;;  %v1203_v60 = vpack.c.bf16 %v307_v58, %v299_v57  ;;  %v11721_v39 = vld [vmem:[#allocation5 + $0x728] ss:$16 sps:$4 sm:$0xff]   ;;  %v394_v40 = vld [vmem:[#allocation2 + $0xaa0] sm:$0xff]  ;;  %v11735_v34 = vld [vmem:[#allocation5 + $0x76c] ss:$16 sps:$4 sm:$0xff]  }
 0x48d   :  { %v530_v33 = vld [vmem:[#allocation2 + $0xee0] sm:$0xff] }
 0x48e   :  { %5178 = vmatpush1.bf16.msra.mxu0 %v11694_v53  ;;  %7870 = vmatpush1.bf16.msra.mxu1 %v11697_v55  ;;  %v1186_v53 = vpack.c.bf16 %v274_v49, %v266_v48  ;;  %v282_v55 = vld [vmem:[#allocation2 + $0x720] sm:$0xff]  ;;  %v427_v49 = vld [vmem:[#allocation2 + $0xba8] sm:$0xff] }
 0x48f   :  { %5179 = vmatprep.subr.bf16.mxu0 %v11702_v18  ;;  %7871 = vmatprep.subr.bf16.mxu1 %v11705_v22  ;;  %v1194_v59 = vpack.c.bf16 %v290_v56, %v282_v55  ;;  %v371_v22 = vld [vmem:[#allocation2 + $0x9e8] sm:$0xff]  ;;  %v418_v48 = vld [vmem:[#allocation2 + $0xb60] sm:$0xff] }
 0x490   :  { %4557 = vmatmul.mubr.bf16.gmra.mrb[12].mxu0 %v1106_v45  ;;  %7249 = vmatmul.mubr.bf16.gmra.mrb[12].mxu1 %v1106_v45  ;;  %v11706_v45 = vld [vmem:[#allocation5 + $0x6e0] ss:$16 sps:$4 sm:$0xff]   ;;  %v1235_v24 = vpack.c.bf16 %v371_v22, %v363_v21  ;;  %v443_v55 = vld [vmem:[#allocation2 + $0xc28] sm:$0xff] }
 0x491   :  { %4566 = vmatprep.mubr.bf16.mxu0 %v1115_v46  ;;  %7258 = vmatprep.mubr.bf16.mxu1 %v1115_v46  ;;  %v11708_v46 = vld [vmem:[#allocation5 + $0x6e4] ss:$16 sps:$4 sm:$0xff]   ;;  %v451_v56 = vld [vmem:[#allocation2 + $0xc68] sm:$0xff] }
 0x492   :  { %5180 = vmatpush1.bf16.msra.mxu0 %v11700_v17  ;;  %7872 = vmatpush1.bf16.msra.mxu1 %v11703_v19  ;;  %v1218_v17 = vpack.c.bf16 %v338_v13, %v330_v12  ;;  %v346_v19 = vld [vmem:[#allocation2 + $0x920] sm:$0xff]  ;;  %v1275_v58 = vpack.c.bf16 %v451_v56, %v443_v55  ;;  %v491_v13 = vld [vmem:[#allocation2 + $0xda8] sm:$0xff] }
 0x493   :  { %5181 = vmatprep.subr.bf16.mxu0 %v11708_v46  ;;  %7873 = vmatprep.subr.bf16.mxu1 %v11711_v50  ;;  %v1226_v23 = vpack.c.bf16 %v354_v20, %v346_v19  ;;  %v435_v50 = vld [vmem:[#allocation2 + $0xbe8] sm:$0xff]  ;;  %v482_v12 = vld [vmem:[#allocation2 + $0xd60] sm:$0xff] }
 0x494   :  { %v507_v19 = vld [vmem:[#allocation2 + $0xe28] sm:$0xff] }
 0x495   :  { %v515_v20 = vld [vmem:[#allocation2 + $0xe68] sm:$0xff] }
 0x496   :  { %5182 = vmatpush1.bf16.msra.mxu0 %v11706_v45  ;;  %7874 = vmatpush1.bf16.msra.mxu1 %v11709_v47  ;;  %v1250_v45 = vpack.c.bf16 %v402_v41, %v394_v40  ;;  %v410_v47 = vld [vmem:[#allocation2 + $0xb20] sm:$0xff]  ;;  %v1307_v22 = vpack.c.bf16 %v515_v20, %v507_v19  ;;  %v555_v41 = vld [vmem:[#allocation2 + $0xfa8] sm:$0xff] }
 0x497   :  { %7875 = vmatprep.subr.bf16.mxu1 %v11717_v14  ;;  %v499_v14 = vld [vmem:[#allocation2 + $0xde8] sm:$0xff]  ;;  %v546_v40 = vld [vmem:[#allocation2 + $0xf60] sm:$0xff] }
 0x498   :  { %4567 = vmatmul.mubr.bf16.gmra.mrb[16].mxu0 %v1114_v51  ;;  %7259 = vmatmul.mubr.bf16.gmra.mrb[16].mxu1 %v1114_v51  ;;  %v283_v51 = vld [vmem:[#allocation2 + $0x728] sm:$0xff] }
 0x499   :  { %4576 = vmatprep.mubr.bf16.mxu0 %v1123_v52  ;;  %7268 = vmatprep.mubr.bf16.mxu1 %v1123_v52  ;;  %v291_v52 = vld [vmem:[#allocation2 + $0x768] sm:$0xff] }
 0x49a   :  { %v1195_v54 = vpack.c.bf16 %v291_v52, %v283_v51  ;;  %7876 = vmatpush1.bf16.msra.mxu1 %v11715_v11  ;;  %v1258_v51 = vpack.c.bf16 %v418_v48, %v410_v47  ;;  %v1267_v52 = vpack.c.bf16 %v435_v50, %v427_v49  ;;  %v474_v11 = vld [vmem:[#allocation2 + $0xd20] sm:$0xff]  ;;  %v571_v47 = vld [vmem:[#allocation2 + $0x1028] sm:$0xff] }
 0x49b   :  { %7877 = vmatprep.subr.bf16.mxu1 %v11723_v42  ;;  %v563_v42 = vld [vmem:[#allocation2 + $0xfe8] sm:$0xff] }
 0x49c   :  { %v579_v48 = vld [vmem:[#allocation2 + $0x1068] sm:$0xff] }
 0x49d   :  { %v1339_v50 = vpack.c.bf16 %v579_v48, %v571_v47 }
 0x49e   :  { %7878 = vmatpush1.bf16.msra.mxu1 %v11721_v39  ;;  %v538_v39 = vld [vmem:[#allocation2 + $0xf20] sm:$0xff] }
 0x49f   :  { %7879 = vmatprep.subr.bf16.mxu1 %v11729_v6  ;;  %v627_v6 = vld [vmem:[#allocation2 + $0x11e8] sm:$0xff] }
 0x4a0   :  { %4577 = vmatmul.mubr.bf16.gmra.mrb[20].mxu0 %v1122_v61  ;;  %7269 = vmatmul.mubr.bf16.gmra.mrb[20].mxu1 %v1122_v61  ;;  %v298_v61 = vld [vmem:[#allocation2 + $0x7a0] sm:$0xff] }
 0x4a1   :  { %4586 = vmatprep.mubr.bf16.mxu0 %v1131_v62  ;;  %7278 = vmatprep.mubr.bf16.mxu1 %v1131_v62  ;;  %v306_v62 = vld [vmem:[#allocation2 + $0x7e0] sm:$0xff] }
 0x4a2   :  { %v1202_v1 = vpack.c.bf16 %v306_v62, %v298_v61  ;;  %v459_v61 = vld [vmem:[#allocation2 + $0xca8] sm:$0xff] }
 0x4a3   :  { %v467_v62 = vld [vmem:[#allocation2 + $0xce8] sm:$0xff] }
 0x4a4   :  { %v1283_v0 = vpack.c.bf16 %v467_v62, %v459_v61  ;;  %v594_v61 = vld [vmem:[#allocation2 + $0x10e0] sm:$0xff]  ;;  %v11741_v62 = vld [vmem:[#allocation5 + $0x78c] ss:$16 sps:$4 sm:$0xff]  }
 0x4a8   :  { %4587 = vmatmul.mubr.bf16.gmra.mrb[24].mxu0 %v1130_v3  ;;  %7279 = vmatmul.mubr.bf16.gmra.mrb[24].mxu1 %v1130_v3  ;;  %v314_v3 = vld [vmem:[#allocation2 + $0x820] sm:$0xff] }
 0x4a9   :  { %4596 = vmatprep.mubr.bf16.mxu0 %v1139_v4  ;;  %7288 = vmatprep.mubr.bf16.mxu1 %v1139_v4  ;;  %v322_v4 = vld [vmem:[#allocation2 + $0x860] sm:$0xff] }
 0x4aa   :  { %v1210_v7 = vpack.c.bf16 %v322_v4, %v314_v3  ;;  %v11727_v3 = vld [vmem:[#allocation5 + $0x748] ss:$16 sps:$4 sm:$0xff]   ;;  %v458_v4 = vld [vmem:[#allocation2 + $0xca0] sm:$0xff] }
 0x4ab   :  { %7880 = vmatpush1.bf16.msra.mxu1 %v11727_v3  ;;  %v602_v3 = vld [vmem:[#allocation2 + $0x1120] sm:$0xff] }
 0x4ac   :  { %7881 = vmatprep.subr.bf16.mxu1 %v11735_v34  ;;  %v691_v34 = vld [vmem:[#allocation2 + $0x13e8] sm:$0xff] }
 0x4b0   :  { %4597 = vmatmul.mubr.bf16.gmra.mrb[28].mxu0 %v1138_v9  ;;  %7289 = vmatmul.mubr.bf16.gmra.mrb[28].mxu1 %v1138_v9  ;;  %v11712_v9 = vld [vmem:[#allocation5 + $0x700] ss:$16 sps:$4 sm:$0xff]  }
 0x4b1   :  { %4606 = vmatprep.mubr.bf16.mxu0 %v1147_v10  ;;  %7298 = vmatprep.mubr.bf16.mxu1 %v1147_v10  ;;  %v11714_v10 = vld [vmem:[#allocation5 + $0x704] ss:$16 sps:$4 sm:$0xff]  }
 0x4b2   :  { %5183 = vmatprep.subr.bf16.mxu0 %v11714_v10 }
 0x4b3   :  { %5184 = vmatpush1.bf16.msra.mxu0 %v11712_v9  ;;  %v1282_v9 = vpack.c.bf16 %v466_v5, %v458_v4  ;;  %v610_v4 = vld [vmem:[#allocation2 + $0x1160] sm:$0xff]  ;;  %v619_v5 = vld [vmem:[#allocation2 + $0x11a8] sm:$0xff] }
 0x4b8   :  { %4607 = vmatmul.mubr.bf16.gmra.mrb[32].mxu0 %v1146_v15  ;;  %7299 = vmatmul.mubr.bf16.gmra.mrb[32].mxu1 %v1146_v15  ;;  %v347_v15 = vld [vmem:[#allocation2 + $0x928] sm:$0xff] }
 0x4b9   :  { %4616 = vmatprep.mubr.bf16.mxu0 %v1155_v16  ;;  %7308 = vmatprep.mubr.bf16.mxu1 %v1155_v16  ;;  %v355_v16 = vld [vmem:[#allocation2 + $0x968] sm:$0xff] }
 0x4ba   :  { %v1227_v18 = vpack.c.bf16 %v355_v16, %v347_v15  ;;  %v1290_v15 = vpack.c.bf16 %v482_v12, %v474_v11  ;;  %v1299_v16 = vpack.c.bf16 %v499_v14, %v491_v13  ;;  %v635_v11 = vld [vmem:[#allocation2 + $0x1228] sm:$0xff] }
 0x4bb   :  { %v643_v12 = vld [vmem:[#allocation2 + $0x1268] sm:$0xff] }
 0x4bc   :  { %v1371_v14 = vpack.c.bf16 %v643_v12, %v635_v11 }
 0x4c0   :  { %4617 = vmatmul.mubr.bf16.gmra.mrb[36].mxu0 %v1154_v25  ;;  %7309 = vmatmul.mubr.bf16.gmra.mrb[36].mxu1 %v1154_v25  ;;  %v362_v25 = vld [vmem:[#allocation2 + $0x9a0] sm:$0xff] }
 0x4c1   :  { %4626 = vmatprep.mubr.bf16.mxu0 %v1163_v26  ;;  %7318 = vmatprep.mubr.bf16.mxu1 %v1163_v26  ;;  %v370_v26 = vld [vmem:[#allocation2 + $0x9e0] sm:$0xff] }
 0x4c2   :  { %v1234_v29 = vpack.c.bf16 %v370_v26, %v362_v25  ;;  %v523_v25 = vld [vmem:[#allocation2 + $0xea8] sm:$0xff] }
 0x4c3   :  { %v531_v26 = vld [vmem:[#allocation2 + $0xee8] sm:$0xff] }
 0x4c4   :  { %v1315_v28 = vpack.c.bf16 %v531_v26, %v523_v25  ;;  %v658_v25 = vld [vmem:[#allocation2 + $0x12e0] sm:$0xff]  ;;  %v11747_v26 = vld [vmem:[#allocation5 + $0x7ac] ss:$16 sps:$4 sm:$0xff]  }
 0x4c8   :  { %4627 = vmatmul.mubr.bf16.gmra.mrb[40].mxu0 %v1162_v31  ;;  %7319 = vmatmul.mubr.bf16.gmra.mrb[40].mxu1 %v1162_v31  ;;  %v378_v31 = vld [vmem:[#allocation2 + $0xa20] sm:$0xff] }
 0x4c9   :  { %4636 = vmatprep.mubr.bf16.mxu0 %v1171_v32  ;;  %7328 = vmatprep.mubr.bf16.mxu1 %v1171_v32  ;;  %v386_v32 = vld [vmem:[#allocation2 + $0xa60] sm:$0xff] }
 0x4ca   :  { %v1242_v35 = vpack.c.bf16 %v386_v32, %v378_v31  ;;  %v11733_v31 = vld [vmem:[#allocation5 + $0x768] ss:$16 sps:$4 sm:$0xff]   ;;  %v522_v32 = vld [vmem:[#allocation2 + $0xea0] sm:$0xff] }
 0x4cb   :  { %7882 = vmatpush1.bf16.msra.mxu1 %v11733_v31  ;;  %v666_v31 = vld [vmem:[#allocation2 + $0x1320] sm:$0xff] }
 0x4cc   :  { %7883 = vmatprep.subr.bf16.mxu1 %v11741_v62  ;;  %v755_v62 = vld [vmem:[#allocation2 + $0x15e8] sm:$0xff] }
 0x4d0   :  { %4637 = vmatmul.mubr.bf16.gmra.mrb[44].mxu0 %v1170_v37  ;;  %7329 = vmatmul.mubr.bf16.gmra.mrb[44].mxu1 %v1170_v37  ;;  %v11718_v37 = vld [vmem:[#allocation5 + $0x720] ss:$16 sps:$4 sm:$0xff]  }
 0x4d1   :  { %4646 = vmatprep.mubr.bf16.mxu0 %v1179_v38  ;;  %7338 = vmatprep.mubr.bf16.mxu1 %v1179_v38  ;;  %v11720_v38 = vld [vmem:[#allocation5 + $0x724] ss:$16 sps:$4 sm:$0xff]  }
 0x4d2   :  { %5185 = vmatprep.subr.bf16.mxu0 %v11720_v38 }
 0x4d3   :  { %5186 = vmatpush1.bf16.msra.mxu0 %v11718_v37  ;;  %v1314_v37 = vpack.c.bf16 %v530_v33, %v522_v32  ;;  %v674_v32 = vld [vmem:[#allocation2 + $0x1360] sm:$0xff]  ;;  %v683_v33 = vld [vmem:[#allocation2 + $0x13a8] sm:$0xff] }
 0x4d8   :  { %4647 = vmatmul.mubr.bf16.gmra.mrb[48].mxu0 %v1178_v43  ;;  %7339 = vmatmul.mubr.bf16.gmra.mrb[48].mxu1 %v1178_v43  ;;  %v411_v43 = vld [vmem:[#allocation2 + $0xb28] sm:$0xff] }
 0x4d9   :  { %4656 = vmatprep.mubr.bf16.mxu0 %v1187_v44  ;;  %7348 = vmatprep.mubr.bf16.mxu1 %v1187_v44  ;;  %v419_v44 = vld [vmem:[#allocation2 + $0xb68] sm:$0xff] }
 0x4da   :  { %v1259_v46 = vpack.c.bf16 %v419_v44, %v411_v43  ;;  %v1322_v43 = vpack.c.bf16 %v546_v40, %v538_v39  ;;  %v1331_v44 = vpack.c.bf16 %v563_v42, %v555_v41  ;;  %v699_v39 = vld [vmem:[#allocation2 + $0x1428] sm:$0xff] }
 0x4db   :  { %v707_v40 = vld [vmem:[#allocation2 + $0x1468] sm:$0xff] }
 0x4dc   :  { %v1403_v42 = vpack.c.bf16 %v707_v40, %v699_v39 }
 0x4e0   :  { %4657 = vmatmul.mubr.bf16.gmra.mrb[52].mxu0 %v1186_v53  ;;  %7349 = vmatmul.mubr.bf16.gmra.mrb[52].mxu1 %v1186_v53  ;;  %v426_v53 = vld [vmem:[#allocation2 + $0xba0] sm:$0xff] }
 0x4e1   :  { %4666 = vmatprep.mubr.bf16.mxu0 %v1195_v54  ;;  %7358 = vmatprep.mubr.bf16.mxu1 %v1195_v54  ;;  %v434_v54 = vld [vmem:[#allocation2 + $0xbe0] sm:$0xff] }
 0x4e2   :  { %v1266_v57 = vpack.c.bf16 %v434_v54, %v426_v53  ;;  %v587_v53 = vld [vmem:[#allocation2 + $0x10a8] sm:$0xff] }
 0x4e3   :  { %v595_v54 = vld [vmem:[#allocation2 + $0x10e8] sm:$0xff] }
 0x4e4   :  { %v1347_v56 = vpack.c.bf16 %v595_v54, %v587_v53  ;;  %v722_v53 = vld [vmem:[#allocation2 + $0x14e0] sm:$0xff]  ;;  %v11753_v54 = vld [vmem:[#allocation5 + $0x7cc] ss:$16 sps:$4 sm:$0xff]  }
 0x4e8   :  { %4667 = vmatmul.mubr.bf16.gmra.mrb[56].mxu0 %v1194_v59  ;;  %7359 = vmatmul.mubr.bf16.gmra.mrb[56].mxu1 %v1194_v59  ;;  %v442_v59 = vld [vmem:[#allocation2 + $0xc20] sm:$0xff] }
 0x4e9   :  { %4676 = vmatprep.mubr.bf16.mxu0 %v1203_v60  ;;  %7368 = vmatprep.mubr.bf16.mxu1 %v1203_v60  ;;  %v450_v60 = vld [vmem:[#allocation2 + $0xc60] sm:$0xff] }
 0x4ea   :  { %v1274_v63 = vpack.c.bf16 %v450_v60, %v442_v59  ;;  %v11739_v59 = vld [vmem:[#allocation5 + $0x788] ss:$16 sps:$4 sm:$0xff]   ;;  %v586_v60 = vld [vmem:[#allocation2 + $0x10a0] sm:$0xff] }
 0x4eb   :  { %7884 = vmatpush1.bf16.msra.mxu1 %v11739_v59  ;;  %v730_v59 = vld [vmem:[#allocation2 + $0x1520] sm:$0xff] }
 0x4ec   :  { %7885 = vmatprep.subr.bf16.mxu1 %v11747_v26  ;;  %v819_v26 = vld [vmem:[#allocation2 + $0x17e8] sm:$0xff] }
 0x4f0   :  { %4677 = vmatmul.mubr.bf16.gmra.mrb[60].mxu0 %v1202_v1  ;;  %7369 = vmatmul.mubr.bf16.gmra.mrb[60].mxu1 %v1202_v1  ;;  %v11724_v1 = vld [vmem:[#allocation5 + $0x740] ss:$16 sps:$4 sm:$0xff]  }
 0x4f1   :  { %4686 = vmatprep.mubr.bf16.mxu0 %v1211_v2  ;;  %7378 = vmatprep.mubr.bf16.mxu1 %v1211_v2  ;;  %v11726_v2 = vld [vmem:[#allocation5 + $0x744] ss:$16 sps:$4 sm:$0xff]  }
 0x4f2   :  { %5187 = vmatprep.subr.bf16.mxu0 %v11726_v2 }
 0x4f3   :  { %5188 = vmatpush1.bf16.msra.mxu0 %v11724_v1  ;;  %v1346_v1 = vpack.c.bf16 %v594_v61, %v586_v60  ;;  %v738_v60 = vld [vmem:[#allocation2 + $0x1560] sm:$0xff]  ;;  %v747_v61 = vld [vmem:[#allocation2 + $0x15a8] sm:$0xff] }
 0x4f8   :  { %4687 = vmatmul.mubr.bf16.gmra.mrb[64].mxu0 %v1210_v7  ;;  %7379 = vmatmul.mubr.bf16.gmra.mrb[64].mxu1 %v1210_v7  ;;  %v475_v7 = vld [vmem:[#allocation2 + $0xd28] sm:$0xff] }
 0x4f9   :  { %4696 = vmatprep.mubr.bf16.mxu0 %v1219_v8  ;;  %7388 = vmatprep.mubr.bf16.mxu1 %v1219_v8  ;;  %v483_v8 = vld [vmem:[#allocation2 + $0xd68] sm:$0xff] }
 0x4fa   :  { %v1291_v10 = vpack.c.bf16 %v483_v8, %v475_v7  ;;  %v1354_v7 = vpack.c.bf16 %v610_v4, %v602_v3  ;;  %v1363_v8 = vpack.c.bf16 %v627_v6, %v619_v5  ;;  %v763_v3 = vld [vmem:[#allocation2 + $0x1628] sm:$0xff] }
 0x4fb   :  { %v771_v4 = vld [vmem:[#allocation2 + $0x1668] sm:$0xff] }
 0x4fc   :  { %v1435_v6 = vpack.c.bf16 %v771_v4, %v763_v3  ;;  %v923_v3 = vld [vmem:[#allocation2 + $0x1b28] sm:$0xff] }
 0x4fd   :  { %v931_v4 = vld [vmem:[#allocation2 + $0x1b68] sm:$0xff] }
 0x500   :  { %4697 = vmatmul.mubr.bf16.gmra.mrb[68].mxu0 %v1218_v17  ;;  %7389 = vmatmul.mubr.bf16.gmra.mrb[68].mxu1 %v1218_v17  ;;  %v490_v17 = vld [vmem:[#allocation2 + $0xda0] sm:$0xff] }
 0x501   :  { %4706 = vmatprep.mubr.bf16.mxu0 %v1227_v18  ;;  %7398 = vmatprep.mubr.bf16.mxu1 %v1227_v18  ;;  %v498_v18 = vld [vmem:[#allocation2 + $0xde0] sm:$0xff] }
 0x502   :  { %v1298_v21 = vpack.c.bf16 %v498_v18, %v490_v17  ;;  %v651_v17 = vld [vmem:[#allocation2 + $0x12a8] sm:$0xff] }
 0x503   :  { %v659_v18 = vld [vmem:[#allocation2 + $0x12e8] sm:$0xff] }
 0x504   :  { %v1379_v20 = vpack.c.bf16 %v659_v18, %v651_v17  ;;  %v786_v17 = vld [vmem:[#allocation2 + $0x16e0] sm:$0xff]  ;;  %v11759_v18 = vld [vmem:[#allocation5 + $0x7ec] ss:$16 sps:$4 sm:$0xff]  }
 0x508   :  { %4707 = vmatmul.mubr.bf16.gmra.mrb[72].mxu0 %v1226_v23  ;;  %7399 = vmatmul.mubr.bf16.gmra.mrb[72].mxu1 %v1226_v23  ;;  %v506_v23 = vld [vmem:[#allocation2 + $0xe20] sm:$0xff] }
 0x509   :  { %4716 = vmatprep.mubr.bf16.mxu0 %v1235_v24  ;;  %7408 = vmatprep.mubr.bf16.mxu1 %v1235_v24  ;;  %v514_v24 = vld [vmem:[#allocation2 + $0xe60] sm:$0xff] }
 0x50a   :  { %v1306_v27 = vpack.c.bf16 %v514_v24, %v506_v23  ;;  %v11745_v23 = vld [vmem:[#allocation5 + $0x7a8] ss:$16 sps:$4 sm:$0xff]   ;;  %v650_v24 = vld [vmem:[#allocation2 + $0x12a0] sm:$0xff] }
 0x50b   :  { %7886 = vmatpush1.bf16.msra.mxu1 %v11745_v23  ;;  %v794_v23 = vld [vmem:[#allocation2 + $0x1720] sm:$0xff] }
 0x50c   :  { %7887 = vmatprep.subr.bf16.mxu1 %v11753_v54  ;;  %v882_v54 = vld [vmem:[#allocation2 + $0x19e0] sm:$0xff] }
 0x510   :  { %4717 = vmatmul.mubr.bf16.gmra.mrb[76].mxu0 %v1234_v29  ;;  %7409 = vmatmul.mubr.bf16.gmra.mrb[76].mxu1 %v1234_v29  ;;  %v11730_v29 = vld [vmem:[#allocation5 + $0x760] ss:$16 sps:$4 sm:$0xff]  }
 0x511   :  { %4726 = vmatprep.mubr.bf16.mxu0 %v1243_v30  ;;  %7418 = vmatprep.mubr.bf16.mxu1 %v1243_v30  ;;  %v11732_v30 = vld [vmem:[#allocation5 + $0x764] ss:$16 sps:$4 sm:$0xff]  }
 0x512   :  { %5189 = vmatprep.subr.bf16.mxu0 %v11732_v30 }
 0x513   :  { %5190 = vmatpush1.bf16.msra.mxu0 %v11730_v29  ;;  %v1378_v29 = vpack.c.bf16 %v658_v25, %v650_v24  ;;  %v802_v24 = vld [vmem:[#allocation2 + $0x1760] sm:$0xff]  ;;  %v811_v25 = vld [vmem:[#allocation2 + $0x17a8] sm:$0xff] }
 0x518   :  { %4727 = vmatmul.mubr.bf16.gmra.mrb[80].mxu0 %v1242_v35  ;;  %7419 = vmatmul.mubr.bf16.gmra.mrb[80].mxu1 %v1242_v35  ;;  %v539_v35 = vld [vmem:[#allocation2 + $0xf28] sm:$0xff] }
 0x519   :  { %4736 = vmatprep.mubr.bf16.mxu0 %v1251_v36  ;;  %7428 = vmatprep.mubr.bf16.mxu1 %v1251_v36  ;;  %v547_v36 = vld [vmem:[#allocation2 + $0xf68] sm:$0xff] }
 0x51a   :  { %v1323_v38 = vpack.c.bf16 %v547_v36, %v539_v35  ;;  %v1386_v35 = vpack.c.bf16 %v674_v32, %v666_v31  ;;  %v1395_v36 = vpack.c.bf16 %v691_v34, %v683_v33  ;;  %v827_v31 = vld [vmem:[#allocation2 + $0x1828] sm:$0xff] }
 0x51b   :  { %v835_v32 = vld [vmem:[#allocation2 + $0x1868] sm:$0xff] }
 0x51c   :  { %v1467_v34 = vpack.c.bf16 %v835_v32, %v827_v31  ;;  %v986_v31 = vld [vmem:[#allocation2 + $0x1d20] sm:$0xff] }
 0x51d   :  { %v994_v32 = vld [vmem:[#allocation2 + $0x1d60] sm:$0xff] }
 0x520   :  { %4737 = vmatmul.mubr.bf16.gmra.mrb[84].mxu0 %v1250_v45  ;;  %7429 = vmatmul.mubr.bf16.gmra.mrb[84].mxu1 %v1250_v45  ;;  %v554_v45 = vld [vmem:[#allocation2 + $0xfa0] sm:$0xff] }
 0x521   :  { %4746 = vmatprep.mubr.bf16.mxu0 %v1259_v46  ;;  %7438 = vmatprep.mubr.bf16.mxu1 %v1259_v46  ;;  %v562_v46 = vld [vmem:[#allocation2 + $0xfe0] sm:$0xff] }
 0x522   :  { %v1330_v49 = vpack.c.bf16 %v562_v46, %v554_v45  ;;  %v715_v45 = vld [vmem:[#allocation2 + $0x14a8] sm:$0xff] }
 0x523   :  { %v723_v46 = vld [vmem:[#allocation2 + $0x14e8] sm:$0xff] }
 0x524   :  { %v1411_v48 = vpack.c.bf16 %v723_v46, %v715_v45 }
 0x528   :  { %4747 = vmatmul.mubr.bf16.gmra.mrb[88].mxu0 %v1258_v51  ;;  %7439 = vmatmul.mubr.bf16.gmra.mrb[88].mxu1 %v1258_v51  ;;  %v570_v51 = vld [vmem:[#allocation2 + $0x1020] sm:$0xff] }
 0x529   :  { %4756 = vmatprep.mubr.bf16.mxu0 %v1267_v52  ;;  %7448 = vmatprep.mubr.bf16.mxu1 %v1267_v52  ;;  %v578_v52 = vld [vmem:[#allocation2 + $0x1060] sm:$0xff] }
 0x52a   :  { %v1338_v55 = vpack.c.bf16 %v578_v52, %v570_v51  ;;  %v11751_v51 = vld [vmem:[#allocation5 + $0x7c8] ss:$16 sps:$4 sm:$0xff]   ;;  %v714_v52 = vld [vmem:[#allocation2 + $0x14a0] sm:$0xff] }
 0x52b   :  { %7888 = vmatpush1.bf16.msra.mxu1 %v11751_v51 }
 0x52c   :  { %7889 = vmatprep.subr.bf16.mxu1 %v11759_v18 }
 0x530   :  { %4757 = vmatmul.mubr.bf16.gmra.mrb[92].mxu0 %v1266_v57  ;;  %7449 = vmatmul.mubr.bf16.gmra.mrb[92].mxu1 %v1266_v57  ;;  %v11736_v57 = vld [vmem:[#allocation5 + $0x780] ss:$16 sps:$4 sm:$0xff]  }
 0x531   :  { %4766 = vmatprep.mubr.bf16.mxu0 %v1275_v58  ;;  %7458 = vmatprep.mubr.bf16.mxu1 %v1275_v58  ;;  %v11738_v58 = vld [vmem:[#allocation5 + $0x784] ss:$16 sps:$4 sm:$0xff]  }
 0x532   :  { %5191 = vmatprep.subr.bf16.mxu0 %v11738_v58 }
 0x533   :  { %5192 = vmatpush1.bf16.msra.mxu0 %v11736_v57  ;;  %v1410_v57 = vpack.c.bf16 %v722_v53, %v714_v52  ;;  %v874_v53 = vld [vmem:[#allocation2 + $0x19a0] sm:$0xff] }
 0x538   :  { %4767 = vmatmul.mubr.bf16.gmra.mrb[96].mxu0 %v1274_v63  ;;  %7459 = vmatmul.mubr.bf16.gmra.mrb[96].mxu1 %v1274_v63  ;;  %v603_v63 = vld [vmem:[#allocation2 + $0x1128] sm:$0xff] }
 0x539   :  { %4776 = vmatprep.mubr.bf16.mxu0 %v1283_v0  ;;  %7468 = vmatprep.mubr.bf16.mxu1 %v1283_v0  ;;  %v611_v0 = vld [vmem:[#allocation2 + $0x1168] sm:$0xff] }
 0x53a   :  { %v1355_v2 = vpack.c.bf16 %v611_v0, %v603_v63  ;;  %v1418_v63 = vpack.c.bf16 %v738_v60, %v730_v59  ;;  %v1427_v0 = vpack.c.bf16 %v755_v62, %v747_v61  ;;  %v890_v59 = vld [vmem:[#allocation2 + $0x1a20] sm:$0xff]  ;;  %v907_v61 = vld [vmem:[#allocation2 + $0x1aa8] sm:$0xff] }
 0x53b   :  { %v898_v60 = vld [vmem:[#allocation2 + $0x1a60] sm:$0xff]  ;;  %v915_v62 = vld [vmem:[#allocation2 + $0x1ae8] sm:$0xff] }
 0x540   :  { %4777 = vmatmul.mubr.bf16.gmra.mrb[100].mxu0 %v1282_v9  ;;  %7469 = vmatmul.mubr.bf16.gmra.mrb[100].mxu1 %v1282_v9  ;;  %v618_v9 = vld [vmem:[#allocation2 + $0x11a0] sm:$0xff] }
 0x541   :  { %4786 = vmatprep.mubr.bf16.mxu0 %v1291_v10  ;;  %7478 = vmatprep.mubr.bf16.mxu1 %v1291_v10  ;;  %v626_v10 = vld [vmem:[#allocation2 + $0x11e0] sm:$0xff] }
 0x542   :  { %v1362_v13 = vpack.c.bf16 %v626_v10, %v618_v9  ;;  %v779_v9 = vld [vmem:[#allocation2 + $0x16a8] sm:$0xff] }
 0x543   :  { %v787_v10 = vld [vmem:[#allocation2 + $0x16e8] sm:$0xff] }
 0x544   :  { %v1443_v12 = vpack.c.bf16 %v787_v10, %v779_v9  ;;  %v939_v9 = vld [vmem:[#allocation2 + $0x1ba8] sm:$0xff] }
 0x545   :  { %v947_v10 = vld [vmem:[#allocation2 + $0x1be8] sm:$0xff] }
 0x548   :  { %4787 = vmatmul.mubr.bf16.gmra.mrb[104].mxu0 %v1290_v15  ;;  %7479 = vmatmul.mubr.bf16.gmra.mrb[104].mxu1 %v1290_v15  ;;  %v634_v15 = vld [vmem:[#allocation2 + $0x1220] sm:$0xff] }
 0x549   :  { %4796 = vmatprep.mubr.bf16.mxu0 %v1299_v16  ;;  %7488 = vmatprep.mubr.bf16.mxu1 %v1299_v16  ;;  %v642_v16 = vld [vmem:[#allocation2 + $0x1260] sm:$0xff] }
 0x54a   :  { %v1370_v19 = vpack.c.bf16 %v642_v16, %v634_v15  ;;  %v11757_v15 = vld [vmem:[#allocation5 + $0x7e8] ss:$16 sps:$4 sm:$0xff]   ;;  %v778_v16 = vld [vmem:[#allocation2 + $0x16a0] sm:$0xff] }
 0x54b   :  { %7890 = vmatpush1.bf16.msra.mxu1 %v11757_v15  ;;  %v955_v15 = vld [vmem:[#allocation2 + $0x1c28] sm:$0xff] }
 0x550   :  { %4797 = vmatmul.mubr.bf16.gmra.mrb[108].mxu0 %v1298_v21  ;;  %7489 = vmatmul.mubr.bf16.gmra.mrb[108].mxu1 %v1298_v21  ;;  %v11742_v21 = vld [vmem:[#allocation5 + $0x7a0] ss:$16 sps:$4 sm:$0xff]  }
 0x551   :  { %4806 = vmatprep.mubr.bf16.mxu0 %v1307_v22  ;;  %7498 = vmatprep.mubr.bf16.mxu1 %v1307_v22  ;;  %v11744_v22 = vld [vmem:[#allocation5 + $0x7a4] ss:$16 sps:$4 sm:$0xff]  }
 0x552   :  { %5193 = vmatprep.subr.bf16.mxu0 %v11744_v22 }
 0x553   :  { %5194 = vmatpush1.bf16.msra.mxu0 %v11742_v21  ;;  %v1442_v21 = vpack.c.bf16 %v786_v17, %v778_v16  ;;  %v963_v16 = vld [vmem:[#allocation2 + $0x1c68] sm:$0xff] }
 0x554   :  { %v1531_v18 = vpack.c.bf16 %v963_v16, %v955_v15  ;;  %v92_v15 = vld [vmem:[#allocation2 + $0x130] sm:$0xff] }
 0x555   :  { %v100_v16 = vld [vmem:[#allocation2 + $0x170] sm:$0xff] }
 0x558   :  { %4807 = vmatmul.mubr.bf16.gmra.mrb[112].mxu0 %v1306_v27  ;;  %7499 = vmatmul.mubr.bf16.gmra.mrb[112].mxu1 %v1306_v27  ;;  %v667_v27 = vld [vmem:[#allocation2 + $0x1328] sm:$0xff] }
 0x559   :  { %4816 = vmatprep.mubr.bf16.mxu0 %v1315_v28  ;;  %7508 = vmatprep.mubr.bf16.mxu1 %v1315_v28  ;;  %v675_v28 = vld [vmem:[#allocation2 + $0x1368] sm:$0xff] }
 0x55a   :  { %v1387_v30 = vpack.c.bf16 %v675_v28, %v667_v27  ;;  %v1450_v27 = vpack.c.bf16 %v802_v24, %v794_v23  ;;  %v1459_v28 = vpack.c.bf16 %v819_v26, %v811_v25  ;;  %v970_v25 = vld [vmem:[#allocation2 + $0x1ca0] sm:$0xff] }
 0x55b   :  { %v978_v26 = vld [vmem:[#allocation2 + $0x1ce0] sm:$0xff] }
 0x560   :  { %4817 = vmatmul.mubr.bf16.gmra.mrb[116].mxu0 %v1314_v37  ;;  %7509 = vmatmul.mubr.bf16.gmra.mrb[116].mxu1 %v1314_v37  ;;  %v682_v37 = vld [vmem:[#allocation2 + $0x13a0] sm:$0xff] }
 0x561   :  { %4826 = vmatprep.mubr.bf16.mxu0 %v1323_v38  ;;  %7518 = vmatprep.mubr.bf16.mxu1 %v1323_v38  ;;  %v690_v38 = vld [vmem:[#allocation2 + $0x13e0] sm:$0xff] }
 0x562   :  { %v1394_v41 = vpack.c.bf16 %v690_v38, %v682_v37  ;;  %v843_v37 = vld [vmem:[#allocation2 + $0x18a8] sm:$0xff] }
 0x563   :  { %v851_v38 = vld [vmem:[#allocation2 + $0x18e8] sm:$0xff] }
 0x564   :  { %v1475_v40 = vpack.c.bf16 %v851_v38, %v843_v37  ;;  %v1002_v37 = vld [vmem:[#allocation2 + $0x1da0] sm:$0xff] }
 0x565   :  { %v1010_v38 = vld [vmem:[#allocation2 + $0x1de0] sm:$0xff] }
 0x568   :  { %4827 = vmatmul.mubr.bf16.gmra.mrb[120].mxu0 %v1322_v43  ;;  %7519 = vmatmul.mubr.bf16.gmra.mrb[120].mxu1 %v1322_v43  ;;  %v698_v43 = vld [vmem:[#allocation2 + $0x1420] sm:$0xff] }
 0x569   :  { %4836 = vmatprep.mubr.bf16.mxu0 %v1331_v44  ;;  %7528 = vmatprep.mubr.bf16.mxu1 %v1331_v44  ;;  %v706_v44 = vld [vmem:[#allocation2 + $0x1460] sm:$0xff] }
 0x56a   :  { %v1402_v47 = vpack.c.bf16 %v706_v44, %v698_v43  ;;  %v859_v43 = vld [vmem:[#allocation2 + $0x1928] sm:$0xff] }
 0x56b   :  { %v867_v44 = vld [vmem:[#allocation2 + $0x1968] sm:$0xff] }
 0x56c   :  { %v1483_v46 = vpack.c.bf16 %v867_v44, %v859_v43  ;;  %v1018_v43 = vld [vmem:[#allocation2 + $0x1e20] sm:$0xff] }
 0x56d   :  { %v1026_v44 = vld [vmem:[#allocation2 + $0x1e60] sm:$0xff] }
 0x570   :  { %4837 = vmatmul.mubr.bf16.gmra.mrb[124].mxu0 %v1330_v49  ;;  %7529 = vmatmul.mubr.bf16.gmra.mrb[124].mxu1 %v1330_v49  ;;  %v11748_v49 = vld [vmem:[#allocation5 + $0x7c0] ss:$16 sps:$4 sm:$0xff]  }
 0x571   :  { %4846 = vmatprep.mubr.bf16.mxu0 %v1339_v50  ;;  %7538 = vmatprep.mubr.bf16.mxu1 %v1339_v50  ;;  %v11750_v50 = vld [vmem:[#allocation5 + $0x7c4] ss:$16 sps:$4 sm:$0xff]  }
 0x572   :  { %5195 = vmatprep.subr.bf16.mxu0 %v11750_v50  ;;  %v883_v50 = vld [vmem:[#allocation2 + $0x19e8] sm:$0xff] }
 0x573   :  { %5196 = vmatpush1.bf16.msra.mxu0 %v11748_v49  ;;  %v875_v49 = vld [vmem:[#allocation2 + $0x19a8] sm:$0xff] }
 0x574   :  { %v1491_v52 = vpack.c.bf16 %v883_v50, %v875_v49  ;;  %v1034_v49 = vld [vmem:[#allocation2 + $0x1ea0] sm:$0xff] }
 0x575   :  { %v1042_v50 = vld [vmem:[#allocation2 + $0x1ee0] sm:$0xff] }
 0x578   :  { %4847 = vmatmul.mubr.bf16.gmra.mrb[128].mxu0 %v1338_v55  ;;  %7539 = vmatmul.mubr.bf16.gmra.mrb[128].mxu1 %v1338_v55  ;;  %v731_v55 = vld [vmem:[#allocation2 + $0x1528] sm:$0xff] }
 0x579   :  { %4856 = vmatprep.mubr.bf16.mxu0 %v1347_v56  ;;  %7548 = vmatprep.mubr.bf16.mxu1 %v1347_v56  ;;  %v739_v56 = vld [vmem:[#allocation2 + $0x1568] sm:$0xff] }
 0x57a   :  { %v1419_v58 = vpack.c.bf16 %v739_v56, %v731_v55  ;;  %v891_v55 = vld [vmem:[#allocation2 + $0x1a28] sm:$0xff] }
 0x57b   :  { %v899_v56 = vld [vmem:[#allocation2 + $0x1a68] sm:$0xff] }
 0x580   :  { %4857 = vmatmul.mubr.bf16.gmra.mrb[132].mxu0 %v1346_v1  ;;  %7549 = vmatmul.mubr.bf16.gmra.mrb[132].mxu1 %v1346_v1  ;;  %v746_v1 = vld [vmem:[#allocation2 + $0x15a0] sm:$0xff] }
 0x581   :  { %4866 = vmatprep.mubr.bf16.mxu0 %v1355_v2  ;;  %7558 = vmatprep.mubr.bf16.mxu1 %v1355_v2  ;;  %v754_v2 = vld [vmem:[#allocation2 + $0x15e0] sm:$0xff] }
 0x582   :  { %v1426_v5 = vpack.c.bf16 %v754_v2, %v746_v1  ;;  %v906_v1 = vld [vmem:[#allocation2 + $0x1aa0] sm:$0xff] }
 0x583   :  { %v914_v2 = vld [vmem:[#allocation2 + $0x1ae0] sm:$0xff] }
 0x588   :  { %4867 = vmatmul.mubr.bf16.gmra.mrb[136].mxu0 %v1354_v7  ;;  %7559 = vmatmul.mubr.bf16.gmra.mrb[136].mxu1 %v1354_v7  ;;  %v762_v7 = vld [vmem:[#allocation2 + $0x1620] sm:$0xff] }
 0x589   :  { %4876 = vmatprep.mubr.bf16.mxu0 %v1363_v8  ;;  %7568 = vmatprep.mubr.bf16.mxu1 %v1363_v8  ;;  %v770_v8 = vld [vmem:[#allocation2 + $0x1660] sm:$0xff] }
 0x58a   :  { %v1434_v11 = vpack.c.bf16 %v770_v8, %v762_v7  ;;  %v922_v7 = vld [vmem:[#allocation2 + $0x1b20] sm:$0xff] }
 0x58b   :  { %v930_v8 = vld [vmem:[#allocation2 + $0x1b60] sm:$0xff] }
 0x590   :  { %4877 = vmatmul.mubr.bf16.gmra.mrb[140].mxu0 %v1362_v13  ;;  %7569 = vmatmul.mubr.bf16.gmra.mrb[140].mxu1 %v1362_v13  ;;  %v11754_v13 = vld [vmem:[#allocation5 + $0x7e0] ss:$16 sps:$4 sm:$0xff]  }
 0x591   :  { %4886 = vmatprep.mubr.bf16.mxu0 %v1371_v14  ;;  %7578 = vmatprep.mubr.bf16.mxu1 %v1371_v14  ;;  %v11756_v14 = vld [vmem:[#allocation5 + $0x7e4] ss:$16 sps:$4 sm:$0xff]  }
 0x592   :  { %5197 = vmatprep.subr.bf16.mxu0 %v11756_v14  ;;  %v946_v14 = vld [vmem:[#allocation2 + $0x1be0] sm:$0xff] }
 0x593   :  { %5198 = vmatpush1.bf16.msra.mxu0 %v11754_v13  ;;  %v938_v13 = vld [vmem:[#allocation2 + $0x1ba0] sm:$0xff] }
 0x594   :  { %v1522_v17 = vpack.c.bf16 %v946_v14, %v938_v13 }
 0x598   :  { %4887 = vmatmul.mubr.bf16.gmra.mrb[144].mxu0 %v1370_v19  ;;  %7579 = vmatmul.mubr.bf16.gmra.mrb[144].mxu1 %v1370_v19  ;;  %v795_v19 = vld [vmem:[#allocation2 + $0x1728] sm:$0xff] }
 0x599   :  { %4896 = vmatprep.mubr.bf16.mxu0 %v1379_v20  ;;  %7588 = vmatprep.mubr.bf16.mxu1 %v1379_v20  ;;  %v803_v20 = vld [vmem:[#allocation2 + $0x1768] sm:$0xff] }
 0x59a   :  { %v1451_v22 = vpack.c.bf16 %v803_v20, %v795_v19  ;;  %v954_v19 = vld [vmem:[#allocation2 + $0x1c20] sm:$0xff] }
 0x59b   :  { %v962_v20 = vld [vmem:[#allocation2 + $0x1c60] sm:$0xff] }
 0x59c   :  { %v1530_v23 = vpack.c.bf16 %v962_v20, %v954_v19  ;;  %v1100_v19 = vpack.c.bf16 %v100_v16, %v92_v15 }
 0x5a0   :  { %4897 = vmatmul.mubr.bf16.gmra.mrb[148].mxu0 %v1378_v29  ;;  %7589 = vmatmul.mubr.bf16.gmra.mrb[148].mxu1 %v1378_v29  ;;  %v810_v29 = vld [vmem:[#allocation2 + $0x17a0] sm:$0xff] }
 0x5a1   :  { %4906 = vmatprep.mubr.bf16.mxu0 %v1387_v30  ;;  %7598 = vmatprep.mubr.bf16.mxu1 %v1387_v30  ;;  %v818_v30 = vld [vmem:[#allocation2 + $0x17e0] sm:$0xff] }
 0x5a2   :  { %v1458_v33 = vpack.c.bf16 %v818_v30, %v810_v29  ;;  %v1538_v29 = vpack.c.bf16 %v978_v26, %v970_v25 }
 0x5a8   :  { %4907 = vmatmul.mubr.bf16.gmra.mrb[152].mxu0 %v1386_v35  ;;  %7599 = vmatmul.mubr.bf16.gmra.mrb[152].mxu1 %v1386_v35  ;;  %v826_v35 = vld [vmem:[#allocation2 + $0x1820] sm:$0xff] }
 0x5a9   :  { %4916 = vmatprep.mubr.bf16.mxu0 %v1395_v36  ;;  %7608 = vmatprep.mubr.bf16.mxu1 %v1395_v36  ;;  %v834_v36 = vld [vmem:[#allocation2 + $0x1860] sm:$0xff] }
 0x5aa   :  { %v1466_v39 = vpack.c.bf16 %v834_v36, %v826_v35  ;;  %v1546_v35 = vpack.c.bf16 %v994_v32, %v986_v31 }
 0x5b0   :  { %4917 = vmatmul.mubr.bf16.gmra.mrb[156].mxu0 %v1394_v41  ;;  %7609 = vmatmul.mubr.bf16.gmra.mrb[156].mxu1 %v1394_v41  ;;  %v842_v41 = vld [vmem:[#allocation2 + $0x18a0] sm:$0xff] }
 0x5b1   :  { %4926 = vmatprep.mubr.bf16.mxu0 %v1403_v42  ;;  %7618 = vmatprep.mubr.bf16.mxu1 %v1403_v42  ;;  %v850_v42 = vld [vmem:[#allocation2 + $0x18e0] sm:$0xff] }
 0x5b2   :  { %v1474_v45 = vpack.c.bf16 %v850_v42, %v842_v41  ;;  %v1554_v41 = vpack.c.bf16 %v1010_v38, %v1002_v37 }
 0x5b8   :  { %4927 = vmatmul.mubr.bf16.gmra.mrb[160].mxu0 %v1402_v47  ;;  %7619 = vmatmul.mubr.bf16.gmra.mrb[160].mxu1 %v1402_v47  ;;  %v858_v47 = vld [vmem:[#allocation2 + $0x1920] sm:$0xff] }
 0x5b9   :  { %4936 = vmatprep.mubr.bf16.mxu0 %v1411_v48  ;;  %7628 = vmatprep.mubr.bf16.mxu1 %v1411_v48  ;;  %v866_v48 = vld [vmem:[#allocation2 + $0x1960] sm:$0xff] }
 0x5ba   :  { %v1482_v51 = vpack.c.bf16 %v866_v48, %v858_v47  ;;  %v1562_v47 = vpack.c.bf16 %v1026_v44, %v1018_v43 }
 0x5c0   :  { %4937 = vmatmul.mubr.bf16.gmra.mrb[164].mxu0 %v1410_v57  ;;  %7629 = vmatmul.mubr.bf16.gmra.mrb[164].mxu1 %v1410_v57  ;;  %v1490_v57 = vpack.c.bf16 %v882_v54, %v874_v53  ;;  %v1570_v53 = vpack.c.bf16 %v1042_v50, %v1034_v49 }
 0x5c1   :  { %4946 = vmatprep.mubr.bf16.mxu0 %v1419_v58  ;;  %7638 = vmatprep.mubr.bf16.mxu1 %v1419_v58  ;;  %v1499_v58 = vpack.c.bf16 %v899_v56, %v891_v55  ;;  %v1050_v55 = vld [vmem:[#allocation2 + $0x1f20] sm:$0xff] }
 0x5c2   :  { %v1058_v56 = vld [vmem:[#allocation2 + $0x1f60] sm:$0xff] }
 0x5c8   :  { %4947 = vmatmul.mubr.bf16.gmra.mrb[168].mxu0 %v1418_v63  ;;  %7639 = vmatmul.mubr.bf16.gmra.mrb[168].mxu1 %v1418_v63  ;;  %v1498_v63 = vpack.c.bf16 %v898_v60, %v890_v59  ;;  %v1578_v59 = vpack.c.bf16 %v1058_v56, %v1050_v55 }
 0x5c9   :  { %4956 = vmatprep.mubr.bf16.mxu0 %v1427_v0  ;;  %7648 = vmatprep.mubr.bf16.mxu1 %v1427_v0  ;;  %v1507_v0 = vpack.c.bf16 %v915_v62, %v907_v61  ;;  %v1066_v61 = vld [vmem:[#allocation2 + $0x1fa0] sm:$0xff] }
 0x5ca   :  { %v1074_v62 = vld [vmem:[#allocation2 + $0x1fe0] sm:$0xff] }
 0x5d0   :  { %4957 = vmatmul.mubr.bf16.gmra.mrb[172].mxu0 %v1426_v5  ;;  %7649 = vmatmul.mubr.bf16.gmra.mrb[172].mxu1 %v1426_v5  ;;  %v1506_v5 = vpack.c.bf16 %v914_v2, %v906_v1  ;;  %v1586_v1 = vpack.c.bf16 %v1074_v62, %v1066_v61 }
 0x5d1   :  { %4966 = vmatprep.mubr.bf16.mxu0 %v1435_v6  ;;  %7658 = vmatprep.mubr.bf16.mxu1 %v1435_v6  ;;  %v1515_v6 = vpack.c.bf16 %v931_v4, %v923_v3  ;;  %v60_v3 = vld [vmem:[#allocation2 + $0x30] sm:$0xff] }
 0x5d2   :  { %v68_v4 = vld [vmem:[#allocation2 + $0x70] sm:$0xff] }
 0x5d8   :  { %4967 = vmatmul.mubr.bf16.gmra.mrb[176].mxu0 %v1434_v11  ;;  %7659 = vmatmul.mubr.bf16.gmra.mrb[176].mxu1 %v1434_v11  ;;  %v1514_v11 = vpack.c.bf16 %v930_v8, %v922_v7  ;;  %v1084_v7 = vpack.c.bf16 %v68_v4, %v60_v3 }
 0x5d9   :  { %4976 = vmatprep.mubr.bf16.mxu0 %v1443_v12  ;;  %7668 = vmatprep.mubr.bf16.mxu1 %v1443_v12  ;;  %v1523_v12 = vpack.c.bf16 %v947_v10, %v939_v9  ;;  %v76_v9 = vld [vmem:[#allocation2 + $0xb0] sm:$0xff] }
 0x5da   :  { %v84_v10 = vld [vmem:[#allocation2 + $0xf0] sm:$0xff] }
 0x5db   :  { %v1092_v13 = vpack.c.bf16 %v84_v10, %v76_v9 }
 0x5e0   :  { %4977 = vmatmul.mubr.bf16.gmra.mrb[180].mxu0 %v1442_v21  ;;  %7669 = vmatmul.mubr.bf16.gmra.mrb[180].mxu1 %v1442_v21  ;;  %v971_v21 = vld [vmem:[#allocation2 + $0x1ca8] sm:$0xff] }
 0x5e1   :  { %4986 = vmatprep.mubr.bf16.mxu0 %v1451_v22  ;;  %7678 = vmatprep.mubr.bf16.mxu1 %v1451_v22  ;;  %v979_v22 = vld [vmem:[#allocation2 + $0x1ce8] sm:$0xff] }
 0x5e2   :  { %v1539_v24 = vpack.c.bf16 %v979_v22, %v971_v21  ;;  %v108_v21 = vld [vmem:[#allocation2 + $0x1b0] sm:$0xff] }
 0x5e3   :  { %v116_v22 = vld [vmem:[#allocation2 + $0x1f0] sm:$0xff] }
 0x5e4   :  { %v1108_v25 = vpack.c.bf16 %v116_v22, %v108_v21 }
 0x5e8   :  { %4987 = vmatmul.mubr.bf16.gmra.mrb[184].mxu0 %v1450_v27  ;;  %7679 = vmatmul.mubr.bf16.gmra.mrb[184].mxu1 %v1450_v27  ;;  %v987_v27 = vld [vmem:[#allocation2 + $0x1d28] sm:$0xff] }
 0x5e9   :  { %4996 = vmatprep.mubr.bf16.mxu0 %v1459_v28  ;;  %7688 = vmatprep.mubr.bf16.mxu1 %v1459_v28  ;;  %v995_v28 = vld [vmem:[#allocation2 + $0x1d68] sm:$0xff] }
 0x5ea   :  { %v1547_v30 = vpack.c.bf16 %v995_v28, %v987_v27  ;;  %v124_v27 = vld [vmem:[#allocation2 + $0x230] sm:$0xff] }
 0x5eb   :  { %v132_v28 = vld [vmem:[#allocation2 + $0x270] sm:$0xff] }
 0x5ec   :  { %v1116_v31 = vpack.c.bf16 %v132_v28, %v124_v27 }
 0x5f0   :  { %4997 = vmatmul.mubr.bf16.gmra.mrb[188].mxu0 %v1458_v33  ;;  %7689 = vmatmul.mubr.bf16.gmra.mrb[188].mxu1 %v1458_v33  ;;  %v1003_v33 = vld [vmem:[#allocation2 + $0x1da8] sm:$0xff] }
 0x5f1   :  { %5006 = vmatprep.mubr.bf16.mxu0 %v1467_v34  ;;  %7698 = vmatprep.mubr.bf16.mxu1 %v1467_v34  ;;  %v1011_v34 = vld [vmem:[#allocation2 + $0x1de8] sm:$0xff] }
 0x5f2   :  { %v1555_v36 = vpack.c.bf16 %v1011_v34, %v1003_v33  ;;  %v140_v33 = vld [vmem:[#allocation2 + $0x2b0] sm:$0xff] }
 0x5f3   :  { %v148_v34 = vld [vmem:[#allocation2 + $0x2f0] sm:$0xff] }
 0x5f4   :  { %v1124_v37 = vpack.c.bf16 %v148_v34, %v140_v33 }
 0x5f8   :  { %5007 = vmatmul.mubr.bf16.gmra.mrb[192].mxu0 %v1466_v39  ;;  %7699 = vmatmul.mubr.bf16.gmra.mrb[192].mxu1 %v1466_v39  ;;  %v1019_v39 = vld [vmem:[#allocation2 + $0x1e28] sm:$0xff] }
 0x5f9   :  { %5016 = vmatprep.mubr.bf16.mxu0 %v1475_v40  ;;  %7708 = vmatprep.mubr.bf16.mxu1 %v1475_v40  ;;  %v1027_v40 = vld [vmem:[#allocation2 + $0x1e68] sm:$0xff] }
 0x5fa   :  { %v1563_v42 = vpack.c.bf16 %v1027_v40, %v1019_v39  ;;  %v156_v39 = vld [vmem:[#allocation2 + $0x330] sm:$0xff] }
 0x5fb   :  { %v164_v40 = vld [vmem:[#allocation2 + $0x370] sm:$0xff] }
 0x5fc   :  { %v1132_v43 = vpack.c.bf16 %v164_v40, %v156_v39 }
 0x600   :  { %5017 = vmatmul.mubr.bf16.gmra.mrb[196].mxu0 %v1474_v45  ;;  %7709 = vmatmul.mubr.bf16.gmra.mrb[196].mxu1 %v1474_v45  ;;  %v1035_v45 = vld [vmem:[#allocation2 + $0x1ea8] sm:$0xff] }
 0x601   :  { %5026 = vmatprep.mubr.bf16.mxu0 %v1483_v46  ;;  %7718 = vmatprep.mubr.bf16.mxu1 %v1483_v46  ;;  %v1043_v46 = vld [vmem:[#allocation2 + $0x1ee8] sm:$0xff] }
 0x602   :  { %v1571_v48 = vpack.c.bf16 %v1043_v46, %v1035_v45  ;;  %v172_v45 = vld [vmem:[#allocation2 + $0x3b0] sm:$0xff] }
 0x603   :  { %v180_v46 = vld [vmem:[#allocation2 + $0x3f0] sm:$0xff] }
 0x604   :  { %v1140_v49 = vpack.c.bf16 %v180_v46, %v172_v45 }
 0x608   :  { %5027 = vmatmul.mubr.bf16.gmra.mrb[200].mxu0 %v1482_v51  ;;  %7719 = vmatmul.mubr.bf16.gmra.mrb[200].mxu1 %v1482_v51  ;;  %v1051_v51 = vld [vmem:[#allocation2 + $0x1f28] sm:$0xff] }
 0x609   :  { %5036 = vmatprep.mubr.bf16.mxu0 %v1491_v52  ;;  %7728 = vmatprep.mubr.bf16.mxu1 %v1491_v52  ;;  %v1059_v52 = vld [vmem:[#allocation2 + $0x1f68] sm:$0xff] }
 0x60a   :  { %v1579_v54 = vpack.c.bf16 %v1059_v52, %v1051_v51  ;;  %v188_v51 = vld [vmem:[#allocation2 + $0x430] sm:$0xff] }
 0x60b   :  { %v196_v52 = vld [vmem:[#allocation2 + $0x470] sm:$0xff] }
 0x60c   :  { %v1148_v55 = vpack.c.bf16 %v196_v52, %v188_v51 }
 0x610   :  { %5037 = vmatmul.mubr.bf16.gmra.mrb[204].mxu0 %v1490_v57  ;;  %7729 = vmatmul.mubr.bf16.gmra.mrb[204].mxu1 %v1490_v57  ;;  %v1067_v57 = vld [vmem:[#allocation2 + $0x1fa8] sm:$0xff] }
 0x611   :  { %5046 = vmatprep.mubr.bf16.mxu0 %v1499_v58  ;;  %7738 = vmatprep.mubr.bf16.mxu1 %v1499_v58  ;;  %v1075_v58 = vld [vmem:[#allocation2 + $0x1fe8] sm:$0xff] }
 0x612   :  { %v1587_v60 = vpack.c.bf16 %v1075_v58, %v1067_v57  ;;  %v204_v57 = vld [vmem:[#allocation2 + $0x4b0] sm:$0xff] }
 0x613   :  { %v212_v58 = vld [vmem:[#allocation2 + $0x4f0] sm:$0xff] }
 0x614   :  { %v1156_v61 = vpack.c.bf16 %v212_v58, %v204_v57 }
 0x618   :  { %5047 = vmatmul.mubr.bf16.gmra.mrb[208].mxu0 %v1498_v63  ;;  %7739 = vmatmul.mubr.bf16.gmra.mrb[208].mxu1 %v1498_v63  ;;  %v61_v63 = vld [vmem:[#allocation2 + $0x38] sm:$0xff] }
 0x619   :  { %5056 = vmatprep.mubr.bf16.mxu0 %v1507_v0  ;;  %7748 = vmatprep.mubr.bf16.mxu1 %v1507_v0  ;;  %v69_v0 = vld [vmem:[#allocation2 + $0x78] sm:$0xff] }
 0x61a   :  { %v1085_v2 = vpack.c.bf16 %v69_v0, %v61_v63  ;;  %v220_v63 = vld [vmem:[#allocation2 + $0x530] sm:$0xff] }
 0x61b   :  { %v228_v0 = vld [vmem:[#allocation2 + $0x570] sm:$0xff] }
 0x61c   :  { %v1164_v3 = vpack.c.bf16 %v228_v0, %v220_v63 }
 0x620   :  { %5057 = vmatmul.mubr.bf16.gmra.mrb[212].mxu0 %v1506_v5  ;;  %7749 = vmatmul.mubr.bf16.gmra.mrb[212].mxu1 %v1506_v5  ;;  %v77_v5 = vld [vmem:[#allocation2 + $0xb8] sm:$0xff] }
 0x621   :  { %5066 = vmatprep.mubr.bf16.mxu0 %v1515_v6  ;;  %7758 = vmatprep.mubr.bf16.mxu1 %v1515_v6  ;;  %v85_v6 = vld [vmem:[#allocation2 + $0xf8] sm:$0xff] }
 0x622   :  { %v1093_v8 = vpack.c.bf16 %v85_v6, %v77_v5  ;;  %v236_v5 = vld [vmem:[#allocation2 + $0x5b0] sm:$0xff] }
 0x623   :  { %v244_v6 = vld [vmem:[#allocation2 + $0x5f0] sm:$0xff] }
 0x624   :  { %v1172_v9 = vpack.c.bf16 %v244_v6, %v236_v5 }
 0x628   :  { %5067 = vmatmul.mubr.bf16.gmra.mrb[216].mxu0 %v1514_v11  ;;  %7759 = vmatmul.mubr.bf16.gmra.mrb[216].mxu1 %v1514_v11  ;;  %v93_v11 = vld [vmem:[#allocation2 + $0x138] sm:$0xff] }
 0x629   :  { %5076 = vmatprep.mubr.bf16.mxu0 %v1523_v12  ;;  %7768 = vmatprep.mubr.bf16.mxu1 %v1523_v12  ;;  %v101_v12 = vld [vmem:[#allocation2 + $0x178] sm:$0xff] }
 0x62a   :  { %v1101_v14 = vpack.c.bf16 %v101_v12, %v93_v11  ;;  %v252_v11 = vld [vmem:[#allocation2 + $0x630] sm:$0xff] }
 0x62b   :  { %v260_v12 = vld [vmem:[#allocation2 + $0x670] sm:$0xff] }
 0x62c   :  { %v1180_v15 = vpack.c.bf16 %v260_v12, %v252_v11 }
 0x630   :  { %5077 = vmatmul.mubr.bf16.gmra.mrb[220].mxu0 %v1522_v17  ;;  %7769 = vmatmul.mubr.bf16.gmra.mrb[220].mxu1 %v1522_v17  ;;  %v109_v17 = vld [vmem:[#allocation2 + $0x1b8] sm:$0xff] }
 0x631   :  { %5086 = vmatprep.mubr.bf16.mxu0 %v1531_v18  ;;  %7778 = vmatprep.mubr.bf16.mxu1 %v1531_v18  ;;  %v117_v18 = vld [vmem:[#allocation2 + $0x1f8] sm:$0xff] }
 0x632   :  { %v1109_v20 = vpack.c.bf16 %v117_v18, %v109_v17  ;;  %v268_v17 = vld [vmem:[#allocation2 + $0x6b0] sm:$0xff] }
 0x633   :  { %v276_v18 = vld [vmem:[#allocation2 + $0x6f0] sm:$0xff] }
 0x634   :  { %v1188_v21 = vpack.c.bf16 %v276_v18, %v268_v17 }
 0x638   :  { %5087 = vmatmul.mubr.bf16.gmra.mrb[224].mxu0 %v1530_v23  ;;  %7779 = vmatmul.mubr.bf16.gmra.mrb[224].mxu1 %v1530_v23  ;;  %v125_v23 = vld [vmem:[#allocation2 + $0x238] sm:$0xff] }
 0x639   :  { %5096 = vmatprep.mubr.bf16.mxu0 %v1539_v24  ;;  %7788 = vmatprep.mubr.bf16.mxu1 %v1539_v24  ;;  %v133_v24 = vld [vmem:[#allocation2 + $0x278] sm:$0xff] }
 0x63a   :  { %v1117_v26 = vpack.c.bf16 %v133_v24, %v125_v23  ;;  %v284_v23 = vld [vmem:[#allocation2 + $0x730] sm:$0xff] }
 0x63b   :  { %v292_v24 = vld [vmem:[#allocation2 + $0x770] sm:$0xff] }
 0x63c   :  { %v1196_v27 = vpack.c.bf16 %v292_v24, %v284_v23 }
 0x640   :  { %5097 = vmatmul.mubr.bf16.gmra.mrb[228].mxu0 %v1538_v29  ;;  %7789 = vmatmul.mubr.bf16.gmra.mrb[228].mxu1 %v1538_v29  ;;  %v141_v29 = vld [vmem:[#allocation2 + $0x2b8] sm:$0xff] }
 0x641   :  { %5106 = vmatprep.mubr.bf16.mxu0 %v1547_v30  ;;  %7798 = vmatprep.mubr.bf16.mxu1 %v1547_v30  ;;  %v149_v30 = vld [vmem:[#allocation2 + $0x2f8] sm:$0xff] }
 0x642   :  { %v1125_v32 = vpack.c.bf16 %v149_v30, %v141_v29  ;;  %v300_v29 = vld [vmem:[#allocation2 + $0x7b0] sm:$0xff] }
 0x643   :  { %v308_v30 = vld [vmem:[#allocation2 + $0x7f0] sm:$0xff] }
 0x644   :  { %v1204_v33 = vpack.c.bf16 %v308_v30, %v300_v29  ;;  %v1848_v30 = vlaneseq }
 0x648   :  { %5107 = vmatmul.mubr.bf16.gmra.mrb[232].mxu0 %v1546_v35  ;;  %7799 = vmatmul.mubr.bf16.gmra.mrb[232].mxu1 %v1546_v35  ;;  %v157_v35 = vld [vmem:[#allocation2 + $0x338] sm:$0xff] }
 0x649   :  { %5116 = vmatprep.mubr.bf16.mxu0 %v1555_v36  ;;  %7808 = vmatprep.mubr.bf16.mxu1 %v1555_v36  ;;  %v165_v36 = vld [vmem:[#allocation2 + $0x378] sm:$0xff] }
 0x64a   :  { %v1133_v38 = vpack.c.bf16 %v165_v36, %v157_v35  ;;  %v316_v35 = vld [vmem:[#allocation2 + $0x830] sm:$0xff] }
 0x64b   :  { %v324_v36 = vld [vmem:[#allocation2 + $0x870] sm:$0xff] }
 0x64c   :  { %v1212_v39 = vpack.c.bf16 %v324_v36, %v316_v35  ;;  %v493_v35 = vld [vmem:[#allocation2 + $0xdb8] sm:$0xff] }
 0x64d   :  { %v501_v36 = vld [vmem:[#allocation2 + $0xdf8] sm:$0xff] }
 0x650   :  { %5117 = vmatmul.mubr.bf16.gmra.mrb[236].mxu0 %v1554_v41  ;;  %7809 = vmatmul.mubr.bf16.gmra.mrb[236].mxu1 %v1554_v41  ;;  %v173_v41 = vld [vmem:[#allocation2 + $0x3b8] sm:$0xff] }
 0x651   :  { %5126 = vmatprep.mubr.bf16.mxu0 %v1563_v42  ;;  %7818 = vmatprep.mubr.bf16.mxu1 %v1563_v42  ;;  %v181_v42 = vld [vmem:[#allocation2 + $0x3f8] sm:$0xff] }
 0x652   :  { %v1141_v44 = vpack.c.bf16 %v181_v42, %v173_v41  ;;  %v332_v41 = vld [vmem:[#allocation2 + $0x8b0] sm:$0xff] }
 0x653   :  { %v340_v42 = vld [vmem:[#allocation2 + $0x8f0] sm:$0xff] }
 0x654   :  { %v1220_v45 = vpack.c.bf16 %v340_v42, %v332_v41 }
 0x658   :  { %5127 = vmatmul.mubr.bf16.gmra.mrb[240].mxu0 %v1562_v47  ;;  %7819 = vmatmul.mubr.bf16.gmra.mrb[240].mxu1 %v1562_v47  ;;  %v189_v47 = vld [vmem:[#allocation2 + $0x438] sm:$0xff] }
 0x659   :  { %5136 = vmatprep.mubr.bf16.mxu0 %v1571_v48  ;;  %7828 = vmatprep.mubr.bf16.mxu1 %v1571_v48  ;;  %v197_v48 = vld [vmem:[#allocation2 + $0x478] sm:$0xff] }
 0x65a   :  { %v1149_v50 = vpack.c.bf16 %v197_v48, %v189_v47  ;;  %v348_v47 = vld [vmem:[#allocation2 + $0x930] sm:$0xff] }
 0x65b   :  { %v356_v48 = vld [vmem:[#allocation2 + $0x970] sm:$0xff] }
 0x65c   :  { %v1228_v51 = vpack.c.bf16 %v356_v48, %v348_v47  ;;  %v492_v48 = vld [vmem:[#allocation2 + $0xdb0] sm:$0xff] }
 0x660   :  { %5137 = vmatmul.mubr.bf16.gmra.mrb[244].mxu0 %v1570_v53  ;;  %7829 = vmatmul.mubr.bf16.gmra.mrb[244].mxu1 %v1570_v53  ;;  %v205_v53 = vld [vmem:[#allocation2 + $0x4b8] sm:$0xff] }
 0x661   :  { %5146 = vmatprep.mubr.bf16.mxu0 %v1579_v54  ;;  %7838 = vmatprep.mubr.bf16.mxu1 %v1579_v54  ;;  %v213_v54 = vld [vmem:[#allocation2 + $0x4f8] sm:$0xff] }
 0x662   :  { %v1157_v56 = vpack.c.bf16 %v213_v54, %v205_v53  ;;  %v364_v53 = vld [vmem:[#allocation2 + $0x9b0] sm:$0xff] }
 0x663   :  { %v372_v54 = vld [vmem:[#allocation2 + $0x9f0] sm:$0xff] }
 0x664   :  { %v1236_v57 = vpack.c.bf16 %v372_v54, %v364_v53 }
 0x668   :  { %5147 = vmatmul.mubr.bf16.gmra.mrb[248].mxu0 %v1578_v59  ;;  %7839 = vmatmul.mubr.bf16.gmra.mrb[248].mxu1 %v1578_v59  ;;  %v221_v59 = vld [vmem:[#allocation2 + $0x538] sm:$0xff] }
 0x669   :  { %5156 = vmatprep.mubr.bf16.mxu0 %v1587_v60  ;;  %7848 = vmatprep.mubr.bf16.mxu1 %v1587_v60  ;;  %v229_v60 = vld [vmem:[#allocation2 + $0x578] sm:$0xff] }
 0x66a   :  { %v1165_v62 = vpack.c.bf16 %v229_v60, %v221_v59  ;;  %v380_v59 = vld [vmem:[#allocation2 + $0xa30] sm:$0xff] }
 0x66b   :  { %v388_v60 = vld [vmem:[#allocation2 + $0xa70] sm:$0xff] }
 0x66c   :  { %v1244_v63 = vpack.c.bf16 %v388_v60, %v380_v59 }
 0x670   :  { %5157 = vmatmul.mubr.bf16.gmra.mrb[252].mxu0 %v1586_v1  ;;  %7849 = vmatmul.mubr.bf16.gmra.mrb[252].mxu1 %v1586_v1  ;;  %v237_v1 = vld [vmem:[#allocation2 + $0x5b8] sm:$0xff] }
 0x671   :  { %5199 = vmatprep.mubr.bf16.mxu0 %v1085_v2  ;;  %7891 = vmatprep.mubr.bf16.mxu1 %v1085_v2  ;;  %v245_v2 = vld [vmem:[#allocation2 + $0x5f8] sm:$0xff] }
 0x672   :  { %v1173_v4 = vpack.c.bf16 %v245_v2, %v237_v1  ;;  %v396_v1 = vld [vmem:[#allocation2 + $0xab0] sm:$0xff] }
 0x673   :  { %v404_v2 = vld [vmem:[#allocation2 + $0xaf0] sm:$0xff] }
 0x674   :  { %v1252_v5 = vpack.c.bf16 %v404_v2, %v396_v1 }
 0x678   :  { %5200 = vmatmul.mubr.bf16.vlgmr.msra.gmra.mrb[0].mxu0 %v1084_v7  ;;  %7892 = vmatmul.mubr.bf16.vlgmr.msra.gmra.mrb[0].mxu1 %v1084_v7  ;;  %v253_v7 = vld [vmem:[#allocation2 + $0x638] sm:$0xff] }
 0x679   :  { %5209 = vmatprep.mubr.bf16.mxu0 %v1093_v8  ;;  %7901 = vmatprep.mubr.bf16.mxu1 %v1093_v8  ;;  %v261_v8 = vld [vmem:[#allocation2 + $0x678] sm:$0xff] }
 0x67a   :  { %v1181_v10 = vpack.c.bf16 %v261_v8, %v253_v7  ;;  %v412_v7 = vld [vmem:[#allocation2 + $0xb30] sm:$0xff] }
 0x67b   :  { %v420_v8 = vld [vmem:[#allocation2 + $0xb70] sm:$0xff] }
 0x67c   :  { %v1260_v11 = vpack.c.bf16 %v420_v8, %v412_v7  ;;  %v516_v7 = vld [vmem:[#allocation2 + $0xe70] sm:$0xff]  ;;  %v525_v8 = vld [vmem:[#allocation2 + $0xeb8] sm:$0xff] }
 0x680   :  { %5210 = vmatmul.mubr.bf16.gmra.mrb[4].mxu0 %v1092_v13  ;;  %7902 = vmatmul.mubr.bf16.gmra.mrb[4].mxu1 %v1092_v13  ;;  %v269_v13 = vld [vmem:[#allocation2 + $0x6b8] sm:$0xff] }
 0x681   :  { %5219 = vmatprep.mubr.bf16.mxu0 %v1101_v14  ;;  %7911 = vmatprep.mubr.bf16.mxu1 %v1101_v14  ;;  %v277_v14 = vld [vmem:[#allocation2 + $0x6f8] sm:$0xff] }
 0x682   :  { %v1189_v16 = vpack.c.bf16 %v277_v14, %v269_v13  ;;  %v428_v13 = vld [vmem:[#allocation2 + $0xbb0] sm:$0xff] }
 0x683   :  { %v436_v14 = vld [vmem:[#allocation2 + $0xbf0] sm:$0xff] }
 0x684   :  { %v1268_v17 = vpack.c.bf16 %v436_v14, %v428_v13 }
 0x688   :  { %5220 = vmatmul.mubr.bf16.gmra.mrb[8].mxu0 %v1100_v19  ;;  %7912 = vmatmul.mubr.bf16.gmra.mrb[8].mxu1 %v1100_v19  ;;  %v285_v19 = vld [vmem:[#allocation2 + $0x738] sm:$0xff] }
 0x689   :  { %5229 = vmatprep.mubr.bf16.mxu0 %v1109_v20  ;;  %7921 = vmatprep.mubr.bf16.mxu1 %v1109_v20  ;;  %v293_v20 = vld [vmem:[#allocation2 + $0x778] sm:$0xff] }
 0x68a   :  { %v1197_v22 = vpack.c.bf16 %v293_v20, %v285_v19  ;;  %v444_v19 = vld [vmem:[#allocation2 + $0xc30] sm:$0xff] }
 0x68b   :  { %v452_v20 = vld [vmem:[#allocation2 + $0xc70] sm:$0xff] }
 0x68c   :  { %v1276_v23 = vpack.c.bf16 %v452_v20, %v444_v19 }
 0x690   :  { %5230 = vmatmul.mubr.bf16.gmra.mrb[12].mxu0 %v1108_v25  ;;  %7922 = vmatmul.mubr.bf16.gmra.mrb[12].mxu1 %v1108_v25  ;;  %v301_v25 = vld [vmem:[#allocation2 + $0x7b8] sm:$0xff] }
 0x691   :  { %5239 = vmatprep.mubr.bf16.mxu0 %v1117_v26  ;;  %7931 = vmatprep.mubr.bf16.mxu1 %v1117_v26  ;;  %v309_v26 = vld [vmem:[#allocation2 + $0x7f8] sm:$0xff] }
 0x692   :  { %v1205_v28 = vpack.c.bf16 %v309_v26, %v301_v25  ;;  %v460_v25 = vld [vmem:[#allocation2 + $0xcb0] sm:$0xff] }
 0x693   :  { %v468_v26 = vld [vmem:[#allocation2 + $0xcf0] sm:$0xff] }
 0x694   :  { %v1284_v29 = vpack.c.bf16 %v468_v26, %v460_v25 }
 0x698   :  { %5240 = vmatmul.mubr.bf16.gmra.mrb[16].mxu0 %v1116_v31  ;;  %7932 = vmatmul.mubr.bf16.gmra.mrb[16].mxu1 %v1116_v31  ;;  %v317_v31 = vld [vmem:[#allocation2 + $0x838] sm:$0xff] }
 0x699   :  { %5249 = vmatprep.mubr.bf16.mxu0 %v1125_v32  ;;  %7941 = vmatprep.mubr.bf16.mxu1 %v1125_v32  ;;  %v325_v32 = vld [vmem:[#allocation2 + $0x878] sm:$0xff] }
 0x69a   :  { %v1213_v34 = vpack.c.bf16 %v325_v32, %v317_v31  ;;  %v1849_v32 = vshrl.u32 %v1848_v30, 7  ;;  %v541_v30 = vld [vmem:[#allocation2 + $0xf38] sm:$0xff] }
 0x69c   :  { %v1854_v41 = vsub.s32 1, %v1849_v32  ;;  %v1862_v42 = vsub.s32 3, %v1849_v32 }
 0x6a0   :  { %5250 = vmatmul.mubr.bf16.gmra.mrb[20].mxu0 %v1124_v37  ;;  %7942 = vmatmul.mubr.bf16.gmra.mrb[20].mxu1 %v1124_v37  ;;  %v333_v37 = vld [vmem:[#allocation2 + $0x8b8] sm:$0xff] }
 0x6a1   :  { %5259 = vmatprep.mubr.bf16.mxu0 %v1133_v38  ;;  %7951 = vmatprep.mubr.bf16.mxu1 %v1133_v38  ;;  %v341_v38 = vld [vmem:[#allocation2 + $0x8f8] sm:$0xff] }
 0x6a2   :  { %v1221_v40 = vpack.c.bf16 %v341_v38, %v333_v37  ;;  %v1850_v38 = vsub.s32 0, %v1849_v32 }
 0x6a8   :  { %5260 = vmatmul.mubr.bf16.gmra.mrb[24].mxu0 %v1132_v43  ;;  %7952 = vmatmul.mubr.bf16.gmra.mrb[24].mxu1 %v1132_v43  ;;  %v349_v43 = vld [vmem:[#allocation2 + $0x938] sm:$0xff] }
 0x6a9   :  { %5269 = vmatprep.mubr.bf16.mxu0 %v1141_v44  ;;  %7961 = vmatprep.mubr.bf16.mxu1 %v1141_v44  ;;  %v357_v44 = vld [vmem:[#allocation2 + $0x978] sm:$0xff] }
 0x6aa   :  { %v1229_v46 = vpack.c.bf16 %v357_v44, %v349_v43  ;;  %v1301_v43 = vpack.c.bf16 %v501_v36, %v493_v35 }
 0x6b0   :  { %5270 = vmatmul.mubr.bf16.gmra.mrb[28].mxu0 %v1140_v49  ;;  %7962 = vmatmul.mubr.bf16.gmra.mrb[28].mxu1 %v1140_v49  ;;  %v365_v49 = vld [vmem:[#allocation2 + $0x9b8] sm:$0xff] }
 0x6b1   :  { %5279 = vmatprep.mubr.bf16.mxu0 %v1149_v50  ;;  %7971 = vmatprep.mubr.bf16.mxu1 %v1149_v50  ;;  %v373_v50 = vld [vmem:[#allocation2 + $0x9f8] sm:$0xff] }
 0x6b2   :  { %v1237_v52 = vpack.c.bf16 %v373_v50, %v365_v49  ;;  %v500_v49 = vld [vmem:[#allocation2 + $0xdf0] sm:$0xff]  ;;  %v509_v50 = vld [vmem:[#allocation2 + $0xe38] sm:$0xff] }
 0x6b8   :  { %5280 = vmatmul.mubr.bf16.gmra.mrb[32].mxu0 %v1148_v55  ;;  %7972 = vmatmul.mubr.bf16.gmra.mrb[32].mxu1 %v1148_v55  ;;  %v381_v55 = vld [vmem:[#allocation2 + $0xa38] sm:$0xff] }
 0x6b9   :  { %5289 = vmatprep.mubr.bf16.mxu0 %v1157_v56  ;;  %7981 = vmatprep.mubr.bf16.mxu1 %v1157_v56  ;;  %v389_v56 = vld [vmem:[#allocation2 + $0xa78] sm:$0xff] }
 0x6ba   :  { %v1245_v58 = vpack.c.bf16 %v389_v56, %v381_v55 }
 0x6c0   :  { %5290 = vmatmul.mubr.bf16.gmra.mrb[36].mxu0 %v1156_v61  ;;  %7982 = vmatmul.mubr.bf16.gmra.mrb[36].mxu1 %v1156_v61  ;;  %v397_v61 = vld [vmem:[#allocation2 + $0xab8] sm:$0xff] }
 0x6c1   :  { %5299 = vmatprep.mubr.bf16.mxu0 %v1165_v62  ;;  %7991 = vmatprep.mubr.bf16.mxu1 %v1165_v62  ;;  %v405_v62 = vld [vmem:[#allocation2 + $0xaf8] sm:$0xff] }
 0x6c2   :  { %v1253_v0 = vpack.c.bf16 %v405_v62, %v397_v61 }
 0x6c8   :  { %5300 = vmatmul.mubr.bf16.gmra.mrb[40].mxu0 %v1164_v3  ;;  %7992 = vmatmul.mubr.bf16.gmra.mrb[40].mxu1 %v1164_v3  ;;  %v413_v3 = vld [vmem:[#allocation2 + $0xb38] sm:$0xff] }
 0x6c9   :  { %5309 = vmatprep.mubr.bf16.mxu0 %v1173_v4  ;;  %8001 = vmatprep.mubr.bf16.mxu1 %v1173_v4  ;;  %v421_v4 = vld [vmem:[#allocation2 + $0xb78] sm:$0xff] }
 0x6ca   :  { %v1261_v6 = vpack.c.bf16 %v421_v4, %v413_v3 }
 0x6d0   :  { %5310 = vmatmul.mubr.bf16.gmra.mrb[44].mxu0 %v1172_v9  ;;  %8002 = vmatmul.mubr.bf16.gmra.mrb[44].mxu1 %v1172_v9  ;;  %v429_v9 = vld [vmem:[#allocation2 + $0xbb8] sm:$0xff] }
 0x6d1   :  { %5319 = vmatprep.mubr.bf16.mxu0 %v1181_v10  ;;  %8011 = vmatprep.mubr.bf16.mxu1 %v1181_v10  ;;  %v437_v10 = vld [vmem:[#allocation2 + $0xbf8] sm:$0xff] }
 0x6d2   :  { %v1269_v12 = vpack.c.bf16 %v437_v10, %v429_v9  ;;  %v533_v9 = vld [vmem:[#allocation2 + $0xef8] sm:$0xff] }
 0x6d8   :  { %5320 = vmatmul.mubr.bf16.gmra.mrb[48].mxu0 %v1180_v15  ;;  %8012 = vmatmul.mubr.bf16.gmra.mrb[48].mxu1 %v1180_v15  ;;  %v445_v15 = vld [vmem:[#allocation2 + $0xc38] sm:$0xff] }
 0x6d9   :  { %5329 = vmatprep.mubr.bf16.mxu0 %v1189_v16  ;;  %8021 = vmatprep.mubr.bf16.mxu1 %v1189_v16  ;;  %v453_v16 = vld [vmem:[#allocation2 + $0xc78] sm:$0xff] }
 0x6da   :  { %v1277_v18 = vpack.c.bf16 %v453_v16, %v445_v15 }
 0x6e0   :  { %5330 = vmatmul.mubr.bf16.gmra.mrb[52].mxu0 %v1188_v21  ;;  %8022 = vmatmul.mubr.bf16.gmra.mrb[52].mxu1 %v1188_v21  ;;  %v461_v21 = vld [vmem:[#allocation2 + $0xcb8] sm:$0xff] }
 0x6e1   :  { %5339 = vmatprep.mubr.bf16.mxu0 %v1197_v22  ;;  %8031 = vmatprep.mubr.bf16.mxu1 %v1197_v22  ;;  %v469_v22 = vld [vmem:[#allocation2 + $0xcf8] sm:$0xff] }
 0x6e2   :  { %v1285_v24 = vpack.c.bf16 %v469_v22, %v461_v21  ;;  %v1317_v21 = vpack.c.bf16 %v533_v9, %v525_v8 }
 0x6e8   :  { %5340 = vmatmul.mubr.bf16.gmra.mrb[56].mxu0 %v1196_v27  ;;  %8032 = vmatmul.mubr.bf16.gmra.mrb[56].mxu1 %v1196_v27  ;;  %v477_v27 = vld [vmem:[#allocation2 + $0xd38] sm:$0xff] }
 0x6e9   :  { %5349 = vmatprep.mubr.bf16.mxu0 %v1205_v28  ;;  %8041 = vmatprep.mubr.bf16.mxu1 %v1205_v28  ;;  %v485_v28 = vld [vmem:[#allocation2 + $0xd78] sm:$0xff] }
 0x6ea   :  { %v1293_v31 = vpack.c.bf16 %v485_v28, %v477_v27  ;;  %v524_v28 = vld [vmem:[#allocation2 + $0xeb0] sm:$0xff] }
 0x6f0   :  { %5350 = vmatmul.mubr.bf16.gmra.mrb[60].mxu0 %v1204_v33  ;;  %8042 = vmatmul.mubr.bf16.gmra.mrb[60].mxu1 %v1204_v33  ;;  %v476_v33 = vld [vmem:[#allocation2 + $0xd30] sm:$0xff] }
 0x6f1   :  { %5359 = vmatprep.mubr.bf16.mxu0 %v1213_v34  ;;  %8051 = vmatprep.mubr.bf16.mxu1 %v1213_v34  ;;  %v484_v34 = vld [vmem:[#allocation2 + $0xd70] sm:$0xff] }
 0x6f2   :  { %v1292_v37 = vpack.c.bf16 %v484_v34, %v476_v33 }
 0x6f8   :  { %5360 = vmatmul.mubr.bf16.gmra.mrb[64].mxu0 %v1212_v39  ;;  %8052 = vmatmul.mubr.bf16.gmra.mrb[64].mxu1 %v1212_v39  ;;  %v1858_v39 = vsub.s32 2, %v1849_v32 }
 0x6f9   :  { %5369 = vmatprep.mubr.bf16.mxu0 %v1221_v40  ;;  %8061 = vmatprep.mubr.bf16.mxu1 %v1221_v40  ;;  %v1846_v40 = vld [vmem:[#allocation7] sm:$0xf] }
 0x6fa   :  { %v11920_v44 = vrot.slane %v1846_v40, %v1850_v38  ;;  %v11926_v47 = vrot.slane %v1846_v40, %v1862_v42 }
 0x700   :  { %5370 = vmatmul.mubr.bf16.gmra.mrb[68].mxu0 %v1220_v45  ;;  %8062 = vmatmul.mubr.bf16.gmra.mrb[68].mxu1 %v1220_v45  ;;  %v11922_v45 = vrot.slane %v1846_v40, %v1858_v39 }
 0x701   :  { %5379 = vmatprep.mubr.bf16.mxu0 %v1229_v46  ;;  %8071 = vmatprep.mubr.bf16.mxu1 %v1229_v46  ;;  %v11924_v46 = vrot.slane %v1846_v40, %v1854_v41 }
 0x708   :  { %5380 = vmatmul.mubr.bf16.gmra.mrb[72].mxu0 %v1228_v51  ;;  %8072 = vmatmul.mubr.bf16.gmra.mrb[72].mxu1 %v1228_v51  ;;  %v517_v51 = vld [vmem:[#allocation2 + $0xe78] sm:$0xff] }
 0x709   :  { %5389 = vmatprep.mubr.bf16.mxu0 %v1237_v52  ;;  %8081 = vmatprep.mubr.bf16.mxu1 %v1237_v52 }
 0x710   :  { %5390 = vmatmul.mubr.bf16.gmra.mrb[76].mxu0 %v1236_v57  ;;  %8082 = vmatmul.mubr.bf16.gmra.mrb[76].mxu1 %v1236_v57 }
 0x711   :  { %5399 = vmatprep.mubr.bf16.mxu0 %v1245_v58  ;;  %8091 = vmatprep.mubr.bf16.mxu1 %v1245_v58  ;;  %v1300_v58 = vpack.c.bf16 %v500_v49, %v492_v48 }
 0x718   :  { %5400 = vmatmul.mubr.bf16.gmra.mrb[80].mxu0 %v1244_v63  ;;  %8092 = vmatmul.mubr.bf16.gmra.mrb[80].mxu1 %v1244_v63  ;;  %v1309_v63 = vpack.c.bf16 %v517_v51, %v509_v50 }
 0x719   :  { %5409 = vmatprep.mubr.bf16.mxu0 %v1253_v0  ;;  %8101 = vmatprep.mubr.bf16.mxu1 %v1253_v0 }
 0x720   :  { %5410 = vmatmul.mubr.bf16.gmra.mrb[84].mxu0 %v1252_v5  ;;  %8102 = vmatmul.mubr.bf16.gmra.mrb[84].mxu1 %v1252_v5 }
 0x721   :  { %5419 = vmatprep.mubr.bf16.mxu0 %v1261_v6  ;;  %8111 = vmatprep.mubr.bf16.mxu1 %v1261_v6  ;;  %v508_v6 = vld [vmem:[#allocation2 + $0xe30] sm:$0xff] }
 0x722   :  { %v1308_v16 = vpack.c.bf16 %v516_v7, %v508_v6 }
 0x728   :  { %5420 = vmatmul.mubr.bf16.gmra.mrb[88].mxu0 %v1260_v11  ;;  %8112 = vmatmul.mubr.bf16.gmra.mrb[88].mxu1 %v1260_v11 }
 0x729   :  { %5429 = vmatprep.mubr.bf16.mxu0 %v1269_v12  ;;  %8121 = vmatprep.mubr.bf16.mxu1 %v1269_v12 }
 0x730   :  { %5430 = vmatmul.mubr.bf16.gmra.mrb[92].mxu0 %v1268_v17  ;;  %8122 = vmatmul.mubr.bf16.gmra.mrb[92].mxu1 %v1268_v17 }
 0x731   :  { %5439 = vmatprep.mubr.bf16.mxu0 %v1277_v18  ;;  %8131 = vmatprep.mubr.bf16.mxu1 %v1277_v18 }
 0x738   :  { %5440 = vmatmul.mubr.bf16.gmra.mrb[96].mxu0 %v1276_v23  ;;  %8132 = vmatmul.mubr.bf16.gmra.mrb[96].mxu1 %v1276_v23 }
 0x739   :  { %5449 = vmatprep.mubr.bf16.mxu0 %v1285_v24  ;;  %8141 = vmatprep.mubr.bf16.mxu1 %v1285_v24 }
 0x740   :  { %5450 = vmatmul.mubr.bf16.gmra.mrb[100].mxu0 %v1284_v29  ;;  %8142 = vmatmul.mubr.bf16.gmra.mrb[100].mxu1 %v1284_v29  ;;  %v532_v29 = vld [vmem:[#allocation2 + $0xef0] sm:$0xff] }
 0x741   :  { %5459 = vmatprep.mubr.bf16.mxu0 %v1293_v31  ;;  %8151 = vmatprep.mubr.bf16.mxu1 %v1293_v31  ;;  %v549_v31 = vld [vmem:[#allocation2 + $0xf78] sm:$0xff]  ;;  %v1316_v38 = vpack.c.bf16 %v532_v29, %v524_v28 }
 0x748   :  { %5460 = vmatmul.mubr.bf16.gmra.mrb[104].mxu0 %v1292_v37  ;;  %8152 = vmatmul.mubr.bf16.gmra.mrb[104].mxu1 %v1292_v37 }
 0x749   :  { %5469 = vmatprep.mubr.bf16.mxu0 %v1301_v43  ;;  %8161 = vmatprep.mubr.bf16.mxu1 %v1301_v43  ;;  %v1325_v43 = vpack.c.bf16 %v549_v31, %v541_v30 }
 0x74b   :  { %v5201_v52 = vpop.f32.mrb[0].mxu0  ;;  %v7893_v53 = vpop.f32.mrb[0].mxu1 }
 0x74c   :  { %v9318_v54 = vadd.f32 %v5201_v52, %v11920_v44  ;;  %v9574_v55 = vadd.f32 %v7893_v53, %v11922_v45  ;;  %v5203_v56 = vpop.f32.mrb[1].mxu0  ;;  %v7895_v57 = vpop.f32.mrb[1].mxu1 }
 0x74d   :  { %v9319_v59 = vadd.f32 %v5203_v56, %v11924_v46  ;;  %v9575_v60 = vadd.f32 %v7895_v57, %v11926_v47  ;;  %v5205_v61 = vpop.f32.mrb[2].mxu0  ;;  %v7897_v62 = vpop.f32.mrb[2].mxu1  ;;  %v557_v56 = vld [vmem:[#allocation2 + $0xfb8] sm:$0xff] }
 0x74e   :  { %8532 = vst [vmem:[#allocation8] sm:$0xff] %v9318_v54  ;;  %8534 = vst [vmem:[#allocation8 + $0x10] sm:$0xff] %v9574_v55  ;;  %v9320_v0 = vadd.f32 %v5205_v61, %v11920_v44  ;;  %v9576_v1 = vadd.f32 %v7897_v62, %v11922_v45  ;;  %v5207_v2 = vpop.f32.mrb[3].mxu0  ;;  %v7899_v3 = vpop.f32.mrb[3].mxu1  ;;  %v540_v54 = vld [vmem:[#allocation2 + $0xf30] sm:$0xff]  ;;  %v565_v57 = vld [vmem:[#allocation2 + $0xff8] sm:$0xff] }
 0x74f   :  { %8533 = vst [vmem:[#allocation8 + $0x8] sm:$0xff] %v9319_v59  ;;  %8535 = vst [vmem:[#allocation8 + $0x18] sm:$0xff] %v9575_v60  ;;  %v9321_v4 = vadd.f32 %v5207_v2, %v11924_v46  ;;  %v9577_v5 = vadd.f32 %v7899_v3, %v11926_v47  ;;  %v548_v55 = vld [vmem:[#allocation2 + $0xf70] sm:$0xff] }
 0x750   :  { %8536 = vst [vmem:[#allocation8 + $0x20] sm:$0xff] %v9320_v0  ;;  %8538 = vst [vmem:[#allocation8 + $0x30] sm:$0xff] %v9576_v1  ;;  %5470 = vmatmul.mubr.bf16.gmra.mrb[108].mxu0 %v1300_v58  ;;  %8162 = vmatmul.mubr.bf16.gmra.mrb[108].mxu1 %v1300_v58  ;;  %v1324_v0 = vpack.c.bf16 %v548_v55, %v540_v54 }
 0x751   :  { %8537 = vst [vmem:[#allocation8 + $0x28] sm:$0xff] %v9321_v4  ;;  %8539 = vst [vmem:[#allocation8 + $0x38] sm:$0xff] %v9577_v5  ;;  %5479 = vmatprep.mubr.bf16.mxu0 %v1309_v63  ;;  %8171 = vmatprep.mubr.bf16.mxu1 %v1309_v63  ;;  %v1333_v5 = vpack.c.bf16 %v565_v57, %v557_v56 }
 0x753   :  { %v5211_v10 = vpop.f32.mrb[4].mxu0  ;;  %v7903_v11 = vpop.f32.mrb[4].mxu1 }
 0x754   :  { %v9322_v12 = vadd.f32 %v5211_v10, %v11920_v44  ;;  %v9578_v13 = vadd.f32 %v7903_v11, %v11922_v45  ;;  %v5213_v14 = vpop.f32.mrb[5].mxu0  ;;  %v7905_v15 = vpop.f32.mrb[5].mxu1 }
 0x755   :  { %v9323_v17 = vadd.f32 %v5213_v14, %v11924_v46  ;;  %v9579_v18 = vadd.f32 %v7905_v15, %v11926_v47  ;;  %v5215_v19 = vpop.f32.mrb[6].mxu0  ;;  %v7907_v20 = vpop.f32.mrb[6].mxu1  ;;  %v573_v14 = vld [vmem:[#allocation2 + $0x1038] sm:$0xff] }
 0x756   :  { %8540 = vst [vmem:[#allocation8 + $0x40] sm:$0xff] %v9322_v12  ;;  %8542 = vst [vmem:[#allocation8 + $0x50] sm:$0xff] %v9578_v13  ;;  %v9324_v22 = vadd.f32 %v5215_v19, %v11920_v44  ;;  %v9580_v23 = vadd.f32 %v7907_v20, %v11922_v45  ;;  %v5217_v24 = vpop.f32.mrb[7].mxu0  ;;  %v7909_v25 = vpop.f32.mrb[7].mxu1  ;;  %v556_v12 = vld [vmem:[#allocation2 + $0xfb0] sm:$0xff]  ;;  %v581_v15 = vld [vmem:[#allocation2 + $0x1078] sm:$0xff] }
 0x757   :  { %8541 = vst [vmem:[#allocation8 + $0x48] sm:$0xff] %v9323_v17  ;;  %8543 = vst [vmem:[#allocation8 + $0x58] sm:$0xff] %v9579_v18  ;;  %v9325_v26 = vadd.f32 %v5217_v24, %v11924_v46  ;;  %v9581_v27 = vadd.f32 %v7909_v25, %v11926_v47  ;;  %v564_v13 = vld [vmem:[#allocation2 + $0xff0] sm:$0xff] }
 0x758   :  { %8544 = vst [vmem:[#allocation8 + $0x60] sm:$0xff] %v9324_v22  ;;  %8546 = vst [vmem:[#allocation8 + $0x70] sm:$0xff] %v9580_v23  ;;  %5480 = vmatmul.mubr.bf16.gmra.mrb[112].mxu0 %v1308_v16  ;;  %8172 = vmatmul.mubr.bf16.gmra.mrb[112].mxu1 %v1308_v16  ;;  %v1332_v22 = vpack.c.bf16 %v564_v13, %v556_v12 }
 0x759   :  { %8545 = vst [vmem:[#allocation8 + $0x68] sm:$0xff] %v9325_v26  ;;  %8547 = vst [vmem:[#allocation8 + $0x78] sm:$0xff] %v9581_v27  ;;  %5489 = vmatprep.mubr.bf16.mxu0 %v1317_v21  ;;  %8181 = vmatprep.mubr.bf16.mxu1 %v1317_v21  ;;  %v1341_v27 = vpack.c.bf16 %v581_v15, %v573_v14 }
 0x75b   :  { %v5221_v32 = vpop.f32.mrb[8].mxu0  ;;  %v7913_v33 = vpop.f32.mrb[8].mxu1 }
 0x75c   :  { %v9326_v34 = vadd.f32 %v5221_v32, %v11920_v44  ;;  %v9582_v35 = vadd.f32 %v7913_v33, %v11922_v45  ;;  %v5223_v36 = vpop.f32.mrb[9].mxu0  ;;  %v7915_v37 = vpop.f32.mrb[9].mxu1 }
 0x75d   :  { %v9327_v39 = vadd.f32 %v5223_v36, %v11924_v46  ;;  %v9583_v40 = vadd.f32 %v7915_v37, %v11926_v47  ;;  %v5225_v41 = vpop.f32.mrb[10].mxu0  ;;  %v7917_v42 = vpop.f32.mrb[10].mxu1  ;;  %v589_v36 = vld [vmem:[#allocation2 + $0x10b8] sm:$0xff] }
 0x75e   :  { %8548 = vst [vmem:[#allocation8 + $0x80] sm:$0xff] %v9326_v34  ;;  %8550 = vst [vmem:[#allocation8 + $0x90] sm:$0xff] %v9582_v35  ;;  %v9328_v48 = vadd.f32 %v5225_v41, %v11920_v44  ;;  %v9584_v49 = vadd.f32 %v7917_v42, %v11922_v45  ;;  %v5227_v50 = vpop.f32.mrb[11].mxu0  ;;  %v7919_v51 = vpop.f32.mrb[11].mxu1  ;;  %v572_v34 = vld [vmem:[#allocation2 + $0x1030] sm:$0xff]  ;;  %v597_v37 = vld [vmem:[#allocation2 + $0x10f8] sm:$0xff] }
 0x75f   :  { %8549 = vst [vmem:[#allocation8 + $0x88] sm:$0xff] %v9327_v39  ;;  %8551 = vst [vmem:[#allocation8 + $0x98] sm:$0xff] %v9583_v40  ;;  %v9329_v52 = vadd.f32 %v5227_v50, %v11924_v46  ;;  %v9585_v53 = vadd.f32 %v7919_v51, %v11926_v47  ;;  %v580_v35 = vld [vmem:[#allocation2 + $0x1070] sm:$0xff] }
 0x760   :  { %8552 = vst [vmem:[#allocation8 + $0xa0] sm:$0xff] %v9328_v48  ;;  %8554 = vst [vmem:[#allocation8 + $0xb0] sm:$0xff] %v9584_v49  ;;  %5490 = vmatmul.mubr.bf16.gmra.mrb[116].mxu0 %v1316_v38  ;;  %8182 = vmatmul.mubr.bf16.gmra.mrb[116].mxu1 %v1316_v38  ;;  %v1340_v48 = vpack.c.bf16 %v580_v35, %v572_v34 }
 0x761   :  { %8553 = vst [vmem:[#allocation8 + $0xa8] sm:$0xff] %v9329_v52  ;;  %8555 = vst [vmem:[#allocation8 + $0xb8] sm:$0xff] %v9585_v53  ;;  %5499 = vmatprep.mubr.bf16.mxu0 %v1325_v43  ;;  %8191 = vmatprep.mubr.bf16.mxu1 %v1325_v43  ;;  %v1349_v53 = vpack.c.bf16 %v597_v37, %v589_v36 }
 0x763   :  { %v5231_v58 = vpop.f32.mrb[12].mxu0  ;;  %v7923_v59 = vpop.f32.mrb[12].mxu1 }
 0x764   :  { %v9330_v60 = vadd.f32 %v5231_v58, %v11920_v44  ;;  %v9586_v61 = vadd.f32 %v7923_v59, %v11922_v45  ;;  %v5233_v62 = vpop.f32.mrb[13].mxu0  ;;  %v7925_v63 = vpop.f32.mrb[13].mxu1 }
 0x765   :  { %v9331_v1 = vadd.f32 %v5233_v62, %v11924_v46  ;;  %v9587_v2 = vadd.f32 %v7925_v63, %v11926_v47  ;;  %v5235_v3 = vpop.f32.mrb[14].mxu0  ;;  %v7927_v4 = vpop.f32.mrb[14].mxu1  ;;  %v605_v62 = vld [vmem:[#allocation2 + $0x1138] sm:$0xff] }
 0x766   :  { %8556 = vst [vmem:[#allocation8 + $0xc0] sm:$0xff] %v9330_v60  ;;  %8558 = vst [vmem:[#allocation8 + $0xd0] sm:$0xff] %v9586_v61  ;;  %v9332_v6 = vadd.f32 %v5235_v3, %v11920_v44  ;;  %v9588_v7 = vadd.f32 %v7927_v4, %v11922_v45  ;;  %v5237_v8 = vpop.f32.mrb[15].mxu0  ;;  %v7929_v9 = vpop.f32.mrb[15].mxu1  ;;  %v588_v60 = vld [vmem:[#allocation2 + $0x10b0] sm:$0xff]  ;;  %v613_v63 = vld [vmem:[#allocation2 + $0x1178] sm:$0xff] }
 0x767   :  { %8557 = vst [vmem:[#allocation8 + $0xc8] sm:$0xff] %v9331_v1  ;;  %8559 = vst [vmem:[#allocation8 + $0xd8] sm:$0xff] %v9587_v2  ;;  %v9333_v10 = vadd.f32 %v5237_v8, %v11924_v46  ;;  %v9589_v11 = vadd.f32 %v7929_v9, %v11926_v47  ;;  %v596_v61 = vld [vmem:[#allocation2 + $0x10f0] sm:$0xff] }
 0x768   :  { %8560 = vst [vmem:[#allocation8 + $0xe0] sm:$0xff] %v9332_v6  ;;  %8562 = vst [vmem:[#allocation8 + $0xf0] sm:$0xff] %v9588_v7  ;;  %5500 = vmatmul.mubr.bf16.gmra.mrb[120].mxu0 %v1324_v0  ;;  %8192 = vmatmul.mubr.bf16.gmra.mrb[120].mxu1 %v1324_v0  ;;  %v1348_v6 = vpack.c.bf16 %v596_v61, %v588_v60 }
 0x769   :  { %8561 = vst [vmem:[#allocation8 + $0xe8] sm:$0xff] %v9333_v10  ;;  %8563 = vst [vmem:[#allocation8 + $0xf8] sm:$0xff] %v9589_v11  ;;  %5509 = vmatprep.mubr.bf16.mxu0 %v1333_v5  ;;  %8201 = vmatprep.mubr.bf16.mxu1 %v1333_v5  ;;  %v1357_v11 = vpack.c.bf16 %v613_v63, %v605_v62 }
 0x76b   :  { %v5241_v16 = vpop.f32.mrb[16].mxu0  ;;  %v7933_v17 = vpop.f32.mrb[16].mxu1 }
 0x76c   :  { %v9334_v18 = vadd.f32 %v5241_v16, %v11920_v44  ;;  %v9590_v19 = vadd.f32 %v7933_v17, %v11922_v45  ;;  %v5243_v20 = vpop.f32.mrb[17].mxu0  ;;  %v7935_v21 = vpop.f32.mrb[17].mxu1 }
 0x76d   :  { %v9335_v23 = vadd.f32 %v5243_v20, %v11924_v46  ;;  %v9591_v24 = vadd.f32 %v7935_v21, %v11926_v47  ;;  %v5245_v25 = vpop.f32.mrb[18].mxu0  ;;  %v7937_v26 = vpop.f32.mrb[18].mxu1  ;;  %v621_v20 = vld [vmem:[#allocation2 + $0x11b8] sm:$0xff] }
 0x76e   :  { %8564 = vst [vmem:[#allocation8 + $0x100] sm:$0xff] %v9334_v18  ;;  %8566 = vst [vmem:[#allocation8 + $0x110] sm:$0xff] %v9590_v19  ;;  %v9336_v28 = vadd.f32 %v5245_v25, %v11920_v44  ;;  %v9592_v29 = vadd.f32 %v7937_v26, %v11922_v45  ;;  %v5247_v30 = vpop.f32.mrb[19].mxu0  ;;  %v7939_v31 = vpop.f32.mrb[19].mxu1  ;;  %v604_v18 = vld [vmem:[#allocation2 + $0x1130] sm:$0xff]  ;;  %v629_v21 = vld [vmem:[#allocation2 + $0x11f8] sm:$0xff] }
 0x76f   :  { %8565 = vst [vmem:[#allocation8 + $0x108] sm:$0xff] %v9335_v23  ;;  %8567 = vst [vmem:[#allocation8 + $0x118] sm:$0xff] %v9591_v24  ;;  %v9337_v32 = vadd.f32 %v5247_v30, %v11924_v46  ;;  %v9593_v33 = vadd.f32 %v7939_v31, %v11926_v47  ;;  %v612_v19 = vld [vmem:[#allocation2 + $0x1170] sm:$0xff] }
 0x770   :  { %8568 = vst [vmem:[#allocation8 + $0x120] sm:$0xff] %v9336_v28  ;;  %8570 = vst [vmem:[#allocation8 + $0x130] sm:$0xff] %v9592_v29  ;;  %5510 = vmatmul.mubr.bf16.gmra.mrb[124].mxu0 %v1332_v22  ;;  %8202 = vmatmul.mubr.bf16.gmra.mrb[124].mxu1 %v1332_v22  ;;  %v1356_v28 = vpack.c.bf16 %v612_v19, %v604_v18 }
 0x771   :  { %8569 = vst [vmem:[#allocation8 + $0x128] sm:$0xff] %v9337_v32  ;;  %8571 = vst [vmem:[#allocation8 + $0x138] sm:$0xff] %v9593_v33  ;;  %5519 = vmatprep.mubr.bf16.mxu0 %v1341_v27  ;;  %8211 = vmatprep.mubr.bf16.mxu1 %v1341_v27  ;;  %v1365_v33 = vpack.c.bf16 %v629_v21, %v621_v20 }
 0x773   :  { %v5251_v38 = vpop.f32.mrb[20].mxu0  ;;  %v7943_v39 = vpop.f32.mrb[20].mxu1 }
 0x774   :  { %v9338_v40 = vadd.f32 %v5251_v38, %v11920_v44  ;;  %v9594_v41 = vadd.f32 %v7943_v39, %v11922_v45  ;;  %v5253_v42 = vpop.f32.mrb[21].mxu0  ;;  %v7945_v43 = vpop.f32.mrb[21].mxu1 }
 0x775   :  { %v9339_v49 = vadd.f32 %v5253_v42, %v11924_v46  ;;  %v9595_v50 = vadd.f32 %v7945_v43, %v11926_v47  ;;  %v5255_v51 = vpop.f32.mrb[22].mxu0  ;;  %v7947_v52 = vpop.f32.mrb[22].mxu1  ;;  %v637_v42 = vld [vmem:[#allocation2 + $0x1238] sm:$0xff] }
 0x776   :  { %8572 = vst [vmem:[#allocation8 + $0x140] sm:$0xff] %v9338_v40  ;;  %8574 = vst [vmem:[#allocation8 + $0x150] sm:$0xff] %v9594_v41  ;;  %v9340_v54 = vadd.f32 %v5255_v51, %v11920_v44  ;;  %v9596_v55 = vadd.f32 %v7947_v52, %v11922_v45  ;;  %v5257_v56 = vpop.f32.mrb[23].mxu0  ;;  %v7949_v57 = vpop.f32.mrb[23].mxu1  ;;  %v620_v40 = vld [vmem:[#allocation2 + $0x11b0] sm:$0xff]  ;;  %v645_v43 = vld [vmem:[#allocation2 + $0x1278] sm:$0xff] }
 0x777   :  { %8573 = vst [vmem:[#allocation8 + $0x148] sm:$0xff] %v9339_v49  ;;  %8575 = vst [vmem:[#allocation8 + $0x158] sm:$0xff] %v9595_v50  ;;  %v9341_v58 = vadd.f32 %v5257_v56, %v11924_v46  ;;  %v9597_v59 = vadd.f32 %v7949_v57, %v11926_v47  ;;  %v628_v41 = vld [vmem:[#allocation2 + $0x11f0] sm:$0xff] }
 0x778   :  { %8576 = vst [vmem:[#allocation8 + $0x160] sm:$0xff] %v9340_v54  ;;  %8578 = vst [vmem:[#allocation8 + $0x170] sm:$0xff] %v9596_v55  ;;  %5520 = vmatmul.mubr.bf16.gmra.mrb[128].mxu0 %v1340_v48  ;;  %8212 = vmatmul.mubr.bf16.gmra.mrb[128].mxu1 %v1340_v48  ;;  %v1364_v54 = vpack.c.bf16 %v628_v41, %v620_v40 }
 0x779   :  { %8577 = vst [vmem:[#allocation8 + $0x168] sm:$0xff] %v9341_v58  ;;  %8579 = vst [vmem:[#allocation8 + $0x178] sm:$0xff] %v9597_v59  ;;  %5529 = vmatprep.mubr.bf16.mxu0 %v1349_v53  ;;  %8221 = vmatprep.mubr.bf16.mxu1 %v1349_v53  ;;  %v1373_v59 = vpack.c.bf16 %v645_v43, %v637_v42 }
 0x77b   :  { %v5261_v0 = vpop.f32.mrb[24].mxu0  ;;  %v7953_v1 = vpop.f32.mrb[24].mxu1 }
 0x77c   :  { %v9342_v2 = vadd.f32 %v5261_v0, %v11920_v44  ;;  %v9598_v3 = vadd.f32 %v7953_v1, %v11922_v45  ;;  %v5263_v4 = vpop.f32.mrb[25].mxu0  ;;  %v7955_v5 = vpop.f32.mrb[25].mxu1 }
 0x77d   :  { %v9343_v7 = vadd.f32 %v5263_v4, %v11924_v46  ;;  %v9599_v8 = vadd.f32 %v7955_v5, %v11926_v47  ;;  %v5265_v9 = vpop.f32.mrb[26].mxu0  ;;  %v7957_v10 = vpop.f32.mrb[26].mxu1  ;;  %v653_v4 = vld [vmem:[#allocation2 + $0x12b8] sm:$0xff] }
 0x77e   :  { %8580 = vst [vmem:[#allocation8 + $0x180] sm:$0xff] %v9342_v2  ;;  %8582 = vst [vmem:[#allocation8 + $0x190] sm:$0xff] %v9598_v3  ;;  %v9344_v12 = vadd.f32 %v5265_v9, %v11920_v44  ;;  %v9600_v13 = vadd.f32 %v7957_v10, %v11922_v45  ;;  %v5267_v14 = vpop.f32.mrb[27].mxu0  ;;  %v7959_v15 = vpop.f32.mrb[27].mxu1  ;;  %v636_v2 = vld [vmem:[#allocation2 + $0x1230] sm:$0xff]  ;;  %v661_v5 = vld [vmem:[#allocation2 + $0x12f8] sm:$0xff] }
 0x77f   :  { %8581 = vst [vmem:[#allocation8 + $0x188] sm:$0xff] %v9343_v7  ;;  %8583 = vst [vmem:[#allocation8 + $0x198] sm:$0xff] %v9599_v8  ;;  %v9345_v16 = vadd.f32 %v5267_v14, %v11924_v46  ;;  %v9601_v17 = vadd.f32 %v7959_v15, %v11926_v47  ;;  %v644_v3 = vld [vmem:[#allocation2 + $0x1270] sm:$0xff] }
 0x780   :  { %8584 = vst [vmem:[#allocation8 + $0x1a0] sm:$0xff] %v9344_v12  ;;  %8586 = vst [vmem:[#allocation8 + $0x1b0] sm:$0xff] %v9600_v13  ;;  %5530 = vmatmul.mubr.bf16.gmra.mrb[132].mxu0 %v1348_v6  ;;  %8222 = vmatmul.mubr.bf16.gmra.mrb[132].mxu1 %v1348_v6  ;;  %v1372_v12 = vpack.c.bf16 %v644_v3, %v636_v2 }
 0x781   :  { %8585 = vst [vmem:[#allocation8 + $0x1a8] sm:$0xff] %v9345_v16  ;;  %8587 = vst [vmem:[#allocation8 + $0x1b8] sm:$0xff] %v9601_v17  ;;  %5539 = vmatprep.mubr.bf16.mxu0 %v1357_v11  ;;  %8231 = vmatprep.mubr.bf16.mxu1 %v1357_v11  ;;  %v1381_v17 = vpack.c.bf16 %v661_v5, %v653_v4 }
 0x783   :  { %v5271_v22 = vpop.f32.mrb[28].mxu0  ;;  %v7963_v23 = vpop.f32.mrb[28].mxu1 }
 0x784   :  { %v9346_v24 = vadd.f32 %v5271_v22, %v11920_v44  ;;  %v9602_v25 = vadd.f32 %v7963_v23, %v11922_v45  ;;  %v5273_v26 = vpop.f32.mrb[29].mxu0  ;;  %v7965_v27 = vpop.f32.mrb[29].mxu1 }
 0x785   :  { %v9347_v29 = vadd.f32 %v5273_v26, %v11924_v46  ;;  %v9603_v30 = vadd.f32 %v7965_v27, %v11926_v47  ;;  %v5275_v31 = vpop.f32.mrb[30].mxu0  ;;  %v7967_v32 = vpop.f32.mrb[30].mxu1  ;;  %v669_v26 = vld [vmem:[#allocation2 + $0x1338] sm:$0xff] }
 0x786   :  { %8588 = vst [vmem:[#allocation8 + $0x1c0] sm:$0xff] %v9346_v24  ;;  %8590 = vst [vmem:[#allocation8 + $0x1d0] sm:$0xff] %v9602_v25  ;;  %v9348_v34 = vadd.f32 %v5275_v31, %v11920_v44  ;;  %v9604_v35 = vadd.f32 %v7967_v32, %v11922_v45  ;;  %v5277_v36 = vpop.f32.mrb[31].mxu0  ;;  %v7969_v37 = vpop.f32.mrb[31].mxu1  ;;  %v652_v24 = vld [vmem:[#allocation2 + $0x12b0] sm:$0xff]  ;;  %v677_v27 = vld [vmem:[#allocation2 + $0x1378] sm:$0xff] }
 0x787   :  { %8589 = vst [vmem:[#allocation8 + $0x1c8] sm:$0xff] %v9347_v29  ;;  %8591 = vst [vmem:[#allocation8 + $0x1d8] sm:$0xff] %v9603_v30  ;;  %v9349_v38 = vadd.f32 %v5277_v36, %v11924_v46  ;;  %v9605_v39 = vadd.f32 %v7969_v37, %v11926_v47  ;;  %v660_v25 = vld [vmem:[#allocation2 + $0x12f0] sm:$0xff] }
 0x788   :  { %8592 = vst [vmem:[#allocation8 + $0x1e0] sm:$0xff] %v9348_v34  ;;  %8594 = vst [vmem:[#allocation8 + $0x1f0] sm:$0xff] %v9604_v35  ;;  %5540 = vmatmul.mubr.bf16.gmra.mrb[136].mxu0 %v1356_v28  ;;  %8232 = vmatmul.mubr.bf16.gmra.mrb[136].mxu1 %v1356_v28  ;;  %v1380_v34 = vpack.c.bf16 %v660_v25, %v652_v24 }
 0x789   :  { %8593 = vst [vmem:[#allocation8 + $0x1e8] sm:$0xff] %v9349_v38  ;;  %8595 = vst [vmem:[#allocation8 + $0x1f8] sm:$0xff] %v9605_v39  ;;  %5549 = vmatprep.mubr.bf16.mxu0 %v1365_v33  ;;  %8241 = vmatprep.mubr.bf16.mxu1 %v1365_v33  ;;  %v1389_v39 = vpack.c.bf16 %v677_v27, %v669_v26 }
 0x78b   :  { %v5281_v48 = vpop.f32.mrb[32].mxu0  ;;  %v7973_v49 = vpop.f32.mrb[32].mxu1 }
 0x78c   :  { %v9350_v50 = vadd.f32 %v5281_v48, %v11920_v44  ;;  %v9606_v51 = vadd.f32 %v7973_v49, %v11922_v45  ;;  %v5283_v52 = vpop.f32.mrb[33].mxu0  ;;  %v7975_v53 = vpop.f32.mrb[33].mxu1 }
 0x78d   :  { %v9351_v55 = vadd.f32 %v5283_v52, %v11924_v46  ;;  %v9607_v56 = vadd.f32 %v7975_v53, %v11926_v47  ;;  %v5285_v57 = vpop.f32.mrb[34].mxu0  ;;  %v7977_v58 = vpop.f32.mrb[34].mxu1  ;;  %v685_v52 = vld [vmem:[#allocation2 + $0x13b8] sm:$0xff] }
 0x78e   :  { %8596 = vst [vmem:[#allocation8 + $0x200] sm:$0xff] %v9350_v50  ;;  %8598 = vst [vmem:[#allocation8 + $0x210] sm:$0xff] %v9606_v51  ;;  %v9352_v60 = vadd.f32 %v5285_v57, %v11920_v44  ;;  %v9608_v61 = vadd.f32 %v7977_v58, %v11922_v45  ;;  %v5287_v62 = vpop.f32.mrb[35].mxu0  ;;  %v7979_v63 = vpop.f32.mrb[35].mxu1  ;;  %v668_v50 = vld [vmem:[#allocation2 + $0x1330] sm:$0xff]  ;;  %v693_v53 = vld [vmem:[#allocation2 + $0x13f8] sm:$0xff] }
 0x78f   :  { %8597 = vst [vmem:[#allocation8 + $0x208] sm:$0xff] %v9351_v55  ;;  %8599 = vst [vmem:[#allocation8 + $0x218] sm:$0xff] %v9607_v56  ;;  %v9353_v0 = vadd.f32 %v5287_v62, %v11924_v46  ;;  %v9609_v1 = vadd.f32 %v7979_v63, %v11926_v47  ;;  %v676_v51 = vld [vmem:[#allocation2 + $0x1370] sm:$0xff] }
 0x790   :  { %8600 = vst [vmem:[#allocation8 + $0x220] sm:$0xff] %v9352_v60  ;;  %8602 = vst [vmem:[#allocation8 + $0x230] sm:$0xff] %v9608_v61  ;;  %5550 = vmatmul.mubr.bf16.gmra.mrb[140].mxu0 %v1364_v54  ;;  %8242 = vmatmul.mubr.bf16.gmra.mrb[140].mxu1 %v1364_v54  ;;  %v1388_v60 = vpack.c.bf16 %v676_v51, %v668_v50 }
 0x791   :  { %8601 = vst [vmem:[#allocation8 + $0x228] sm:$0xff] %v9353_v0  ;;  %8603 = vst [vmem:[#allocation8 + $0x238] sm:$0xff] %v9609_v1  ;;  %5559 = vmatprep.mubr.bf16.mxu0 %v1373_v59  ;;  %8251 = vmatprep.mubr.bf16.mxu1 %v1373_v59  ;;  %v1397_v1 = vpack.c.bf16 %v693_v53, %v685_v52 }
 0x793   :  { %v5291_v6 = vpop.f32.mrb[36].mxu0  ;;  %v7983_v7 = vpop.f32.mrb[36].mxu1 }
 0x794   :  { %v9354_v8 = vadd.f32 %v5291_v6, %v11920_v44  ;;  %v9610_v9 = vadd.f32 %v7983_v7, %v11922_v45  ;;  %v5293_v10 = vpop.f32.mrb[37].mxu0  ;;  %v7985_v11 = vpop.f32.mrb[37].mxu1 }
 0x795   :  { %v9355_v13 = vadd.f32 %v5293_v10, %v11924_v46  ;;  %v9611_v14 = vadd.f32 %v7985_v11, %v11926_v47  ;;  %v5295_v15 = vpop.f32.mrb[38].mxu0  ;;  %v7987_v16 = vpop.f32.mrb[38].mxu1  ;;  %v701_v10 = vld [vmem:[#allocation2 + $0x1438] sm:$0xff] }
 0x796   :  { %8604 = vst [vmem:[#allocation8 + $0x240] sm:$0xff] %v9354_v8  ;;  %8606 = vst [vmem:[#allocation8 + $0x250] sm:$0xff] %v9610_v9  ;;  %v9356_v18 = vadd.f32 %v5295_v15, %v11920_v44  ;;  %v9612_v19 = vadd.f32 %v7987_v16, %v11922_v45  ;;  %v5297_v20 = vpop.f32.mrb[39].mxu0  ;;  %v7989_v21 = vpop.f32.mrb[39].mxu1  ;;  %v684_v8 = vld [vmem:[#allocation2 + $0x13b0] sm:$0xff]  ;;  %v709_v11 = vld [vmem:[#allocation2 + $0x1478] sm:$0xff] }
 0x797   :  { %8605 = vst [vmem:[#allocation8 + $0x248] sm:$0xff] %v9355_v13  ;;  %8607 = vst [vmem:[#allocation8 + $0x258] sm:$0xff] %v9611_v14  ;;  %v9357_v22 = vadd.f32 %v5297_v20, %v11924_v46  ;;  %v9613_v23 = vadd.f32 %v7989_v21, %v11926_v47  ;;  %v692_v9 = vld [vmem:[#allocation2 + $0x13f0] sm:$0xff] }
 0x798   :  { %8608 = vst [vmem:[#allocation8 + $0x260] sm:$0xff] %v9356_v18  ;;  %8610 = vst [vmem:[#allocation8 + $0x270] sm:$0xff] %v9612_v19  ;;  %5560 = vmatmul.mubr.bf16.gmra.mrb[144].mxu0 %v1372_v12  ;;  %8252 = vmatmul.mubr.bf16.gmra.mrb[144].mxu1 %v1372_v12  ;;  %v1396_v18 = vpack.c.bf16 %v692_v9, %v684_v8 }
 0x799   :  { %8609 = vst [vmem:[#allocation8 + $0x268] sm:$0xff] %v9357_v22  ;;  %8611 = vst [vmem:[#allocation8 + $0x278] sm:$0xff] %v9613_v23  ;;  %5569 = vmatprep.mubr.bf16.mxu0 %v1381_v17  ;;  %8261 = vmatprep.mubr.bf16.mxu1 %v1381_v17  ;;  %v1405_v23 = vpack.c.bf16 %v709_v11, %v701_v10 }
 0x79b   :  { %v5301_v28 = vpop.f32.mrb[40].mxu0  ;;  %v7993_v29 = vpop.f32.mrb[40].mxu1 }
 0x79c   :  { %v9358_v30 = vadd.f32 %v5301_v28, %v11920_v44  ;;  %v9614_v31 = vadd.f32 %v7993_v29, %v11922_v45  ;;  %v5303_v32 = vpop.f32.mrb[41].mxu0  ;;  %v7995_v33 = vpop.f32.mrb[41].mxu1 }
 0x79d   :  { %v9359_v35 = vadd.f32 %v5303_v32, %v11924_v46  ;;  %v9615_v36 = vadd.f32 %v7995_v33, %v11926_v47  ;;  %v5305_v37 = vpop.f32.mrb[42].mxu0  ;;  %v7997_v38 = vpop.f32.mrb[42].mxu1  ;;  %v717_v32 = vld [vmem:[#allocation2 + $0x14b8] sm:$0xff] }
 0x79e   :  { %8612 = vst [vmem:[#allocation8 + $0x280] sm:$0xff] %v9358_v30  ;;  %8614 = vst [vmem:[#allocation8 + $0x290] sm:$0xff] %v9614_v31  ;;  %v9360_v40 = vadd.f32 %v5305_v37, %v11920_v44  ;;  %v9616_v41 = vadd.f32 %v7997_v38, %v11922_v45  ;;  %v5307_v42 = vpop.f32.mrb[43].mxu0  ;;  %v7999_v43 = vpop.f32.mrb[43].mxu1  ;;  %v700_v30 = vld [vmem:[#allocation2 + $0x1430] sm:$0xff]  ;;  %v725_v33 = vld [vmem:[#allocation2 + $0x14f8] sm:$0xff] }
 0x79f   :  { %8613 = vst [vmem:[#allocation8 + $0x288] sm:$0xff] %v9359_v35  ;;  %8615 = vst [vmem:[#allocation8 + $0x298] sm:$0xff] %v9615_v36  ;;  %v9361_v48 = vadd.f32 %v5307_v42, %v11924_v46  ;;  %v9617_v49 = vadd.f32 %v7999_v43, %v11926_v47  ;;  %v708_v31 = vld [vmem:[#allocation2 + $0x1470] sm:$0xff] }
 0x7a0   :  { %8616 = vst [vmem:[#allocation8 + $0x2a0] sm:$0xff] %v9360_v40  ;;  %8618 = vst [vmem:[#allocation8 + $0x2b0] sm:$0xff] %v9616_v41  ;;  %5570 = vmatmul.mubr.bf16.gmra.mrb[148].mxu0 %v1380_v34  ;;  %8262 = vmatmul.mubr.bf16.gmra.mrb[148].mxu1 %v1380_v34  ;;  %v1404_v40 = vpack.c.bf16 %v708_v31, %v700_v30 }
 0x7a1   :  { %8617 = vst [vmem:[#allocation8 + $0x2a8] sm:$0xff] %v9361_v48  ;;  %8619 = vst [vmem:[#allocation8 + $0x2b8] sm:$0xff] %v9617_v49  ;;  %5579 = vmatprep.mubr.bf16.mxu0 %v1389_v39  ;;  %8271 = vmatprep.mubr.bf16.mxu1 %v1389_v39  ;;  %v1413_v49 = vpack.c.bf16 %v725_v33, %v717_v32 }
 0x7a3   :  { %v5311_v54 = vpop.f32.mrb[44].mxu0  ;;  %v8003_v55 = vpop.f32.mrb[44].mxu1 }
 0x7a4   :  { %v9362_v56 = vadd.f32 %v5311_v54, %v11920_v44  ;;  %v9618_v57 = vadd.f32 %v8003_v55, %v11922_v45  ;;  %v5313_v58 = vpop.f32.mrb[45].mxu0  ;;  %v8005_v59 = vpop.f32.mrb[45].mxu1 }
 0x7a5   :  { %v9363_v61 = vadd.f32 %v5313_v58, %v11924_v46  ;;  %v9619_v62 = vadd.f32 %v8005_v59, %v11926_v47  ;;  %v5315_v63 = vpop.f32.mrb[46].mxu0  ;;  %v8007_v0 = vpop.f32.mrb[46].mxu1  ;;  %v733_v58 = vld [vmem:[#allocation2 + $0x1538] sm:$0xff] }
 0x7a6   :  { %8620 = vst [vmem:[#allocation8 + $0x2c0] sm:$0xff] %v9362_v56  ;;  %8622 = vst [vmem:[#allocation8 + $0x2d0] sm:$0xff] %v9618_v57  ;;  %v9364_v2 = vadd.f32 %v5315_v63, %v11920_v44  ;;  %v9620_v3 = vadd.f32 %v8007_v0, %v11922_v45  ;;  %v5317_v4 = vpop.f32.mrb[47].mxu0  ;;  %v8009_v5 = vpop.f32.mrb[47].mxu1  ;;  %v716_v56 = vld [vmem:[#allocation2 + $0x14b0] sm:$0xff]  ;;  %v741_v59 = vld [vmem:[#allocation2 + $0x1578] sm:$0xff] }
 0x7a7   :  { %8621 = vst [vmem:[#allocation8 + $0x2c8] sm:$0xff] %v9363_v61  ;;  %8623 = vst [vmem:[#allocation8 + $0x2d8] sm:$0xff] %v9619_v62  ;;  %v9365_v6 = vadd.f32 %v5317_v4, %v11924_v46  ;;  %v9621_v7 = vadd.f32 %v8009_v5, %v11926_v47  ;;  %v724_v57 = vld [vmem:[#allocation2 + $0x14f0] sm:$0xff] }
 0x7a8   :  { %8624 = vst [vmem:[#allocation8 + $0x2e0] sm:$0xff] %v9364_v2  ;;  %8626 = vst [vmem:[#allocation8 + $0x2f0] sm:$0xff] %v9620_v3  ;;  %5580 = vmatmul.mubr.bf16.gmra.mrb[152].mxu0 %v1388_v60  ;;  %8272 = vmatmul.mubr.bf16.gmra.mrb[152].mxu1 %v1388_v60  ;;  %v1412_v2 = vpack.c.bf16 %v724_v57, %v716_v56 }
 0x7a9   :  { %8625 = vst [vmem:[#allocation8 + $0x2e8] sm:$0xff] %v9365_v6  ;;  %8627 = vst [vmem:[#allocation8 + $0x2f8] sm:$0xff] %v9621_v7  ;;  %5589 = vmatprep.mubr.bf16.mxu0 %v1397_v1  ;;  %8281 = vmatprep.mubr.bf16.mxu1 %v1397_v1  ;;  %v1421_v7 = vpack.c.bf16 %v741_v59, %v733_v58 }
 0x7ab   :  { %v5321_v12 = vpop.f32.mrb[48].mxu0  ;;  %v8013_v13 = vpop.f32.mrb[48].mxu1 }
 0x7ac   :  { %v9366_v14 = vadd.f32 %v5321_v12, %v11920_v44  ;;  %v9622_v15 = vadd.f32 %v8013_v13, %v11922_v45  ;;  %v5323_v16 = vpop.f32.mrb[49].mxu0  ;;  %v8015_v17 = vpop.f32.mrb[49].mxu1 }
 0x7ad   :  { %v9367_v19 = vadd.f32 %v5323_v16, %v11924_v46  ;;  %v9623_v20 = vadd.f32 %v8015_v17, %v11926_v47  ;;  %v5325_v21 = vpop.f32.mrb[50].mxu0  ;;  %v8017_v22 = vpop.f32.mrb[50].mxu1  ;;  %v749_v16 = vld [vmem:[#allocation2 + $0x15b8] sm:$0xff] }
 0x7ae   :  { %8628 = vst [vmem:[#allocation8 + $0x300] sm:$0xff] %v9366_v14  ;;  %8630 = vst [vmem:[#allocation8 + $0x310] sm:$0xff] %v9622_v15  ;;  %v9368_v24 = vadd.f32 %v5325_v21, %v11920_v44  ;;  %v9624_v25 = vadd.f32 %v8017_v22, %v11922_v45  ;;  %v5327_v26 = vpop.f32.mrb[51].mxu0  ;;  %v8019_v27 = vpop.f32.mrb[51].mxu1  ;;  %v732_v14 = vld [vmem:[#allocation2 + $0x1530] sm:$0xff]  ;;  %v757_v17 = vld [vmem:[#allocation2 + $0x15f8] sm:$0xff] }
 0x7af   :  { %8629 = vst [vmem:[#allocation8 + $0x308] sm:$0xff] %v9367_v19  ;;  %8631 = vst [vmem:[#allocation8 + $0x318] sm:$0xff] %v9623_v20  ;;  %v9369_v28 = vadd.f32 %v5327_v26, %v11924_v46  ;;  %v9625_v29 = vadd.f32 %v8019_v27, %v11926_v47  ;;  %v740_v15 = vld [vmem:[#allocation2 + $0x1570] sm:$0xff] }
 0x7b0   :  { %8632 = vst [vmem:[#allocation8 + $0x320] sm:$0xff] %v9368_v24  ;;  %8634 = vst [vmem:[#allocation8 + $0x330] sm:$0xff] %v9624_v25  ;;  %5590 = vmatmul.mubr.bf16.gmra.mrb[156].mxu0 %v1396_v18  ;;  %8282 = vmatmul.mubr.bf16.gmra.mrb[156].mxu1 %v1396_v18  ;;  %v1420_v24 = vpack.c.bf16 %v740_v15, %v732_v14 }
 0x7b1   :  { %8633 = vst [vmem:[#allocation8 + $0x328] sm:$0xff] %v9369_v28  ;;  %8635 = vst [vmem:[#allocation8 + $0x338] sm:$0xff] %v9625_v29  ;;  %5599 = vmatprep.mubr.bf16.mxu0 %v1405_v23  ;;  %8291 = vmatprep.mubr.bf16.mxu1 %v1405_v23  ;;  %v1429_v29 = vpack.c.bf16 %v757_v17, %v749_v16 }
 0x7b3   :  { %v5331_v34 = vpop.f32.mrb[52].mxu0  ;;  %v8023_v35 = vpop.f32.mrb[52].mxu1 }
 0x7b4   :  { %v9370_v36 = vadd.f32 %v5331_v34, %v11920_v44  ;;  %v9626_v37 = vadd.f32 %v8023_v35, %v11922_v45  ;;  %v5333_v38 = vpop.f32.mrb[53].mxu0  ;;  %v8025_v39 = vpop.f32.mrb[53].mxu1 }
 0x7b5   :  { %v9371_v41 = vadd.f32 %v5333_v38, %v11924_v46  ;;  %v9627_v42 = vadd.f32 %v8025_v39, %v11926_v47  ;;  %v5335_v43 = vpop.f32.mrb[54].mxu0  ;;  %v8027_v48 = vpop.f32.mrb[54].mxu1  ;;  %v765_v38 = vld [vmem:[#allocation2 + $0x1638] sm:$0xff] }
 0x7b6   :  { %8636 = vst [vmem:[#allocation8 + $0x340] sm:$0xff] %v9370_v36  ;;  %8638 = vst [vmem:[#allocation8 + $0x350] sm:$0xff] %v9626_v37  ;;  %v9372_v50 = vadd.f32 %v5335_v43, %v11920_v44  ;;  %v9628_v51 = vadd.f32 %v8027_v48, %v11922_v45  ;;  %v5337_v52 = vpop.f32.mrb[55].mxu0  ;;  %v8029_v53 = vpop.f32.mrb[55].mxu1  ;;  %v748_v36 = vld [vmem:[#allocation2 + $0x15b0] sm:$0xff]  ;;  %v773_v39 = vld [vmem:[#allocation2 + $0x1678] sm:$0xff] }
 0x7b7   :  { %8637 = vst [vmem:[#allocation8 + $0x348] sm:$0xff] %v9371_v41  ;;  %8639 = vst [vmem:[#allocation8 + $0x358] sm:$0xff] %v9627_v42  ;;  %v9373_v54 = vadd.f32 %v5337_v52, %v11924_v46  ;;  %v9629_v55 = vadd.f32 %v8029_v53, %v11926_v47  ;;  %v756_v37 = vld [vmem:[#allocation2 + $0x15f0] sm:$0xff] }
 0x7b8   :  { %8640 = vst [vmem:[#allocation8 + $0x360] sm:$0xff] %v9372_v50  ;;  %8642 = vst [vmem:[#allocation8 + $0x370] sm:$0xff] %v9628_v51  ;;  %5600 = vmatmul.mubr.bf16.gmra.mrb[160].mxu0 %v1404_v40  ;;  %8292 = vmatmul.mubr.bf16.gmra.mrb[160].mxu1 %v1404_v40  ;;  %v1428_v50 = vpack.c.bf16 %v756_v37, %v748_v36 }
 0x7b9   :  { %8641 = vst [vmem:[#allocation8 + $0x368] sm:$0xff] %v9373_v54  ;;  %8643 = vst [vmem:[#allocation8 + $0x378] sm:$0xff] %v9629_v55  ;;  %5609 = vmatprep.mubr.bf16.mxu0 %v1413_v49  ;;  %8301 = vmatprep.mubr.bf16.mxu1 %v1413_v49  ;;  %v1437_v55 = vpack.c.bf16 %v773_v39, %v765_v38 }
 0x7bb   :  { %v5341_v60 = vpop.f32.mrb[56].mxu0  ;;  %v8033_v61 = vpop.f32.mrb[56].mxu1 }
 0x7bc   :  { %v9374_v62 = vadd.f32 %v5341_v60, %v11920_v44  ;;  %v9630_v63 = vadd.f32 %v8033_v61, %v11922_v45  ;;  %v5343_v0 = vpop.f32.mrb[57].mxu0  ;;  %v8035_v1 = vpop.f32.mrb[57].mxu1 }
 0x7bd   :  { %v9375_v3 = vadd.f32 %v5343_v0, %v11924_v46  ;;  %v9631_v4 = vadd.f32 %v8035_v1, %v11926_v47  ;;  %v5345_v5 = vpop.f32.mrb[58].mxu0  ;;  %v8037_v6 = vpop.f32.mrb[58].mxu1  ;;  %v781_v0 = vld [vmem:[#allocation2 + $0x16b8] sm:$0xff] }
 0x7be   :  { %8644 = vst [vmem:[#allocation8 + $0x380] sm:$0xff] %v9374_v62  ;;  %8646 = vst [vmem:[#allocation8 + $0x390] sm:$0xff] %v9630_v63  ;;  %v9376_v8 = vadd.f32 %v5345_v5, %v11920_v44  ;;  %v9632_v9 = vadd.f32 %v8037_v6, %v11922_v45  ;;  %v5347_v10 = vpop.f32.mrb[59].mxu0  ;;  %v8039_v11 = vpop.f32.mrb[59].mxu1  ;;  %v764_v62 = vld [vmem:[#allocation2 + $0x1630] sm:$0xff]  ;;  %v789_v1 = vld [vmem:[#allocation2 + $0x16f8] sm:$0xff] }
 0x7bf   :  { %8645 = vst [vmem:[#allocation8 + $0x388] sm:$0xff] %v9375_v3  ;;  %8647 = vst [vmem:[#allocation8 + $0x398] sm:$0xff] %v9631_v4  ;;  %v9377_v12 = vadd.f32 %v5347_v10, %v11924_v46  ;;  %v9633_v13 = vadd.f32 %v8039_v11, %v11926_v47  ;;  %v772_v63 = vld [vmem:[#allocation2 + $0x1670] sm:$0xff] }
 0x7c0   :  { %8648 = vst [vmem:[#allocation8 + $0x3a0] sm:$0xff] %v9376_v8  ;;  %8650 = vst [vmem:[#allocation8 + $0x3b0] sm:$0xff] %v9632_v9  ;;  %5610 = vmatmul.mubr.bf16.gmra.mrb[164].mxu0 %v1412_v2  ;;  %8302 = vmatmul.mubr.bf16.gmra.mrb[164].mxu1 %v1412_v2  ;;  %v1436_v8 = vpack.c.bf16 %v772_v63, %v764_v62 }
 0x7c1   :  { %8649 = vst [vmem:[#allocation8 + $0x3a8] sm:$0xff] %v9377_v12  ;;  %8651 = vst [vmem:[#allocation8 + $0x3b8] sm:$0xff] %v9633_v13  ;;  %5619 = vmatprep.mubr.bf16.mxu0 %v1421_v7  ;;  %8311 = vmatprep.mubr.bf16.mxu1 %v1421_v7  ;;  %v1445_v13 = vpack.c.bf16 %v789_v1, %v781_v0 }
 0x7c3   :  { %v5351_v18 = vpop.f32.mrb[60].mxu0  ;;  %v8043_v19 = vpop.f32.mrb[60].mxu1 }
 0x7c4   :  { %v9378_v20 = vadd.f32 %v5351_v18, %v11920_v44  ;;  %v9634_v21 = vadd.f32 %v8043_v19, %v11922_v45  ;;  %v5353_v22 = vpop.f32.mrb[61].mxu0  ;;  %v8045_v23 = vpop.f32.mrb[61].mxu1 }
 0x7c5   :  { %v9379_v25 = vadd.f32 %v5353_v22, %v11924_v46  ;;  %v9635_v26 = vadd.f32 %v8045_v23, %v11926_v47  ;;  %v5355_v27 = vpop.f32.mrb[62].mxu0  ;;  %v8047_v28 = vpop.f32.mrb[62].mxu1  ;;  %v797_v22 = vld [vmem:[#allocation2 + $0x1738] sm:$0xff] }
 0x7c6   :  { %8652 = vst [vmem:[#allocation8 + $0x3c0] sm:$0xff] %v9378_v20  ;;  %8654 = vst [vmem:[#allocation8 + $0x3d0] sm:$0xff] %v9634_v21  ;;  %v9380_v30 = vadd.f32 %v5355_v27, %v11920_v44  ;;  %v9636_v31 = vadd.f32 %v8047_v28, %v11922_v45  ;;  %v5357_v32 = vpop.f32.mrb[63].mxu0  ;;  %v8049_v33 = vpop.f32.mrb[63].mxu1  ;;  %v780_v20 = vld [vmem:[#allocation2 + $0x16b0] sm:$0xff]  ;;  %v805_v23 = vld [vmem:[#allocation2 + $0x1778] sm:$0xff] }
 0x7c7   :  { %8653 = vst [vmem:[#allocation8 + $0x3c8] sm:$0xff] %v9379_v25  ;;  %8655 = vst [vmem:[#allocation8 + $0x3d8] sm:$0xff] %v9635_v26  ;;  %v9381_v34 = vadd.f32 %v5357_v32, %v11924_v46  ;;  %v9637_v35 = vadd.f32 %v8049_v33, %v11926_v47  ;;  %v788_v21 = vld [vmem:[#allocation2 + $0x16f0] sm:$0xff] }
 0x7c8   :  { %8656 = vst [vmem:[#allocation8 + $0x3e0] sm:$0xff] %v9380_v30  ;;  %8658 = vst [vmem:[#allocation8 + $0x3f0] sm:$0xff] %v9636_v31  ;;  %5620 = vmatmul.mubr.bf16.gmra.mrb[168].mxu0 %v1420_v24  ;;  %8312 = vmatmul.mubr.bf16.gmra.mrb[168].mxu1 %v1420_v24  ;;  %v1444_v30 = vpack.c.bf16 %v788_v21, %v780_v20 }
 0x7c9   :  { %8657 = vst [vmem:[#allocation8 + $0x3e8] sm:$0xff] %v9381_v34  ;;  %8659 = vst [vmem:[#allocation8 + $0x3f8] sm:$0xff] %v9637_v35  ;;  %5629 = vmatprep.mubr.bf16.mxu0 %v1429_v29  ;;  %8321 = vmatprep.mubr.bf16.mxu1 %v1429_v29  ;;  %v1453_v35 = vpack.c.bf16 %v805_v23, %v797_v22 }
 0x7cb   :  { %v5361_v40 = vpop.f32.mrb[64].mxu0  ;;  %v8053_v41 = vpop.f32.mrb[64].mxu1 }
 0x7cc   :  { %v9382_v42 = vadd.f32 %v5361_v40, %v11920_v44  ;;  %v9638_v43 = vadd.f32 %v8053_v41, %v11922_v45  ;;  %v5363_v48 = vpop.f32.mrb[65].mxu0  ;;  %v8055_v49 = vpop.f32.mrb[65].mxu1 }
 0x7cd   :  { %v9383_v51 = vadd.f32 %v5363_v48, %v11924_v46  ;;  %v9639_v52 = vadd.f32 %v8055_v49, %v11926_v47  ;;  %v5365_v53 = vpop.f32.mrb[66].mxu0  ;;  %v8057_v54 = vpop.f32.mrb[66].mxu1  ;;  %v813_v48 = vld [vmem:[#allocation2 + $0x17b8] sm:$0xff] }
 0x7ce   :  { %8660 = vst [vmem:[#allocation8 + $0x400] sm:$0xff] %v9382_v42  ;;  %8662 = vst [vmem:[#allocation8 + $0x410] sm:$0xff] %v9638_v43  ;;  %v9384_v56 = vadd.f32 %v5365_v53, %v11920_v44  ;;  %v9640_v57 = vadd.f32 %v8057_v54, %v11922_v45  ;;  %v5367_v58 = vpop.f32.mrb[67].mxu0  ;;  %v8059_v59 = vpop.f32.mrb[67].mxu1  ;;  %v796_v42 = vld [vmem:[#allocation2 + $0x1730] sm:$0xff]  ;;  %v821_v49 = vld [vmem:[#allocation2 + $0x17f8] sm:$0xff] }
 0x7cf   :  { %8661 = vst [vmem:[#allocation8 + $0x408] sm:$0xff] %v9383_v51  ;;  %8663 = vst [vmem:[#allocation8 + $0x418] sm:$0xff] %v9639_v52  ;;  %v9385_v60 = vadd.f32 %v5367_v58, %v11924_v46  ;;  %v9641_v61 = vadd.f32 %v8059_v59, %v11926_v47  ;;  %v804_v43 = vld [vmem:[#allocation2 + $0x1770] sm:$0xff] }
 0x7d0   :  { %8664 = vst [vmem:[#allocation8 + $0x420] sm:$0xff] %v9384_v56  ;;  %8666 = vst [vmem:[#allocation8 + $0x430] sm:$0xff] %v9640_v57  ;;  %5630 = vmatmul.mubr.bf16.gmra.mrb[172].mxu0 %v1428_v50  ;;  %8322 = vmatmul.mubr.bf16.gmra.mrb[172].mxu1 %v1428_v50  ;;  %v1452_v56 = vpack.c.bf16 %v804_v43, %v796_v42 }
 0x7d1   :  { %8665 = vst [vmem:[#allocation8 + $0x428] sm:$0xff] %v9385_v60  ;;  %8667 = vst [vmem:[#allocation8 + $0x438] sm:$0xff] %v9641_v61  ;;  %5639 = vmatprep.mubr.bf16.mxu0 %v1437_v55  ;;  %8331 = vmatprep.mubr.bf16.mxu1 %v1437_v55  ;;  %v1461_v61 = vpack.c.bf16 %v821_v49, %v813_v48 }
 0x7d3   :  { %v5371_v2 = vpop.f32.mrb[68].mxu0  ;;  %v8063_v3 = vpop.f32.mrb[68].mxu1 }
 0x7d4   :  { %v9386_v4 = vadd.f32 %v5371_v2, %v11920_v44  ;;  %v9642_v5 = vadd.f32 %v8063_v3, %v11922_v45  ;;  %v5373_v6 = vpop.f32.mrb[69].mxu0  ;;  %v8065_v7 = vpop.f32.mrb[69].mxu1 }
 0x7d5   :  { %v9387_v9 = vadd.f32 %v5373_v6, %v11924_v46  ;;  %v9643_v10 = vadd.f32 %v8065_v7, %v11926_v47  ;;  %v5375_v11 = vpop.f32.mrb[70].mxu0  ;;  %v8067_v12 = vpop.f32.mrb[70].mxu1  ;;  %v829_v6 = vld [vmem:[#allocation2 + $0x1838] sm:$0xff] }
 0x7d6   :  { %8668 = vst [vmem:[#allocation8 + $0x440] sm:$0xff] %v9386_v4  ;;  %8670 = vst [vmem:[#allocation8 + $0x450] sm:$0xff] %v9642_v5  ;;  %v9388_v14 = vadd.f32 %v5375_v11, %v11920_v44  ;;  %v9644_v15 = vadd.f32 %v8067_v12, %v11922_v45  ;;  %v5377_v16 = vpop.f32.mrb[71].mxu0  ;;  %v8069_v17 = vpop.f32.mrb[71].mxu1  ;;  %v812_v4 = vld [vmem:[#allocation2 + $0x17b0] sm:$0xff]  ;;  %v837_v7 = vld [vmem:[#allocation2 + $0x1878] sm:$0xff] }
 0x7d7   :  { %8669 = vst [vmem:[#allocation8 + $0x448] sm:$0xff] %v9387_v9  ;;  %8671 = vst [vmem:[#allocation8 + $0x458] sm:$0xff] %v9643_v10  ;;  %v9389_v18 = vadd.f32 %v5377_v16, %v11924_v46  ;;  %v9645_v19 = vadd.f32 %v8069_v17, %v11926_v47  ;;  %v820_v5 = vld [vmem:[#allocation2 + $0x17f0] sm:$0xff] }
 0x7d8   :  { %8672 = vst [vmem:[#allocation8 + $0x460] sm:$0xff] %v9388_v14  ;;  %8674 = vst [vmem:[#allocation8 + $0x470] sm:$0xff] %v9644_v15  ;;  %5640 = vmatmul.mubr.bf16.gmra.mrb[176].mxu0 %v1436_v8  ;;  %8332 = vmatmul.mubr.bf16.gmra.mrb[176].mxu1 %v1436_v8  ;;  %v1460_v14 = vpack.c.bf16 %v820_v5, %v812_v4 }
 0x7d9   :  { %8673 = vst [vmem:[#allocation8 + $0x468] sm:$0xff] %v9389_v18  ;;  %8675 = vst [vmem:[#allocation8 + $0x478] sm:$0xff] %v9645_v19  ;;  %5649 = vmatprep.mubr.bf16.mxu0 %v1445_v13  ;;  %8341 = vmatprep.mubr.bf16.mxu1 %v1445_v13  ;;  %v1469_v19 = vpack.c.bf16 %v837_v7, %v829_v6 }
 0x7db   :  { %v5381_v24 = vpop.f32.mrb[72].mxu0  ;;  %v8073_v25 = vpop.f32.mrb[72].mxu1 }
 0x7dc   :  { %v9390_v26 = vadd.f32 %v5381_v24, %v11920_v44  ;;  %v9646_v27 = vadd.f32 %v8073_v25, %v11922_v45  ;;  %v5383_v28 = vpop.f32.mrb[73].mxu0  ;;  %v8075_v29 = vpop.f32.mrb[73].mxu1 }
 0x7dd   :  { %v9391_v31 = vadd.f32 %v5383_v28, %v11924_v46  ;;  %v9647_v32 = vadd.f32 %v8075_v29, %v11926_v47  ;;  %v5385_v33 = vpop.f32.mrb[74].mxu0  ;;  %v8077_v34 = vpop.f32.mrb[74].mxu1  ;;  %v845_v28 = vld [vmem:[#allocation2 + $0x18b8] sm:$0xff] }
 0x7de   :  { %8676 = vst [vmem:[#allocation8 + $0x480] sm:$0xff] %v9390_v26  ;;  %8678 = vst [vmem:[#allocation8 + $0x490] sm:$0xff] %v9646_v27  ;;  %v9392_v36 = vadd.f32 %v5385_v33, %v11920_v44  ;;  %v9648_v37 = vadd.f32 %v8077_v34, %v11922_v45  ;;  %v5387_v38 = vpop.f32.mrb[75].mxu0  ;;  %v8079_v39 = vpop.f32.mrb[75].mxu1  ;;  %v828_v26 = vld [vmem:[#allocation2 + $0x1830] sm:$0xff]  ;;  %v853_v29 = vld [vmem:[#allocation2 + $0x18f8] sm:$0xff] }
 0x7df   :  { %8677 = vst [vmem:[#allocation8 + $0x488] sm:$0xff] %v9391_v31  ;;  %8679 = vst [vmem:[#allocation8 + $0x498] sm:$0xff] %v9647_v32  ;;  %v9393_v40 = vadd.f32 %v5387_v38, %v11924_v46  ;;  %v9649_v41 = vadd.f32 %v8079_v39, %v11926_v47  ;;  %v836_v27 = vld [vmem:[#allocation2 + $0x1870] sm:$0xff] }
 0x7e0   :  { %8680 = vst [vmem:[#allocation8 + $0x4a0] sm:$0xff] %v9392_v36  ;;  %8682 = vst [vmem:[#allocation8 + $0x4b0] sm:$0xff] %v9648_v37  ;;  %5650 = vmatmul.mubr.bf16.gmra.mrb[180].mxu0 %v1444_v30  ;;  %8342 = vmatmul.mubr.bf16.gmra.mrb[180].mxu1 %v1444_v30  ;;  %v1468_v36 = vpack.c.bf16 %v836_v27, %v828_v26 }
 0x7e1   :  { %8681 = vst [vmem:[#allocation8 + $0x4a8] sm:$0xff] %v9393_v40  ;;  %8683 = vst [vmem:[#allocation8 + $0x4b8] sm:$0xff] %v9649_v41  ;;  %5659 = vmatprep.mubr.bf16.mxu0 %v1453_v35  ;;  %8351 = vmatprep.mubr.bf16.mxu1 %v1453_v35  ;;  %v1477_v41 = vpack.c.bf16 %v853_v29, %v845_v28 }
 0x7e3   :  { %v5391_v50 = vpop.f32.mrb[76].mxu0  ;;  %v8083_v51 = vpop.f32.mrb[76].mxu1 }
 0x7e4   :  { %v9394_v52 = vadd.f32 %v5391_v50, %v11920_v44  ;;  %v9650_v53 = vadd.f32 %v8083_v51, %v11922_v45  ;;  %v5393_v54 = vpop.f32.mrb[77].mxu0  ;;  %v8085_v55 = vpop.f32.mrb[77].mxu1 }
 0x7e5   :  { %v9395_v57 = vadd.f32 %v5393_v54, %v11924_v46  ;;  %v9651_v58 = vadd.f32 %v8085_v55, %v11926_v47  ;;  %v5395_v59 = vpop.f32.mrb[78].mxu0  ;;  %v8087_v60 = vpop.f32.mrb[78].mxu1  ;;  %v861_v54 = vld [vmem:[#allocation2 + $0x1938] sm:$0xff] }
 0x7e6   :  { %8684 = vst [vmem:[#allocation8 + $0x4c0] sm:$0xff] %v9394_v52  ;;  %8686 = vst [vmem:[#allocation8 + $0x4d0] sm:$0xff] %v9650_v53  ;;  %v9396_v62 = vadd.f32 %v5395_v59, %v11920_v44  ;;  %v9652_v63 = vadd.f32 %v8087_v60, %v11922_v45  ;;  %v5397_v0 = vpop.f32.mrb[79].mxu0  ;;  %v8089_v1 = vpop.f32.mrb[79].mxu1  ;;  %v844_v52 = vld [vmem:[#allocation2 + $0x18b0] sm:$0xff]  ;;  %v869_v55 = vld [vmem:[#allocation2 + $0x1978] sm:$0xff] }
 0x7e7   :  { %8685 = vst [vmem:[#allocation8 + $0x4c8] sm:$0xff] %v9395_v57  ;;  %8687 = vst [vmem:[#allocation8 + $0x4d8] sm:$0xff] %v9651_v58  ;;  %v9397_v2 = vadd.f32 %v5397_v0, %v11924_v46  ;;  %v9653_v3 = vadd.f32 %v8089_v1, %v11926_v47  ;;  %v852_v53 = vld [vmem:[#allocation2 + $0x18f0] sm:$0xff] }
 0x7e8   :  { %8688 = vst [vmem:[#allocation8 + $0x4e0] sm:$0xff] %v9396_v62  ;;  %8690 = vst [vmem:[#allocation8 + $0x4f0] sm:$0xff] %v9652_v63  ;;  %5660 = vmatmul.mubr.bf16.gmra.mrb[184].mxu0 %v1452_v56  ;;  %8352 = vmatmul.mubr.bf16.gmra.mrb[184].mxu1 %v1452_v56  ;;  %v1476_v62 = vpack.c.bf16 %v852_v53, %v844_v52 }
 0x7e9   :  { %8689 = vst [vmem:[#allocation8 + $0x4e8] sm:$0xff] %v9397_v2  ;;  %8691 = vst [vmem:[#allocation8 + $0x4f8] sm:$0xff] %v9653_v3  ;;  %5669 = vmatprep.mubr.bf16.mxu0 %v1461_v61  ;;  %8361 = vmatprep.mubr.bf16.mxu1 %v1461_v61  ;;  %v1485_v3 = vpack.c.bf16 %v869_v55, %v861_v54 }
 0x7eb   :  { %v5401_v8 = vpop.f32.mrb[80].mxu0  ;;  %v8093_v9 = vpop.f32.mrb[80].mxu1 }
 0x7ec   :  { %v9398_v10 = vadd.f32 %v5401_v8, %v11920_v44  ;;  %v9654_v11 = vadd.f32 %v8093_v9, %v11922_v45  ;;  %v5403_v12 = vpop.f32.mrb[81].mxu0  ;;  %v8095_v13 = vpop.f32.mrb[81].mxu1 }
 0x7ed   :  { %v9399_v15 = vadd.f32 %v5403_v12, %v11924_v46  ;;  %v9655_v16 = vadd.f32 %v8095_v13, %v11926_v47  ;;  %v5405_v17 = vpop.f32.mrb[82].mxu0  ;;  %v8097_v18 = vpop.f32.mrb[82].mxu1  ;;  %v877_v12 = vld [vmem:[#allocation2 + $0x19b8] sm:$0xff] }
 0x7ee   :  { %8692 = vst [vmem:[#allocation8 + $0x500] sm:$0xff] %v9398_v10  ;;  %8694 = vst [vmem:[#allocation8 + $0x510] sm:$0xff] %v9654_v11  ;;  %v9400_v20 = vadd.f32 %v5405_v17, %v11920_v44  ;;  %v9656_v21 = vadd.f32 %v8097_v18, %v11922_v45  ;;  %v5407_v22 = vpop.f32.mrb[83].mxu0  ;;  %v8099_v23 = vpop.f32.mrb[83].mxu1  ;;  %v860_v10 = vld [vmem:[#allocation2 + $0x1930] sm:$0xff]  ;;  %v885_v13 = vld [vmem:[#allocation2 + $0x19f8] sm:$0xff] }
 0x7ef   :  { %8693 = vst [vmem:[#allocation8 + $0x508] sm:$0xff] %v9399_v15  ;;  %8695 = vst [vmem:[#allocation8 + $0x518] sm:$0xff] %v9655_v16  ;;  %v9401_v24 = vadd.f32 %v5407_v22, %v11924_v46  ;;  %v9657_v25 = vadd.f32 %v8099_v23, %v11926_v47  ;;  %v868_v11 = vld [vmem:[#allocation2 + $0x1970] sm:$0xff] }
 0x7f0   :  { %8696 = vst [vmem:[#allocation8 + $0x520] sm:$0xff] %v9400_v20  ;;  %8698 = vst [vmem:[#allocation8 + $0x530] sm:$0xff] %v9656_v21  ;;  %5670 = vmatmul.mubr.bf16.gmra.mrb[188].mxu0 %v1460_v14  ;;  %8362 = vmatmul.mubr.bf16.gmra.mrb[188].mxu1 %v1460_v14  ;;  %v1484_v20 = vpack.c.bf16 %v868_v11, %v860_v10 }
 0x7f1   :  { %8697 = vst [vmem:[#allocation8 + $0x528] sm:$0xff] %v9401_v24  ;;  %8699 = vst [vmem:[#allocation8 + $0x538] sm:$0xff] %v9657_v25  ;;  %5679 = vmatprep.mubr.bf16.mxu0 %v1469_v19  ;;  %8371 = vmatprep.mubr.bf16.mxu1 %v1469_v19  ;;  %v1493_v25 = vpack.c.bf16 %v885_v13, %v877_v12 }
 0x7f3   :  { %v5411_v30 = vpop.f32.mrb[84].mxu0  ;;  %v8103_v31 = vpop.f32.mrb[84].mxu1 }
 0x7f4   :  { %v9402_v32 = vadd.f32 %v5411_v30, %v11920_v44  ;;  %v9658_v33 = vadd.f32 %v8103_v31, %v11922_v45  ;;  %v5413_v34 = vpop.f32.mrb[85].mxu0  ;;  %v8105_v35 = vpop.f32.mrb[85].mxu1 }
 0x7f5   :  { %v9403_v37 = vadd.f32 %v5413_v34, %v11924_v46  ;;  %v9659_v38 = vadd.f32 %v8105_v35, %v11926_v47  ;;  %v5415_v39 = vpop.f32.mrb[86].mxu0  ;;  %v8107_v40 = vpop.f32.mrb[86].mxu1  ;;  %v893_v34 = vld [vmem:[#allocation2 + $0x1a38] sm:$0xff] }
 0x7f6   :  { %8700 = vst [vmem:[#allocation8 + $0x540] sm:$0xff] %v9402_v32  ;;  %8702 = vst [vmem:[#allocation8 + $0x550] sm:$0xff] %v9658_v33  ;;  %v9404_v42 = vadd.f32 %v5415_v39, %v11920_v44  ;;  %v9660_v43 = vadd.f32 %v8107_v40, %v11922_v45  ;;  %v5417_v48 = vpop.f32.mrb[87].mxu0  ;;  %v8109_v49 = vpop.f32.mrb[87].mxu1  ;;  %v876_v32 = vld [vmem:[#allocation2 + $0x19b0] sm:$0xff]  ;;  %v901_v35 = vld [vmem:[#allocation2 + $0x1a78] sm:$0xff] }
 0x7f7   :  { %8701 = vst [vmem:[#allocation8 + $0x548] sm:$0xff] %v9403_v37  ;;  %8703 = vst [vmem:[#allocation8 + $0x558] sm:$0xff] %v9659_v38  ;;  %v9405_v50 = vadd.f32 %v5417_v48, %v11924_v46  ;;  %v9661_v51 = vadd.f32 %v8109_v49, %v11926_v47  ;;  %v884_v33 = vld [vmem:[#allocation2 + $0x19f0] sm:$0xff] }
 0x7f8   :  { %8704 = vst [vmem:[#allocation8 + $0x560] sm:$0xff] %v9404_v42  ;;  %8706 = vst [vmem:[#allocation8 + $0x570] sm:$0xff] %v9660_v43  ;;  %5680 = vmatmul.mubr.bf16.gmra.mrb[192].mxu0 %v1468_v36  ;;  %8372 = vmatmul.mubr.bf16.gmra.mrb[192].mxu1 %v1468_v36  ;;  %v1492_v42 = vpack.c.bf16 %v884_v33, %v876_v32 }
 0x7f9   :  { %8705 = vst [vmem:[#allocation8 + $0x568] sm:$0xff] %v9405_v50  ;;  %8707 = vst [vmem:[#allocation8 + $0x578] sm:$0xff] %v9661_v51  ;;  %5689 = vmatprep.mubr.bf16.mxu0 %v1477_v41  ;;  %8381 = vmatprep.mubr.bf16.mxu1 %v1477_v41  ;;  %v1501_v51 = vpack.c.bf16 %v901_v35, %v893_v34 }
 0x7fb   :  { %v5421_v56 = vpop.f32.mrb[88].mxu0  ;;  %v8113_v57 = vpop.f32.mrb[88].mxu1 }
 0x7fc   :  { %v9406_v58 = vadd.f32 %v5421_v56, %v11920_v44  ;;  %v9662_v59 = vadd.f32 %v8113_v57, %v11922_v45  ;;  %v5423_v60 = vpop.f32.mrb[89].mxu0  ;;  %v8115_v61 = vpop.f32.mrb[89].mxu1 }
 0x7fd   :  { %v9407_v63 = vadd.f32 %v5423_v60, %v11924_v46  ;;  %v9663_v0 = vadd.f32 %v8115_v61, %v11926_v47  ;;  %v5425_v1 = vpop.f32.mrb[90].mxu0  ;;  %v8117_v2 = vpop.f32.mrb[90].mxu1  ;;  %v909_v60 = vld [vmem:[#allocation2 + $0x1ab8] sm:$0xff] }
 0x7fe   :  { %8708 = vst [vmem:[#allocation8 + $0x580] sm:$0xff] %v9406_v58  ;;  %8710 = vst [vmem:[#allocation8 + $0x590] sm:$0xff] %v9662_v59  ;;  %v9408_v4 = vadd.f32 %v5425_v1, %v11920_v44  ;;  %v9664_v5 = vadd.f32 %v8117_v2, %v11922_v45  ;;  %v5427_v6 = vpop.f32.mrb[91].mxu0  ;;  %v8119_v7 = vpop.f32.mrb[91].mxu1  ;;  %v892_v58 = vld [vmem:[#allocation2 + $0x1a30] sm:$0xff]  ;;  %v917_v61 = vld [vmem:[#allocation2 + $0x1af8] sm:$0xff] }
 0x7ff   :  { %8709 = vst [vmem:[#allocation8 + $0x588] sm:$0xff] %v9407_v63  ;;  %8711 = vst [vmem:[#allocation8 + $0x598] sm:$0xff] %v9663_v0  ;;  %v9409_v8 = vadd.f32 %v5427_v6, %v11924_v46  ;;  %v9665_v9 = vadd.f32 %v8119_v7, %v11926_v47  ;;  %v900_v59 = vld [vmem:[#allocation2 + $0x1a70] sm:$0xff] }
 0x800   :  { %8712 = vst [vmem:[#allocation8 + $0x5a0] sm:$0xff] %v9408_v4  ;;  %8714 = vst [vmem:[#allocation8 + $0x5b0] sm:$0xff] %v9664_v5  ;;  %5690 = vmatmul.mubr.bf16.gmra.mrb[196].mxu0 %v1476_v62  ;;  %8382 = vmatmul.mubr.bf16.gmra.mrb[196].mxu1 %v1476_v62  ;;  %v1500_v4 = vpack.c.bf16 %v900_v59, %v892_v58 }
 0x801   :  { %8713 = vst [vmem:[#allocation8 + $0x5a8] sm:$0xff] %v9409_v8  ;;  %8715 = vst [vmem:[#allocation8 + $0x5b8] sm:$0xff] %v9665_v9  ;;  %5699 = vmatprep.mubr.bf16.mxu0 %v1485_v3  ;;  %8391 = vmatprep.mubr.bf16.mxu1 %v1485_v3  ;;  %v1509_v9 = vpack.c.bf16 %v917_v61, %v909_v60 }
 0x803   :  { %v5431_v14 = vpop.f32.mrb[92].mxu0  ;;  %v8123_v15 = vpop.f32.mrb[92].mxu1 }
 0x804   :  { %v9410_v16 = vadd.f32 %v5431_v14, %v11920_v44  ;;  %v9666_v17 = vadd.f32 %v8123_v15, %v11922_v45  ;;  %v5433_v18 = vpop.f32.mrb[93].mxu0  ;;  %v8125_v19 = vpop.f32.mrb[93].mxu1 }
 0x805   :  { %v9411_v21 = vadd.f32 %v5433_v18, %v11924_v46  ;;  %v9667_v22 = vadd.f32 %v8125_v19, %v11926_v47  ;;  %v5435_v23 = vpop.f32.mrb[94].mxu0  ;;  %v8127_v24 = vpop.f32.mrb[94].mxu1  ;;  %v925_v18 = vld [vmem:[#allocation2 + $0x1b38] sm:$0xff] }
 0x806   :  { %8716 = vst [vmem:[#allocation8 + $0x5c0] sm:$0xff] %v9410_v16  ;;  %8718 = vst [vmem:[#allocation8 + $0x5d0] sm:$0xff] %v9666_v17  ;;  %v9412_v26 = vadd.f32 %v5435_v23, %v11920_v44  ;;  %v9668_v27 = vadd.f32 %v8127_v24, %v11922_v45  ;;  %v5437_v28 = vpop.f32.mrb[95].mxu0  ;;  %v8129_v29 = vpop.f32.mrb[95].mxu1  ;;  %v908_v16 = vld [vmem:[#allocation2 + $0x1ab0] sm:$0xff]  ;;  %v933_v19 = vld [vmem:[#allocation2 + $0x1b78] sm:$0xff] }
 0x807   :  { %8717 = vst [vmem:[#allocation8 + $0x5c8] sm:$0xff] %v9411_v21  ;;  %8719 = vst [vmem:[#allocation8 + $0x5d8] sm:$0xff] %v9667_v22  ;;  %v9413_v30 = vadd.f32 %v5437_v28, %v11924_v46  ;;  %v9669_v31 = vadd.f32 %v8129_v29, %v11926_v47  ;;  %v916_v17 = vld [vmem:[#allocation2 + $0x1af0] sm:$0xff] }
 0x808   :  { %8720 = vst [vmem:[#allocation8 + $0x5e0] sm:$0xff] %v9412_v26  ;;  %8722 = vst [vmem:[#allocation8 + $0x5f0] sm:$0xff] %v9668_v27  ;;  %5700 = vmatmul.mubr.bf16.gmra.mrb[200].mxu0 %v1484_v20  ;;  %8392 = vmatmul.mubr.bf16.gmra.mrb[200].mxu1 %v1484_v20  ;;  %v1508_v26 = vpack.c.bf16 %v916_v17, %v908_v16 }
 0x809   :  { %8721 = vst [vmem:[#allocation8 + $0x5e8] sm:$0xff] %v9413_v30  ;;  %8723 = vst [vmem:[#allocation8 + $0x5f8] sm:$0xff] %v9669_v31  ;;  %5709 = vmatprep.mubr.bf16.mxu0 %v1493_v25  ;;  %8401 = vmatprep.mubr.bf16.mxu1 %v1493_v25  ;;  %v1517_v31 = vpack.c.bf16 %v933_v19, %v925_v18 }
 0x80b   :  { %v5441_v36 = vpop.f32.mrb[96].mxu0  ;;  %v8133_v37 = vpop.f32.mrb[96].mxu1 }
 0x80c   :  { %v9414_v38 = vadd.f32 %v5441_v36, %v11920_v44  ;;  %v9670_v39 = vadd.f32 %v8133_v37, %v11922_v45  ;;  %v5443_v40 = vpop.f32.mrb[97].mxu0  ;;  %v8135_v41 = vpop.f32.mrb[97].mxu1 }
 0x80d   :  { %v9415_v43 = vadd.f32 %v5443_v40, %v11924_v46  ;;  %v9671_v48 = vadd.f32 %v8135_v41, %v11926_v47  ;;  %v5445_v49 = vpop.f32.mrb[98].mxu0  ;;  %v8137_v50 = vpop.f32.mrb[98].mxu1  ;;  %v941_v40 = vld [vmem:[#allocation2 + $0x1bb8] sm:$0xff] }
 0x80e   :  { %8724 = vst [vmem:[#allocation8 + $0x600] sm:$0xff] %v9414_v38  ;;  %8726 = vst [vmem:[#allocation8 + $0x610] sm:$0xff] %v9670_v39  ;;  %v9416_v52 = vadd.f32 %v5445_v49, %v11920_v44  ;;  %v9672_v53 = vadd.f32 %v8137_v50, %v11922_v45  ;;  %v5447_v54 = vpop.f32.mrb[99].mxu0  ;;  %v8139_v55 = vpop.f32.mrb[99].mxu1  ;;  %v924_v38 = vld [vmem:[#allocation2 + $0x1b30] sm:$0xff]  ;;  %v949_v41 = vld [vmem:[#allocation2 + $0x1bf8] sm:$0xff] }
 0x80f   :  { %8725 = vst [vmem:[#allocation8 + $0x608] sm:$0xff] %v9415_v43  ;;  %8727 = vst [vmem:[#allocation8 + $0x618] sm:$0xff] %v9671_v48  ;;  %v9417_v56 = vadd.f32 %v5447_v54, %v11924_v46  ;;  %v9673_v57 = vadd.f32 %v8139_v55, %v11926_v47  ;;  %v932_v39 = vld [vmem:[#allocation2 + $0x1b70] sm:$0xff] }
 0x810   :  { %8728 = vst [vmem:[#allocation8 + $0x620] sm:$0xff] %v9416_v52  ;;  %8730 = vst [vmem:[#allocation8 + $0x630] sm:$0xff] %v9672_v53  ;;  %5710 = vmatmul.mubr.bf16.gmra.mrb[204].mxu0 %v1492_v42  ;;  %8402 = vmatmul.mubr.bf16.gmra.mrb[204].mxu1 %v1492_v42  ;;  %v1516_v52 = vpack.c.bf16 %v932_v39, %v924_v38 }
 0x811   :  { %8729 = vst [vmem:[#allocation8 + $0x628] sm:$0xff] %v9417_v56  ;;  %8731 = vst [vmem:[#allocation8 + $0x638] sm:$0xff] %v9673_v57  ;;  %5719 = vmatprep.mubr.bf16.mxu0 %v1501_v51  ;;  %8411 = vmatprep.mubr.bf16.mxu1 %v1501_v51  ;;  %v1525_v57 = vpack.c.bf16 %v949_v41, %v941_v40 }
 0x813   :  { %v5451_v62 = vpop.f32.mrb[100].mxu0  ;;  %v8143_v63 = vpop.f32.mrb[100].mxu1 }
 0x814   :  { %v9418_v0 = vadd.f32 %v5451_v62, %v11920_v44  ;;  %v9674_v1 = vadd.f32 %v8143_v63, %v11922_v45  ;;  %v5453_v2 = vpop.f32.mrb[101].mxu0  ;;  %v8145_v3 = vpop.f32.mrb[101].mxu1 }
 0x815   :  { %v9419_v5 = vadd.f32 %v5453_v2, %v11924_v46  ;;  %v9675_v6 = vadd.f32 %v8145_v3, %v11926_v47  ;;  %v5455_v7 = vpop.f32.mrb[102].mxu0  ;;  %v8147_v8 = vpop.f32.mrb[102].mxu1  ;;  %v957_v2 = vld [vmem:[#allocation2 + $0x1c38] sm:$0xff] }
 0x816   :  { %8732 = vst [vmem:[#allocation8 + $0x640] sm:$0xff] %v9418_v0  ;;  %8734 = vst [vmem:[#allocation8 + $0x650] sm:$0xff] %v9674_v1  ;;  %v9420_v10 = vadd.f32 %v5455_v7, %v11920_v44  ;;  %v9676_v11 = vadd.f32 %v8147_v8, %v11922_v45  ;;  %v5457_v12 = vpop.f32.mrb[103].mxu0  ;;  %v8149_v13 = vpop.f32.mrb[103].mxu1  ;;  %v940_v0 = vld [vmem:[#allocation2 + $0x1bb0] sm:$0xff]  ;;  %v965_v3 = vld [vmem:[#allocation2 + $0x1c78] sm:$0xff] }
 0x817   :  { %8733 = vst [vmem:[#allocation8 + $0x648] sm:$0xff] %v9419_v5  ;;  %8735 = vst [vmem:[#allocation8 + $0x658] sm:$0xff] %v9675_v6  ;;  %v9421_v14 = vadd.f32 %v5457_v12, %v11924_v46  ;;  %v9677_v15 = vadd.f32 %v8149_v13, %v11926_v47  ;;  %v948_v1 = vld [vmem:[#allocation2 + $0x1bf0] sm:$0xff] }
 0x818   :  { %8736 = vst [vmem:[#allocation8 + $0x660] sm:$0xff] %v9420_v10  ;;  %8738 = vst [vmem:[#allocation8 + $0x670] sm:$0xff] %v9676_v11  ;;  %5720 = vmatmul.mubr.bf16.gmra.mrb[208].mxu0 %v1500_v4  ;;  %8412 = vmatmul.mubr.bf16.gmra.mrb[208].mxu1 %v1500_v4  ;;  %v1524_v10 = vpack.c.bf16 %v948_v1, %v940_v0 }
 0x819   :  { %8737 = vst [vmem:[#allocation8 + $0x668] sm:$0xff] %v9421_v14  ;;  %8739 = vst [vmem:[#allocation8 + $0x678] sm:$0xff] %v9677_v15  ;;  %5729 = vmatprep.mubr.bf16.mxu0 %v1509_v9  ;;  %8421 = vmatprep.mubr.bf16.mxu1 %v1509_v9  ;;  %v1533_v15 = vpack.c.bf16 %v965_v3, %v957_v2 }
 0x81b   :  { %v5461_v20 = vpop.f32.mrb[104].mxu0  ;;  %v8153_v21 = vpop.f32.mrb[104].mxu1 }
 0x81c   :  { %v9422_v22 = vadd.f32 %v5461_v20, %v11920_v44  ;;  %v9678_v23 = vadd.f32 %v8153_v21, %v11922_v45  ;;  %v5463_v24 = vpop.f32.mrb[105].mxu0  ;;  %v8155_v25 = vpop.f32.mrb[105].mxu1 }
 0x81d   :  { %v9423_v27 = vadd.f32 %v5463_v24, %v11924_v46  ;;  %v9679_v28 = vadd.f32 %v8155_v25, %v11926_v47  ;;  %v5465_v29 = vpop.f32.mrb[106].mxu0  ;;  %v8157_v30 = vpop.f32.mrb[106].mxu1  ;;  %v973_v24 = vld [vmem:[#allocation2 + $0x1cb8] sm:$0xff] }
 0x81e   :  { %8740 = vst [vmem:[#allocation8 + $0x680] sm:$0xff] %v9422_v22  ;;  %8742 = vst [vmem:[#allocation8 + $0x690] sm:$0xff] %v9678_v23  ;;  %v9424_v32 = vadd.f32 %v5465_v29, %v11920_v44  ;;  %v9680_v33 = vadd.f32 %v8157_v30, %v11922_v45  ;;  %v5467_v34 = vpop.f32.mrb[107].mxu0  ;;  %v8159_v35 = vpop.f32.mrb[107].mxu1  ;;  %v956_v22 = vld [vmem:[#allocation2 + $0x1c30] sm:$0xff]  ;;  %v981_v25 = vld [vmem:[#allocation2 + $0x1cf8] sm:$0xff] }
 0x81f   :  { %8741 = vst [vmem:[#allocation8 + $0x688] sm:$0xff] %v9423_v27  ;;  %8743 = vst [vmem:[#allocation8 + $0x698] sm:$0xff] %v9679_v28  ;;  %v9425_v36 = vadd.f32 %v5467_v34, %v11924_v46  ;;  %v9681_v37 = vadd.f32 %v8159_v35, %v11926_v47  ;;  %v964_v23 = vld [vmem:[#allocation2 + $0x1c70] sm:$0xff] }
 0x820   :  { %8744 = vst [vmem:[#allocation8 + $0x6a0] sm:$0xff] %v9424_v32  ;;  %8746 = vst [vmem:[#allocation8 + $0x6b0] sm:$0xff] %v9680_v33  ;;  %5730 = vmatmul.mubr.bf16.gmra.mrb[212].mxu0 %v1508_v26  ;;  %8422 = vmatmul.mubr.bf16.gmra.mrb[212].mxu1 %v1508_v26  ;;  %v1532_v32 = vpack.c.bf16 %v964_v23, %v956_v22 }
 0x821   :  { %8745 = vst [vmem:[#allocation8 + $0x6a8] sm:$0xff] %v9425_v36  ;;  %8747 = vst [vmem:[#allocation8 + $0x6b8] sm:$0xff] %v9681_v37  ;;  %5739 = vmatprep.mubr.bf16.mxu0 %v1517_v31  ;;  %8431 = vmatprep.mubr.bf16.mxu1 %v1517_v31  ;;  %v1541_v37 = vpack.c.bf16 %v981_v25, %v973_v24 }
 0x823   :  { %v5471_v42 = vpop.f32.mrb[108].mxu0  ;;  %v8163_v43 = vpop.f32.mrb[108].mxu1 }
 0x824   :  { %v9426_v48 = vadd.f32 %v5471_v42, %v11920_v44  ;;  %v9682_v49 = vadd.f32 %v8163_v43, %v11922_v45  ;;  %v5473_v50 = vpop.f32.mrb[109].mxu0  ;;  %v8165_v51 = vpop.f32.mrb[109].mxu1 }
 0x825   :  { %v9427_v53 = vadd.f32 %v5473_v50, %v11924_v46  ;;  %v9683_v54 = vadd.f32 %v8165_v51, %v11926_v47  ;;  %v5475_v55 = vpop.f32.mrb[110].mxu0  ;;  %v8167_v56 = vpop.f32.mrb[110].mxu1  ;;  %v989_v50 = vld [vmem:[#allocation2 + $0x1d38] sm:$0xff] }
 0x826   :  { %8748 = vst [vmem:[#allocation8 + $0x6c0] sm:$0xff] %v9426_v48  ;;  %8750 = vst [vmem:[#allocation8 + $0x6d0] sm:$0xff] %v9682_v49  ;;  %v9428_v58 = vadd.f32 %v5475_v55, %v11920_v44  ;;  %v9684_v59 = vadd.f32 %v8167_v56, %v11922_v45  ;;  %v5477_v60 = vpop.f32.mrb[111].mxu0  ;;  %v8169_v61 = vpop.f32.mrb[111].mxu1  ;;  %v972_v48 = vld [vmem:[#allocation2 + $0x1cb0] sm:$0xff]  ;;  %v997_v51 = vld [vmem:[#allocation2 + $0x1d78] sm:$0xff] }
 0x827   :  { %8749 = vst [vmem:[#allocation8 + $0x6c8] sm:$0xff] %v9427_v53  ;;  %8751 = vst [vmem:[#allocation8 + $0x6d8] sm:$0xff] %v9683_v54  ;;  %v9429_v62 = vadd.f32 %v5477_v60, %v11924_v46  ;;  %v9685_v63 = vadd.f32 %v8169_v61, %v11926_v47  ;;  %v980_v49 = vld [vmem:[#allocation2 + $0x1cf0] sm:$0xff] }
 0x828   :  { %8752 = vst [vmem:[#allocation8 + $0x6e0] sm:$0xff] %v9428_v58  ;;  %8754 = vst [vmem:[#allocation8 + $0x6f0] sm:$0xff] %v9684_v59  ;;  %5740 = vmatmul.mubr.bf16.gmra.mrb[216].mxu0 %v1516_v52  ;;  %8432 = vmatmul.mubr.bf16.gmra.mrb[216].mxu1 %v1516_v52  ;;  %v1540_v58 = vpack.c.bf16 %v980_v49, %v972_v48 }
 0x829   :  { %8753 = vst [vmem:[#allocation8 + $0x6e8] sm:$0xff] %v9429_v62  ;;  %8755 = vst [vmem:[#allocation8 + $0x6f8] sm:$0xff] %v9685_v63  ;;  %5749 = vmatprep.mubr.bf16.mxu0 %v1525_v57  ;;  %8441 = vmatprep.mubr.bf16.mxu1 %v1525_v57  ;;  %v1549_v63 = vpack.c.bf16 %v997_v51, %v989_v50 }
 0x82b   :  { %v5481_v4 = vpop.f32.mrb[112].mxu0  ;;  %v8173_v5 = vpop.f32.mrb[112].mxu1 }
 0x82c   :  { %v9430_v6 = vadd.f32 %v5481_v4, %v11920_v44  ;;  %v9686_v7 = vadd.f32 %v8173_v5, %v11922_v45  ;;  %v5483_v8 = vpop.f32.mrb[113].mxu0  ;;  %v8175_v9 = vpop.f32.mrb[113].mxu1 }
 0x82d   :  { %v9431_v11 = vadd.f32 %v5483_v8, %v11924_v46  ;;  %v9687_v12 = vadd.f32 %v8175_v9, %v11926_v47  ;;  %v5485_v13 = vpop.f32.mrb[114].mxu0  ;;  %v8177_v14 = vpop.f32.mrb[114].mxu1  ;;  %v1005_v8 = vld [vmem:[#allocation2 + $0x1db8] sm:$0xff] }
 0x82e   :  { %8756 = vst [vmem:[#allocation8 + $0x700] sm:$0xff] %v9430_v6  ;;  %8758 = vst [vmem:[#allocation8 + $0x710] sm:$0xff] %v9686_v7  ;;  %v9432_v16 = vadd.f32 %v5485_v13, %v11920_v44  ;;  %v9688_v17 = vadd.f32 %v8177_v14, %v11922_v45  ;;  %v5487_v18 = vpop.f32.mrb[115].mxu0  ;;  %v8179_v19 = vpop.f32.mrb[115].mxu1  ;;  %v988_v6 = vld [vmem:[#allocation2 + $0x1d30] sm:$0xff]  ;;  %v1013_v9 = vld [vmem:[#allocation2 + $0x1df8] sm:$0xff] }
 0x82f   :  { %8757 = vst [vmem:[#allocation8 + $0x708] sm:$0xff] %v9431_v11  ;;  %8759 = vst [vmem:[#allocation8 + $0x718] sm:$0xff] %v9687_v12  ;;  %v9433_v20 = vadd.f32 %v5487_v18, %v11924_v46  ;;  %v9689_v21 = vadd.f32 %v8179_v19, %v11926_v47  ;;  %v996_v7 = vld [vmem:[#allocation2 + $0x1d70] sm:$0xff] }
 0x830   :  { %8760 = vst [vmem:[#allocation8 + $0x720] sm:$0xff] %v9432_v16  ;;  %8762 = vst [vmem:[#allocation8 + $0x730] sm:$0xff] %v9688_v17  ;;  %5750 = vmatmul.mubr.bf16.gmra.mrb[220].mxu0 %v1524_v10  ;;  %8442 = vmatmul.mubr.bf16.gmra.mrb[220].mxu1 %v1524_v10  ;;  %v1548_v16 = vpack.c.bf16 %v996_v7, %v988_v6 }
 0x831   :  { %8761 = vst [vmem:[#allocation8 + $0x728] sm:$0xff] %v9433_v20  ;;  %8763 = vst [vmem:[#allocation8 + $0x738] sm:$0xff] %v9689_v21  ;;  %5759 = vmatprep.mubr.bf16.mxu0 %v1533_v15  ;;  %8451 = vmatprep.mubr.bf16.mxu1 %v1533_v15  ;;  %v1557_v21 = vpack.c.bf16 %v1013_v9, %v1005_v8 }
 0x833   :  { %v5491_v26 = vpop.f32.mrb[116].mxu0  ;;  %v8183_v27 = vpop.f32.mrb[116].mxu1 }
 0x834   :  { %v9434_v28 = vadd.f32 %v5491_v26, %v11920_v44  ;;  %v9690_v29 = vadd.f32 %v8183_v27, %v11922_v45  ;;  %v5493_v30 = vpop.f32.mrb[117].mxu0  ;;  %v8185_v31 = vpop.f32.mrb[117].mxu1 }
 0x835   :  { %v9435_v33 = vadd.f32 %v5493_v30, %v11924_v46  ;;  %v9691_v34 = vadd.f32 %v8185_v31, %v11926_v47  ;;  %v5495_v35 = vpop.f32.mrb[118].mxu0  ;;  %v8187_v36 = vpop.f32.mrb[118].mxu1  ;;  %v1021_v30 = vld [vmem:[#allocation2 + $0x1e38] sm:$0xff] }
 0x836   :  { %8764 = vst [vmem:[#allocation8 + $0x740] sm:$0xff] %v9434_v28  ;;  %8766 = vst [vmem:[#allocation8 + $0x750] sm:$0xff] %v9690_v29  ;;  %v9436_v38 = vadd.f32 %v5495_v35, %v11920_v44  ;;  %v9692_v39 = vadd.f32 %v8187_v36, %v11922_v45  ;;  %v5497_v40 = vpop.f32.mrb[119].mxu0  ;;  %v8189_v41 = vpop.f32.mrb[119].mxu1  ;;  %v1004_v28 = vld [vmem:[#allocation2 + $0x1db0] sm:$0xff]  ;;  %v1029_v31 = vld [vmem:[#allocation2 + $0x1e78] sm:$0xff] }
 0x837   :  { %8765 = vst [vmem:[#allocation8 + $0x748] sm:$0xff] %v9435_v33  ;;  %8767 = vst [vmem:[#allocation8 + $0x758] sm:$0xff] %v9691_v34  ;;  %v9437_v42 = vadd.f32 %v5497_v40, %v11924_v46  ;;  %v9693_v43 = vadd.f32 %v8189_v41, %v11926_v47  ;;  %v1012_v29 = vld [vmem:[#allocation2 + $0x1df0] sm:$0xff] }
 0x838   :  { %8768 = vst [vmem:[#allocation8 + $0x760] sm:$0xff] %v9436_v38  ;;  %8770 = vst [vmem:[#allocation8 + $0x770] sm:$0xff] %v9692_v39  ;;  %5760 = vmatmul.mubr.bf16.gmra.mrb[224].mxu0 %v1532_v32  ;;  %8452 = vmatmul.mubr.bf16.gmra.mrb[224].mxu1 %v1532_v32  ;;  %v1556_v38 = vpack.c.bf16 %v1012_v29, %v1004_v28 }
 0x839   :  { %8769 = vst [vmem:[#allocation8 + $0x768] sm:$0xff] %v9437_v42  ;;  %8771 = vst [vmem:[#allocation8 + $0x778] sm:$0xff] %v9693_v43  ;;  %5769 = vmatprep.mubr.bf16.mxu0 %v1541_v37  ;;  %8461 = vmatprep.mubr.bf16.mxu1 %v1541_v37  ;;  %v1565_v43 = vpack.c.bf16 %v1029_v31, %v1021_v30 }
 0x83b   :  { %v5501_v52 = vpop.f32.mrb[120].mxu0  ;;  %v8193_v53 = vpop.f32.mrb[120].mxu1 }
 0x83c   :  { %v9438_v54 = vadd.f32 %v5501_v52, %v11920_v44  ;;  %v9694_v55 = vadd.f32 %v8193_v53, %v11922_v45  ;;  %v5503_v56 = vpop.f32.mrb[121].mxu0  ;;  %v8195_v57 = vpop.f32.mrb[121].mxu1 }
 0x83d   :  { %v9439_v59 = vadd.f32 %v5503_v56, %v11924_v46  ;;  %v9695_v60 = vadd.f32 %v8195_v57, %v11926_v47  ;;  %v5505_v61 = vpop.f32.mrb[122].mxu0  ;;  %v8197_v62 = vpop.f32.mrb[122].mxu1  ;;  %v1037_v56 = vld [vmem:[#allocation2 + $0x1eb8] sm:$0xff] }
 0x83e   :  { %8772 = vst [vmem:[#allocation8 + $0x780] sm:$0xff] %v9438_v54  ;;  %8774 = vst [vmem:[#allocation8 + $0x790] sm:$0xff] %v9694_v55  ;;  %v9440_v0 = vadd.f32 %v5505_v61, %v11920_v44  ;;  %v9696_v1 = vadd.f32 %v8197_v62, %v11922_v45  ;;  %v5507_v2 = vpop.f32.mrb[123].mxu0  ;;  %v8199_v3 = vpop.f32.mrb[123].mxu1  ;;  %v1020_v54 = vld [vmem:[#allocation2 + $0x1e30] sm:$0xff]  ;;  %v1045_v57 = vld [vmem:[#allocation2 + $0x1ef8] sm:$0xff] }
 0x83f   :  { %8773 = vst [vmem:[#allocation8 + $0x788] sm:$0xff] %v9439_v59  ;;  %8775 = vst [vmem:[#allocation8 + $0x798] sm:$0xff] %v9695_v60  ;;  %v9441_v4 = vadd.f32 %v5507_v2, %v11924_v46  ;;  %v9697_v5 = vadd.f32 %v8199_v3, %v11926_v47  ;;  %v1028_v55 = vld [vmem:[#allocation2 + $0x1e70] sm:$0xff] }
 0x840   :  { %8776 = vst [vmem:[#allocation8 + $0x7a0] sm:$0xff] %v9440_v0  ;;  %8778 = vst [vmem:[#allocation8 + $0x7b0] sm:$0xff] %v9696_v1  ;;  %5770 = vmatmul.mubr.bf16.gmra.mrb[228].mxu0 %v1540_v58  ;;  %8462 = vmatmul.mubr.bf16.gmra.mrb[228].mxu1 %v1540_v58  ;;  %v1564_v0 = vpack.c.bf16 %v1028_v55, %v1020_v54 }
 0x841   :  { %8777 = vst [vmem:[#allocation8 + $0x7a8] sm:$0xff] %v9441_v4  ;;  %8779 = vst [vmem:[#allocation8 + $0x7b8] sm:$0xff] %v9697_v5  ;;  %5779 = vmatprep.mubr.bf16.mxu0 %v1549_v63  ;;  %8471 = vmatprep.mubr.bf16.mxu1 %v1549_v63  ;;  %v1573_v5 = vpack.c.bf16 %v1045_v57, %v1037_v56 }
 0x843   :  { %v5511_v10 = vpop.f32.mrb[124].mxu0  ;;  %v8203_v11 = vpop.f32.mrb[124].mxu1 }
 0x844   :  { %v9442_v12 = vadd.f32 %v5511_v10, %v11920_v44  ;;  %v9698_v13 = vadd.f32 %v8203_v11, %v11922_v45  ;;  %v5513_v14 = vpop.f32.mrb[125].mxu0  ;;  %v8205_v15 = vpop.f32.mrb[125].mxu1 }
 0x845   :  { %v9443_v17 = vadd.f32 %v5513_v14, %v11924_v46  ;;  %v9699_v18 = vadd.f32 %v8205_v15, %v11926_v47  ;;  %v5515_v19 = vpop.f32.mrb[126].mxu0  ;;  %v8207_v20 = vpop.f32.mrb[126].mxu1  ;;  %v1053_v14 = vld [vmem:[#allocation2 + $0x1f38] sm:$0xff] }
 0x846   :  { %8780 = vst [vmem:[#allocation8 + $0x7c0] sm:$0xff] %v9442_v12  ;;  %8782 = vst [vmem:[#allocation8 + $0x7d0] sm:$0xff] %v9698_v13  ;;  %v9444_v22 = vadd.f32 %v5515_v19, %v11920_v44  ;;  %v9700_v23 = vadd.f32 %v8207_v20, %v11922_v45  ;;  %v5517_v24 = vpop.f32.mrb[127].mxu0  ;;  %v8209_v25 = vpop.f32.mrb[127].mxu1  ;;  %v1036_v12 = vld [vmem:[#allocation2 + $0x1eb0] sm:$0xff]  ;;  %v1061_v15 = vld [vmem:[#allocation2 + $0x1f78] sm:$0xff] }
 0x847   :  { %8781 = vst [vmem:[#allocation8 + $0x7c8] sm:$0xff] %v9443_v17  ;;  %8783 = vst [vmem:[#allocation8 + $0x7d8] sm:$0xff] %v9699_v18  ;;  %v9445_v26 = vadd.f32 %v5517_v24, %v11924_v46  ;;  %v9701_v27 = vadd.f32 %v8209_v25, %v11926_v47  ;;  %v1044_v13 = vld [vmem:[#allocation2 + $0x1ef0] sm:$0xff] }
 0x848   :  { %8784 = vst [vmem:[#allocation8 + $0x7e0] sm:$0xff] %v9444_v22  ;;  %8786 = vst [vmem:[#allocation8 + $0x7f0] sm:$0xff] %v9700_v23  ;;  %5780 = vmatmul.mubr.bf16.gmra.mrb[232].mxu0 %v1548_v16  ;;  %8472 = vmatmul.mubr.bf16.gmra.mrb[232].mxu1 %v1548_v16  ;;  %v1572_v22 = vpack.c.bf16 %v1044_v13, %v1036_v12 }
 0x849   :  { %8785 = vst [vmem:[#allocation8 + $0x7e8] sm:$0xff] %v9445_v26  ;;  %8787 = vst [vmem:[#allocation8 + $0x7f8] sm:$0xff] %v9701_v27  ;;  %5789 = vmatprep.mubr.bf16.mxu0 %v1557_v21  ;;  %8481 = vmatprep.mubr.bf16.mxu1 %v1557_v21  ;;  %v1581_v27 = vpack.c.bf16 %v1061_v15, %v1053_v14 }
 0x84b   :  { %v5521_v32 = vpop.f32.mrb[128].mxu0  ;;  %v8213_v33 = vpop.f32.mrb[128].mxu1 }
 0x84c   :  { %v9446_v34 = vadd.f32 %v5521_v32, %v11920_v44  ;;  %v9702_v35 = vadd.f32 %v8213_v33, %v11922_v45  ;;  %v5523_v36 = vpop.f32.mrb[129].mxu0  ;;  %v8215_v37 = vpop.f32.mrb[129].mxu1 }
 0x84d   :  { %v9447_v39 = vadd.f32 %v5523_v36, %v11924_v46  ;;  %v9703_v40 = vadd.f32 %v8215_v37, %v11926_v47  ;;  %v5525_v41 = vpop.f32.mrb[130].mxu0  ;;  %v8217_v42 = vpop.f32.mrb[130].mxu1  ;;  %v1069_v36 = vld [vmem:[#allocation2 + $0x1fb8] sm:$0xff] }
 0x84e   :  { %8788 = vst [vmem:[#allocation8 + $0x800] sm:$0xff] %v9446_v34  ;;  %8790 = vst [vmem:[#allocation8 + $0x810] sm:$0xff] %v9702_v35  ;;  %v9448_v48 = vadd.f32 %v5525_v41, %v11920_v44  ;;  %v9704_v49 = vadd.f32 %v8217_v42, %v11922_v45  ;;  %v5527_v50 = vpop.f32.mrb[131].mxu0  ;;  %v8219_v51 = vpop.f32.mrb[131].mxu1  ;;  %v1052_v34 = vld [vmem:[#allocation2 + $0x1f30] sm:$0xff]  ;;  %v1077_v37 = vld [vmem:[#allocation2 + $0x1ff8] sm:$0xff] }
 0x84f   :  { %8789 = vst [vmem:[#allocation8 + $0x808] sm:$0xff] %v9447_v39  ;;  %8791 = vst [vmem:[#allocation8 + $0x818] sm:$0xff] %v9703_v40  ;;  %v9449_v52 = vadd.f32 %v5527_v50, %v11924_v46  ;;  %v9705_v53 = vadd.f32 %v8219_v51, %v11926_v47  ;;  %v1060_v35 = vld [vmem:[#allocation2 + $0x1f70] sm:$0xff] }
 0x850   :  { %8792 = vst [vmem:[#allocation8 + $0x820] sm:$0xff] %v9448_v48  ;;  %8794 = vst [vmem:[#allocation8 + $0x830] sm:$0xff] %v9704_v49  ;;  %5790 = vmatmul.mubr.bf16.gmra.mrb[236].mxu0 %v1556_v38  ;;  %8482 = vmatmul.mubr.bf16.gmra.mrb[236].mxu1 %v1556_v38  ;;  %v1580_v48 = vpack.c.bf16 %v1060_v35, %v1052_v34 }
 0x851   :  { %8793 = vst [vmem:[#allocation8 + $0x828] sm:$0xff] %v9449_v52  ;;  %8795 = vst [vmem:[#allocation8 + $0x838] sm:$0xff] %v9705_v53  ;;  %5799 = vmatprep.mubr.bf16.mxu0 %v1565_v43  ;;  %8491 = vmatprep.mubr.bf16.mxu1 %v1565_v43  ;;  %v1589_v53 = vpack.c.bf16 %v1077_v37, %v1069_v36 }
 0x853   :  { %v5531_v58 = vpop.f32.mrb[132].mxu0  ;;  %v8223_v59 = vpop.f32.mrb[132].mxu1 }
 0x854   :  { %v9450_v60 = vadd.f32 %v5531_v58, %v11920_v44  ;;  %v9706_v61 = vadd.f32 %v8223_v59, %v11922_v45  ;;  %v5533_v62 = vpop.f32.mrb[133].mxu0  ;;  %v8225_v63 = vpop.f32.mrb[133].mxu1 }
 0x855   :  { %v9451_v1 = vadd.f32 %v5533_v62, %v11924_v46  ;;  %v9707_v2 = vadd.f32 %v8225_v63, %v11926_v47  ;;  %v5535_v3 = vpop.f32.mrb[134].mxu0  ;;  %v8227_v4 = vpop.f32.mrb[134].mxu1 }
 0x856   :  { %8796 = vst [vmem:[#allocation8 + $0x840] sm:$0xff] %v9450_v60  ;;  %8798 = vst [vmem:[#allocation8 + $0x850] sm:$0xff] %v9706_v61  ;;  %v9452_v6 = vadd.f32 %v5535_v3, %v11920_v44  ;;  %v9708_v7 = vadd.f32 %v8227_v4, %v11922_v45  ;;  %v5537_v8 = vpop.f32.mrb[135].mxu0  ;;  %v8229_v9 = vpop.f32.mrb[135].mxu1  ;;  %v1068_v60 = vld [vmem:[#allocation2 + $0x1fb0] sm:$0xff] }
 0x857   :  { %8797 = vst [vmem:[#allocation8 + $0x848] sm:$0xff] %v9451_v1  ;;  %8799 = vst [vmem:[#allocation8 + $0x858] sm:$0xff] %v9707_v2  ;;  %v9453_v10 = vadd.f32 %v5537_v8, %v11924_v46  ;;  %v9709_v11 = vadd.f32 %v8229_v9, %v11926_v47  ;;  %v1076_v61 = vld [vmem:[#allocation2 + $0x1ff0] sm:$0xff] }
 0x858   :  { %8800 = vst [vmem:[#allocation8 + $0x860] sm:$0xff] %v9452_v6  ;;  %8802 = vst [vmem:[#allocation8 + $0x870] sm:$0xff] %v9708_v7  ;;  %5800 = vmatmul.mubr.bf16.gmra.mrb[240].mxu0 %v1564_v0  ;;  %8492 = vmatmul.mubr.bf16.gmra.mrb[240].mxu1 %v1564_v0  ;;  %v1588_v4 = vpack.c.bf16 %v1076_v61, %v1068_v60 }
 0x859   :  { %8801 = vst [vmem:[#allocation8 + $0x868] sm:$0xff] %v9453_v10  ;;  %8803 = vst [vmem:[#allocation8 + $0x878] sm:$0xff] %v9709_v11  ;;  %5809 = vmatprep.mubr.bf16.mxu0 %v1573_v5  ;;  %8501 = vmatprep.mubr.bf16.mxu1 %v1573_v5 }
 0x85b   :  { %v5541_v16 = vpop.f32.mrb[136].mxu0  ;;  %v8233_v17 = vpop.f32.mrb[136].mxu1 }
 0x85c   :  { %v9454_v18 = vadd.f32 %v5541_v16, %v11920_v44  ;;  %v9710_v19 = vadd.f32 %v8233_v17, %v11922_v45  ;;  %v5543_v20 = vpop.f32.mrb[137].mxu0  ;;  %v8235_v21 = vpop.f32.mrb[137].mxu1 }
 0x85d   :  { %v9455_v23 = vadd.f32 %v5543_v20, %v11924_v46  ;;  %v9711_v24 = vadd.f32 %v8235_v21, %v11926_v47  ;;  %v5545_v25 = vpop.f32.mrb[138].mxu0  ;;  %v8237_v26 = vpop.f32.mrb[138].mxu1 }
 0x85e   :  { %8804 = vst [vmem:[#allocation8 + $0x880] sm:$0xff] %v9454_v18  ;;  %8806 = vst [vmem:[#allocation8 + $0x890] sm:$0xff] %v9710_v19  ;;  %v9456_v28 = vadd.f32 %v5545_v25, %v11920_v44  ;;  %v9712_v29 = vadd.f32 %v8237_v26, %v11922_v45  ;;  %v5547_v30 = vpop.f32.mrb[139].mxu0  ;;  %v8239_v31 = vpop.f32.mrb[139].mxu1 }
 0x85f   :  { %8805 = vst [vmem:[#allocation8 + $0x888] sm:$0xff] %v9455_v23  ;;  %8807 = vst [vmem:[#allocation8 + $0x898] sm:$0xff] %v9711_v24  ;;  %v9457_v32 = vadd.f32 %v5547_v30, %v11924_v46  ;;  %v9713_v33 = vadd.f32 %v8239_v31, %v11926_v47 }
 0x860   :  { %8808 = vst [vmem:[#allocation8 + $0x8a0] sm:$0xff] %v9456_v28  ;;  %8810 = vst [vmem:[#allocation8 + $0x8b0] sm:$0xff] %v9712_v29  ;;  %5810 = vmatmul.mubr.bf16.gmra.mrb[244].mxu0 %v1572_v22  ;;  %8502 = vmatmul.mubr.bf16.gmra.mrb[244].mxu1 %v1572_v22 }
 0x861   :  { %8809 = vst [vmem:[#allocation8 + $0x8a8] sm:$0xff] %v9457_v32  ;;  %8811 = vst [vmem:[#allocation8 + $0x8b8] sm:$0xff] %v9713_v33  ;;  %5819 = vmatprep.mubr.bf16.mxu0 %v1581_v27  ;;  %8511 = vmatprep.mubr.bf16.mxu1 %v1581_v27 }
 0x863   :  { %v5551_v38 = vpop.f32.mrb[140].mxu0  ;;  %v8243_v39 = vpop.f32.mrb[140].mxu1 }
 0x864   :  { %v9458_v40 = vadd.f32 %v5551_v38, %v11920_v44  ;;  %v9714_v41 = vadd.f32 %v8243_v39, %v11922_v45  ;;  %v5553_v42 = vpop.f32.mrb[141].mxu0  ;;  %v8245_v43 = vpop.f32.mrb[141].mxu1 }
 0x865   :  { %v9459_v49 = vadd.f32 %v5553_v42, %v11924_v46  ;;  %v9715_v50 = vadd.f32 %v8245_v43, %v11926_v47  ;;  %v5555_v51 = vpop.f32.mrb[142].mxu0  ;;  %v8247_v52 = vpop.f32.mrb[142].mxu1 }
 0x866   :  { %8812 = vst [vmem:[#allocation8 + $0x8c0] sm:$0xff] %v9458_v40  ;;  %8814 = vst [vmem:[#allocation8 + $0x8d0] sm:$0xff] %v9714_v41  ;;  %v9460_v54 = vadd.f32 %v5555_v51, %v11920_v44  ;;  %v9716_v55 = vadd.f32 %v8247_v52, %v11922_v45  ;;  %v5557_v56 = vpop.f32.mrb[143].mxu0  ;;  %v8249_v57 = vpop.f32.mrb[143].mxu1 }
 0x867   :  { %8813 = vst [vmem:[#allocation8 + $0x8c8] sm:$0xff] %v9459_v49  ;;  %8815 = vst [vmem:[#allocation8 + $0x8d8] sm:$0xff] %v9715_v50  ;;  %v9461_v58 = vadd.f32 %v5557_v56, %v11924_v46  ;;  %v9717_v59 = vadd.f32 %v8249_v57, %v11926_v47 }
 0x868   :  { %8816 = vst [vmem:[#allocation8 + $0x8e0] sm:$0xff] %v9460_v54  ;;  %8818 = vst [vmem:[#allocation8 + $0x8f0] sm:$0xff] %v9716_v55  ;;  %5820 = vmatmul.mubr.bf16.gmra.mrb[248].mxu0 %v1580_v48  ;;  %8512 = vmatmul.mubr.bf16.gmra.mrb[248].mxu1 %v1580_v48 }
 0x869   :  { %8817 = vst [vmem:[#allocation8 + $0x8e8] sm:$0xff] %v9461_v58  ;;  %8819 = vst [vmem:[#allocation8 + $0x8f8] sm:$0xff] %v9717_v59  ;;  %5829 = vmatprep.mubr.bf16.mxu0 %v1589_v53  ;;  %8521 = vmatprep.mubr.bf16.mxu1 %v1589_v53 }
 0x86b   :  { %v5561_v62 = vpop.f32.mrb[144].mxu0  ;;  %v8253_v63 = vpop.f32.mrb[144].mxu1 }
 0x86c   :  { %v9462_v0 = vadd.f32 %v5561_v62, %v11920_v44  ;;  %v9718_v1 = vadd.f32 %v8253_v63, %v11922_v45  ;;  %v5563_v2 = vpop.f32.mrb[145].mxu0  ;;  %v8255_v3 = vpop.f32.mrb[145].mxu1 }
 0x86d   :  { %v9463_v5 = vadd.f32 %v5563_v2, %v11924_v46  ;;  %v9719_v6 = vadd.f32 %v8255_v3, %v11926_v47  ;;  %v5565_v7 = vpop.f32.mrb[146].mxu0  ;;  %v8257_v8 = vpop.f32.mrb[146].mxu1 }
 0x86e   :  { %8820 = vst [vmem:[#allocation8 + $0x900] sm:$0xff] %v9462_v0  ;;  %8822 = vst [vmem:[#allocation8 + $0x910] sm:$0xff] %v9718_v1  ;;  %v9464_v9 = vadd.f32 %v5565_v7, %v11920_v44  ;;  %v9720_v10 = vadd.f32 %v8257_v8, %v11922_v45  ;;  %v5567_v11 = vpop.f32.mrb[147].mxu0  ;;  %v8259_v12 = vpop.f32.mrb[147].mxu1 }
 0x86f   :  { %8821 = vst [vmem:[#allocation8 + $0x908] sm:$0xff] %v9463_v5  ;;  %8823 = vst [vmem:[#allocation8 + $0x918] sm:$0xff] %v9719_v6  ;;  %v9465_v13 = vadd.f32 %v5567_v11, %v11924_v46  ;;  %v9721_v14 = vadd.f32 %v8259_v12, %v11926_v47 }
 0x870   :  { %8824 = vst [vmem:[#allocation8 + $0x920] sm:$0xff] %v9464_v9  ;;  %8826 = vst [vmem:[#allocation8 + $0x930] sm:$0xff] %v9720_v10  ;;  %5830 = vmatmul.mubr.bf16.gmra.mrb[252].mxu0 %v1588_v4  ;;  %8522 = vmatmul.mubr.bf16.gmra.mrb[252].mxu1 %v1588_v4 }
 0x871   :  { %8825 = vst [vmem:[#allocation8 + $0x928] sm:$0xff] %v9465_v13  ;;  %8827 = vst [vmem:[#allocation8 + $0x938] sm:$0xff] %v9721_v14 }
 0x873   :  { %v5571_v15 = vpop.f32.mrb[148].mxu0  ;;  %v8263_v16 = vpop.f32.mrb[148].mxu1 }
 0x874   :  { %v9466_v17 = vadd.f32 %v5571_v15, %v11920_v44  ;;  %v9722_v18 = vadd.f32 %v8263_v16, %v11922_v45  ;;  %v5573_v19 = vpop.f32.mrb[149].mxu0  ;;  %v8265_v20 = vpop.f32.mrb[149].mxu1 }
 0x875   :  { %v9467_v21 = vadd.f32 %v5573_v19, %v11924_v46  ;;  %v9723_v22 = vadd.f32 %v8265_v20, %v11926_v47  ;;  %v5575_v23 = vpop.f32.mrb[150].mxu0  ;;  %v8267_v24 = vpop.f32.mrb[150].mxu1 }
 0x876   :  { %8828 = vst [vmem:[#allocation8 + $0x940] sm:$0xff] %v9466_v17  ;;  %8830 = vst [vmem:[#allocation8 + $0x950] sm:$0xff] %v9722_v18  ;;  %v9468_v25 = vadd.f32 %v5575_v23, %v11920_v44  ;;  %v9724_v26 = vadd.f32 %v8267_v24, %v11922_v45  ;;  %v5577_v27 = vpop.f32.mrb[151].mxu0  ;;  %v8269_v28 = vpop.f32.mrb[151].mxu1 }
 0x877   :  { %8829 = vst [vmem:[#allocation8 + $0x948] sm:$0xff] %v9467_v21  ;;  %8831 = vst [vmem:[#allocation8 + $0x958] sm:$0xff] %v9723_v22  ;;  %v9469_v29 = vadd.f32 %v5577_v27, %v11924_v46  ;;  %v9725_v30 = vadd.f32 %v8269_v28, %v11926_v47 }
 0x878   :  { %8832 = vst [vmem:[#allocation8 + $0x960] sm:$0xff] %v9468_v25  ;;  %8834 = vst [vmem:[#allocation8 + $0x970] sm:$0xff] %v9724_v26 }
 0x879   :  { %8833 = vst [vmem:[#allocation8 + $0x968] sm:$0xff] %v9469_v29  ;;  %8835 = vst [vmem:[#allocation8 + $0x978] sm:$0xff] %v9725_v30 }
 0x87b   :  { %v5581_v31 = vpop.f32.mrb[152].mxu0  ;;  %v8273_v32 = vpop.f32.mrb[152].mxu1 }
 0x87c   :  { %v9470_v33 = vadd.f32 %v5581_v31, %v11920_v44  ;;  %v9726_v34 = vadd.f32 %v8273_v32, %v11922_v45  ;;  %v5583_v35 = vpop.f32.mrb[153].mxu0  ;;  %v8275_v36 = vpop.f32.mrb[153].mxu1 }
 0x87d   :  { %v9471_v37 = vadd.f32 %v5583_v35, %v11924_v46  ;;  %v9727_v38 = vadd.f32 %v8275_v36, %v11926_v47  ;;  %v5585_v39 = vpop.f32.mrb[154].mxu0  ;;  %v8277_v40 = vpop.f32.mrb[154].mxu1 }
 0x87e   :  { %8836 = vst [vmem:[#allocation8 + $0x980] sm:$0xff] %v9470_v33  ;;  %8838 = vst [vmem:[#allocation8 + $0x990] sm:$0xff] %v9726_v34  ;;  %v9472_v41 = vadd.f32 %v5585_v39, %v11920_v44  ;;  %v9728_v42 = vadd.f32 %v8277_v40, %v11922_v45  ;;  %v5587_v43 = vpop.f32.mrb[155].mxu0  ;;  %v8279_v48 = vpop.f32.mrb[155].mxu1 }
 0x87f   :  { %8837 = vst [vmem:[#allocation8 + $0x988] sm:$0xff] %v9471_v37  ;;  %8839 = vst [vmem:[#allocation8 + $0x998] sm:$0xff] %v9727_v38  ;;  %v9473_v49 = vadd.f32 %v5587_v43, %v11924_v46  ;;  %v9729_v50 = vadd.f32 %v8279_v48, %v11926_v47 }
 0x880   :  { %8840 = vst [vmem:[#allocation8 + $0x9a0] sm:$0xff] %v9472_v41  ;;  %8842 = vst [vmem:[#allocation8 + $0x9b0] sm:$0xff] %v9728_v42 }
 0x881   :  { %8841 = vst [vmem:[#allocation8 + $0x9a8] sm:$0xff] %v9473_v49  ;;  %8843 = vst [vmem:[#allocation8 + $0x9b8] sm:$0xff] %v9729_v50 }
 0x883   :  { %v5591_v51 = vpop.f32.mrb[156].mxu0  ;;  %v8283_v52 = vpop.f32.mrb[156].mxu1 }
 0x884   :  { %v9474_v53 = vadd.f32 %v5591_v51, %v11920_v44  ;;  %v9730_v54 = vadd.f32 %v8283_v52, %v11922_v45  ;;  %v5593_v55 = vpop.f32.mrb[157].mxu0  ;;  %v8285_v56 = vpop.f32.mrb[157].mxu1 }
 0x885   :  { %v9475_v57 = vadd.f32 %v5593_v55, %v11924_v46  ;;  %v9731_v58 = vadd.f32 %v8285_v56, %v11926_v47  ;;  %v5595_v59 = vpop.f32.mrb[158].mxu0  ;;  %v8287_v60 = vpop.f32.mrb[158].mxu1 }
 0x886   :  { %8844 = vst [vmem:[#allocation8 + $0x9c0] sm:$0xff] %v9474_v53  ;;  %8846 = vst [vmem:[#allocation8 + $0x9d0] sm:$0xff] %v9730_v54  ;;  %v9476_v61 = vadd.f32 %v5595_v59, %v11920_v44  ;;  %v9732_v62 = vadd.f32 %v8287_v60, %v11922_v45  ;;  %v5597_v63 = vpop.f32.mrb[159].mxu0  ;;  %v8289_v0 = vpop.f32.mrb[159].mxu1 }
 0x887   :  { %8845 = vst [vmem:[#allocation8 + $0x9c8] sm:$0xff] %v9475_v57  ;;  %8847 = vst [vmem:[#allocation8 + $0x9d8] sm:$0xff] %v9731_v58  ;;  %v9477_v1 = vadd.f32 %v5597_v63, %v11924_v46  ;;  %v9733_v2 = vadd.f32 %v8289_v0, %v11926_v47 }
 0x888   :  { %8848 = vst [vmem:[#allocation8 + $0x9e0] sm:$0xff] %v9476_v61  ;;  %8850 = vst [vmem:[#allocation8 + $0x9f0] sm:$0xff] %v9732_v62 }
 0x889   :  { %8849 = vst [vmem:[#allocation8 + $0x9e8] sm:$0xff] %v9477_v1  ;;  %8851 = vst [vmem:[#allocation8 + $0x9f8] sm:$0xff] %v9733_v2 }
 0x88b   :  { %v5601_v3 = vpop.f32.mrb[160].mxu0  ;;  %v8293_v4 = vpop.f32.mrb[160].mxu1 }
 0x88c   :  { %v9478_v5 = vadd.f32 %v5601_v3, %v11920_v44  ;;  %v9734_v6 = vadd.f32 %v8293_v4, %v11922_v45  ;;  %v5603_v7 = vpop.f32.mrb[161].mxu0  ;;  %v8295_v8 = vpop.f32.mrb[161].mxu1 }
 0x88d   :  { %v9479_v9 = vadd.f32 %v5603_v7, %v11924_v46  ;;  %v9735_v10 = vadd.f32 %v8295_v8, %v11926_v47  ;;  %v5605_v11 = vpop.f32.mrb[162].mxu0  ;;  %v8297_v12 = vpop.f32.mrb[162].mxu1 }
 0x88e   :  { %8852 = vst [vmem:[#allocation8 + $0xa00] sm:$0xff] %v9478_v5  ;;  %8854 = vst [vmem:[#allocation8 + $0xa10] sm:$0xff] %v9734_v6  ;;  %v9480_v13 = vadd.f32 %v5605_v11, %v11920_v44  ;;  %v9736_v14 = vadd.f32 %v8297_v12, %v11922_v45  ;;  %v5607_v15 = vpop.f32.mrb[163].mxu0  ;;  %v8299_v16 = vpop.f32.mrb[163].mxu1 }
 0x88f   :  { %8853 = vst [vmem:[#allocation8 + $0xa08] sm:$0xff] %v9479_v9  ;;  %8855 = vst [vmem:[#allocation8 + $0xa18] sm:$0xff] %v9735_v10  ;;  %v9481_v17 = vadd.f32 %v5607_v15, %v11924_v46  ;;  %v9737_v18 = vadd.f32 %v8299_v16, %v11926_v47 }
 0x890   :  { %8856 = vst [vmem:[#allocation8 + $0xa20] sm:$0xff] %v9480_v13  ;;  %8858 = vst [vmem:[#allocation8 + $0xa30] sm:$0xff] %v9736_v14 }
 0x891   :  { %8857 = vst [vmem:[#allocation8 + $0xa28] sm:$0xff] %v9481_v17  ;;  %8859 = vst [vmem:[#allocation8 + $0xa38] sm:$0xff] %v9737_v18 }
 0x893   :  { %v5611_v19 = vpop.f32.mrb[164].mxu0  ;;  %v8303_v20 = vpop.f32.mrb[164].mxu1 }
 0x894   :  { %v9482_v21 = vadd.f32 %v5611_v19, %v11920_v44  ;;  %v9738_v22 = vadd.f32 %v8303_v20, %v11922_v45  ;;  %v5613_v23 = vpop.f32.mrb[165].mxu0  ;;  %v8305_v24 = vpop.f32.mrb[165].mxu1 }
 0x895   :  { %v9483_v25 = vadd.f32 %v5613_v23, %v11924_v46  ;;  %v9739_v26 = vadd.f32 %v8305_v24, %v11926_v47  ;;  %v5615_v27 = vpop.f32.mrb[166].mxu0  ;;  %v8307_v28 = vpop.f32.mrb[166].mxu1 }
 0x896   :  { %8860 = vst [vmem:[#allocation8 + $0xa40] sm:$0xff] %v9482_v21  ;;  %8862 = vst [vmem:[#allocation8 + $0xa50] sm:$0xff] %v9738_v22  ;;  %v9484_v29 = vadd.f32 %v5615_v27, %v11920_v44  ;;  %v9740_v30 = vadd.f32 %v8307_v28, %v11922_v45  ;;  %v5617_v31 = vpop.f32.mrb[167].mxu0  ;;  %v8309_v32 = vpop.f32.mrb[167].mxu1 }
 0x897   :  { %8861 = vst [vmem:[#allocation8 + $0xa48] sm:$0xff] %v9483_v25  ;;  %8863 = vst [vmem:[#allocation8 + $0xa58] sm:$0xff] %v9739_v26  ;;  %v9485_v33 = vadd.f32 %v5617_v31, %v11924_v46  ;;  %v9741_v34 = vadd.f32 %v8309_v32, %v11926_v47 }
 0x898   :  { %8864 = vst [vmem:[#allocation8 + $0xa60] sm:$0xff] %v9484_v29  ;;  %8866 = vst [vmem:[#allocation8 + $0xa70] sm:$0xff] %v9740_v30 }
 0x899   :  { %8865 = vst [vmem:[#allocation8 + $0xa68] sm:$0xff] %v9485_v33  ;;  %8867 = vst [vmem:[#allocation8 + $0xa78] sm:$0xff] %v9741_v34 }
 0x89b   :  { %v5621_v35 = vpop.f32.mrb[168].mxu0  ;;  %v8313_v36 = vpop.f32.mrb[168].mxu1 }
 0x89c   :  { %v9486_v37 = vadd.f32 %v5621_v35, %v11920_v44  ;;  %v9742_v38 = vadd.f32 %v8313_v36, %v11922_v45  ;;  %v5623_v39 = vpop.f32.mrb[169].mxu0  ;;  %v8315_v40 = vpop.f32.mrb[169].mxu1 }
 0x89d   :  { %v9487_v41 = vadd.f32 %v5623_v39, %v11924_v46  ;;  %v9743_v42 = vadd.f32 %v8315_v40, %v11926_v47  ;;  %v5625_v43 = vpop.f32.mrb[170].mxu0  ;;  %v8317_v48 = vpop.f32.mrb[170].mxu1 }
 0x89e   :  { %8868 = vst [vmem:[#allocation8 + $0xa80] sm:$0xff] %v9486_v37  ;;  %8870 = vst [vmem:[#allocation8 + $0xa90] sm:$0xff] %v9742_v38  ;;  %v9488_v49 = vadd.f32 %v5625_v43, %v11920_v44  ;;  %v9744_v50 = vadd.f32 %v8317_v48, %v11922_v45  ;;  %v5627_v51 = vpop.f32.mrb[171].mxu0  ;;  %v8319_v52 = vpop.f32.mrb[171].mxu1 }
 0x89f   :  { %8869 = vst [vmem:[#allocation8 + $0xa88] sm:$0xff] %v9487_v41  ;;  %8871 = vst [vmem:[#allocation8 + $0xa98] sm:$0xff] %v9743_v42  ;;  %v9489_v53 = vadd.f32 %v5627_v51, %v11924_v46  ;;  %v9745_v54 = vadd.f32 %v8319_v52, %v11926_v47 }
 0x8a0   :  { %8872 = vst [vmem:[#allocation8 + $0xaa0] sm:$0xff] %v9488_v49  ;;  %8874 = vst [vmem:[#allocation8 + $0xab0] sm:$0xff] %v9744_v50 }
 0x8a1   :  { %8873 = vst [vmem:[#allocation8 + $0xaa8] sm:$0xff] %v9489_v53  ;;  %8875 = vst [vmem:[#allocation8 + $0xab8] sm:$0xff] %v9745_v54 }
 0x8a3   :  { %v5631_v55 = vpop.f32.mrb[172].mxu0  ;;  %v8323_v56 = vpop.f32.mrb[172].mxu1 }
 0x8a4   :  { %v9490_v57 = vadd.f32 %v5631_v55, %v11920_v44  ;;  %v9746_v58 = vadd.f32 %v8323_v56, %v11922_v45  ;;  %v5633_v59 = vpop.f32.mrb[173].mxu0  ;;  %v8325_v60 = vpop.f32.mrb[173].mxu1 }
 0x8a5   :  { %v9491_v61 = vadd.f32 %v5633_v59, %v11924_v46  ;;  %v9747_v62 = vadd.f32 %v8325_v60, %v11926_v47  ;;  %v5635_v63 = vpop.f32.mrb[174].mxu0  ;;  %v8327_v0 = vpop.f32.mrb[174].mxu1 }
 0x8a6   :  { %8876 = vst [vmem:[#allocation8 + $0xac0] sm:$0xff] %v9490_v57  ;;  %8878 = vst [vmem:[#allocation8 + $0xad0] sm:$0xff] %v9746_v58  ;;  %v9492_v1 = vadd.f32 %v5635_v63, %v11920_v44  ;;  %v9748_v2 = vadd.f32 %v8327_v0, %v11922_v45  ;;  %v5637_v3 = vpop.f32.mrb[175].mxu0  ;;  %v8329_v4 = vpop.f32.mrb[175].mxu1 }
 0x8a7   :  { %8877 = vst [vmem:[#allocation8 + $0xac8] sm:$0xff] %v9491_v61  ;;  %8879 = vst [vmem:[#allocation8 + $0xad8] sm:$0xff] %v9747_v62  ;;  %v9493_v5 = vadd.f32 %v5637_v3, %v11924_v46  ;;  %v9749_v6 = vadd.f32 %v8329_v4, %v11926_v47 }
 0x8a8   :  { %8880 = vst [vmem:[#allocation8 + $0xae0] sm:$0xff] %v9492_v1  ;;  %8882 = vst [vmem:[#allocation8 + $0xaf0] sm:$0xff] %v9748_v2 }
 0x8a9   :  { %8881 = vst [vmem:[#allocation8 + $0xae8] sm:$0xff] %v9493_v5  ;;  %8883 = vst [vmem:[#allocation8 + $0xaf8] sm:$0xff] %v9749_v6 }
 0x8ab   :  { %v5641_v7 = vpop.f32.mrb[176].mxu0  ;;  %v8333_v8 = vpop.f32.mrb[176].mxu1 }
 0x8ac   :  { %v9494_v9 = vadd.f32 %v5641_v7, %v11920_v44  ;;  %v9750_v10 = vadd.f32 %v8333_v8, %v11922_v45  ;;  %v5643_v11 = vpop.f32.mrb[177].mxu0  ;;  %v8335_v12 = vpop.f32.mrb[177].mxu1 }
 0x8ad   :  { %v9495_v13 = vadd.f32 %v5643_v11, %v11924_v46  ;;  %v9751_v14 = vadd.f32 %v8335_v12, %v11926_v47  ;;  %v5645_v15 = vpop.f32.mrb[178].mxu0  ;;  %v8337_v16 = vpop.f32.mrb[178].mxu1 }
 0x8ae   :  { %8884 = vst [vmem:[#allocation8 + $0xb00] sm:$0xff] %v9494_v9  ;;  %8886 = vst [vmem:[#allocation8 + $0xb10] sm:$0xff] %v9750_v10  ;;  %v9496_v17 = vadd.f32 %v5645_v15, %v11920_v44  ;;  %v9752_v18 = vadd.f32 %v8337_v16, %v11922_v45  ;;  %v5647_v19 = vpop.f32.mrb[179].mxu0  ;;  %v8339_v20 = vpop.f32.mrb[179].mxu1 }
 0x8af   :  { %8885 = vst [vmem:[#allocation8 + $0xb08] sm:$0xff] %v9495_v13  ;;  %8887 = vst [vmem:[#allocation8 + $0xb18] sm:$0xff] %v9751_v14  ;;  %v9497_v21 = vadd.f32 %v5647_v19, %v11924_v46  ;;  %v9753_v22 = vadd.f32 %v8339_v20, %v11926_v47 }
 0x8b0   :  { %8888 = vst [vmem:[#allocation8 + $0xb20] sm:$0xff] %v9496_v17  ;;  %8890 = vst [vmem:[#allocation8 + $0xb30] sm:$0xff] %v9752_v18 }
 0x8b1   :  { %8889 = vst [vmem:[#allocation8 + $0xb28] sm:$0xff] %v9497_v21  ;;  %8891 = vst [vmem:[#allocation8 + $0xb38] sm:$0xff] %v9753_v22 }
 0x8b3   :  { %v5651_v23 = vpop.f32.mrb[180].mxu0  ;;  %v8343_v24 = vpop.f32.mrb[180].mxu1 }
 0x8b4   :  { %v9498_v25 = vadd.f32 %v5651_v23, %v11920_v44  ;;  %v9754_v26 = vadd.f32 %v8343_v24, %v11922_v45  ;;  %v5653_v27 = vpop.f32.mrb[181].mxu0  ;;  %v8345_v28 = vpop.f32.mrb[181].mxu1 }
 0x8b5   :  { %v9499_v29 = vadd.f32 %v5653_v27, %v11924_v46  ;;  %v9755_v30 = vadd.f32 %v8345_v28, %v11926_v47  ;;  %v5655_v31 = vpop.f32.mrb[182].mxu0  ;;  %v8347_v32 = vpop.f32.mrb[182].mxu1 }
 0x8b6   :  { %8892 = vst [vmem:[#allocation8 + $0xb40] sm:$0xff] %v9498_v25  ;;  %8894 = vst [vmem:[#allocation8 + $0xb50] sm:$0xff] %v9754_v26  ;;  %v9500_v33 = vadd.f32 %v5655_v31, %v11920_v44  ;;  %v9756_v34 = vadd.f32 %v8347_v32, %v11922_v45  ;;  %v5657_v35 = vpop.f32.mrb[183].mxu0  ;;  %v8349_v36 = vpop.f32.mrb[183].mxu1 }
 0x8b7   :  { %8893 = vst [vmem:[#allocation8 + $0xb48] sm:$0xff] %v9499_v29  ;;  %8895 = vst [vmem:[#allocation8 + $0xb58] sm:$0xff] %v9755_v30  ;;  %v9501_v37 = vadd.f32 %v5657_v35, %v11924_v46  ;;  %v9757_v38 = vadd.f32 %v8349_v36, %v11926_v47 }
 0x8b8   :  { %8896 = vst [vmem:[#allocation8 + $0xb60] sm:$0xff] %v9500_v33  ;;  %8898 = vst [vmem:[#allocation8 + $0xb70] sm:$0xff] %v9756_v34 }
 0x8b9   :  { %8897 = vst [vmem:[#allocation8 + $0xb68] sm:$0xff] %v9501_v37  ;;  %8899 = vst [vmem:[#allocation8 + $0xb78] sm:$0xff] %v9757_v38 }
 0x8bb   :  { %v5661_v39 = vpop.f32.mrb[184].mxu0  ;;  %v8353_v40 = vpop.f32.mrb[184].mxu1 }
 0x8bc   :  { %v9502_v41 = vadd.f32 %v5661_v39, %v11920_v44  ;;  %v9758_v42 = vadd.f32 %v8353_v40, %v11922_v45  ;;  %v5663_v43 = vpop.f32.mrb[185].mxu0  ;;  %v8355_v48 = vpop.f32.mrb[185].mxu1 }
 0x8bd   :  { %v9503_v49 = vadd.f32 %v5663_v43, %v11924_v46  ;;  %v9759_v50 = vadd.f32 %v8355_v48, %v11926_v47  ;;  %v5665_v51 = vpop.f32.mrb[186].mxu0  ;;  %v8357_v52 = vpop.f32.mrb[186].mxu1 }
 0x8be   :  { %8900 = vst [vmem:[#allocation8 + $0xb80] sm:$0xff] %v9502_v41  ;;  %8902 = vst [vmem:[#allocation8 + $0xb90] sm:$0xff] %v9758_v42  ;;  %v9504_v53 = vadd.f32 %v5665_v51, %v11920_v44  ;;  %v9760_v54 = vadd.f32 %v8357_v52, %v11922_v45  ;;  %v5667_v55 = vpop.f32.mrb[187].mxu0  ;;  %v8359_v56 = vpop.f32.mrb[187].mxu1 }
 0x8bf   :  { %8901 = vst [vmem:[#allocation8 + $0xb88] sm:$0xff] %v9503_v49  ;;  %8903 = vst [vmem:[#allocation8 + $0xb98] sm:$0xff] %v9759_v50  ;;  %v9505_v57 = vadd.f32 %v5667_v55, %v11924_v46  ;;  %v9761_v58 = vadd.f32 %v8359_v56, %v11926_v47 }
 0x8c0   :  { %8904 = vst [vmem:[#allocation8 + $0xba0] sm:$0xff] %v9504_v53  ;;  %8906 = vst [vmem:[#allocation8 + $0xbb0] sm:$0xff] %v9760_v54 }
 0x8c1   :  { %8905 = vst [vmem:[#allocation8 + $0xba8] sm:$0xff] %v9505_v57  ;;  %8907 = vst [vmem:[#allocation8 + $0xbb8] sm:$0xff] %v9761_v58 }
 0x8c3   :  { %v5671_v59 = vpop.f32.mrb[188].mxu0  ;;  %v8363_v60 = vpop.f32.mrb[188].mxu1 }
 0x8c4   :  { %v9506_v61 = vadd.f32 %v5671_v59, %v11920_v44  ;;  %v9762_v62 = vadd.f32 %v8363_v60, %v11922_v45  ;;  %v5673_v63 = vpop.f32.mrb[189].mxu0  ;;  %v8365_v0 = vpop.f32.mrb[189].mxu1 }
 0x8c5   :  { %v9507_v1 = vadd.f32 %v5673_v63, %v11924_v46  ;;  %v9763_v2 = vadd.f32 %v8365_v0, %v11926_v47  ;;  %v5675_v3 = vpop.f32.mrb[190].mxu0  ;;  %v8367_v4 = vpop.f32.mrb[190].mxu1 }
 0x8c6   :  { %8908 = vst [vmem:[#allocation8 + $0xbc0] sm:$0xff] %v9506_v61  ;;  %8910 = vst [vmem:[#allocation8 + $0xbd0] sm:$0xff] %v9762_v62  ;;  %v9508_v5 = vadd.f32 %v5675_v3, %v11920_v44  ;;  %v9764_v6 = vadd.f32 %v8367_v4, %v11922_v45  ;;  %v5677_v7 = vpop.f32.mrb[191].mxu0  ;;  %v8369_v8 = vpop.f32.mrb[191].mxu1 }
 0x8c7   :  { %8909 = vst [vmem:[#allocation8 + $0xbc8] sm:$0xff] %v9507_v1  ;;  %8911 = vst [vmem:[#allocation8 + $0xbd8] sm:$0xff] %v9763_v2  ;;  %v9509_v9 = vadd.f32 %v5677_v7, %v11924_v46  ;;  %v9765_v10 = vadd.f32 %v8369_v8, %v11926_v47 }
 0x8c8   :  { %8912 = vst [vmem:[#allocation8 + $0xbe0] sm:$0xff] %v9508_v5  ;;  %8914 = vst [vmem:[#allocation8 + $0xbf0] sm:$0xff] %v9764_v6 }
 0x8c9   :  { %8913 = vst [vmem:[#allocation8 + $0xbe8] sm:$0xff] %v9509_v9  ;;  %8915 = vst [vmem:[#allocation8 + $0xbf8] sm:$0xff] %v9765_v10 }
 0x8cb   :  { %v5681_v11 = vpop.f32.mrb[192].mxu0  ;;  %v8373_v12 = vpop.f32.mrb[192].mxu1 }
 0x8cc   :  { %v9510_v13 = vadd.f32 %v5681_v11, %v11920_v44  ;;  %v9766_v14 = vadd.f32 %v8373_v12, %v11922_v45  ;;  %v5683_v15 = vpop.f32.mrb[193].mxu0  ;;  %v8375_v16 = vpop.f32.mrb[193].mxu1 }
 0x8cd   :  { %v9511_v17 = vadd.f32 %v5683_v15, %v11924_v46  ;;  %v9767_v18 = vadd.f32 %v8375_v16, %v11926_v47  ;;  %v5685_v19 = vpop.f32.mrb[194].mxu0  ;;  %v8377_v20 = vpop.f32.mrb[194].mxu1 }
 0x8ce   :  { %8916 = vst [vmem:[#allocation8 + $0xc00] sm:$0xff] %v9510_v13  ;;  %8918 = vst [vmem:[#allocation8 + $0xc10] sm:$0xff] %v9766_v14  ;;  %v9512_v21 = vadd.f32 %v5685_v19, %v11920_v44  ;;  %v9768_v22 = vadd.f32 %v8377_v20, %v11922_v45  ;;  %v5687_v23 = vpop.f32.mrb[195].mxu0  ;;  %v8379_v24 = vpop.f32.mrb[195].mxu1 }
 0x8cf   :  { %8917 = vst [vmem:[#allocation8 + $0xc08] sm:$0xff] %v9511_v17  ;;  %8919 = vst [vmem:[#allocation8 + $0xc18] sm:$0xff] %v9767_v18  ;;  %v9513_v25 = vadd.f32 %v5687_v23, %v11924_v46  ;;  %v9769_v26 = vadd.f32 %v8379_v24, %v11926_v47 }
 0x8d0   :  { %8920 = vst [vmem:[#allocation8 + $0xc20] sm:$0xff] %v9512_v21  ;;  %8922 = vst [vmem:[#allocation8 + $0xc30] sm:$0xff] %v9768_v22 }
 0x8d1   :  { %8921 = vst [vmem:[#allocation8 + $0xc28] sm:$0xff] %v9513_v25  ;;  %8923 = vst [vmem:[#allocation8 + $0xc38] sm:$0xff] %v9769_v26 }
 0x8d3   :  { %v5691_v27 = vpop.f32.mrb[196].mxu0  ;;  %v8383_v28 = vpop.f32.mrb[196].mxu1 }
 0x8d4   :  { %v9514_v29 = vadd.f32 %v5691_v27, %v11920_v44  ;;  %v9770_v30 = vadd.f32 %v8383_v28, %v11922_v45  ;;  %v5693_v31 = vpop.f32.mrb[197].mxu0  ;;  %v8385_v32 = vpop.f32.mrb[197].mxu1 }
 0x8d5   :  { %v9515_v33 = vadd.f32 %v5693_v31, %v11924_v46  ;;  %v9771_v34 = vadd.f32 %v8385_v32, %v11926_v47  ;;  %v5695_v35 = vpop.f32.mrb[198].mxu0  ;;  %v8387_v36 = vpop.f32.mrb[198].mxu1 }
 0x8d6   :  { %8924 = vst [vmem:[#allocation8 + $0xc40] sm:$0xff] %v9514_v29  ;;  %8926 = vst [vmem:[#allocation8 + $0xc50] sm:$0xff] %v9770_v30  ;;  %v9516_v37 = vadd.f32 %v5695_v35, %v11920_v44  ;;  %v9772_v38 = vadd.f32 %v8387_v36, %v11922_v45  ;;  %v5697_v39 = vpop.f32.mrb[199].mxu0  ;;  %v8389_v40 = vpop.f32.mrb[199].mxu1 }
 0x8d7   :  { %8925 = vst [vmem:[#allocation8 + $0xc48] sm:$0xff] %v9515_v33  ;;  %8927 = vst [vmem:[#allocation8 + $0xc58] sm:$0xff] %v9771_v34  ;;  %v9517_v41 = vadd.f32 %v5697_v39, %v11924_v46  ;;  %v9773_v42 = vadd.f32 %v8389_v40, %v11926_v47 }
 0x8d8   :  { %8928 = vst [vmem:[#allocation8 + $0xc60] sm:$0xff] %v9516_v37  ;;  %8930 = vst [vmem:[#allocation8 + $0xc70] sm:$0xff] %v9772_v38 }
 0x8d9   :  { %8929 = vst [vmem:[#allocation8 + $0xc68] sm:$0xff] %v9517_v41  ;;  %8931 = vst [vmem:[#allocation8 + $0xc78] sm:$0xff] %v9773_v42 }
 0x8db   :  { %v5701_v43 = vpop.f32.mrb[200].mxu0  ;;  %v8393_v48 = vpop.f32.mrb[200].mxu1 }
 0x8dc   :  { %v9518_v49 = vadd.f32 %v5701_v43, %v11920_v44  ;;  %v9774_v50 = vadd.f32 %v8393_v48, %v11922_v45  ;;  %v5703_v51 = vpop.f32.mrb[201].mxu0  ;;  %v8395_v52 = vpop.f32.mrb[201].mxu1 }
 0x8dd   :  { %v9519_v53 = vadd.f32 %v5703_v51, %v11924_v46  ;;  %v9775_v54 = vadd.f32 %v8395_v52, %v11926_v47  ;;  %v5705_v55 = vpop.f32.mrb[202].mxu0  ;;  %v8397_v56 = vpop.f32.mrb[202].mxu1 }
 0x8de   :  { %8932 = vst [vmem:[#allocation8 + $0xc80] sm:$0xff] %v9518_v49  ;;  %8934 = vst [vmem:[#allocation8 + $0xc90] sm:$0xff] %v9774_v50  ;;  %v9520_v57 = vadd.f32 %v5705_v55, %v11920_v44  ;;  %v9776_v58 = vadd.f32 %v8397_v56, %v11922_v45  ;;  %v5707_v59 = vpop.f32.mrb[203].mxu0  ;;  %v8399_v60 = vpop.f32.mrb[203].mxu1 }
 0x8df   :  { %8933 = vst [vmem:[#allocation8 + $0xc88] sm:$0xff] %v9519_v53  ;;  %8935 = vst [vmem:[#allocation8 + $0xc98] sm:$0xff] %v9775_v54  ;;  %v9521_v61 = vadd.f32 %v5707_v59, %v11924_v46  ;;  %v9777_v62 = vadd.f32 %v8399_v60, %v11926_v47 }
 0x8e0   :  { %8936 = vst [vmem:[#allocation8 + $0xca0] sm:$0xff] %v9520_v57  ;;  %8938 = vst [vmem:[#allocation8 + $0xcb0] sm:$0xff] %v9776_v58 }
 0x8e1   :  { %8937 = vst [vmem:[#allocation8 + $0xca8] sm:$0xff] %v9521_v61  ;;  %8939 = vst [vmem:[#allocation8 + $0xcb8] sm:$0xff] %v9777_v62 }
 0x8e3   :  { %v5711_v63 = vpop.f32.mrb[204].mxu0  ;;  %v8403_v0 = vpop.f32.mrb[204].mxu1 }
 0x8e4   :  { %v9522_v1 = vadd.f32 %v5711_v63, %v11920_v44  ;;  %v9778_v2 = vadd.f32 %v8403_v0, %v11922_v45  ;;  %v5713_v3 = vpop.f32.mrb[205].mxu0  ;;  %v8405_v4 = vpop.f32.mrb[205].mxu1 }
 0x8e5   :  { %v9523_v5 = vadd.f32 %v5713_v3, %v11924_v46  ;;  %v9779_v6 = vadd.f32 %v8405_v4, %v11926_v47  ;;  %v5715_v7 = vpop.f32.mrb[206].mxu0  ;;  %v8407_v8 = vpop.f32.mrb[206].mxu1 }
 0x8e6   :  { %8940 = vst [vmem:[#allocation8 + $0xcc0] sm:$0xff] %v9522_v1  ;;  %8942 = vst [vmem:[#allocation8 + $0xcd0] sm:$0xff] %v9778_v2  ;;  %v9524_v9 = vadd.f32 %v5715_v7, %v11920_v44  ;;  %v9780_v10 = vadd.f32 %v8407_v8, %v11922_v45  ;;  %v5717_v11 = vpop.f32.mrb[207].mxu0  ;;  %v8409_v12 = vpop.f32.mrb[207].mxu1 }
 0x8e7   :  { %8941 = vst [vmem:[#allocation8 + $0xcc8] sm:$0xff] %v9523_v5  ;;  %8943 = vst [vmem:[#allocation8 + $0xcd8] sm:$0xff] %v9779_v6  ;;  %v9525_v13 = vadd.f32 %v5717_v11, %v11924_v46  ;;  %v9781_v14 = vadd.f32 %v8409_v12, %v11926_v47 }
 0x8e8   :  { %8944 = vst [vmem:[#allocation8 + $0xce0] sm:$0xff] %v9524_v9  ;;  %8946 = vst [vmem:[#allocation8 + $0xcf0] sm:$0xff] %v9780_v10 }
 0x8e9   :  { %8945 = vst [vmem:[#allocation8 + $0xce8] sm:$0xff] %v9525_v13  ;;  %8947 = vst [vmem:[#allocation8 + $0xcf8] sm:$0xff] %v9781_v14 }
 0x8eb   :  { %v5721_v15 = vpop.f32.mrb[208].mxu0  ;;  %v8413_v16 = vpop.f32.mrb[208].mxu1 }
 0x8ec   :  { %v9526_v17 = vadd.f32 %v5721_v15, %v11920_v44  ;;  %v9782_v18 = vadd.f32 %v8413_v16, %v11922_v45  ;;  %v5723_v19 = vpop.f32.mrb[209].mxu0  ;;  %v8415_v20 = vpop.f32.mrb[209].mxu1 }
 0x8ed   :  { %v9527_v21 = vadd.f32 %v5723_v19, %v11924_v46  ;;  %v9783_v22 = vadd.f32 %v8415_v20, %v11926_v47  ;;  %v5725_v23 = vpop.f32.mrb[210].mxu0  ;;  %v8417_v24 = vpop.f32.mrb[210].mxu1 }
 0x8ee   :  { %8948 = vst [vmem:[#allocation8 + $0xd00] sm:$0xff] %v9526_v17  ;;  %8950 = vst [vmem:[#allocation8 + $0xd10] sm:$0xff] %v9782_v18  ;;  %v9528_v25 = vadd.f32 %v5725_v23, %v11920_v44  ;;  %v9784_v26 = vadd.f32 %v8417_v24, %v11922_v45  ;;  %v5727_v27 = vpop.f32.mrb[211].mxu0  ;;  %v8419_v28 = vpop.f32.mrb[211].mxu1 }
 0x8ef   :  { %8949 = vst [vmem:[#allocation8 + $0xd08] sm:$0xff] %v9527_v21  ;;  %8951 = vst [vmem:[#allocation8 + $0xd18] sm:$0xff] %v9783_v22  ;;  %v9529_v29 = vadd.f32 %v5727_v27, %v11924_v46  ;;  %v9785_v30 = vadd.f32 %v8419_v28, %v11926_v47 }
 0x8f0   :  { %8952 = vst [vmem:[#allocation8 + $0xd20] sm:$0xff] %v9528_v25  ;;  %8954 = vst [vmem:[#allocation8 + $0xd30] sm:$0xff] %v9784_v26 }
 0x8f1   :  { %8953 = vst [vmem:[#allocation8 + $0xd28] sm:$0xff] %v9529_v29  ;;  %8955 = vst [vmem:[#allocation8 + $0xd38] sm:$0xff] %v9785_v30 }
 0x8f3   :  { %v5731_v31 = vpop.f32.mrb[212].mxu0  ;;  %v8423_v32 = vpop.f32.mrb[212].mxu1 }
 0x8f4   :  { %v9530_v33 = vadd.f32 %v5731_v31, %v11920_v44  ;;  %v9786_v34 = vadd.f32 %v8423_v32, %v11922_v45  ;;  %v5733_v35 = vpop.f32.mrb[213].mxu0  ;;  %v8425_v36 = vpop.f32.mrb[213].mxu1 }
 0x8f5   :  { %v9531_v37 = vadd.f32 %v5733_v35, %v11924_v46  ;;  %v9787_v38 = vadd.f32 %v8425_v36, %v11926_v47  ;;  %v5735_v39 = vpop.f32.mrb[214].mxu0  ;;  %v8427_v40 = vpop.f32.mrb[214].mxu1 }
 0x8f6   :  { %8956 = vst [vmem:[#allocation8 + $0xd40] sm:$0xff] %v9530_v33  ;;  %8958 = vst [vmem:[#allocation8 + $0xd50] sm:$0xff] %v9786_v34  ;;  %v9532_v41 = vadd.f32 %v5735_v39, %v11920_v44  ;;  %v9788_v42 = vadd.f32 %v8427_v40, %v11922_v45  ;;  %v5737_v43 = vpop.f32.mrb[215].mxu0  ;;  %v8429_v48 = vpop.f32.mrb[215].mxu1 }
 0x8f7   :  { %8957 = vst [vmem:[#allocation8 + $0xd48] sm:$0xff] %v9531_v37  ;;  %8959 = vst [vmem:[#allocation8 + $0xd58] sm:$0xff] %v9787_v38  ;;  %v9533_v49 = vadd.f32 %v5737_v43, %v11924_v46  ;;  %v9789_v50 = vadd.f32 %v8429_v48, %v11926_v47 }
 0x8f8   :  { %8960 = vst [vmem:[#allocation8 + $0xd60] sm:$0xff] %v9532_v41  ;;  %8962 = vst [vmem:[#allocation8 + $0xd70] sm:$0xff] %v9788_v42 }
 0x8f9   :  { %8961 = vst [vmem:[#allocation8 + $0xd68] sm:$0xff] %v9533_v49  ;;  %8963 = vst [vmem:[#allocation8 + $0xd78] sm:$0xff] %v9789_v50 }
 0x8fb   :  { %v5741_v51 = vpop.f32.mrb[216].mxu0  ;;  %v8433_v52 = vpop.f32.mrb[216].mxu1 }
 0x8fc   :  { %v9534_v53 = vadd.f32 %v5741_v51, %v11920_v44  ;;  %v9790_v54 = vadd.f32 %v8433_v52, %v11922_v45  ;;  %v5743_v55 = vpop.f32.mrb[217].mxu0  ;;  %v8435_v56 = vpop.f32.mrb[217].mxu1 }
 0x8fd   :  { %v9535_v57 = vadd.f32 %v5743_v55, %v11924_v46  ;;  %v9791_v58 = vadd.f32 %v8435_v56, %v11926_v47  ;;  %v5745_v59 = vpop.f32.mrb[218].mxu0  ;;  %v8437_v60 = vpop.f32.mrb[218].mxu1 }
 0x8fe   :  { %8964 = vst [vmem:[#allocation8 + $0xd80] sm:$0xff] %v9534_v53  ;;  %8966 = vst [vmem:[#allocation8 + $0xd90] sm:$0xff] %v9790_v54  ;;  %v9536_v61 = vadd.f32 %v5745_v59, %v11920_v44  ;;  %v9792_v62 = vadd.f32 %v8437_v60, %v11922_v45  ;;  %v5747_v63 = vpop.f32.mrb[219].mxu0  ;;  %v8439_v0 = vpop.f32.mrb[219].mxu1 }
 0x8ff   :  { %8965 = vst [vmem:[#allocation8 + $0xd88] sm:$0xff] %v9535_v57  ;;  %8967 = vst [vmem:[#allocation8 + $0xd98] sm:$0xff] %v9791_v58  ;;  %v9537_v1 = vadd.f32 %v5747_v63, %v11924_v46  ;;  %v9793_v2 = vadd.f32 %v8439_v0, %v11926_v47 }
 0x900   :  { %8968 = vst [vmem:[#allocation8 + $0xda0] sm:$0xff] %v9536_v61  ;;  %8970 = vst [vmem:[#allocation8 + $0xdb0] sm:$0xff] %v9792_v62 }
 0x901   :  { %8969 = vst [vmem:[#allocation8 + $0xda8] sm:$0xff] %v9537_v1  ;;  %8971 = vst [vmem:[#allocation8 + $0xdb8] sm:$0xff] %v9793_v2 }
 0x903   :  { %v5751_v3 = vpop.f32.mrb[220].mxu0  ;;  %v8443_v4 = vpop.f32.mrb[220].mxu1 }
 0x904   :  { %v9538_v5 = vadd.f32 %v5751_v3, %v11920_v44  ;;  %v9794_v6 = vadd.f32 %v8443_v4, %v11922_v45  ;;  %v5753_v7 = vpop.f32.mrb[221].mxu0  ;;  %v8445_v8 = vpop.f32.mrb[221].mxu1 }
 0x905   :  { %v9539_v9 = vadd.f32 %v5753_v7, %v11924_v46  ;;  %v9795_v10 = vadd.f32 %v8445_v8, %v11926_v47  ;;  %v5755_v11 = vpop.f32.mrb[222].mxu0  ;;  %v8447_v12 = vpop.f32.mrb[222].mxu1 }
 0x906   :  { %8972 = vst [vmem:[#allocation8 + $0xdc0] sm:$0xff] %v9538_v5  ;;  %8974 = vst [vmem:[#allocation8 + $0xdd0] sm:$0xff] %v9794_v6  ;;  %v9540_v13 = vadd.f32 %v5755_v11, %v11920_v44  ;;  %v9796_v14 = vadd.f32 %v8447_v12, %v11922_v45  ;;  %v5757_v15 = vpop.f32.mrb[223].mxu0  ;;  %v8449_v16 = vpop.f32.mrb[223].mxu1 }
 0x907   :  { %8973 = vst [vmem:[#allocation8 + $0xdc8] sm:$0xff] %v9539_v9  ;;  %8975 = vst [vmem:[#allocation8 + $0xdd8] sm:$0xff] %v9795_v10  ;;  %v9541_v17 = vadd.f32 %v5757_v15, %v11924_v46  ;;  %v9797_v18 = vadd.f32 %v8449_v16, %v11926_v47 }
 0x908   :  { %8976 = vst [vmem:[#allocation8 + $0xde0] sm:$0xff] %v9540_v13  ;;  %8978 = vst [vmem:[#allocation8 + $0xdf0] sm:$0xff] %v9796_v14 }
 0x909   :  { %8977 = vst [vmem:[#allocation8 + $0xde8] sm:$0xff] %v9541_v17  ;;  %8979 = vst [vmem:[#allocation8 + $0xdf8] sm:$0xff] %v9797_v18 }
 0x90b   :  { %v5761_v19 = vpop.f32.mrb[224].mxu0  ;;  %v8453_v20 = vpop.f32.mrb[224].mxu1 }
 0x90c   :  { %v9542_v21 = vadd.f32 %v5761_v19, %v11920_v44  ;;  %v9798_v22 = vadd.f32 %v8453_v20, %v11922_v45  ;;  %v5763_v23 = vpop.f32.mrb[225].mxu0  ;;  %v8455_v24 = vpop.f32.mrb[225].mxu1 }
 0x90d   :  { %v9543_v25 = vadd.f32 %v5763_v23, %v11924_v46  ;;  %v9799_v26 = vadd.f32 %v8455_v24, %v11926_v47  ;;  %v5765_v27 = vpop.f32.mrb[226].mxu0  ;;  %v8457_v28 = vpop.f32.mrb[226].mxu1 }
 0x90e   :  { %8980 = vst [vmem:[#allocation8 + $0xe00] sm:$0xff] %v9542_v21  ;;  %8982 = vst [vmem:[#allocation8 + $0xe10] sm:$0xff] %v9798_v22  ;;  %v9544_v29 = vadd.f32 %v5765_v27, %v11920_v44  ;;  %v9800_v30 = vadd.f32 %v8457_v28, %v11922_v45  ;;  %v5767_v31 = vpop.f32.mrb[227].mxu0  ;;  %v8459_v32 = vpop.f32.mrb[227].mxu1 }
 0x90f   :  { %8981 = vst [vmem:[#allocation8 + $0xe08] sm:$0xff] %v9543_v25  ;;  %8983 = vst [vmem:[#allocation8 + $0xe18] sm:$0xff] %v9799_v26  ;;  %v9545_v33 = vadd.f32 %v5767_v31, %v11924_v46  ;;  %v9801_v34 = vadd.f32 %v8459_v32, %v11926_v47 }
 0x910   :  { %8984 = vst [vmem:[#allocation8 + $0xe20] sm:$0xff] %v9544_v29  ;;  %8986 = vst [vmem:[#allocation8 + $0xe30] sm:$0xff] %v9800_v30 }
 0x911   :  { %8985 = vst [vmem:[#allocation8 + $0xe28] sm:$0xff] %v9545_v33  ;;  %8987 = vst [vmem:[#allocation8 + $0xe38] sm:$0xff] %v9801_v34 }
 0x913   :  { %v5771_v35 = vpop.f32.mrb[228].mxu0  ;;  %v8463_v36 = vpop.f32.mrb[228].mxu1 }
 0x914   :  { %v9546_v37 = vadd.f32 %v5771_v35, %v11920_v44  ;;  %v9802_v38 = vadd.f32 %v8463_v36, %v11922_v45  ;;  %v5773_v39 = vpop.f32.mrb[229].mxu0  ;;  %v8465_v40 = vpop.f32.mrb[229].mxu1 }
 0x915   :  { %v9547_v41 = vadd.f32 %v5773_v39, %v11924_v46  ;;  %v9803_v42 = vadd.f32 %v8465_v40, %v11926_v47  ;;  %v5775_v43 = vpop.f32.mrb[230].mxu0  ;;  %v8467_v48 = vpop.f32.mrb[230].mxu1 }
 0x916   :  { %8988 = vst [vmem:[#allocation8 + $0xe40] sm:$0xff] %v9546_v37  ;;  %8990 = vst [vmem:[#allocation8 + $0xe50] sm:$0xff] %v9802_v38  ;;  %v9548_v49 = vadd.f32 %v5775_v43, %v11920_v44  ;;  %v9804_v50 = vadd.f32 %v8467_v48, %v11922_v45  ;;  %v5777_v51 = vpop.f32.mrb[231].mxu0  ;;  %v8469_v52 = vpop.f32.mrb[231].mxu1 }
 0x917   :  { %8989 = vst [vmem:[#allocation8 + $0xe48] sm:$0xff] %v9547_v41  ;;  %8991 = vst [vmem:[#allocation8 + $0xe58] sm:$0xff] %v9803_v42  ;;  %v9549_v53 = vadd.f32 %v5777_v51, %v11924_v46  ;;  %v9805_v54 = vadd.f32 %v8469_v52, %v11926_v47 }
 0x918   :  { %8992 = vst [vmem:[#allocation8 + $0xe60] sm:$0xff] %v9548_v49  ;;  %8994 = vst [vmem:[#allocation8 + $0xe70] sm:$0xff] %v9804_v50 }
 0x919   :  { %8993 = vst [vmem:[#allocation8 + $0xe68] sm:$0xff] %v9549_v53  ;;  %8995 = vst [vmem:[#allocation8 + $0xe78] sm:$0xff] %v9805_v54 }
 0x91b   :  { %v5781_v55 = vpop.f32.mrb[232].mxu0  ;;  %v8473_v56 = vpop.f32.mrb[232].mxu1 }
 0x91c   :  { %v9550_v57 = vadd.f32 %v5781_v55, %v11920_v44  ;;  %v9806_v58 = vadd.f32 %v8473_v56, %v11922_v45  ;;  %v5783_v59 = vpop.f32.mrb[233].mxu0  ;;  %v8475_v60 = vpop.f32.mrb[233].mxu1 }
 0x91d   :  { %v9551_v61 = vadd.f32 %v5783_v59, %v11924_v46  ;;  %v9807_v62 = vadd.f32 %v8475_v60, %v11926_v47  ;;  %v5785_v63 = vpop.f32.mrb[234].mxu0  ;;  %v8477_v0 = vpop.f32.mrb[234].mxu1 }
 0x91e   :  { %8996 = vst [vmem:[#allocation8 + $0xe80] sm:$0xff] %v9550_v57  ;;  %8998 = vst [vmem:[#allocation8 + $0xe90] sm:$0xff] %v9806_v58  ;;  %v9552_v1 = vadd.f32 %v5785_v63, %v11920_v44  ;;  %v9808_v2 = vadd.f32 %v8477_v0, %v11922_v45  ;;  %v5787_v3 = vpop.f32.mrb[235].mxu0  ;;  %v8479_v4 = vpop.f32.mrb[235].mxu1 }
 0x91f   :  { %8997 = vst [vmem:[#allocation8 + $0xe88] sm:$0xff] %v9551_v61  ;;  %8999 = vst [vmem:[#allocation8 + $0xe98] sm:$0xff] %v9807_v62  ;;  %v9553_v5 = vadd.f32 %v5787_v3, %v11924_v46  ;;  %v9809_v6 = vadd.f32 %v8479_v4, %v11926_v47 }
 0x920   :  { %9000 = vst [vmem:[#allocation8 + $0xea0] sm:$0xff] %v9552_v1  ;;  %9002 = vst [vmem:[#allocation8 + $0xeb0] sm:$0xff] %v9808_v2 }
 0x921   :  { %9001 = vst [vmem:[#allocation8 + $0xea8] sm:$0xff] %v9553_v5  ;;  %9003 = vst [vmem:[#allocation8 + $0xeb8] sm:$0xff] %v9809_v6 }
 0x923   :  { %v5791_v7 = vpop.f32.mrb[236].mxu0  ;;  %v8483_v8 = vpop.f32.mrb[236].mxu1 }
 0x924   :  { %v9554_v9 = vadd.f32 %v5791_v7, %v11920_v44  ;;  %v9810_v10 = vadd.f32 %v8483_v8, %v11922_v45  ;;  %v5793_v11 = vpop.f32.mrb[237].mxu0  ;;  %v8485_v12 = vpop.f32.mrb[237].mxu1 }
 0x925   :  { %v9555_v13 = vadd.f32 %v5793_v11, %v11924_v46  ;;  %v9811_v14 = vadd.f32 %v8485_v12, %v11926_v47  ;;  %v5795_v15 = vpop.f32.mrb[238].mxu0  ;;  %v8487_v16 = vpop.f32.mrb[238].mxu1 }
 0x926   :  { %9004 = vst [vmem:[#allocation8 + $0xec0] sm:$0xff] %v9554_v9  ;;  %9006 = vst [vmem:[#allocation8 + $0xed0] sm:$0xff] %v9810_v10  ;;  %v9556_v17 = vadd.f32 %v5795_v15, %v11920_v44  ;;  %v9812_v18 = vadd.f32 %v8487_v16, %v11922_v45  ;;  %v5797_v19 = vpop.f32.mrb[239].mxu0  ;;  %v8489_v20 = vpop.f32.mrb[239].mxu1 }
 0x927   :  { %9005 = vst [vmem:[#allocation8 + $0xec8] sm:$0xff] %v9555_v13  ;;  %9007 = vst [vmem:[#allocation8 + $0xed8] sm:$0xff] %v9811_v14  ;;  %v9557_v21 = vadd.f32 %v5797_v19, %v11924_v46  ;;  %v9813_v22 = vadd.f32 %v8489_v20, %v11926_v47 }
 0x928   :  { %9008 = vst [vmem:[#allocation8 + $0xee0] sm:$0xff] %v9556_v17  ;;  %9010 = vst [vmem:[#allocation8 + $0xef0] sm:$0xff] %v9812_v18 }
 0x929   :  { %9009 = vst [vmem:[#allocation8 + $0xee8] sm:$0xff] %v9557_v21  ;;  %9011 = vst [vmem:[#allocation8 + $0xef8] sm:$0xff] %v9813_v22 }
 0x92b   :  { %v5801_v23 = vpop.f32.mrb[240].mxu0  ;;  %v8493_v24 = vpop.f32.mrb[240].mxu1 }
 0x92c   :  { %v9558_v25 = vadd.f32 %v5801_v23, %v11920_v44  ;;  %v9814_v26 = vadd.f32 %v8493_v24, %v11922_v45  ;;  %v5803_v27 = vpop.f32.mrb[241].mxu0  ;;  %v8495_v28 = vpop.f32.mrb[241].mxu1 }
 0x92d   :  { %v9559_v29 = vadd.f32 %v5803_v27, %v11924_v46  ;;  %v9815_v30 = vadd.f32 %v8495_v28, %v11926_v47  ;;  %v5805_v31 = vpop.f32.mrb[242].mxu0  ;;  %v8497_v32 = vpop.f32.mrb[242].mxu1 }
 0x92e   :  { %9012 = vst [vmem:[#allocation8 + $0xf00] sm:$0xff] %v9558_v25  ;;  %9014 = vst [vmem:[#allocation8 + $0xf10] sm:$0xff] %v9814_v26  ;;  %v9560_v33 = vadd.f32 %v5805_v31, %v11920_v44  ;;  %v9816_v34 = vadd.f32 %v8497_v32, %v11922_v45  ;;  %v5807_v35 = vpop.f32.mrb[243].mxu0  ;;  %v8499_v36 = vpop.f32.mrb[243].mxu1 }
 0x92f   :  { %9013 = vst [vmem:[#allocation8 + $0xf08] sm:$0xff] %v9559_v29  ;;  %9015 = vst [vmem:[#allocation8 + $0xf18] sm:$0xff] %v9815_v30  ;;  %v9561_v37 = vadd.f32 %v5807_v35, %v11924_v46  ;;  %v9817_v38 = vadd.f32 %v8499_v36, %v11926_v47 }
 0x930   :  { %9016 = vst [vmem:[#allocation8 + $0xf20] sm:$0xff] %v9560_v33  ;;  %9018 = vst [vmem:[#allocation8 + $0xf30] sm:$0xff] %v9816_v34 }
 0x931   :  { %9017 = vst [vmem:[#allocation8 + $0xf28] sm:$0xff] %v9561_v37  ;;  %9019 = vst [vmem:[#allocation8 + $0xf38] sm:$0xff] %v9817_v38 }
 0x933   :  { %v5811_v39 = vpop.f32.mrb[244].mxu0  ;;  %v8503_v40 = vpop.f32.mrb[244].mxu1 }
 0x934   :  { %v9562_v41 = vadd.f32 %v5811_v39, %v11920_v44  ;;  %v9818_v42 = vadd.f32 %v8503_v40, %v11922_v45  ;;  %v5813_v43 = vpop.f32.mrb[245].mxu0  ;;  %v8505_v48 = vpop.f32.mrb[245].mxu1 }
 0x935   :  { %v9563_v49 = vadd.f32 %v5813_v43, %v11924_v46  ;;  %v9819_v50 = vadd.f32 %v8505_v48, %v11926_v47  ;;  %v5815_v51 = vpop.f32.mrb[246].mxu0  ;;  %v8507_v52 = vpop.f32.mrb[246].mxu1 }
 0x936   :  { %9020 = vst [vmem:[#allocation8 + $0xf40] sm:$0xff] %v9562_v41  ;;  %9022 = vst [vmem:[#allocation8 + $0xf50] sm:$0xff] %v9818_v42  ;;  %v9564_v53 = vadd.f32 %v5815_v51, %v11920_v44  ;;  %v9820_v54 = vadd.f32 %v8507_v52, %v11922_v45  ;;  %v5817_v55 = vpop.f32.mrb[247].mxu0  ;;  %v8509_v56 = vpop.f32.mrb[247].mxu1 }
 0x937   :  { %9021 = vst [vmem:[#allocation8 + $0xf48] sm:$0xff] %v9563_v49  ;;  %9023 = vst [vmem:[#allocation8 + $0xf58] sm:$0xff] %v9819_v50  ;;  %v9565_v57 = vadd.f32 %v5817_v55, %v11924_v46  ;;  %v9821_v58 = vadd.f32 %v8509_v56, %v11926_v47 }
 0x938   :  { %9024 = vst [vmem:[#allocation8 + $0xf60] sm:$0xff] %v9564_v53  ;;  %9026 = vst [vmem:[#allocation8 + $0xf70] sm:$0xff] %v9820_v54 }
 0x939   :  { %9025 = vst [vmem:[#allocation8 + $0xf68] sm:$0xff] %v9565_v57  ;;  %9027 = vst [vmem:[#allocation8 + $0xf78] sm:$0xff] %v9821_v58 }
 0x93b   :  { %v5821_v59 = vpop.f32.mrb[248].mxu0  ;;  %v8513_v60 = vpop.f32.mrb[248].mxu1 }
 0x93c   :  { %v9566_v61 = vadd.f32 %v5821_v59, %v11920_v44  ;;  %v9822_v62 = vadd.f32 %v8513_v60, %v11922_v45  ;;  %v5823_v63 = vpop.f32.mrb[249].mxu0  ;;  %v8515_v0 = vpop.f32.mrb[249].mxu1 }
 0x93d   :  { %v9567_v1 = vadd.f32 %v5823_v63, %v11924_v46  ;;  %v9823_v2 = vadd.f32 %v8515_v0, %v11926_v47  ;;  %v5825_v3 = vpop.f32.mrb[250].mxu0  ;;  %v8517_v4 = vpop.f32.mrb[250].mxu1 }
 0x93e   :  { %9028 = vst [vmem:[#allocation8 + $0xf80] sm:$0xff] %v9566_v61  ;;  %9030 = vst [vmem:[#allocation8 + $0xf90] sm:$0xff] %v9822_v62  ;;  %v9568_v5 = vadd.f32 %v5825_v3, %v11920_v44  ;;  %v9824_v6 = vadd.f32 %v8517_v4, %v11922_v45  ;;  %v5827_v7 = vpop.f32.mrb[251].mxu0  ;;  %v8519_v8 = vpop.f32.mrb[251].mxu1 }
 0x93f   :  { %9029 = vst [vmem:[#allocation8 + $0xf88] sm:$0xff] %v9567_v1  ;;  %9031 = vst [vmem:[#allocation8 + $0xf98] sm:$0xff] %v9823_v2  ;;  %v9569_v9 = vadd.f32 %v5827_v7, %v11924_v46  ;;  %v9825_v10 = vadd.f32 %v8519_v8, %v11926_v47 }
 0x940   :  { %9032 = vst [vmem:[#allocation8 + $0xfa0] sm:$0xff] %v9568_v5  ;;  %9034 = vst [vmem:[#allocation8 + $0xfb0] sm:$0xff] %v9824_v6 }
 0x941   :  { %9033 = vst [vmem:[#allocation8 + $0xfa8] sm:$0xff] %v9569_v9  ;;  %9035 = vst [vmem:[#allocation8 + $0xfb8] sm:$0xff] %v9825_v10 }
 0x943   :  { %v5831_v11 = vpop.f32.mrb[252].mxu0  ;;  %v8523_v12 = vpop.f32.mrb[252].mxu1 }
 0x944   :  { %v9570_v13 = vadd.f32 %v5831_v11, %v11920_v44  ;;  %v9826_v14 = vadd.f32 %v8523_v12, %v11922_v45  ;;  %v5833_v15 = vpop.f32.mrb[253].mxu0  ;;  %v8525_v16 = vpop.f32.mrb[253].mxu1 }
 0x945   :  { %v9571_v17 = vadd.f32 %v5833_v15, %v11924_v46  ;;  %v9827_v18 = vadd.f32 %v8525_v16, %v11926_v47  ;;  %v5835_v19 = vpop.f32.mrb[254].mxu0  ;;  %v8527_v20 = vpop.f32.mrb[254].mxu1 }
 0x946   :  { %9036 = vst [vmem:[#allocation8 + $0xfc0] sm:$0xff] %v9570_v13  ;;  %9038 = vst [vmem:[#allocation8 + $0xfd0] sm:$0xff] %v9826_v14  ;;  %v9572_v21 = vadd.f32 %v5835_v19, %v11920_v44  ;;  %v9828_v22 = vadd.f32 %v8527_v20, %v11922_v45  ;;  %v5837_v23 = vpop.f32.mrb[255].mxu0  ;;  %v8529_v24 = vpop.f32.mrb[255].mxu1 }
 0x947   :  { %9037 = vst [vmem:[#allocation8 + $0xfc8] sm:$0xff] %v9571_v17  ;;  %9039 = vst [vmem:[#allocation8 + $0xfd8] sm:$0xff] %v9827_v18  ;;  %v9573_v25 = vadd.f32 %v5837_v23, %v11924_v46  ;;  %v9829_v26 = vadd.f32 %v8529_v24, %v11926_v47 }
 0x948   :  { %9040 = vst [vmem:[#allocation8 + $0xfe0] sm:$0xff] %v9572_v21  ;;  %9042 = vst [vmem:[#allocation8 + $0xff0] sm:$0xff] %v9828_v22 }
 0x949   :  { %9041 = vst [vmem:[#allocation8 + $0xfe8] sm:$0xff] %v9573_v25  ;;  %9043 = vst [vmem:[#allocation8 + $0xff8] sm:$0xff] %v9829_v26 }
 0x94a   :  { %11837 = shalt.err (!%p11834_p0)
}
 0x94b   :  { %s11838_s27 = scalar_lea.hbm %s12455_s3, 65536 }
 0x94c   :  { %p11839_p1 = scmp.ne.s32.totalorder %s12455_s3, %s11838_s27  ;;  %p11842_p2 = scmp.lt.u32.totalorder %s11838_s27, %s12455_s3 }
 0x94e   :  { %p11844_p3 = pnand %p11842_p2, %p11839_p1 }
 0x950   :  { %11847 = shalt.err (!%p11844_p3)
}
 0x951   :  { %s11862_s5 = smov 512   ;;  %s11863_s6 = smov 32  }
 0x952   :  { %9055 = dma.vmem_to_hbm [thread:$0]  %s9050_s23, 65536, %s12455_s3, [#allocation4], %s11862_s5, %s11862_s5, %s11863_s6  }
 0x953   :  { %11852 = dma.done.wait [#allocation4], 65536  }
 0x954   :  { %11853 = vsyncadd [#allocation4], 4294901760 }
 0x955   :  { %9059 = vsyncpa [#allocation3], 1 }
 0x956   :  { %9060 = vsyncpa [#allocation6], 1 }
 0x957   :  { %9061 = vsyncpa [#allocation4], 1 }

</bundles_post_ra>
